<compile_context>
chip_gen: v5e
topology: v5e:2x2
jax: 0.10.0
libtpu: 0.0.40
codegen_flags: <defaults>
</compile_context>

<pallas_src>
import math

import numpy as np
import jax
import jax.numpy as jnp
from jax import lax
from jax.experimental import pallas as pl
from jax.experimental.pallas import tpu as pltpu

EPS = 1e-5  # PyTorch BatchNorm2d default eps


# ---------------------------------------------------------------------------
# Generation-aware scoped-VMEM budget (v5e/v6e: 128 MiB physical, v7x: 64 MiB).
# ---------------------------------------------------------------------------
def _vmem_limit_bytes():
    cap = 64 * 1024 * 1024
    try:
        cap = int(getattr(pltpu.get_tpu_info(), "vmem_capacity_bytes", cap))
    except Exception:
        pass
    return int(max(16 * 1024 * 1024, min(cap // 2, 64 * 1024 * 1024)))


def _bn_scale_shift(s, ss, count, gamma, beta):
    mean = s / count
    var = jnp.maximum(ss / count - mean * mean, 0.0)  # biased var (PyTorch training BN)
    scale = gamma * lax.rsqrt(var + EPS)
    shift = beta - mean * scale
    return scale, shift


# ---------------------------------------------------------------------------
# Banded ("Toeplitz") conv weights, built once in the wrapper (constant under jit).
# ---------------------------------------------------------------------------
def _toeplitz_width(w_hwio, w_img):
    """(3,3,Cin,Cout) HWIO -> (3, W*Cin, W*Cout); unpadded width, boundary folded
    into the band zeros (so K = W*Cin exactly)."""
    kh, kw, cin, cout = w_hwio.shape
    xin = jnp.arange(w_img)[:, None]
    xout = jnp.arange(w_img)[None, :]
    dx = xin - xout + 1                                   # kernel column index
    valid = (dx >= 0) & (dx <= kw - 1)
    g = w_hwio[:, jnp.clip(dx, 0, kw - 1)]                # (3, W, W, Cin, Cout)
    g = g * valid[None, :, :, None, None].astype(g.dtype)
    g = jnp.transpose(g, (0, 1, 3, 2, 4))                 # (3, xin, ci, xout, co)
    return g.reshape(kh, w_img * cin, w_img * cout)


def _block2x2(a, b, c, d):
    return jnp.concatenate(
        [jnp.concatenate([a, b], axis=1), jnp.concatenate([c, d], axis=1)], axis=0)


def _encoder_banded(w_hwio, w1):
    """Row-paired + pool-permuted encoder weights: (2*W1*Cin, 6*W1*Cout).

    Input slab row R = [image row 2R | image row 2R+1] in lanes.  Output slab row R is
    laid out as 4 lane quarters [row2R-evencols | row2R-oddcols | row2R+1-evencols |
    row2R+1-oddcols], so the fused 2x2 max-pool is a 4-way lane-quarter max."""
    _, _, cin, cout = w_hwio.shape
    tw = _toeplitz_width(w_hwio, w1)                      # (3, W1*Cin, W1*Cout)
    order = np.concatenate([np.arange(0, w1, 2), np.arange(1, w1, 2)])
    twp = tw.reshape(3, w1 * cin, w1, cout)[:, :, order, :].reshape(
        3, w1 * cin, w1 * cout)
    z = jnp.zeros_like(twp[0])
    # block rows = [image row 2R ; image row 2R+1], block cols = [out row 2R ; out 2R+1]
    b_up = _block2x2(z, z, twp[0], z)          # slab R-1: image row 2R-1 -> out 2R (dy=0)
    b_mid = _block2x2(twp[1], twp[0], twp[2], twp[1])
    b_down = _block2x2(z, twp[2], z, z)        # slab R+1: image row 2R+2 -> out 2R+1 (dy=2)
    return jnp.concatenate([b_up, b_mid, b_down], axis=1)


def _decoder_banded(w_hwio, w2):
    td = _toeplitz_width(w_hwio, w2)                      # (3, W2*Cin, W2*Cout)
    return jnp.concatenate([td[0], td[1], td[2]], axis=1)  # (W2*Cin, 3*W2*Cout)


# ---------------------------------------------------------------------------
# Kernel 1: fused folded-BN + ReLU + Conv3x3 (+ 2x2 max-pool) on the encoder,
# folded-BN + ReLU + Conv3x3 on the decoder, skip-add, and per-batch BN stats of s.
# One grid step == one image (grid=(N,), "parallel").
# ---------------------------------------------------------------------------
def _make_conv_pool_skip_kernel(h2, w1, w2, d):
    q = 2 * w1 * d      # encoder output lanes per dy-part (two conv rows, permuted cols)
    wd = w2 * d         # pooled / decoder output lanes (= q // 4)

    def kernel(x1_ref, x2_ref, sc1_ref, sh1_ref, sc2_ref, sh2_ref,
               benc_ref, tdec_ref, be_ref, bd_ref, s_ref, st_ref):
        rows = lax.broadcasted_iota(jnp.int32, (h2 + 2, 1), 0)
        interior = (rows >= 1) & (rows <= h2)             # zero the vertical halo rows

        # ---- encoder: folded BN + ReLU + conv3x3 + fused 2x2 max-pool ----
        a1 = jnp.maximum(x1_ref[0] * sc1_ref[...] + sh1_ref[...], 0.0)
        a1 = jnp.where(interior, a1, 0.0)
        f1 = jnp.dot(a1, benc_ref[...], preferred_element_type=jnp.float32)  # (h2+2, 3q)
        eo = (f1[0:h2, 0:q]
              + f1[1:h2 + 1, q:2 * q]
              + f1[2:h2 + 2, 2 * q:3 * q])                                   # (h2, q)
        enc = jnp.maximum(jnp.maximum(eo[:, 0:wd], eo[:, wd:2 * wd]),
                          jnp.maximum(eo[:, 2 * wd:3 * wd], eo[:, 3 * wd:4 * wd]))
        enc = enc + be_ref[...]                                              # (h2, wd)

        # ---- decoder: folded BN + ReLU + conv3x3 + skip add ----
        a2 = jnp.maximum(x2_ref[0] * sc2_ref[...] + sh2_ref[...], 0.0)
        a2 = jnp.where(interior, a2, 0.0)
        f2 = jnp.dot(a2, tdec_ref[...], preferred_element_type=jnp.float32)  # (h2+2, 3wd)
        dec = (f2[0:h2, 0:wd]
               + f2[1:h2 + 1, wd:2 * wd]
               + f2[2:h2 + 2, 2 * wd:3 * wd])
        s = enc + dec + bd_ref[...]
        s_ref[0] = s

        # ---- per-batch BN statistics of s (row-reduced, lane-dense) ----
        st_ref[0, 0:1, :] = jnp.sum(s, axis=0, keepdims=True)
        st_ref[0, 1:2, :] = jnp.sum(s * s, axis=0, keepdims=True)

    return kernel


# ---------------------------------------------------------------------------
# Kernel 2: fused attention gate: folded-BN + ReLU + 1x1 conv (block-diagonal matmul
# over the (W*D) lane layout) + bias + multiply with x2.
# ---------------------------------------------------------------------------
def _gate_kernel(s_ref, x2_ref, sc_ref, sh_ref, m_ref, b_ref, o_ref):
    h = jnp.maximum(s_ref[0] * sc_ref[...] + sh_ref[...], 0.0)          # (h2, w2*d)
    attn = jnp.dot(h, m_ref[...], preferred_element_type=jnp.float32)   # (h2, w2*cd)
    o_ref[0] = (attn + b_ref[...]) * x2_ref[0]


# ---------------------------------------------------------------------------
# Full forward pass (matches AttentionBlock.forward).
# ---------------------------------------------------------------------------
def attention_block_forward(x1_nchw, x2_nchw, p):
    n, ce, h1, w1 = x1_nchw.shape
    n2, cd, h2, w2 = x2_nchw.shape
    d = p["w_enc"].shape[-1]
    assert n == n2 and h1 == 2 * h2 and w1 == 2 * w2
    wd = w2 * d
    vmem = _vmem_limit_bytes()

    # ---- pass 1: BN batch stats of the raw inputs (plain jnp; fused by XLA) ----
    s1 = jnp.sum(x1_nchw, axis=(0, 2, 3))
    q1 = jnp.sum(x1_nchw * x1_nchw, axis=(0, 2, 3))
    s2 = jnp.sum(x2_nchw, axis=(0, 2, 3))
    q2 = jnp.sum(x2_nchw * x2_nchw, axis=(0, 2, 3))
    sc1, sh1 = _bn_scale_shift(s1, q1, n * h1 * w1, p["g_enc"], p["b_enc"])
    sc2, sh2 = _bn_scale_shift(s2, q2, n * h2 * w2, p["g_dec"], p["b_dec"])

    # ---- lane-dense slabs; encoder rows are paired [row 2R | row 2R+1] ----
    x1_slab = jnp.transpose(x1_nchw, (0, 2, 3, 1)).reshape(n, h2, 2 * w1 * ce)
    x1_slab = jnp.pad(x1_slab, ((0, 0), (1, 1), (0, 0)))            # vertical halo
    x2_rows = jnp.transpose(x2_nchw, (0, 2, 3, 1)).reshape(n, h2, w2 * cd)
    x2_slab = jnp.pad(x2_rows, ((0, 0), (1, 1), (0, 0)))

    # ---- banded conv weights and folded-BN broadcast rows ----
    benc = _encoder_banded(p["w_enc"], w1)                          # (2*w1*ce, 6*w1*d)
    tdec = _decoder_banded(p["w_dec"], w2)                          # (w2*cd, 3*wd)
    sc1_row = jnp.tile(sc1, 2 * w1).reshape(1, 2 * w1 * ce)
    sh1_row = jnp.tile(sh1, 2 * w1).reshape(1, 2 * w1 * ce)
    sc2_row = jnp.tile(sc2, w2).reshape(1, w2 * cd)
    sh2_row = jnp.tile(sh2, w2).reshape(1, w2 * cd)
    be_row = jnp.tile(p["bias_enc"], w2).reshape(1, wd)
    bd_row = jnp.tile(p["bias_dec"], w2).reshape(1, wd)

    conv_cost = pl.CostEstimate(
        flops=2 * n * (h2 + 2) * ((2 * w1 * ce) * (6 * w1 * d) + (w2 * cd) * (3 * wd)),
        transcendentals=0,
        bytes_accessed=4 * (x1_slab.size + x2_slab.size + benc.size + tdec.size
                            + n * h2 * wd + n * 2 * wd))

    s, st = pl.pallas_call(
        _make_conv_pool_skip_kernel(h2, w1, w2, d),
        out_shape=(jax.ShapeDtypeStruct((n, h2, wd), jnp.float32),
                   jax.ShapeDtypeStruct((n, 2, wd), jnp.float32)),
        grid=(n,),
        in_specs=[
            pl.BlockSpec((1, h2 + 2, 2 * w1 * ce), lambda i: (i, 0, 0)),
            pl.BlockSpec((1, h2 + 2, w2 * cd), lambda i: (i, 0, 0)),
            pl.BlockSpec((1, 2 * w1 * ce), lambda i: (0, 0)),
            pl.BlockSpec((1, 2 * w1 * ce), lambda i: (0, 0)),
            pl.BlockSpec((1, w2 * cd), lambda i: (0, 0)),
            pl.BlockSpec((1, w2 * cd), lambda i: (0, 0)),
            pl.BlockSpec((2 * w1 * ce, 6 * w1 * d), lambda i: (0, 0)),
            pl.BlockSpec((w2 * cd, 3 * wd), lambda i: (0, 0)),
            pl.BlockSpec((1, wd), lambda i: (0, 0)),
            pl.BlockSpec((1, wd), lambda i: (0, 0)),
        ],
        out_specs=(
            pl.BlockSpec((1, h2, wd), lambda i: (i, 0, 0)),
            pl.BlockSpec((1, 2, wd), lambda i: (i, 0, 0)),
        ),
        compiler_params=pltpu.CompilerParams(
            dimension_semantics=("parallel",), vmem_limit_bytes=vmem),
        cost_estimate=conv_cost,
    )(x1_slab, x2_slab, sc1_row, sh1_row, sc2_row, sh2_row, benc, tdec, be_row, bd_row)

    # ---- attention-BN scale/shift from the fused per-batch partial sums ----
    st = jnp.sum(st, axis=0)                                        # (2, wd)
    ssum = st[0].reshape(w2, d).sum(axis=0)
    ssq = st[1].reshape(w2, d).sum(axis=0)
    sca, sha = _bn_scale_shift(ssum, ssq, n * h2 * w2, p["g_attn"], p["b_attn"])
    sca_row = jnp.tile(sca, w2).reshape(1, wd)
    sha_row = jnp.tile(sha, w2).reshape(1, wd)

    # block-diagonal 1x1-conv matrix: lane c*D+dch -> lane c*Cd+ci with value w_attn[dch]
    # TODO(synk): (W*D, W*Cd) is quadratic in W with ~1/W nonzeros; fine at W=16, but at
    # large W tile it block-diagonally or switch to elementwise mul + lane-group reduce.
    m = (jnp.eye(w2, dtype=jnp.float32)[:, None, :, None]
         * p["w_attn"].reshape(1, d, 1, 1)
         * jnp.ones((1, 1, 1, cd), jnp.float32)).reshape(wd, w2 * cd)
    ba_row = jnp.broadcast_to(p["bias_attn"].reshape(1, 1), (1, w2 * cd))

    gate_cost = pl.CostEstimate(
        flops=2 * n * h2 * wd * (w2 * cd),
        transcendentals=0,
        bytes_accessed=4 * (s.size + x2_rows.size + m.size + n * h2 * w2 * cd))

    out = pl.pallas_call(
        _gate_kernel,
        out_shape=jax.ShapeDtypeStruct((n, h2, w2 * cd), jnp.float32),
        grid=(n,),
        in_specs=[
            pl.BlockSpec((1, h2, wd), lambda i: (i, 0, 0)),
            pl.BlockSpec((1, h2, w2 * cd), lambda i: (i, 0, 0)),
            pl.BlockSpec((1, wd), lambda i: (0, 0)),
            pl.BlockSpec((1, wd), lambda i: (0, 0)),
            pl.BlockSpec((wd, w2 * cd), lambda i: (0, 0)),
            pl.BlockSpec((1, w2 * cd), lambda i: (0, 0)),
        ],
        out_specs=pl.BlockSpec((1, h2, w2 * cd), lambda i: (i, 0, 0)),
        compiler_params=pltpu.CompilerParams(
            dimension_semantics=("parallel",), vmem_limit_bytes=vmem),
        cost_estimate=gate_cost,
    )(s, x2_rows, sca_row, sha_row, m, ba_row)

    out = out.reshape(n, h2, w2, cd)
    return jnp.transpose(out, (0, 3, 1, 2))                         # NHWC -> NCHW


# ---------------------------------------------------------------------------
# Deterministic parameter init (shapes from AttentionBlock.__init__).
# ---------------------------------------------------------------------------
def init_params(key, ce, cd, d):
    ks = jax.random.split(key, 12)

    def u(k, shape, fan_in):
        bound = 1.0 / math.sqrt(fan_in)
        return jax.random.uniform(k, shape, jnp.float32, -bound, bound)

    return dict(
        g_enc=1.0 + 0.1 * jax.random.normal(ks[0], (ce,), jnp.float32),
        b_enc=0.1 * jax.random.normal(ks[1], (ce,), jnp.float32),
        w_enc=u(ks[2], (3, 3, ce, d), ce * 9),
        bias_enc=u(ks[3], (d,), ce * 9),
        g_dec=1.0 + 0.1 * jax.random.normal(ks[4], (cd,), jnp.float32),
        b_dec=0.1 * jax.random.normal(ks[5], (cd,), jnp.float32),
        w_dec=u(ks[6], (3, 3, cd, d), cd * 9),
        bias_dec=u(ks[7], (d,), cd * 9),
        g_attn=1.0 + 0.1 * jax.random.normal(ks[8], (d,), jnp.float32),
        b_attn=0.1 * jax.random.normal(ks[9], (d,), jnp.float32),
        w_attn=u(ks[10], (d,), d),
        bias_attn=u(ks[11], (1,), d),
    )


# ---------------------------------------------------------------------------
# Pure-JAX f32 reference (same math, NCHW) for the correctness check.
# ---------------------------------------------------------------------------
def reference_forward(x1, x2, p):
    def bn_relu_ref(x, g, b):
        mean = x.mean(axis=(0, 2, 3), keepdims=True)
        var = ((x - mean) ** 2).mean(axis=(0, 2, 3), keepdims=True)
        xn = (x - mean) / jnp.sqrt(var + EPS) * g.reshape(1, -1, 1, 1) + b.reshape(1, -1, 1, 1)
        return jnp.maximum(xn, 0.0)

    def conv(x, w, b):
        out = lax.conv_general_dilated(x, w, (1, 1), "SAME",
                                       dimension_numbers=("NCHW", "HWIO", "NCHW"))
        return out + b.reshape(1, -1, 1, 1)

    enc = conv(bn_relu_ref(x1, p["g_enc"], p["b_enc"]), p["w_enc"], p["bias_enc"])
    n, c, hh, ww = enc.shape
    enc = enc.reshape(n, c, hh // 2, 2, ww // 2, 2).max(axis=(3, 5))
    dec = conv(bn_relu_ref(x2, p["g_dec"], p["b_dec"]), p["w_dec"], p["bias_dec"])
    out = bn_relu_ref(enc + dec, p["g_attn"], p["b_attn"])
    attn = conv(out, p["w_attn"].reshape(1, 1, -1, 1), p["bias_attn"])
    return attn * x2


if __name__ == "__main__":
    N, Ce, Cd, D = 2, 4, 4, 8
    H, W = 16, 16  # decoder (x2) spatial; encoder (x1) is 2H x 2W

    key = jax.random.PRNGKey(0)
    k1, k2, kp = jax.random.split(key, 3)
    x1 = jax.random.normal(k1, (N, Ce, 2 * H, 2 * W), jnp.float32)
    x2 = jax.random.normal(k2, (N, Cd, H, W), jnp.float32)
    params = init_params(kp, Ce, Cd, D)

    fwd = jax.jit(attention_block_forward)
    out = fwd(x1, x2, params)
    jax.block_until_ready(out)

    ref = reference_forward(x1, x2, params)
    np.testing.assert_allclose(np.asarray(out), np.asarray(ref), rtol=2e-2, atol=2e-2)
    print("KERNEL_OK")
</pallas_src>

<mosaic_0001>
module attributes {stable_mosaic.version = 11 : i64} {
  func.func @kernel(%arg0: i32, %arg1: memref<1x18x256xf32, #tpu.memory_space<vmem>>, %arg2: memref<1x18x64xf32, #tpu.memory_space<vmem>>, %arg3: memref<1x256xf32, #tpu.memory_space<vmem>>, %arg4: memref<1x256xf32, #tpu.memory_space<vmem>>, %arg5: memref<1x64xf32, #tpu.memory_space<vmem>>, %arg6: memref<1x64xf32, #tpu.memory_space<vmem>>, %arg7: memref<256x1536xf32, #tpu.memory_space<vmem>>, %arg8: memref<64x384xf32, #tpu.memory_space<vmem>>, %arg9: memref<1x128xf32, #tpu.memory_space<vmem>>, %arg10: memref<1x128xf32, #tpu.memory_space<vmem>>, %arg11: memref<1x16x128xf32, #tpu.memory_space<vmem>>, %arg12: memref<1x2x128xf32, #tpu.memory_space<vmem>>) attributes {dimension_semantics = [#tpu.dimension_semantics<parallel>], iteration_bounds = array<i64: 2>, scalar_prefetch = 0 : i64, scratch_operands = 0 : i64, tpu.core_type = #tpu.core_type<tc>, window_params = [{transform_indices = @transform_0, window_bounds = array<i64: 1, 18, 256>}, {transform_indices = @transform_1, window_bounds = array<i64: 1, 18, 64>}, {pipeline_mode = #tpu.pipeline_mode<synchronous>, transform_indices = @transform_2, window_bounds = array<i64: 1, 256>}, {pipeline_mode = #tpu.pipeline_mode<synchronous>, transform_indices = @transform_3, window_bounds = array<i64: 1, 256>}, {pipeline_mode = #tpu.pipeline_mode<synchronous>, transform_indices = @transform_4, window_bounds = array<i64: 1, 64>}, {pipeline_mode = #tpu.pipeline_mode<synchronous>, transform_indices = @transform_5, window_bounds = array<i64: 1, 64>}, {pipeline_mode = #tpu.pipeline_mode<synchronous>, transform_indices = @transform_6, window_bounds = array<i64: 256, 1536>}, {pipeline_mode = #tpu.pipeline_mode<synchronous>, transform_indices = @transform_7, window_bounds = array<i64: 64, 384>}, {pipeline_mode = #tpu.pipeline_mode<synchronous>, transform_indices = @transform_8, window_bounds = array<i64: 1, 128>}, {pipeline_mode = #tpu.pipeline_mode<synchronous>, transform_indices = @transform_9, window_bounds = array<i64: 1, 128>}, {transform_indices = @transform_10, window_bounds = array<i64: 1, 16, 128>}, {transform_indices = @transform_11, window_bounds = array<i64: 1, 2, 128>}]} {
    %0 = tpu.iota {dimensions = array<i32: 0>} : vector<18x1xi32>
    %c1_i32 = arith.constant 1 : i32
    %1 = vector.broadcast %c1_i32 : i32 to vector<18x1xi32>
    %2 = arith.cmpi sge, %0, %1 : vector<18x1xi32>
    %c16_i32 = arith.constant 16 : i32
    %3 = vector.broadcast %c16_i32 : i32 to vector<18x1xi32>
    %4 = arith.cmpi sle, %0, %3 : vector<18x1xi32>
    %5 = arith.andi %2, %4 : vector<18x1xi1>
    %c0 = arith.constant 0 : index
    %c0_0 = arith.constant 0 : index
    %c0_1 = arith.constant 0 : index
    %6 = vector.load %arg1[%c0, %c0_0, %c0_1] : memref<1x18x256xf32, #tpu.memory_space<vmem>>, vector<1x18x256xf32>
    %7 = vector.shape_cast %6 : vector<1x18x256xf32> to vector<18x256xf32>
    %c0_2 = arith.constant 0 : index
    %c0_3 = arith.constant 0 : index
    %8 = vector.load %arg3[%c0_2, %c0_3] : memref<1x256xf32, #tpu.memory_space<vmem>>, vector<1x256xf32>
    %9 = vector.broadcast %8 : vector<1x256xf32> to vector<18x256xf32>
    %10 = arith.mulf %7, %9 : vector<18x256xf32>
    %c0_4 = arith.constant 0 : index
    %c0_5 = arith.constant 0 : index
    %11 = vector.load %arg4[%c0_4, %c0_5] : memref<1x256xf32, #tpu.memory_space<vmem>>, vector<1x256xf32>
    %12 = vector.broadcast %11 : vector<1x256xf32> to vector<18x256xf32>
    %13 = arith.addf %10, %12 : vector<18x256xf32>
    %cst = arith.constant 0.000000e+00 : f32
    %14 = vector.broadcast %cst : f32 to vector<18x256xf32>
    %15 = arith.maximumf %13, %14 : vector<18x256xf32>
    %cst_6 = arith.constant 0.000000e+00 : f32
    %16 = vector.shape_cast %5 : vector<18x1xi1> to vector<18x1xi1>
    %17 = vector.broadcast %16 : vector<18x1xi1> to vector<18x256xi1>
    %18 = vector.broadcast %cst_6 : f32 to vector<18x256xf32>
    %19 = arith.select %17, %15, %18 : vector<18x256xi1>, vector<18x256xf32>
    %c0_7 = arith.constant 0 : index
    %c0_8 = arith.constant 0 : index
    %20 = vector.load %arg7[%c0_7, %c0_8] : memref<256x1536xf32, #tpu.memory_space<vmem>>, vector<256x1536xf32>
    %cst_9 = arith.constant dense<0.000000e+00> : vector<18x1536xf32>
    %21 = tpu.matmul %19, %20, %cst_9 {dimension_numbers = #tpu.dot_dimension_numbers<[1], [0], [0], [1], [0, 0, 1, 1], [], []>} : vector<18x256xf32>, vector<256x1536xf32>, vector<18x1536xf32> -> vector<18x1536xf32>
    %22 = vector.extract_strided_slice %21 {offsets = [0, 0], sizes = [16, 512], strides = [1, 1]} : vector<18x1536xf32> to vector<16x512xf32>
    %23 = vector.extract_strided_slice %21 {offsets = [1, 512], sizes = [16, 512], strides = [1, 1]} : vector<18x1536xf32> to vector<16x512xf32>
    %24 = arith.addf %22, %23 : vector<16x512xf32>
    %25 = vector.extract_strided_slice %21 {offsets = [2, 1024], sizes = [16, 512], strides = [1, 1]} : vector<18x1536xf32> to vector<16x512xf32>
    %26 = arith.addf %24, %25 : vector<16x512xf32>
    %27 = vector.extract_strided_slice %26 {offsets = [0, 0], sizes = [16, 128], strides = [1, 1]} : vector<16x512xf32> to vector<16x128xf32>
    %28 = vector.extract_strided_slice %26 {offsets = [0, 128], sizes = [16, 128], strides = [1, 1]} : vector<16x512xf32> to vector<16x128xf32>
    %29 = arith.maximumf %27, %28 : vector<16x128xf32>
    %30 = vector.extract_strided_slice %26 {offsets = [0, 256], sizes = [16, 128], strides = [1, 1]} : vector<16x512xf32> to vector<16x128xf32>
    %31 = vector.extract_strided_slice %26 {offsets = [0, 384], sizes = [16, 128], strides = [1, 1]} : vector<16x512xf32> to vector<16x128xf32>
    %32 = arith.maximumf %30, %31 : vector<16x128xf32>
    %33 = arith.maximumf %29, %32 : vector<16x128xf32>
    %c0_10 = arith.constant 0 : index
    %c0_11 = arith.constant 0 : index
    %34 = vector.load %arg9[%c0_10, %c0_11] : memref<1x128xf32, #tpu.memory_space<vmem>>, vector<1x128xf32>
    %35 = vector.broadcast %34 : vector<1x128xf32> to vector<16x128xf32>
    %36 = arith.addf %33, %35 : vector<16x128xf32>
    %c0_12 = arith.constant 0 : index
    %c0_13 = arith.constant 0 : index
    %c0_14 = arith.constant 0 : index
    %37 = vector.load %arg2[%c0_12, %c0_13, %c0_14] : memref<1x18x64xf32, #tpu.memory_space<vmem>>, vector<1x18x64xf32>
    %38 = vector.shape_cast %37 : vector<1x18x64xf32> to vector<18x64xf32>
    %c0_15 = arith.constant 0 : index
    %c0_16 = arith.constant 0 : index
    %39 = vector.load %arg5[%c0_15, %c0_16] : memref<1x64xf32, #tpu.memory_space<vmem>>, vector<1x64xf32>
    %40 = vector.broadcast %39 : vector<1x64xf32> to vector<18x64xf32>
    %41 = arith.mulf %38, %40 : vector<18x64xf32>
    %c0_17 = arith.constant 0 : index
    %c0_18 = arith.constant 0 : index
    %42 = vector.load %arg6[%c0_17, %c0_18] : memref<1x64xf32, #tpu.memory_space<vmem>>, vector<1x64xf32>
    %43 = vector.broadcast %42 : vector<1x64xf32> to vector<18x64xf32>
    %44 = arith.addf %41, %43 : vector<18x64xf32>
    %cst_19 = arith.constant 0.000000e+00 : f32
    %45 = vector.broadcast %cst_19 : f32 to vector<18x64xf32>
    %46 = arith.maximumf %44, %45 : vector<18x64xf32>
    %cst_20 = arith.constant 0.000000e+00 : f32
    %47 = vector.shape_cast %5 : vector<18x1xi1> to vector<18x1xi1>
    %48 = vector.broadcast %47 : vector<18x1xi1> to vector<18x64xi1>
    %49 = vector.broadcast %cst_20 : f32 to vector<18x64xf32>
    %50 = arith.select %48, %46, %49 : vector<18x64xi1>, vector<18x64xf32>
    %c0_21 = arith.constant 0 : index
    %c0_22 = arith.constant 0 : index
    %51 = vector.load %arg8[%c0_21, %c0_22] : memref<64x384xf32, #tpu.memory_space<vmem>>, vector<64x384xf32>
    %cst_23 = arith.constant dense<0.000000e+00> : vector<18x384xf32>
    %52 = tpu.matmul %50, %51, %cst_23 {dimension_numbers = #tpu.dot_dimension_numbers<[1], [0], [0], [1], [0, 0, 1, 1], [], []>} : vector<18x64xf32>, vector<64x384xf32>, vector<18x384xf32> -> vector<18x384xf32>
    %53 = vector.extract_strided_slice %52 {offsets = [0, 0], sizes = [16, 128], strides = [1, 1]} : vector<18x384xf32> to vector<16x128xf32>
    %54 = vector.extract_strided_slice %52 {offsets = [1, 128], sizes = [16, 128], strides = [1, 1]} : vector<18x384xf32> to vector<16x128xf32>
    %55 = arith.addf %53, %54 : vector<16x128xf32>
    %56 = vector.extract_strided_slice %52 {offsets = [2, 256], sizes = [16, 128], strides = [1, 1]} : vector<18x384xf32> to vector<16x128xf32>
    %57 = arith.addf %55, %56 : vector<16x128xf32>
    %58 = arith.addf %36, %57 : vector<16x128xf32>
    %c0_24 = arith.constant 0 : index
    %c0_25 = arith.constant 0 : index
    %59 = vector.load %arg10[%c0_24, %c0_25] : memref<1x128xf32, #tpu.memory_space<vmem>>, vector<1x128xf32>
    %60 = vector.broadcast %59 : vector<1x128xf32> to vector<16x128xf32>
    %61 = arith.addf %58, %60 : vector<16x128xf32>
    %c0_26 = arith.constant 0 : index
    %c0_27 = arith.constant 0 : index
    %c0_28 = arith.constant 0 : index
    %62 = vector.load %arg11[%c0_26, %c0_27, %c0_28] : memref<1x16x128xf32, #tpu.memory_space<vmem>>, vector<1x16x128xf32>
    %63 = vector.shape_cast %62 : vector<1x16x128xf32> to vector<16x128xf32>
    %64 = vector.shape_cast %61 : vector<16x128xf32> to vector<1x16x128xf32>
    tpu.vector_store %arg11[%c0_26, %c0_27, %c0_28], %64 {strides = array<i32>} : memref<1x16x128xf32, #tpu.memory_space<vmem>>, vector<1x16x128xf32>,
    %cst_29 = arith.constant dense<0.000000e+00> : vector<128xf32>
    %65 = vector.multi_reduction <add>, %61, %cst_29 [0] : vector<16x128xf32> to vector<128xf32>
    %66 = vector.shape_cast %65 : vector<128xf32> to vector<1x128xf32>
    %c0_30 = arith.constant 0 : index
    %c0_31 = arith.constant 0 : index
    %c0_32 = arith.constant 0 : index
    %67 = vector.load %arg12[%c0_30, %c0_31, %c0_32] : memref<1x2x128xf32, #tpu.memory_space<vmem>>, vector<1x1x128xf32>
    %68 = vector.shape_cast %67 : vector<1x1x128xf32> to vector<1x128xf32>
    %69 = vector.shape_cast %66 : vector<1x128xf32> to vector<1x1x128xf32>
    tpu.vector_store %arg12[%c0_30, %c0_31, %c0_32], %69 {strides = array<i32>} : memref<1x2x128xf32, #tpu.memory_space<vmem>>, vector<1x1x128xf32>,
    %70 = arith.mulf %61, %61 : vector<16x128xf32>
    %cst_33 = arith.constant dense<0.000000e+00> : vector<128xf32>
    %71 = vector.multi_reduction <add>, %70, %cst_33 [0] : vector<16x128xf32> to vector<128xf32>
    %72 = vector.shape_cast %71 : vector<128xf32> to vector<1x128xf32>
    %c0_34 = arith.constant 0 : index
    %c1 = arith.constant 1 : index
    %c0_35 = arith.constant 0 : index
    %73 = vector.load %arg12[%c0_34, %c1, %c0_35] : memref<1x2x128xf32, #tpu.memory_space<vmem>>, vector<1x1x128xf32>
    %74 = vector.shape_cast %73 : vector<1x1x128xf32> to vector<1x128xf32>
    %75 = vector.shape_cast %72 : vector<1x128xf32> to vector<1x1x128xf32>
    tpu.vector_store %arg12[%c0_34, %c1, %c0_35], %75 {strides = array<i32>} : memref<1x2x128xf32, #tpu.memory_space<vmem>>, vector<1x1x128xf32>,
    return
  }
  func.func @transform_0(%arg0: i32) -> (i32, i32, i32) {
    %c0_i32 = arith.constant 0 : i32
    %c0_i32_0 = arith.constant 0 : i32
    %c0_i32_1 = arith.constant 0 : i32
    return %arg0, %c0_i32, %c0_i32_0 : i32, i32, i32
  }
  func.func @transform_1(%arg0: i32) -> (i32, i32, i32) {
    %c0_i32 = arith.constant 0 : i32
    %c0_i32_0 = arith.constant 0 : i32
    %c0_i32_1 = arith.constant 0 : i32
    return %arg0, %c0_i32, %c0_i32_0 : i32, i32, i32
  }
  func.func @transform_2(%arg0: i32) -> (i32, i32) {
    %c0_i32 = arith.constant 0 : i32
    %c0_i32_0 = arith.constant 0 : i32
    %c0_i32_1 = arith.constant 0 : i32
    return %c0_i32, %c0_i32_0 : i32, i32
  }
  func.func @transform_3(%arg0: i32) -> (i32, i32) {
    %c0_i32 = arith.constant 0 : i32
    %c0_i32_0 = arith.constant 0 : i32
    %c0_i32_1 = arith.constant 0 : i32
    return %c0_i32, %c0_i32_0 : i32, i32
  }
  func.func @transform_4(%arg0: i32) -> (i32, i32) {
    %c0_i32 = arith.constant 0 : i32
    %c0_i32_0 = arith.constant 0 : i32
    %c0_i32_1 = arith.constant 0 : i32
    return %c0_i32, %c0_i32_0 : i32, i32
  }
  func.func @transform_5(%arg0: i32) -> (i32, i32) {
    %c0_i32 = arith.constant 0 : i32
    %c0_i32_0 = arith.constant 0 : i32
    %c0_i32_1 = arith.constant 0 : i32
    return %c0_i32, %c0_i32_0 : i32, i32
  }
  func.func @transform_6(%arg0: i32) -> (i32, i32) {
    %c0_i32 = arith.constant 0 : i32
    %c0_i32_0 = arith.constant 0 : i32
    %c0_i32_1 = arith.constant 0 : i32
    return %c0_i32, %c0_i32_0 : i32, i32
  }
  func.func @transform_7(%arg0: i32) -> (i32, i32) {
    %c0_i32 = arith.constant 0 : i32
    %c0_i32_0 = arith.constant 0 : i32
    %c0_i32_1 = arith.constant 0 : i32
    return %c0_i32, %c0_i32_0 : i32, i32
  }
  func.func @transform_8(%arg0: i32) -> (i32, i32) {
    %c0_i32 = arith.constant 0 : i32
    %c0_i32_0 = arith.constant 0 : i32
    %c0_i32_1 = arith.constant 0 : i32
    return %c0_i32, %c0_i32_0 : i32, i32
  }
  func.func @transform_9(%arg0: i32) -> (i32, i32) {
    %c0_i32 = arith.constant 0 : i32
    %c0_i32_0 = arith.constant 0 : i32
    %c0_i32_1 = arith.constant 0 : i32
    return %c0_i32, %c0_i32_0 : i32, i32
  }
  func.func @transform_10(%arg0: i32) -> (i32, i32, i32) {
    %c0_i32 = arith.constant 0 : i32
    %c0_i32_0 = arith.constant 0 : i32
    %c0_i32_1 = arith.constant 0 : i32
    return %arg0, %c0_i32, %c0_i32_0 : i32, i32, i32
  }
  func.func @transform_11(%arg0: i32) -> (i32, i32, i32) {
    %c0_i32 = arith.constant 0 : i32
    %c0_i32_0 = arith.constant 0 : i32
    %c0_i32_1 = arith.constant 0 : i32
    return %arg0, %c0_i32, %c0_i32_0 : i32, i32, i32
  }
}

module attributes {stable_mosaic.version = 11 : i64} {
  func.func @_gate_kernel(%arg0: i32, %arg1: memref<1x16x128xf32, #tpu.memory_space<vmem>>, %arg2: memref<1x16x64xf32, #tpu.memory_space<vmem>>, %arg3: memref<1x128xf32, #tpu.memory_space<vmem>>, %arg4: memref<1x128xf32, #tpu.memory_space<vmem>>, %arg5: memref<128x64xf32, #tpu.memory_space<vmem>>, %arg6: memref<1x64xf32, #tpu.memory_space<vmem>>, %arg7: memref<1x16x64xf32, #tpu.memory_space<vmem>>) attributes {dimension_semantics = [#tpu.dimension_semantics<parallel>], iteration_bounds = array<i64: 2>, scalar_prefetch = 0 : i64, scratch_operands = 0 : i64, tpu.core_type = #tpu.core_type<tc>, window_params = [{transform_indices = @transform_0, window_bounds = array<i64: 1, 16, 128>}, {transform_indices = @transform_1, window_bounds = array<i64: 1, 16, 64>}, {pipeline_mode = #tpu.pipeline_mode<synchronous>, transform_indices = @transform_2, window_bounds = array<i64: 1, 128>}, {pipeline_mode = #tpu.pipeline_mode<synchronous>, transform_indices = @transform_3, window_bounds = array<i64: 1, 128>}, {pipeline_mode = #tpu.pipeline_mode<synchronous>, transform_indices = @transform_4, window_bounds = array<i64: 128, 64>}, {pipeline_mode = #tpu.pipeline_mode<synchronous>, transform_indices = @transform_5, window_bounds = array<i64: 1, 64>}, {transform_indices = @transform_6, window_bounds = array<i64: 1, 16, 64>}]} {
    %c0 = arith.constant 0 : index
    %c0_0 = arith.constant 0 : index
    %c0_1 = arith.constant 0 : index
    %0 = vector.load %arg1[%c0, %c0_0, %c0_1] : memref<1x16x128xf32, #tpu.memory_space<vmem>>, vector<1x16x128xf32>
    %1 = vector.shape_cast %0 : vector<1x16x128xf32> to vector<16x128xf32>
    %c0_2 = arith.constant 0 : index
    %c0_3 = arith.constant 0 : index
    %2 = vector.load %arg3[%c0_2, %c0_3] : memref<1x128xf32, #tpu.memory_space<vmem>>, vector<1x128xf32>
    %3 = vector.broadcast %2 : vector<1x128xf32> to vector<16x128xf32>
    %4 = arith.mulf %1, %3 : vector<16x128xf32>
    %c0_4 = arith.constant 0 : index
    %c0_5 = arith.constant 0 : index
    %5 = vector.load %arg4[%c0_4, %c0_5] : memref<1x128xf32, #tpu.memory_space<vmem>>, vector<1x128xf32>
    %6 = vector.broadcast %5 : vector<1x128xf32> to vector<16x128xf32>
    %7 = arith.addf %4, %6 : vector<16x128xf32>
    %cst = arith.constant 0.000000e+00 : f32
    %8 = vector.broadcast %cst : f32 to vector<16x128xf32>
    %9 = arith.maximumf %7, %8 : vector<16x128xf32>
    %c0_6 = arith.constant 0 : index
    %c0_7 = arith.constant 0 : index
    %10 = vector.load %arg5[%c0_6, %c0_7] : memref<128x64xf32, #tpu.memory_space<vmem>>, vector<128x64xf32>
    %cst_8 = arith.constant dense<0.000000e+00> : vector<16x64xf32>
    %11 = tpu.matmul %9, %10, %cst_8 {dimension_numbers = #tpu.dot_dimension_numbers<[1], [0], [0], [1], [0, 0, 1, 1], [], []>} : vector<16x128xf32>, vector<128x64xf32>, vector<16x64xf32> -> vector<16x64xf32>
    %c0_9 = arith.constant 0 : index
    %c0_10 = arith.constant 0 : index
    %12 = vector.load %arg6[%c0_9, %c0_10] : memref<1x64xf32, #tpu.memory_space<vmem>>, vector<1x64xf32>
    %13 = vector.broadcast %12 : vector<1x64xf32> to vector<16x64xf32>
    %14 = arith.addf %11, %13 : vector<16x64xf32>
    %c0_11 = arith.constant 0 : index
    %c0_12 = arith.constant 0 : index
    %c0_13 = arith.constant 0 : index
    %15 = vector.load %arg2[%c0_11, %c0_12, %c0_13] : memref<1x16x64xf32, #tpu.memory_space<vmem>>, vector<1x16x64xf32>
    %16 = vector.shape_cast %15 : vector<1x16x64xf32> to vector<16x64xf32>
    %17 = arith.mulf %14, %16 : vector<16x64xf32>
    %c0_14 = arith.constant 0 : index
    %c0_15 = arith.constant 0 : index
    %c0_16 = arith.constant 0 : index
    %18 = vector.load %arg7[%c0_14, %c0_15, %c0_16] : memref<1x16x64xf32, #tpu.memory_space<vmem>>, vector<1x16x64xf32>
    %19 = vector.shape_cast %18 : vector<1x16x64xf32> to vector<16x64xf32>
    %20 = vector.shape_cast %17 : vector<16x64xf32> to vector<1x16x64xf32>
    tpu.vector_store %arg7[%c0_14, %c0_15, %c0_16], %20 {strides = array<i32>} : memref<1x16x64xf32, #tpu.memory_space<vmem>>, vector<1x16x64xf32>,
    return
  }
  func.func @transform_0(%arg0: i32) -> (i32, i32, i32) {
    %c0_i32 = arith.constant 0 : i32
    %c0_i32_0 = arith.constant 0 : i32
    %c0_i32_1 = arith.constant 0 : i32
    return %arg0, %c0_i32, %c0_i32_0 : i32, i32, i32
  }
  func.func @transform_1(%arg0: i32) -> (i32, i32, i32) {
    %c0_i32 = arith.constant 0 : i32
    %c0_i32_0 = arith.constant 0 : i32
    %c0_i32_1 = arith.constant 0 : i32
    return %arg0, %c0_i32, %c0_i32_0 : i32, i32, i32
  }
  func.func @transform_2(%arg0: i32) -> (i32, i32) {
    %c0_i32 = arith.constant 0 : i32
    %c0_i32_0 = arith.constant 0 : i32
    %c0_i32_1 = arith.constant 0 : i32
    return %c0_i32, %c0_i32_0 : i32, i32
  }
  func.func @transform_3(%arg0: i32) -> (i32, i32) {
    %c0_i32 = arith.constant 0 : i32
    %c0_i32_0 = arith.constant 0 : i32
    %c0_i32_1 = arith.constant 0 : i32
    return %c0_i32, %c0_i32_0 : i32, i32
  }
  func.func @transform_4(%arg0: i32) -> (i32, i32) {
    %c0_i32 = arith.constant 0 : i32
    %c0_i32_0 = arith.constant 0 : i32
    %c0_i32_1 = arith.constant 0 : i32
    return %c0_i32, %c0_i32_0 : i32, i32
  }
  func.func @transform_5(%arg0: i32) -> (i32, i32) {
    %c0_i32 = arith.constant 0 : i32
    %c0_i32_0 = arith.constant 0 : i32
    %c0_i32_1 = arith.constant 0 : i32
    return %c0_i32, %c0_i32_0 : i32, i32
  }
  func.func @transform_6(%arg0: i32) -> (i32, i32, i32) {
    %c0_i32 = arith.constant 0 : i32
    %c0_i32_0 = arith.constant 0 : i32
    %c0_i32_1 = arith.constant 0 : i32
    return %arg0, %c0_i32, %c0_i32_0 : i32, i32, i32
  }
}

</mosaic_0001>

<bundles_post_ra>
// kernel: squeeze.17
= control target key start
LH: loop header
LB: loop body
LE: loop exit
PB: predicated region body
PF: predicated region fallthrough
CT: control target
= control target key end

     0   :  { %vm6_vm0 = vcmask 1043458   ;;  %s211_s6 = smov 3  ;;  %vm10_vm1 = vcmask 1045508   ;;  %vm14_vm2 = vcmask 1047558   ;;  %s214_s9 = smov 12  ;;  %vm16_vm3 = vcmask 64512   ;;  %s6152_s0 = inlined_call_operand.vmem [shape: f32[1,16,4,16,8], index: 0, kind: input, shape index: {}]   ;;  %s6153_s1 = inlined_call_operand.vmem [shape: f32[64,128], index: 1, kind: output, shape index: {}]  }
   0x1   :  { %v2954_v0 = vld [vmem:[%s6152_s0 + $0x8f] ss:$16 sm:%s211_s6]   ;;  %s219_s10 = smov 48  ;;  %s224_s15 = smov 192  ;;  %vm185_vm4 = vcmask 1048512   ;;  %vm368_vm5 = vcmask 982912  }
   0x2   :  { %v2955_v1 = vld [vmem:[%s6152_s0 + $0x8f] ss:$16 sm:%s214_s9]   ;;  %s166_s16 = smov 3  ;;  %s169_s21 = smov 12  ;;  %vm551_vm6 = vcmask 917312   ;;  %vm734_vm7 = vcmask 851712  }
   0x3   :  { %v2956_v2 = vld [vmem:[%s6152_s0 + $0x8f] ss:$16 sm:%s219_s10]   ;;  %v217_v3 = vsel %vm6_vm0, %v2955_v1, %v2954_v0  ;;  %s174_s22 = smov 48  ;;  %s179_s27 = smov 192  ;;  %vm917_vm8 = vcmask 786112   ;;  %vm1100_vm9 = vcmask 720512  }
   0x4   :  { %v2957_v4 = vld [vmem:[%s6152_s0 + $0x8f] ss:$16 sm:%s224_s15]   ;;  %v222_v6 = vsel %vm10_vm1, %v2956_v2, %v217_v3  ;;  %s234_s28 = smov 3  ;;  %s237_s4 = smov 12  ;;  %vm1283_vm10 = vcmask 654912   ;;  %vm1466_vm11 = vcmask 589312  }
   0x5   :  { %v2945_v5 = vld [vmem:[%s6152_s0 + $0xf] ss:$16 sm:%s166_s16]   ;;  %v227_v9 = vsel %vm14_vm2, %v2957_v4, %v222_v6  ;;  %s242_s5 = smov 48  ;;  %s3545_s6 = smov 120   ;;  %vm1649_vm12 = vcmask 523712   ;;  %vm1832_vm13 = vcmask 458112  }
   0x6   :  { %v2946_v7 = vld [vmem:[%s6152_s0 + $0xf] ss:$16 sm:%s169_s21]   ;;  %228 = vrot.lane.b32.xlu1 %v227_v9, %s3545_s6  ;;  %s247_s9 = smov 192  ;;  %s188_s10 = smov 3  ;;  %vm2015_vm14 = vcmask 392512   ;;  %vm2198_vm15 = vcmask 326912  }
   0x7   :  { %v2947_v8 = vld [vmem:[%s6152_s0 + $0xf] ss:$16 sm:%s174_s22]   ;;  %v172_v10 = vsel %vm6_vm0, %v2946_v7, %v2945_v5  ;;  %s191_s15 = smov 12  ;;  %s196_s16 = smov 48 }
   0x8   :  { %v2948_v11 = vld [vmem:[%s6152_s0 + $0xf] ss:$16 sm:%s179_s27]   ;;  %v177_v13 = vsel %vm10_vm1, %v2947_v8, %v172_v10  ;;  %s201_s19 = smov 192  ;;  %s326_s20 = smov 3 }
   0x9   :  { %v2959_v12 = vld [vmem:[%s6152_s0 + $0x28f] ss:$16 sm:%s234_s28]   ;;  %v182_v15 = vsel %vm14_vm2, %v2948_v11, %v177_v13  ;;  %s329_s25 = smov 12  ;;  %s334_s26 = smov 48 }
   0xa   :  { %v2960_v14 = vld [vmem:[%s6152_s0 + $0x28f] ss:$16 sm:%s237_s4]   ;;  %183 = vrot.lane.b32.xlu0 %v182_v15, %s3545_s6  ;;  %s339_s2 = smov 192  ;;  %s303_s3 = smov 3 }
   0xb   :  { %v240_v16 = vsel %vm6_vm0, %v2960_v14, %v2959_v12  ;;  %v2961_v17 = vld [vmem:[%s6152_s0 + $0x28f] ss:$16 sm:%s242_s5]   ;;  %s306_s7 = smov 12  ;;  %s311_s8 = smov 48 }
   0xc   :  { %v2962_v18 = vld [vmem:[%s6152_s0 + $0x28f] ss:$16 sm:%s247_s9]   ;;  %v245_v19 = vsel %vm10_vm1, %v2961_v17, %v240_v16  ;;  %s257_s11 = smov 3  ;;  %s265_s17 = smov 48 }
   0xd   :  { %v2949_v20 = vld [vmem:[%s6152_s0 + $0x20f] ss:$16 sm:%s188_s10]   ;;  %v250_v26 = vsel %vm14_vm2, %v2962_v18, %v245_v19  ;;  %s316_s22 = smov 192  ;;  %s270_s23 = smov 192 }
   0xe   :  { %v2950_v21 = vld [vmem:[%s6152_s0 + $0x20f] ss:$16 sm:%s191_s15]   ;;  %251 = vrot.lane.b32.xlu1 %v250_v26, %s3545_s6  ;;  %s394_s28 = smov 3  ;;  %s397_s29 = smov 12 }
   0xf   :  { %v2951_v22 = vld [vmem:[%s6152_s0 + $0x20f] ss:$16 sm:%s196_s16]   ;;  %v194_v23 = vsel %vm6_vm0, %v2950_v21, %v2949_v20  ;;  %s260_s16 = smov 12  ;;  %s374_s9 = smov 12  ;;  %v2993_v47 = vld [vmem:[%s6152_s0 + $0x8e] ss:$16 sm:%s394_s28]  }
  0x10   :  { %v2952_v24 = vld [vmem:[%s6152_s0 + $0x20f] ss:$16 sm:%s201_s19]   ;;  %v199_v27 = vsel %vm10_vm1, %v2951_v22, %v194_v23  ;;  %v2994_v48 = vld [vmem:[%s6152_s0 + $0x8e] ss:$16 sm:%s397_s29]   ;;  %s402_s14 = smov 48  ;;  %s379_s15 = smov 48 }
  0x11   :  { %v2979_v25 = vld [vmem:[%s6152_s0 + $0x38f] ss:$16 sm:%s326_s20]   ;;  %v204_v30 = vsel %vm14_vm2, %v2952_v24, %v199_v27  ;;  %v2989_v51 = vld [vmem:[%s6152_s0 + $0x20e] ss:$16 sm:%s374_s9]   ;;  %v400_v53 = vsel %vm6_vm0, %v2994_v48, %v2993_v47  ;;  %s293_s28 = smov 192  ;;  %s463_s10 = smov 3 }
  0x12   :  { %v2980_v28 = vld [vmem:[%s6152_s0 + $0x38f] ss:$16 sm:%s329_s25]   ;;  %205 = vrot.lane.b32.xlu0 %v204_v30, %s3545_s6  ;;  %s443_s18 = smov 12  ;;  %s349_s24 = smov 3 }
  0x13   :  { %v2974_v29 = vld [vmem:[%s6152_s0 + $0x18f] ss:$16 sm:%s303_s3]   ;;  %v332_v31 = vsel %vm6_vm0, %v2980_v28, %v2979_v25  ;;  %v2995_v54 = vld [vmem:[%s6152_s0 + $0x8e] ss:$16 sm:%s402_s14]   ;;  %s471_s14 = smov 48  ;;  %s362_s3 = smov 192 }
  0x14   :  { %v2981_v32 = vld [vmem:[%s6152_s0 + $0x38f] ss:$16 sm:%s334_s26]   ;;  %v2990_v55 = vld [vmem:[%s6152_s0 + $0x20e] ss:$16 sm:%s379_s15]   ;;  %v405_v61 = vsel %vm10_vm1, %v2995_v54, %v400_v53  ;;  %s352_s26 = smov 12  ;;  %s476_s4 = smov 192 }
  0x15   :  { %v2975_v33 = vld [vmem:[%s6152_s0 + $0x18f] ss:$16 sm:%s306_s7]   ;;  %v337_v39 = vsel %vm10_vm1, %v2981_v32, %v332_v31  ;;  %v3008_v4 = vld [vmem:[%s6152_s0 + $0x30e] ss:$16 sm:%s463_s10]   ;;  %s3546_s10 = smov 112   ;;  %s535_s19 = smov 12 }
  0x16   :  { %v2982_v34 = vld [vmem:[%s6152_s0 + $0x38f] ss:$16 sm:%s339_s2]   ;;  %v309_v36 = vsel %vm6_vm0, %v2975_v33, %v2974_v29  ;;  %s384_s2 = smov 192  ;;  %v3010_v7 = vld [vmem:[%s6152_s0 + $0x30e] ss:$16 sm:%s471_s14]   ;;  %s512_s25 = smov 12 }
  0x17   :  { %v2976_v35 = vld [vmem:[%s6152_s0 + $0x18f] ss:$16 sm:%s311_s8]   ;;  %s371_s8 = smov 3  ;;  %v342_v49 = vsel %vm14_vm2, %v2982_v34, %v337_v39  ;;  %v2991_v0 = vld [vmem:[%s6152_s0 + $0x20e] ss:$16 sm:%s384_s2]   ;;  %s357_s2 = smov 48 }
  0x18   :  { %v2964_v37 = vld [vmem:[%s6152_s0 + $0x10f] ss:$16 sm:%s257_s11]   ;;  %v314_v45 = vsel %vm10_vm1, %v2976_v35, %v309_v36  ;;  %v2988_v50 = vld [vmem:[%s6152_s0 + $0x20e] ss:$16 sm:%s371_s8]   ;;  %s466_s11 = smov 12  ;;  %s417_s30 = smov 3 }
  0x19   :  { %v2965_v38 = vld [vmem:[%s6152_s0 + $0x10f] ss:$16 sm:%s260_s16]   ;;  %s407_s16 = smov 192  ;;  %343 = vrot.lane.b32.xlu1 %v342_v49, %s3545_s6  ;;  %v377_v58 = vsel %vm6_vm0, %v2989_v51, %v2988_v50  ;;  %s425_s5 = smov 48 }
  0x1a   :  { %v263_v40 = vsel %vm6_vm0, %v2965_v38, %v2964_v37  ;;  %v2966_v41 = vld [vmem:[%s6152_s0 + $0x10f] ss:$16 sm:%s265_s17]   ;;  %s280_s17 = smov 3  ;;  %v2996_v56 = vld [vmem:[%s6152_s0 + $0x8e] ss:$16 sm:%s407_s16]   ;;  %v382_v2 = vsel %vm10_vm1, %v2990_v55, %v377_v58  ;;  %s517_s12 = smov 48 }
  0x1b   :  { %v2977_v42 = vld [vmem:[%s6152_s0 + $0x18f] ss:$16 sm:%s316_s22]   ;;  %v268_v43 = vsel %vm10_vm1, %v2966_v41, %v263_v40  ;;  %s283_s22 = smov 12  ;;  %v3009_v5 = vld [vmem:[%s6152_s0 + $0x30e] ss:$16 sm:%s466_s11]   ;;  %v410_v6 = vsel %vm14_vm2, %v2996_v56, %v405_v61  ;;  %v387_v10 = vsel %vm14_vm2, %v2991_v0, %v382_v2  ;;  %s453_s11 = smov 192 }
  0x1c   :  { %v2967_v44 = vld [vmem:[%s6152_s0 + $0x10f] ss:$16 sm:%s270_s23]   ;;  %s288_s23 = smov 48  ;;  %v319_v52 = vsel %vm14_vm2, %v2977_v42, %v314_v45  ;;  %v3004_v9 = vld [vmem:[%s6152_s0 + $0x10e] ss:$16 sm:%s443_s18]   ;;  %v469_v11 = vsel %vm6_vm0, %v3009_v5, %v3008_v4  ;;  %s532_s18 = smov 3 }
  0x1d   :  { %v273_v46 = vsel %vm14_vm2, %v2967_v44, %v268_v43  ;;  %v2969_v57 = vld [vmem:[%s6152_s0 + $0x30f] ss:$16 sm:%s280_s17]   ;;  %320 = vrot.lane.b32.xlu0 %v319_v52, %s3545_s6  ;;  %s440_s17 = smov 3  ;;  %v474_v19 = vsel %vm10_vm1, %v3010_v7, %v469_v11  ;;  %s430_s13 = smov 192 }
  0x1e   :  { %274 = vrot.lane.b32.xlu2 %v273_v46, %s3545_s6  ;;  %v2970_v59 = vld [vmem:[%s6152_s0 + $0x30f] ss:$16 sm:%s283_s22]   ;;  %s540_s22 = smov 48  ;;  %s545_s14 = smov 192 }
  0x1f   :  { %v2971_v60 = vld [vmem:[%s6152_s0 + $0x30f] ss:$16 sm:%s288_s23]   ;;  %v286_v62 = vsel %vm6_vm0, %v2970_v59, %v2969_v57  ;;  %s448_s23 = smov 48  ;;  %v3003_v8 = vld [vmem:[%s6152_s0 + $0x10e] ss:$16 sm:%s440_s17]   ;;  %s608_s29 = smov 48 }
  0x20   :  { %v2972_v63 = vld [vmem:[%s6152_s0 + $0x30f] ss:$16 sm:%s293_s28]   ;;  %v291_v1 = vsel %vm10_vm1, %v2971_v60, %v286_v62  ;;  %v3005_v12 = vld [vmem:[%s6152_s0 + $0x10e] ss:$16 sm:%s448_s23]   ;;  %v446_v15 = vsel %vm6_vm0, %v3004_v9, %v3003_v8  ;;  %s585_s21 = smov 48  ;;  %s3547_s28 = smov 104  }
  0x21   :  { %v296_v3 = vsel %vm14_vm2, %v2972_v63, %v291_v1  ;;  %v2984_v13 = vld [vmem:[%s6152_s0 + $0xe] ss:$16 sm:%s349_s24]   ;;  %411 = vrot.lane.b32.xlu1 %v410_v6, %s3546_s10  ;;  %v451_v24 = vsel %vm10_vm1, %v3005_v12, %v446_v15  ;;  %s613_s24 = smov 192  ;;  %s672_s7 = smov 12 }
  0x22   :  { %v2985_v14 = vld [vmem:[%s6152_s0 + $0xe] ss:$16 sm:%s352_s26]   ;;  %v3023_v25 = vld [vmem:[%s6152_s0 + $0xd] ss:$16 sm:%s532_s18]   ;;  %s603_s26 = smov 12  ;;  %s499_s18 = smov 192 }
  0x23   :  { %v355_v16 = vsel %vm6_vm0, %v2985_v14, %v2984_v13  ;;  %v2986_v17 = vld [vmem:[%s6152_s0 + $0xe] ss:$16 sm:%s357_s2]   ;;  %v3024_v26 = vld [vmem:[%s6152_s0 + $0xd] ss:$16 sm:%s535_s19]   ;;  %s420_s2 = smov 12  ;;  %s522_s19 = smov 192 }
  0x24   :  { %v2987_v18 = vld [vmem:[%s6152_s0 + $0xe] ss:$16 sm:%s362_s3]   ;;  %v360_v21 = vsel %vm10_vm1, %v2986_v17, %v355_v16  ;;  %v3025_v28 = vld [vmem:[%s6152_s0 + $0xd] ss:$16 sm:%s540_s22]   ;;  %v538_v32 = vsel %vm6_vm0, %v3024_v26, %v3023_v25  ;;  %s669_s3 = smov 3  ;;  %s646_s8 = smov 3 }
  0x25   :  { %388 = vrot.lane.b32.xlu0 %v387_v10, %s3546_s10  ;;  %v3011_v20 = vld [vmem:[%s6152_s0 + $0x30e] ss:$16 sm:%s476_s4]   ;;  %v365_v23 = vsel %vm14_vm2, %v2987_v18, %v360_v21  ;;  %v543_v41 = vsel %vm10_vm1, %v3025_v28, %v538_v32  ;;  %s580_s4 = smov 12  ;;  %s718_s20 = smov 12 }
  0x26   :  { %297 = vrot.lane.b32.xlu2 %v296_v3, %s3545_s6  ;;  %v3006_v22 = vld [vmem:[%s6152_s0 + $0x10e] ss:$16 sm:%s453_s11]   ;;  %s509_s6 = smov 3  ;;  %v479_v27 = vsel %vm14_vm2, %v3011_v20, %v474_v19  ;;  %s623_s23 = smov 3 }
  0x27   :  { %v3018_v29 = vld [vmem:[%s6152_s0 + $0x38e] ss:$16 sm:%s509_s6]   ;;  %v456_v31 = vsel %vm14_vm2, %v3006_v22, %v451_v24  ;;  %v3026_v42 = vld [vmem:[%s6152_s0 + $0xd] ss:$16 sm:%s545_s14]   ;;  %s567_s6 = smov 192  ;;  %s740_s14 = smov 12 }
  0x28   :  { %v3019_v30 = vld [vmem:[%s6152_s0 + $0x38e] ss:$16 sm:%s512_s25]   ;;  %s600_s25 = smov 3  ;;  %v3038_v47 = vld [vmem:[%s6152_s0 + $0x28d] ss:$16 sm:%s603_s26]   ;;  %v548_v48 = vsel %vm14_vm2, %v3026_v42, %v543_v41  ;;  %s626_s26 = smov 12 }
  0x29   :  { %v2998_v33 = vld [vmem:[%s6152_s0 + $0x28e] ss:$16 sm:%s417_s30]   ;;  %480 = vrot.lane.b32.xlu1 %v479_v27, %s3546_s10  ;;  %v515_v37 = vsel %vm6_vm0, %v3019_v30, %v3018_v29  ;;  %s577_s30 = smov 3  ;;  %s631_s27 = smov 48 }
  0x2a   :  { %v2999_v34 = vld [vmem:[%s6152_s0 + $0x28e] ss:$16 sm:%s420_s2]   ;;  %v3037_v46 = vld [vmem:[%s6152_s0 + $0x28d] ss:$16 sm:%s600_s25]   ;;  %s750_s9 = smov 192  ;;  %s723_s11 = smov 48 }
  0x2b   :  { %v423_v35 = vsel %vm6_vm0, %v2999_v34, %v2998_v33  ;;  %v3000_v36 = vld [vmem:[%s6152_s0 + $0x28e] ss:$16 sm:%s425_s5]   ;;  %s486_s5 = smov 3  ;;  %v3039_v49 = vld [vmem:[%s6152_s0 + $0x28d] ss:$16 sm:%s608_s29]   ;;  %v606_v54 = vsel %vm6_vm0, %v3038_v47, %v3037_v46  ;;  %s590_s29 = smov 192 }
  0x2c   :  { %v3020_v38 = vld [vmem:[%s6152_s0 + $0x38e] ss:$16 sm:%s517_s12]   ;;  %v428_v39 = vsel %vm10_vm1, %v3000_v36, %v423_v35  ;;  %s489_s12 = smov 12  ;;  %v3032_v50 = vld [vmem:[%s6152_s0 + $0x8d] ss:$16 sm:%s577_s30]   ;;  %v611_v62 = vsel %vm10_vm1, %v3039_v49, %v606_v54  ;;  %s654_s30 = smov 48 }
  0x2d   :  { %v3001_v40 = vld [vmem:[%s6152_s0 + $0x28e] ss:$16 sm:%s430_s13]   ;;  %457 = vrot.lane.b32.xlu0 %v456_v31, %s3546_s10  ;;  %v520_v45 = vsel %vm10_vm1, %v3020_v38, %v515_v37  ;;  %s494_s13 = smov 48  ;;  %s809_s22 = smov 12 }
  0x2e   :  { %366 = vrot.lane.b32.xlu2 %v365_v23, %s3546_s10  ;;  %v433_v43 = vsel %vm14_vm2, %v3001_v40, %v428_v39  ;;  %v3021_v44 = vld [vmem:[%s6152_s0 + $0x38e] ss:$16 sm:%s522_s19]   ;;  %s557_s19 = smov 12  ;;  %s783_s25 = smov 3 }
  0x2f   :  { %v3033_v51 = vld [vmem:[%s6152_s0 + $0x8d] ss:$16 sm:%s580_s4]   ;;  %v3013_v52 = vld [vmem:[%s6152_s0 + $0x18e] ss:$16 sm:%s486_s5]   ;;  %v525_v53 = vsel %vm14_vm2, %v3021_v44, %v520_v45  ;;  %s636_s5 = smov 192  ;;  %s705_s15 = smov 192 }
  0x30   :  { %v3014_v55 = vld [vmem:[%s6152_s0 + $0x18e] ss:$16 sm:%s489_s12]   ;;  %v583_v59 = vsel %vm6_vm0, %v3033_v51, %v3032_v50  ;;  %v3034_v60 = vld [vmem:[%s6152_s0 + $0x8d] ss:$16 sm:%s585_s21]   ;;  %s677_s12 = smov 48  ;;  %s806_s21 = smov 3 }
  0x31   :  { %v3015_v56 = vld [vmem:[%s6152_s0 + $0x18e] ss:$16 sm:%s494_s13]   ;;  %549 = vrot.lane.b32.xlu1 %v548_v48, %s3547_s28  ;;  %v492_v57 = vsel %vm6_vm0, %v3014_v55, %v3013_v52  ;;  %s649_s13 = smov 12  ;;  %v588_v3 = vsel %vm10_vm1, %v3034_v60, %v583_v59  ;;  %s852_s17 = smov 3 }
  0x32   :  { %v3016_v58 = vld [vmem:[%s6152_s0 + $0x18e] ss:$16 sm:%s499_s18]   ;;  %v497_v61 = vsel %vm10_vm1, %v3015_v56, %v492_v57  ;;  %v3040_v63 = vld [vmem:[%s6152_s0 + $0x28d] ss:$16 sm:%s613_s24]   ;;  %s554_s18 = smov 3  ;;  %s562_s24 = smov 48 }
  0x33   :  { %v502_v0 = vsel %vm14_vm2, %v3016_v58, %v497_v61  ;;  %v3035_v1 = vld [vmem:[%s6152_s0 + $0x8d] ss:$16 sm:%s590_s29]   ;;  %v616_v6 = vsel %vm14_vm2, %v3040_v63, %v611_v62  ;;  %s682_s29 = smov 192  ;;  %v3067_v24 = vld [vmem:[%s6152_s0 + $0x20c] ss:$16 sm:%s740_s14]   ;;  %s860_s2 = smov 48 }
  0x34   :  { %v3052_v2 = vld [vmem:[%s6152_s0 + $0x18d] ss:$16 sm:%s669_s3]   ;;  %v593_v11 = vsel %vm14_vm2, %v3035_v1, %v588_v3  ;;  %v3063_v27 = vld [vmem:[%s6152_s0 + $0xc] ss:$16 sm:%s718_s20]   ;;  %s842_s4 = smov 192  ;;  %s901_s20 = smov 12 }
  0x35   :  { %526 = vrot.lane.b32.xlu0 %v525_v53, %s3546_s10  ;;  %v3053_v4 = vld [vmem:[%s6152_s0 + $0x18d] ss:$16 sm:%s672_s7]   ;;  %s659_s7 = smov 192  ;;  %s992_s3 = smov 12 }
  0x36   :  { %434 = vrot.lane.b32.xlu2 %v433_v43, %s3546_s10  ;;  %v3047_v5 = vld [vmem:[%s6152_s0 + $0x30d] ss:$16 sm:%s646_s8]   ;;  %v675_v12 = vsel %vm6_vm0, %v3053_v4, %v3052_v2  ;;  %s700_s8 = smov 48  ;;  %s1002_s16 = smov 192 }
  0x37   :  { %v3054_v7 = vld [vmem:[%s6152_s0 + $0x18d] ss:$16 sm:%s677_s12]   ;;  %v3069_v38 = vld [vmem:[%s6152_s0 + $0x20c] ss:$16 sm:%s750_s9]   ;;  %s814_s9 = smov 48  ;;  %s768_s12 = smov 48 }
  0x38   :  { %v3048_v8 = vld [vmem:[%s6152_s0 + $0x30d] ss:$16 sm:%s649_s13]   ;;  %s737_s13 = smov 3  ;;  %v680_v20 = vsel %vm10_vm1, %v3054_v7, %v675_v12  ;;  %v3064_v40 = vld [vmem:[%s6152_s0 + $0xc] ss:$16 sm:%s723_s11]   ;;  %s946_s11 = smov 12 }
  0x39   :  { %v3027_v9 = vld [vmem:[%s6152_s0 + $0x20d] ss:$16 sm:%s554_s18]   ;;  %617 = vrot.lane.b32.xlu1 %v616_v6, %s3547_s28  ;;  %v652_v18 = vsel %vm6_vm0, %v3048_v8, %v3047_v5  ;;  %s728_s18 = smov 192  ;;  %s1035_s14 = smov 3 }
  0x3a   :  { %v3028_v10 = vld [vmem:[%s6152_s0 + $0x20d] ss:$16 sm:%s557_s19]   ;;  %s715_s19 = smov 3  ;;  %v3066_v23 = vld [vmem:[%s6152_s0 + $0x20c] ss:$16 sm:%s737_s13]   ;;  %s43_s13 = smov 12 }
  0x3b   :  { %v560_v13 = vsel %vm6_vm0, %v3028_v10, %v3027_v9  ;;  %v3029_v14 = vld [vmem:[%s6152_s0 + $0x20d] ss:$16 sm:%s562_s24]   ;;  %v3062_v26 = vld [vmem:[%s6152_s0 + $0xc] ss:$16 sm:%s715_s19]   ;;  %v743_v33 = vsel %vm6_vm0, %v3067_v24, %v3066_v23  ;;  %s883_s19 = smov 48  ;;  %s773_s24 = smov 192 }
  0x3c   :  { %v3030_v15 = vld [vmem:[%s6152_s0 + $0x20d] ss:$16 sm:%s567_s6]   ;;  %v565_v16 = vsel %vm10_vm1, %v3029_v14, %v560_v13  ;;  %v721_v39 = vsel %vm6_vm0, %v3063_v27, %v3062_v26  ;;  %v3065_v42 = vld [vmem:[%s6152_s0 + $0xc] ss:$16 sm:%s728_s18]   ;;  %s819_s18 = smov 192  ;;  %s923_s6 = smov 12 }
  0x3d   :  { %v3055_v17 = vld [vmem:[%s6152_s0 + $0x18d] ss:$16 sm:%s682_s29]   ;;  %594 = vrot.lane.b32.xlu0 %v593_v11, %s3547_s28  ;;  %v570_v22 = vsel %vm14_vm2, %v3030_v15, %v565_v16  ;;  %s745_s29 = smov 48  ;;  %v726_v46 = vsel %vm10_vm1, %v3064_v40, %v721_v39 }
  0x3e   :  { %503 = vrot.lane.b32.xlu2 %v502_v0, %s3546_s10  ;;  %v3049_v19 = vld [vmem:[%s6152_s0 + $0x30d] ss:$16 sm:%s654_s30]   ;;  %v685_v28 = vsel %vm14_vm2, %v3055_v17, %v680_v20  ;;  %s695_s30 = smov 12  ;;  %v731_v54 = vsel %vm14_vm2, %v3065_v42, %v726_v46  ;;  %s796_s10 = smov 192 }
  0x3f   :  { %v3050_v21 = vld [vmem:[%s6152_s0 + $0x30d] ss:$16 sm:%s659_s7]   ;;  %v657_v25 = vsel %vm10_vm1, %v3049_v19, %v652_v18  ;;  %v3068_v34 = vld [vmem:[%s6152_s0 + $0x20c] ss:$16 sm:%s745_s29]   ;;  %s786_s7 = smov 12  ;;  %s875_s29 = smov 3 }
  0x40   :  { %v3042_v29 = vld [vmem:[%s6152_s0 + $0x10d] ss:$16 sm:%s623_s23]   ;;  %v662_v32 = vsel %vm14_vm2, %v3050_v21, %v657_v25  ;;  %v748_v41 = vsel %vm10_vm1, %v3068_v34, %v743_v33  ;;  %v3081_v44 = vld [vmem:[%s6152_s0 + $0x10c] ss:$16 sm:%s806_s21]   ;;  %s791_s21 = smov 48  ;;  %s1043_s23 = smov 48 }
  0x41   :  { %v3043_v30 = vld [vmem:[%s6152_s0 + $0x10d] ss:$16 sm:%s626_s26]   ;;  %686 = vrot.lane.b32.xlu1 %v685_v28, %s3547_s28  ;;  %s692_s26 = smov 3  ;;  %v753_v49 = vsel %vm14_vm2, %v3069_v38, %v748_v41 }
  0x42   :  { %v3044_v31 = vld [vmem:[%s6152_s0 + $0x10d] ss:$16 sm:%s631_s27]   ;;  %v629_v35 = vsel %vm6_vm0, %v3043_v30, %v3042_v29  ;;  %v3082_v45 = vld [vmem:[%s6152_s0 + $0x10c] ss:$16 sm:%s809_s22]   ;;  %s3548_s27 = smov 96   ;;  %s1084_s22 = smov 12 }
  0x43   :  { %v3045_v36 = vld [vmem:[%s6152_s0 + $0x10d] ss:$16 sm:%s636_s5]   ;;  %v634_v37 = vsel %vm10_vm1, %v3044_v31, %v629_v35  ;;  %v3076_v47 = vld [vmem:[%s6152_s0 + $0x28c] ss:$16 sm:%s783_s25]   ;;  %v812_v55 = vsel %vm6_vm0, %v3082_v45, %v3081_v44  ;;  %s865_s5 = smov 192  ;;  %s966_s25 = smov 3 }
  0x44   :  { %v639_v43 = vsel %vm14_vm2, %v3045_v36, %v634_v37  ;;  %v3057_v48 = vld [vmem:[%s6152_s0 + $0x38d] ss:$16 sm:%s692_s26]   ;;  %v3077_v51 = vld [vmem:[%s6152_s0 + $0x28c] ss:$16 sm:%s786_s7]   ;;  %s760_s7 = smov 3  ;;  %s951_s26 = smov 48 }
  0x45   :  { %663 = vrot.lane.b32.xlu0 %v662_v32, %s3547_s28  ;;  %v3058_v50 = vld [vmem:[%s6152_s0 + $0x38d] ss:$16 sm:%s695_s30]   ;;  %s878_s30 = smov 12  ;;  %v789_v60 = vsel %vm6_vm0, %v3077_v51, %v3076_v47 }
  0x46   :  { %571 = vrot.lane.b32.xlu2 %v570_v22, %s3547_s28  ;;  %v698_v52 = vsel %vm6_vm0, %v3058_v50, %v3057_v48  ;;  %v3059_v53 = vld [vmem:[%s6152_s0 + $0x38d] ss:$16 sm:%s700_s8]   ;;  %s763_s8 = smov 12 }
  0x47   :  { %v3083_v56 = vld [vmem:[%s6152_s0 + $0x10c] ss:$16 sm:%s814_s9]   ;;  %v703_v57 = vsel %vm10_vm1, %v3059_v53, %v698_v52  ;;  %v3060_v58 = vld [vmem:[%s6152_s0 + $0x38d] ss:$16 sm:%s705_s15]   ;;  %s943_s9 = smov 3  ;;  %s933_s15 = smov 192 }
  0x48   :  { %v3084_v59 = vld [vmem:[%s6152_s0 + $0x10c] ss:$16 sm:%s819_s18]   ;;  %v817_v62 = vsel %vm10_vm1, %v3083_v56, %v812_v55  ;;  %v708_v0 = vsel %vm14_vm2, %v3060_v58, %v703_v57  ;;  %s855_s18 = smov 12  ;;  %v3110_v22 = vld [vmem:[%s6152_s0 + $0x8b] ss:$16 sm:%s943_s9]   ;;  %s137_s9 = smov 192 }
  0x49   :  { %754 = vrot.lane.b32.xlu1 %v753_v49, %s3548_s27  ;;  %v3078_v61 = vld [vmem:[%s6152_s0 + $0x28c] ss:$16 sm:%s791_s21]   ;;  %v822_v6 = vsel %vm14_vm2, %v3084_v59, %v817_v62  ;;  %s1081_s21 = smov 3 }
  0x4a   :  { %v3079_v63 = vld [vmem:[%s6152_s0 + $0x28c] ss:$16 sm:%s796_s10]   ;;  %v794_v3 = vsel %vm10_vm1, %v3078_v61, %v789_v60  ;;  %s888_s10 = smov 192  ;;  %v3111_v23 = vld [vmem:[%s6152_s0 + $0x8b] ss:$16 sm:%s946_s11]   ;;  %s1058_s11 = smov 3 }
  0x4b   :  { %v3096_v1 = vld [vmem:[%s6152_s0 + $0x38c] ss:$16 sm:%s875_s29]   ;;  %v799_v11 = vsel %vm14_vm2, %v3079_v63, %v794_v3  ;;  %v3106_v31 = vld [vmem:[%s6152_s0 + $0x20b] ss:$16 sm:%s923_s6]   ;;  %v949_v33 = vsel %vm6_vm0, %v3111_v23, %v3110_v22  ;;  %s906_s6 = smov 48  ;;  %s4145_s29 = smov 192 }
  0x4c   :  { %v3097_v2 = vld [vmem:[%s6152_s0 + $0x38c] ss:$16 sm:%s878_s30]   ;;  %v3112_v34 = vld [vmem:[%s6152_s0 + $0x8b] ss:$16 sm:%s951_s26]   ;;  %s1020_s30 = smov 48  ;;  %s3549_s26 = smov 88  }
  0x4d   :  { %732 = vrot.lane.b32.xlu0 %v731_v54, %s3548_s27  ;;  %v3071_v4 = vld [vmem:[%s6152_s0 + $0x8c] ss:$16 sm:%s760_s7]   ;;  %v881_v12 = vsel %vm6_vm0, %v3097_v2, %v3096_v1  ;;  %v954_v40 = vsel %vm10_vm1, %v3112_v34, %v949_v33  ;;  %s974_s7 = smov 48 }
  0x4e   :  { %640 = vrot.lane.b32.xlu2 %v639_v43, %s3547_s28  ;;  %v3072_v5 = vld [vmem:[%s6152_s0 + $0x8c] ss:$16 sm:%s763_s8]   ;;  %s85_s8 = smov 12 }
  0x4f   :  { %v766_v7 = vsel %vm6_vm0, %v3072_v5, %v3071_v4  ;;  %v3073_v8 = vld [vmem:[%s6152_s0 + $0x8c] ss:$16 sm:%s768_s12]   ;;  %s829_s12 = smov 3  ;;  %v3108_v41 = vld [vmem:[%s6152_s0 + $0x20b] ss:$16 sm:%s933_s15]   ;;  %s911_s15 = smov 192 }
  0x50   :  { %v3091_v9 = vld [vmem:[%s6152_s0 + $0x18c] ss:$16 sm:%s852_s17]   ;;  %v771_v14 = vsel %vm10_vm1, %v3073_v8, %v766_v7  ;;  %s832_s17 = smov 12  ;;  %v3102_v45 = vld [vmem:[%s6152_s0 + $0xb] ss:$16 sm:%s901_s20]   ;;  %s4_s20 = smov 12 }
  0x51   :  { %v3092_v10 = vld [vmem:[%s6152_s0 + $0x18c] ss:$16 sm:%s855_s18]   ;;  %823 = vrot.lane.b32.xlu1 %v822_v6, %s3548_s27  ;;  %s837_s18 = smov 48 }
  0x52   :  { %v3098_v13 = vld [vmem:[%s6152_s0 + $0x38c] ss:$16 sm:%s883_s19]   ;;  %v858_v17 = vsel %vm6_vm0, %v3092_v10, %v3091_v9  ;;  %s898_s19 = smov 3  ;;  %v3103_v49 = vld [vmem:[%s6152_s0 + $0xb] ss:$16 sm:%s906_s6]   ;;  %s1152_s6 = smov 12 }
  0x53   :  { %v3074_v15 = vld [vmem:[%s6152_s0 + $0x8c] ss:$16 sm:%s773_s24]   ;;  %v886_v19 = vsel %vm10_vm1, %v3098_v13, %v881_v12  ;;  %v3101_v44 = vld [vmem:[%s6152_s0 + $0xb] ss:$16 sm:%s898_s19]   ;;  %s979_s24 = smov 192  ;;  %s106_s19 = smov 12 }
  0x54   :  { %v3099_v16 = vld [vmem:[%s6152_s0 + $0x38c] ss:$16 sm:%s888_s10]   ;;  %v776_v21 = vsel %vm14_vm2, %v3074_v15, %v771_v14  ;;  %v904_v48 = vsel %vm6_vm0, %v3102_v45, %v3101_v44  ;;  %v3121_v52 = vld [vmem:[%s6152_s0 + $0x10b] ss:$16 sm:%s992_s3]   ;;  %s4142_s10 = smov 48  ;;  %s1218_s3 = smov 3 }
  0x55   :  { %v3093_v18 = vld [vmem:[%s6152_s0 + $0x18c] ss:$16 sm:%s860_s2]   ;;  %800 = vrot.lane.b32.xlu0 %v799_v11, %s3548_s27  ;;  %v891_v28 = vsel %vm14_vm2, %v3099_v16, %v886_v19  ;;  %s989_s2 = smov 3  ;;  %v909_v56 = vsel %vm10_vm1, %v3103_v49, %v904_v48 }
  0x56   :  { %709 = vrot.lane.b32.xlu2 %v708_v0, %s3547_s28  ;;  %v3094_v20 = vld [vmem:[%s6152_s0 + $0x18c] ss:$16 sm:%s865_s5]   ;;  %s920_s28 = smov 3  ;;  %v863_v25 = vsel %vm10_vm1, %v3093_v18, %v858_v17  ;;  %s956_s5 = smov 192 }
  0x57   :  { %v3086_v24 = vld [vmem:[%s6152_s0 + $0x30c] ss:$16 sm:%s829_s12]   ;;  %v3105_v30 = vld [vmem:[%s6152_s0 + $0x20b] ss:$16 sm:%s920_s28]   ;;  %s928_s12 = smov 48  ;;  %v868_v32 = vsel %vm14_vm2, %v3094_v20, %v863_v25  ;;  %s1015_s28 = smov 12 }
  0x58   :  { %v3087_v26 = vld [vmem:[%s6152_s0 + $0x30c] ss:$16 sm:%s832_s17]   ;;  %v3113_v37 = vld [vmem:[%s6152_s0 + $0x8b] ss:$16 sm:%s956_s5]   ;;  %v926_v38 = vsel %vm6_vm0, %v3106_v31, %v3105_v30  ;;  %s4168_s17 = smov 192  ;;  %s4193_s5 = smov 3 }
  0x59   :  { %v3088_v27 = vld [vmem:[%s6152_s0 + $0x30c] ss:$16 sm:%s837_s18]   ;;  %v835_v29 = vsel %vm6_vm0, %v3087_v26, %v3086_v24  ;;  %s1012_s18 = smov 3  ;;  %892 = vrot.lane.b32.xlu1 %v891_v28, %s3548_s27  ;;  %v959_v50 = vsel %vm14_vm2, %v3113_v37, %v954_v40 }
  0x5a   :  { %v840_v35 = vsel %vm10_vm1, %v3088_v27, %v835_v29  ;;  %v3089_v36 = vld [vmem:[%s6152_s0 + $0x30c] ss:$16 sm:%s842_s4]   ;;  %v3107_v39 = vld [vmem:[%s6152_s0 + $0x20b] ss:$16 sm:%s928_s12]   ;;  %s1025_s12 = smov 192  ;;  %s12_s4 = smov 192 }
  0x5b   :  { %v845_v42 = vsel %vm14_vm2, %v3089_v36, %v840_v35  ;;  %v3125_v43 = vld [vmem:[%s6152_s0 + $0x30b] ss:$16 sm:%s1012_s18]   ;;  %v931_v46 = vsel %vm10_vm1, %v3107_v39, %v926_v38  ;;  %v3140_v1 = vld [vmem:[%s6152_s0 + $0xa] ss:$16 sm:%s1081_s21]   ;;  %s19_s21 = smov 3  ;;  %s1103_s18 = smov 3 }
  0x5c   :  { %v3126_v47 = vld [vmem:[%s6152_s0 + $0x30b] ss:$16 sm:%s1015_s28]   ;;  %v936_v53 = vsel %vm14_vm2, %v3108_v41, %v931_v46  ;;  %v3141_v4 = vld [vmem:[%s6152_s0 + $0xa] ss:$16 sm:%s1084_s22]   ;;  %s4181_s28 = smov 3  ;;  %s22_s22 = smov 12 }
  0x5d   :  { %869 = vrot.lane.b32.xlu0 %v868_v32, %s3548_s27  ;;  %v3120_v51 = vld [vmem:[%s6152_s0 + $0x10b] ss:$16 sm:%s989_s2]   ;;  %v1018_v54 = vsel %vm6_vm0, %v3126_v47, %v3125_v43  ;;  %v1087_v11 = vsel %vm6_vm0, %v3141_v4, %v3140_v1  ;;  %s127_s2 = smov 12 }
  0x5e   :  { %777 = vrot.lane.b32.xlu2 %v776_v21, %s3548_s27  ;;  %v3127_v55 = vld [vmem:[%s6152_s0 + $0x30b] ss:$16 sm:%s1020_s30]   ;;  %s969_s30 = smov 12  ;;  %v995_v59 = vsel %vm6_vm0, %v3121_v52, %v3120_v51 }
  0x5f   :  { %v3104_v57 = vld [vmem:[%s6152_s0 + $0xb] ss:$16 sm:%s911_s15]   ;;  %v1023_v61 = vsel %vm10_vm1, %v3127_v55, %v1018_v54  ;;  %v3142_v12 = vld [vmem:[%s6152_s0 + $0xa] ss:$16 sm:%s4142_s10]   ;;  %s3550_s15 = smov 80   ;;  %s1226_s10 = smov 48 }
  0x60   :  { %v3128_v58 = vld [vmem:[%s6152_s0 + $0x30b] ss:$16 sm:%s1025_s12]   ;;  %v914_v63 = vsel %vm14_vm2, %v3104_v57, %v909_v56  ;;  %s1061_s12 = smov 12  ;;  %v3143_v15 = vld [vmem:[%s6152_s0 + $0xa] ss:$16 sm:%s4145_s29]   ;;  %s48_s29 = smov 48  ;;  %v1092_v19 = vsel %vm10_vm1, %v3142_v12, %v1087_v11 }
  0x61   :  { %960 = vrot.lane.b32.xlu1 %v959_v50, %s3549_s26  ;;  %v3123_v62 = vld [vmem:[%s6152_s0 + $0x10b] ss:$16 sm:%s1002_s16]   ;;  %s4166_s16 = smov 48  ;;  %v1028_v7 = vsel %vm14_vm2, %v3128_v58, %v1023_v61  ;;  %v1097_v34 = vsel %vm14_vm2, %v3143_v15, %v1092_v19 }
  0x62   :  { %v3115_v0 = vld [vmem:[%s6152_s0 + $0x28b] ss:$16 sm:%s966_s25]   ;;  %s4185_s25 = smov 48  ;;  %v3154_v22 = vld [vmem:[%s6152_s0 + $0x28a] ss:$16 sm:%s4181_s28]   ;;  %s82_s28 = smov 3 }
  0x63   :  { %v3116_v2 = vld [vmem:[%s6152_s0 + $0x28b] ss:$16 sm:%s969_s30]   ;;  %v3155_v23 = vld [vmem:[%s6152_s0 + $0x28a] ss:$16 sm:%s1152_s6]   ;;  %s4232_s6 = smov 48  ;;  %s1116_s30 = smov 192 }
  0x64   :  { %v972_v5 = vsel %vm6_vm0, %v3116_v2, %v3115_v0  ;;  %v3117_v6 = vld [vmem:[%s6152_s0 + $0x28b] ss:$16 sm:%s974_s7]   ;;  %s40_s7 = smov 3  ;;  %v2916_v24 = vld [vmem:[%s6152_s0 + $0x100] ss:$16 sm:%s43_s13]   ;;  %s32_s13 = smov 192 }
  0x65   :  { %937 = vrot.lane.b32.xlu0 %v936_v53, %s3549_s26  ;;  %v3135_v8 = vld [vmem:[%s6152_s0 + $0x38b] ss:$16 sm:%s1058_s11]   ;;  %v977_v13 = vsel %vm10_vm1, %v3117_v6, %v972_v5  ;;  %s1289_s11 = smov 12 }
  0x66   :  { %846 = vrot.lane.b32.xlu2 %v845_v42, %s3548_s27  ;;  %s997_s27 = smov 48  ;;  %v3136_v9 = vld [vmem:[%s6152_s0 + $0x38b] ss:$16 sm:%s1061_s12]   ;;  %s1129_s12 = smov 12  ;;  %v1155_v42 = vsel %vm6_vm0, %v3155_v23, %v3154_v22 }
  0x67   :  { %v3122_v60 = vld [vmem:[%s6152_s0 + $0x10b] ss:$16 sm:%s997_s27]   ;;  %s53_s27 = smov 192  ;;  %v1064_v16 = vsel %vm6_vm0, %v3136_v9, %v3135_v8  ;;  %v2915_v18 = vld [vmem:[%s6152_s0 + $0x100] ss:$16 sm:%s40_s7]   ;;  %s27_s7 = smov 48 }
  0x68   :  { %v1000_v3 = vsel %vm10_vm1, %v3122_v60, %v995_v59  ;;  %v3118_v14 = vld [vmem:[%s6152_s0 + $0x28b] ss:$16 sm:%s979_s24]   ;;  %v46_v25 = vsel %vm6_vm0, %v2916_v24, %v2915_v18  ;;  %v2917_v26 = vld [vmem:[%s6152_s0 + $0x100] ss:$16 sm:%s48_s29]   ;;  %s1048_s24 = smov 192  ;;  %s1195_s29 = smov 3 }
  0x69   :  { %v1005_v10 = vsel %vm14_vm2, %v3123_v62, %v1000_v3  ;;  %1029 = vrot.lane.b32.xlu1 %v1028_v7, %s3549_s26  ;;  %v3137_v17 = vld [vmem:[%s6152_s0 + $0x38b] ss:$16 sm:%s4166_s16]   ;;  %v982_v21 = vsel %vm14_vm2, %v3118_v14, %v977_v13  ;;  %v51_v31 = vsel %vm10_vm1, %v2917_v26, %v46_v25  ;;  %s2_s16 = smov 3 }
  0x6a   :  { %v3138_v20 = vld [vmem:[%s6152_s0 + $0x38b] ss:$16 sm:%s4168_s17]   ;;  %v2918_v27 = vld [vmem:[%s6152_s0 + $0x100] ss:$16 sm:%s53_s27]   ;;  %v1069_v28 = vsel %vm10_vm1, %v3137_v17, %v1064_v16  ;;  %s8_s17 = smov 48  ;;  %s1299_s27 = smov 192 }
  0x6b   :  { %v3149_v29 = vld [vmem:[%s6152_s0 + $0x8a] ss:$16 sm:%s4193_s5]   ;;  %v2910_v32 = vld [vmem:[%s6152_s0 + $0x80] ss:$16 sm:%s19_s21]   ;;  %v56_v36 = vsel %vm14_vm2, %v2918_v27, %v51_v31  ;;  %v1074_v41 = vsel %vm14_vm2, %v3138_v20, %v1069_v28  ;;  %s103_s5 = smov 3  ;;  %s1264_s21 = smov 3 }
  0x6c   :  { %v3150_v30 = vld [vmem:[%s6152_s0 + $0x8a] ss:$16 sm:%s1129_s12]   ;;  %v2911_v33 = vld [vmem:[%s6152_s0 + $0x80] ss:$16 sm:%s22_s22]   ;;  %s1231_s22 = smov 192  ;;  %s1340_s12 = smov 48 }
  0x6d   :  { %1006 = vrot.lane.b32.xlu0 %v1005_v10, %s3549_s26  ;;  %v3156_v35 = vld [vmem:[%s6152_s0 + $0x28a] ss:$16 sm:%s4185_s25]   ;;  %s1162_s25 = smov 192  ;;  %v25_v37 = vsel %vm6_vm0, %v2911_v33, %v2910_v32  ;;  %2919 = vst.msk [vmem:[%s6153_s1 + $0x10] sm:$0xff] %vm16_vm3, %v56_v36   ;;  %v1132_v51 = vsel %vm6_vm0, %v3150_v30, %v3149_v29 }
  0x6e   :  { %915 = vrot.lane.b32.xlu2 %v914_v63, %s3549_s26  ;;  %v2912_v38 = vld [vmem:[%s6152_s0 + $0x80] ss:$16 sm:%s27_s7]   ;;  %v1160_v54 = vsel %vm10_vm1, %v3156_v35, %v1155_v42  ;;  %s1286_s7 = smov 3 }
  0x6f   :  { %v30_v39 = vsel %vm10_vm1, %v2912_v38, %v25_v37  ;;  %v2913_v40 = vld [vmem:[%s6152_s0 + $0x80] ss:$16 sm:%s32_s13]   ;;  %v3151_v43 = vld [vmem:[%s6152_s0 + $0x8a] ss:$16 sm:%s4232_s6]   ;;  %s1139_s6 = smov 192  ;;  %s1294_s13 = smov 48 }
  0x70   :  { %v35_v45 = vsel %vm14_vm2, %v2913_v40, %v30_v39  ;;  %v3_v46 = vld [vmem:[%s6152_s0] ss:$16 sm:%s2_s16]   ;;  %v3157_v48 = vld [vmem:[%s6152_s0 + $0x28a] ss:$16 sm:%s1162_s25]   ;;  %s1038_s16 = smov 12  ;;  %v1137_v59 = vsel %vm10_vm1, %v3151_v43, %v1132_v51  ;;  %s1203_s25 = smov 48 }
  0x71   :  { %v5_v47 = vld [vmem:[%s6152_s0] ss:$16 sm:%s4_s20]   ;;  %1098 = vrot.lane.b32.xlu1 %v1097_v34, %s3550_s15  ;;  %2914 = vst.msk [vmem:[%s6153_s1 + $0x8] sm:$0xff] %vm16_vm3, %v35_v45   ;;  %v1165_v63 = vsel %vm14_vm2, %v3157_v48, %v1160_v54  ;;  %s61_s20 = smov 3 }
  0x72   :  { %v7_v49 = vsel %vm6_vm0, %v5_v47, %v3_v46  ;;  %v9_v50 = vld [vmem:[%s6152_s0] ss:$16 sm:%s8_s17]   ;;  %v3152_v55 = vld [vmem:[%s6152_s0 + $0x8a] ss:$16 sm:%s1139_s6]   ;;  %s124_s17 = smov 3  ;;  %s132_s6 = smov 48 }
  0x73   :  { %v11_v52 = vsel %vm10_vm1, %v9_v50, %v7_v49  ;;  %v13_v53 = vld [vmem:[%s6152_s0] ss:$16 sm:%s12_s4]   ;;  %v3130_v57 = vld [vmem:[%s6152_s0 + $0x18b] ss:$16 sm:%s1035_s14]   ;;  %s1221_s4 = smov 12  ;;  %v1142_v5 = vsel %vm14_vm2, %v3152_v55, %v1137_v59  ;;  %s95_s14 = smov 192 }
  0x74   :  { %v15_v56 = vsel %vm14_vm2, %v13_v53, %v11_v52  ;;  %v3131_v58 = vld [vmem:[%s6152_s0 + $0x18b] ss:$16 sm:%s1038_s16]   ;;  %v3169_v1 = vld [vmem:[%s6152_s0 + $0x18a] ss:$16 sm:%s1218_s3]   ;;  %s1198_s16 = smov 12  ;;  %s1363_s3 = smov 48 }
  0x75   :  { %1075 = vrot.lane.b32.xlu0 %v1074_v41, %s3549_s26  ;;  %17 = vst.msk [vmem:[%s6153_s1] sm:$0xff] %vm16_vm3, %v15_v56   ;;  %v1041_v60 = vsel %vm6_vm0, %v3131_v58, %v3130_v57  ;;  %v3132_v61 = vld [vmem:[%s6152_s0 + $0x18b] ss:$16 sm:%s1043_s23]   ;;  %s1355_s23 = smov 3 }
  0x76   :  { %983 = vrot.lane.b32.xlu2 %v982_v21, %s3549_s26  ;;  %v3133_v62 = vld [vmem:[%s6152_s0 + $0x18b] ss:$16 sm:%s1048_s24]   ;;  %v1046_v0 = vsel %vm10_vm1, %v3132_v61, %v1041_v60  ;;  %s1208_s24 = smov 192 }
  0x77   :  { %v3170_v2 = vld [vmem:[%s6152_s0 + $0x18a] ss:$16 sm:%s1221_s4]   ;;  %v1051_v3 = vsel %vm14_vm2, %v3133_v62, %v1046_v0  ;;  %v2935_v16 = vld [vmem:[%s6152_s0 + $0x300] ss:$16 sm:%s124_s17]   ;;  %s1272_s17 = smov 48  ;;  %s1172_s4 = smov 3 }
  0x78   :  { %v275_v44 = vpop.permute.xlu2 %274   ;;  %v3171_v4 = vld [vmem:[%s6152_s0 + $0x18a] ss:$16 sm:%s1226_s10]   ;;  %v1224_v6 = vsel %vm6_vm0, %v3170_v2, %v3169_v1  ;;  %v229_v13 = vpop.permute.xlu1 %228   ;;  %v2936_v17 = vld [vmem:[%s6152_s0 + $0x300] ss:$16 sm:%s127_s2]   ;;  %s1175_s10 = smov 12  ;;  %s1678_s2 = smov 12 }
  0x79   :  { %2968 = vst.msk [vmem:[%s6153_s1 + $0x10] sm:$0xff] %vm185_vm4, %v275_v44   ;;  %v3164_v7 = vld [vmem:[%s6152_s0 + $0x30a] ss:$16 sm:%s1195_s29]   ;;  %1166 = vrot.lane.b32.xlu1 %v1165_v63, %s3550_s15  ;;  %v1229_v14 = vsel %vm10_vm1, %v3171_v4, %v1224_v6  ;;  %v130_v20 = vsel %vm6_vm0, %v2936_v17, %v2935_v16  ;;  %s1180_s29 = smov 48 }
  0x7a   :  { %v3165_v9 = vld [vmem:[%s6152_s0 + $0x30a] ss:$16 sm:%s1198_s16]   ;;  %2958 = vst.msk [vmem:[%s6153_s1 + $0x8] sm:$0xff] %vm185_vm4, %v229_v13   ;;  %s111_s16 = smov 48 }
  0x7b   :  { %v3172_v10 = vld [vmem:[%s6152_s0 + $0x18a] ss:$16 sm:%s1231_s22]   ;;  %v1201_v11 = vsel %vm6_vm0, %v3165_v9, %v3164_v7  ;;  %v2937_v21 = vld [vmem:[%s6152_s0 + $0x300] ss:$16 sm:%s132_s6]   ;;  %s90_s6 = smov 48  ;;  %s1106_s22 = smov 12 }
  0x7c   :  { %v3166_v12 = vld [vmem:[%s6152_s0 + $0x30a] ss:$16 sm:%s1203_s25]   ;;  %v184_v18 = vpop.permute.xlu0 %183   ;;  %v2938_v22 = vld [vmem:[%s6152_s0 + $0x300] ss:$16 sm:%s137_s9]   ;;  %v1234_v23 = vsel %vm14_vm2, %v3172_v10, %v1229_v14  ;;  %v135_v24 = vsel %vm10_vm1, %v2937_v21, %v130_v20  ;;  %s1111_s25 = smov 48  ;;  %s1368_s9 = smov 192 }
  0x7d   :  { %1143 = vrot.lane.b32.xlu0 %v1142_v5, %s3550_s15  ;;  %v3167_v15 = vld [vmem:[%s6152_s0 + $0x30a] ss:$16 sm:%s1208_s24]   ;;  %v1206_v19 = vsel %vm10_vm1, %v3166_v12, %v1201_v11  ;;  %186 = vst.msk [vmem:[%s6153_s1] sm:$0xff] %vm185_vm4, %v184_v18   ;;  %v140_v26 = vsel %vm14_vm2, %v2938_v22, %v135_v24  ;;  %s1358_s24 = smov 12 }
  0x7e   :  { %1052 = vrot.lane.b32.xlu2 %v1051_v3, %s3549_s26  ;;  %s116_s26 = smov 192  ;;  %v2930_v25 = vld [vmem:[%s6152_s0 + $0x280] ss:$16 sm:%s103_s5]   ;;  %v1211_v29 = vsel %vm14_vm2, %v3167_v15, %v1206_v19  ;;  %2939 = vst.msk [vmem:[%s6153_s1 + $0x30] sm:$0xff] %vm16_vm3, %v140_v26   ;;  %s1472_s5 = smov 12 }
  0x7f   :  { %v2931_v27 = vld [vmem:[%s6152_s0 + $0x280] ss:$16 sm:%s106_s19]   ;;  %v3144_v42 = vld [vmem:[%s6152_s0 + $0x20a] ss:$16 sm:%s1103_s18]   ;;  %s3551_s18 = smov 72   ;;  %s1706_s19 = smov 48 }
  0x80   :  { %v298_v8 = vpop.permute.xlu2 %297   ;;  %v2932_v28 = vld [vmem:[%s6152_s0 + $0x280] ss:$16 sm:%s111_s16]   ;;  %v109_v30 = vsel %vm6_vm0, %v2931_v27, %v2930_v25  ;;  %v252_v38 = vpop.permute.xlu1 %251   ;;  %v3145_v45 = vld [vmem:[%s6152_s0 + $0x20a] ss:$16 sm:%s1106_s22]   ;;  %s1267_s22 = smov 12  ;;  %s1345_s16 = smov 192 }
  0x81   :  { %v2933_v31 = vld [vmem:[%s6152_s0 + $0x280] ss:$16 sm:%s116_s26]   ;;  %1235 = vrot.lane.b32.xlu1 %v1234_v23, %s3550_s15  ;;  %2973 = vst.msk [vmem:[%s6153_s1 + $0x30] sm:$0xff] %vm185_vm4, %v298_v8   ;;  %v114_v33 = vsel %vm10_vm1, %v2932_v28, %v109_v30  ;;  %v1109_v47 = vsel %vm6_vm0, %v3145_v45, %v3144_v42  ;;  %s1866_s26 = smov 48 }
  0x82   :  { %v2925_v34 = vld [vmem:[%s6152_s0 + $0x200] ss:$16 sm:%s82_s28]   ;;  %v119_v35 = vsel %vm14_vm2, %v2933_v31, %v114_v33  ;;  %v3146_v46 = vld [vmem:[%s6152_s0 + $0x20a] ss:$16 sm:%s1111_s25]   ;;  %s74_s28 = smov 192  ;;  %s1492_s25 = smov 3 }
  0x83   :  { %v2926_v36 = vld [vmem:[%s6152_s0 + $0x200] ss:$16 sm:%s85_s8]   ;;  %2934 = vst.msk [vmem:[%s6153_s1 + $0x28] sm:$0xff] %vm16_vm3, %v119_v35   ;;  %v1114_v49 = vsel %vm10_vm1, %v3146_v46, %v1109_v47  ;;  %s1414_s8 = smov 192 }
  0x84   :  { %v2927_v37 = vld [vmem:[%s6152_s0 + $0x200] ss:$16 sm:%s90_s6]   ;;  %v88_v39 = vsel %vm6_vm0, %v2926_v36, %v2925_v34  ;;  %2963 = vst.msk [vmem:[%s6153_s1 + $0x28] sm:$0xff] %vm185_vm4, %v252_v38   ;;  %v206_v43 = vpop.permute.xlu0 %205   ;;  %s1775_s6 = smov 48 }
  0x85   :  { %1212 = vrot.lane.b32.xlu0 %v1211_v29, %s3550_s15  ;;  %v2928_v40 = vld [vmem:[%s6152_s0 + $0x200] ss:$16 sm:%s95_s14]   ;;  %v93_v41 = vsel %vm10_vm1, %v2927_v37, %v88_v39  ;;  %s1447_s14 = smov 3 }
  0x86   :  { %v98_v44 = vsel %vm14_vm2, %v2928_v40, %v93_v41  ;;  %v3147_v48 = vld [vmem:[%s6152_s0 + $0x20a] ss:$16 sm:%s1116_s30]   ;;  %v3183_v50 = vld [vmem:[%s6152_s0 + $0x209] ss:$16 sm:%s1286_s7]   ;;  %s1277_s30 = smov 192  ;;  %s145_s7 = smov 3 }
  0x87   :  { %2929 = vst.msk [vmem:[%s6153_s1 + $0x20] sm:$0xff] %vm16_vm3, %v98_v44   ;;  %v1119_v51 = vsel %vm14_vm2, %v3147_v48, %v1114_v49  ;;  %v3184_v52 = vld [vmem:[%s6152_s0 + $0x209] ss:$16 sm:%s1289_s11]   ;;  %s148_s11 = smov 12 }
  0x88   :  { %v367_v32 = vpop.permute.xlu2 %366   ;;  %2953 = vst.msk [vmem:[%s6153_s1 + $0x20] sm:$0xff] %vm185_vm4, %v206_v43   ;;  %v3185_v53 = vld [vmem:[%s6152_s0 + $0x209] ss:$16 sm:%s1294_s13]   ;;  %1120 = vrot.lane.b32.xlu2 %v1119_v51, %s3550_s15  ;;  %v1292_v55 = vsel %vm6_vm0, %v3184_v52, %v3183_v50  ;;  %s153_s13 = smov 48 }
  0x89   :  { %v3186_v56 = vld [vmem:[%s6152_s0 + $0x209] ss:$16 sm:%s1299_s27]   ;;  %369 = vst.msk [vmem:[%s6153_s1] sm:$0xff] %vm368_vm5, %v367_v32   ;;  %v1297_v57 = vsel %vm10_vm1, %v3185_v53, %v1292_v55  ;;  %s158_s27 = smov 192 }
  0x8a   :  { %v3179_v58 = vld [vmem:[%s6152_s0 + $0x9] ss:$16 sm:%s1264_s21]   ;;  %v1302_v60 = vsel %vm14_vm2, %v3186_v56, %v1297_v57  ;;  %v2940_v2 = vld [vmem:[%s6152_s0 + $0x380] ss:$16 sm:%s145_s7]   ;;  %s64_s21 = smov 12  ;;  %s1254_s7 = smov 192 }
  0x8b   :  { %v3180_v59 = vld [vmem:[%s6152_s0 + $0x9] ss:$16 sm:%s1267_s22]   ;;  %v344_v0 = vpop.permute.xlu1 %343   ;;  %1303 = vrot.lane.b32.xlu1 %v1302_v60, %s3551_s18  ;;  %s1437_s22 = smov 192 }
  0x8c   :  { %v1270_v61 = vsel %vm6_vm0, %v3180_v59, %v3179_v58  ;;  %v3181_v62 = vld [vmem:[%s6152_s0 + $0x9] ss:$16 sm:%s1272_s17]   ;;  %v2941_v4 = vld [vmem:[%s6152_s0 + $0x380] ss:$16 sm:%s148_s11]   ;;  %s1244_s17 = smov 12  ;;  %s1424_s11 = smov 3 }
  0x8d   :  { %v3182_v63 = vld [vmem:[%s6152_s0 + $0x9] ss:$16 sm:%s1277_s30]   ;;  %v1275_v1 = vsel %vm10_vm1, %v3181_v62, %v1270_v61  ;;  %v2942_v5 = vld [vmem:[%s6152_s0 + $0x380] ss:$16 sm:%s153_s13]   ;;  %s69_s30 = smov 48  ;;  %v151_v7 = vsel %vm6_vm0, %v2941_v4, %v2940_v2  ;;  %s3552_s13 = smov 64  }
  0x8e   :  { %v1280_v3 = vsel %vm14_vm2, %v3182_v63, %v1275_v1  ;;  %v2943_v8 = vld [vmem:[%s6152_s0 + $0x380] ss:$16 sm:%s158_s27]   ;;  %v156_v9 = vsel %vm10_vm1, %v2942_v5, %v151_v7  ;;  %v3159_v18 = vld [vmem:[%s6152_s0 + $0x10a] ss:$16 sm:%s1172_s4]   ;;  %s1249_s4 = smov 48  ;;  %s1432_s27 = smov 48 }
  0x8f   :  { %v321_v6 = vpop.permute.xlu0 %320   ;;  %1281 = vrot.lane.b32.xlu0 %v1280_v3, %s3551_s18  ;;  %v2920_v10 = vld [vmem:[%s6152_s0 + $0x180] ss:$16 sm:%s61_s20]   ;;  %v161_v12 = vsel %vm14_vm2, %v2943_v8, %v156_v9  ;;  %s1185_s20 = smov 192 }
  0x90   :  { %v435_v54 = vpop.permute.xlu2 %434   ;;  %v2921_v11 = vld [vmem:[%s6152_s0 + $0x180] ss:$16 sm:%s64_s21]   ;;  %2944 = vst.msk [vmem:[%s6153_s1 + $0x38] sm:$0xff] %vm16_vm3, %v161_v12   ;;  %s1620_s21 = smov 192 }
  0x91   :  { %3002 = vst.msk [vmem:[%s6153_s1 + $0x28] sm:$0xff] %vm368_vm5, %v435_v54   ;;  %v67_v13 = vsel %vm6_vm0, %v2921_v11, %v2920_v10  ;;  %v2922_v14 = vld [vmem:[%s6152_s0 + $0x180] ss:$16 sm:%s69_s30]   ;;  %s1495_s30 = smov 12 }
  0x92   :  { %v2923_v15 = vld [vmem:[%s6152_s0 + $0x180] ss:$16 sm:%s74_s28]   ;;  %v72_v17 = vsel %vm10_vm1, %v2922_v14, %v67_v13  ;;  %2983 = vst.msk [vmem:[%s6153_s1 + $0x38] sm:$0xff] %vm185_vm4, %v344_v0   ;;  %s1633_s28 = smov 12 }
  0x93   :  { %v77_v19 = vsel %vm14_vm2, %v2923_v15, %v72_v17  ;;  %v3160_v20 = vld [vmem:[%s6152_s0 + $0x10a] ss:$16 sm:%s1175_s10]   ;;  %v412_v23 = vpop.permute.xlu1 %411   ;;  %s1332_s10 = smov 3  ;;  %v3198_v27 = vld [vmem:[%s6152_s0 + $0x109] ss:$16 sm:%s1355_s23]   ;;  %s1401_s23 = smov 3 }
  0x94   :  { %2924 = vst.msk [vmem:[%s6153_s1 + $0x18] sm:$0xff] %vm16_vm3, %v77_v19   ;;  %v1178_v21 = vsel %vm6_vm0, %v3160_v20, %v3159_v18  ;;  %v3161_v22 = vld [vmem:[%s6152_s0 + $0x10a] ss:$16 sm:%s1180_s29]   ;;  %s1335_s29 = smov 12 }
  0x95   :  { %2978 = vst.msk [vmem:[%s6153_s1 + $0x18] sm:$0xff] %vm185_vm4, %v321_v6   ;;  %v1183_v24 = vsel %vm10_vm1, %v3161_v22, %v1178_v21  ;;  %v3162_v25 = vld [vmem:[%s6152_s0 + $0x10a] ss:$16 sm:%s1185_s20]   ;;  %s1615_s20 = smov 48 }
  0x96   :  { %v1188_v26 = vsel %vm14_vm2, %v3162_v25, %v1183_v24  ;;  %v3199_v28 = vld [vmem:[%s6152_s0 + $0x109] ss:$16 sm:%s1358_s24]   ;;  %2997 = vst.msk [vmem:[%s6153_s1 + $0x8] sm:$0xff] %vm368_vm5, %v412_v23   ;;  %s1241_s24 = smov 3 }
  0x97   :  { %v389_v29 = vpop.permute.xlu0 %388   ;;  %1189 = vrot.lane.b32.xlu2 %v1188_v26, %s3550_s15  ;;  %v1361_v30 = vsel %vm6_vm0, %v3199_v28, %v3198_v27  ;;  %v3200_v31 = vld [vmem:[%s6152_s0 + $0x109] ss:$16 sm:%s1363_s3]   ;;  %s1541_s3 = smov 12 }
  0x98   :  { %v4536_v16 = vpop.permute.xlu2 %503   ;;  %v1366_v32 = vsel %vm10_vm1, %v3200_v31, %v1361_v30  ;;  %v3201_v33 = vld [vmem:[%s6152_s0 + $0x109] ss:$16 sm:%s1368_s9]   ;;  %2992 = vst.msk [vmem:[%s6153_s1 + $0x20] sm:$0xff] %vm368_vm5, %v389_v29   ;;  %s1780_s9 = smov 192 }
  0x99   :  { %v3193_v34 = vld [vmem:[%s6152_s0 + $0x289] ss:$16 sm:%s1332_s10]   ;;  %v1371_v35 = vsel %vm14_vm2, %v3201_v33, %v1366_v32  ;;  %v3174_v42 = vld [vmem:[%s6152_s0 + $0x38a] ss:$16 sm:%s1241_s24]   ;;  %s1404_s24 = smov 12  ;;  %s1391_s10 = smov 192 }
  0x9a   :  { %v3194_v36 = vld [vmem:[%s6152_s0 + $0x289] ss:$16 sm:%s1335_s29]   ;;  %1372 = vrot.lane.b32.xlu1 %v1371_v35, %s3551_s18  ;;  %3017 = vst.msk [vmem:[%s6153_s1 + $0x18] sm:$0xff] %vm368_vm5, %v4536_v16   ;;  %s1477_s29 = smov 48 }
  0x9b   :  { %v3195_v37 = vld [vmem:[%s6152_s0 + $0x289] ss:$16 sm:%s1340_s12]   ;;  %v1338_v39 = vsel %vm6_vm0, %v3194_v36, %v3193_v34  ;;  %v3175_v43 = vld [vmem:[%s6152_s0 + $0x38a] ss:$16 sm:%s1244_s17]   ;;  %s1427_s12 = smov 12  ;;  %v481_v48 = vpop.permute.xlu1 %480   ;;  %s1378_s17 = smov 3 }
  0x9c   :  { %v3196_v40 = vld [vmem:[%s6152_s0 + $0x289] ss:$16 sm:%s1345_s16]   ;;  %v1343_v41 = vsel %vm10_vm1, %v3195_v37, %v1338_v39  ;;  %v1247_v45 = vsel %vm6_vm0, %v3175_v43, %v3174_v42  ;;  %v3176_v46 = vld [vmem:[%s6152_s0 + $0x38a] ss:$16 sm:%s1249_s4]   ;;  %s1381_s4 = smov 12  ;;  %s3553_s16 = smov 56  }
  0x9d   :  { %v1348_v44 = vsel %vm14_vm2, %v3196_v40, %v1343_v41  ;;  %v3177_v47 = vld [vmem:[%s6152_s0 + $0x38a] ss:$16 sm:%s1254_s7]   ;;  %v1252_v49 = vsel %vm10_vm1, %v3176_v46, %v1247_v45  ;;  %v3213_v50 = vld [vmem:[%s6152_s0 + $0x389] ss:$16 sm:%s1424_s11]   ;;  %s1409_s7 = smov 48  ;;  %s1309_s11 = smov 3 }
  0x9e   :  { %1349 = vrot.lane.b32.xlu0 %v1348_v44, %s3551_s18  ;;  %v1257_v51 = vsel %vm14_vm2, %v3177_v47, %v1252_v49  ;;  %v3214_v52 = vld [vmem:[%s6152_s0 + $0x389] ss:$16 sm:%s1427_s12]   ;;  %3012 = vst.msk [vmem:[%s6153_s1 + $0x30] sm:$0xff] %vm368_vm5, %v481_v48   ;;  %s1312_s12 = smov 12 }
  0x9f   :  { %v3215_v53 = vld [vmem:[%s6152_s0 + $0x389] ss:$16 sm:%s1432_s27]   ;;  %v458_v54 = vpop.permute.xlu0 %457   ;;  %1258 = vrot.lane.b32.xlu2 %v1257_v51, %s3550_s15  ;;  %v1430_v55 = vsel %vm6_vm0, %v3214_v52, %v3213_v50  ;;  %s1317_s27 = smov 48  ;;  %s1683_s15 = smov 48 }
  0xa0   :  { %v4600_v38 = vpop.permute.xlu2 %571   ;;  %v3216_v56 = vld [vmem:[%s6152_s0 + $0x389] ss:$16 sm:%s1437_s22]   ;;  %v1435_v57 = vsel %vm10_vm1, %v3215_v53, %v1430_v55  ;;  %s1322_s22 = smov 192  ;;  %3007 = vst.msk [vmem:[%s6153_s1 + $0x10] sm:$0xff] %vm368_vm5, %v458_v54  }
  0xa1   :  { %v3208_v58 = vld [vmem:[%s6152_s0 + $0x189] ss:$16 sm:%s1401_s23]   ;;  %v1440_v60 = vsel %vm14_vm2, %v3216_v56, %v1435_v57  ;;  %v3227_v8 = vld [vmem:[%s6152_s0 + $0x88] ss:$16 sm:%s1492_s25]   ;;  %s1574_s25 = smov 192  ;;  %s1597_s23 = smov 192 }
  0xa2   :  { %v3209_v59 = vld [vmem:[%s6152_s0 + $0x189] ss:$16 sm:%s1404_s24]   ;;  %1441 = vrot.lane.b32.xlu1 %v1440_v60, %s3551_s18  ;;  %3031 = vst.msk [vmem:[%s6153_s1 + $0x20] sm:$0xff] %vm551_vm6, %v4600_v38   ;;  %s1757_s24 = smov 192 }
  0xa3   :  { %v1407_v61 = vsel %vm6_vm0, %v3209_v59, %v3208_v58  ;;  %v3210_v62 = vld [vmem:[%s6152_s0 + $0x189] ss:$16 sm:%s1409_s7]   ;;  %s1500_s7 = smov 48  ;;  %v550_v9 = vpop.permute.xlu1 %549   ;;  %v3228_v11 = vld [vmem:[%s6152_s0 + $0x88] ss:$16 sm:%s1495_s30]   ;;  %s1538_s30 = smov 3 }
  0xa4   :  { %v3211_v63 = vld [vmem:[%s6152_s0 + $0x189] ss:$16 sm:%s1414_s8]   ;;  %v1412_v1 = vsel %vm10_vm1, %v3210_v62, %v1407_v61  ;;  %s1505_s8 = smov 192  ;;  %v1498_v13 = vsel %vm6_vm0, %v3228_v11, %v3227_v8  ;;  %v3229_v14 = vld [vmem:[%s6152_s0 + $0x88] ss:$16 sm:%s1500_s7]   ;;  %s1386_s7 = smov 48 }
  0xa5   :  { %v3188_v2 = vld [vmem:[%s6152_s0 + $0x89] ss:$16 sm:%s1309_s11]   ;;  %v1417_v3 = vsel %vm14_vm2, %v3211_v63, %v1412_v1  ;;  %s1469_s11 = smov 3  ;;  %v3230_v15 = vld [vmem:[%s6152_s0 + $0x88] ss:$16 sm:%s1505_s8]   ;;  %v1503_v17 = vsel %vm10_vm1, %v3229_v14, %v1498_v13  ;;  %s1523_s8 = smov 48 }
  0xa6   :  { %v3189_v4 = vld [vmem:[%s6152_s0 + $0x89] ss:$16 sm:%s1312_s12]   ;;  %1418 = vrot.lane.b32.xlu0 %v1417_v3, %s3551_s18  ;;  %552 = vst.msk [vmem:[%s6153_s1] sm:$0xff] %vm551_vm6, %v550_v9   ;;  %v1508_v19 = vsel %vm14_vm2, %v3230_v15, %v1503_v17  ;;  %s3554_s12 = smov 48  }
  0xa7   :  { %v3190_v5 = vld [vmem:[%s6152_s0 + $0x89] ss:$16 sm:%s1317_s27]   ;;  %v1315_v6 = vsel %vm6_vm0, %v3189_v4, %v3188_v2  ;;  %v527_v16 = vpop.permute.xlu0 %526   ;;  %v3222_v18 = vld [vmem:[%s6152_s0 + $0x208] ss:$16 sm:%s1469_s11]   ;;  %s1561_s11 = smov 3  ;;  %s1450_s27 = smov 12 }
  0xa8   :  { %v641_v0 = vpop.permute.xlu2 %640   ;;  %v3191_v7 = vld [vmem:[%s6152_s0 + $0x89] ss:$16 sm:%s1322_s22]   ;;  %v1320_v10 = vsel %vm10_vm1, %v3190_v5, %v1315_v6  ;;  %s1482_s22 = smov 192  ;;  %v3223_v20 = vld [vmem:[%s6152_s0 + $0x208] ss:$16 sm:%s1472_s5]   ;;  %s1835_s5 = smov 3 }
  0xa9   :  { %v1325_v12 = vsel %vm14_vm2, %v3191_v7, %v1320_v10  ;;  %v3224_v21 = vld [vmem:[%s6152_s0 + $0x208] ss:$16 sm:%s1477_s29]   ;;  %v1475_v22 = vsel %vm6_vm0, %v3223_v20, %v3222_v18  ;;  %3022 = vst.msk [vmem:[%s6153_s1 + $0x38] sm:$0xff] %vm368_vm5, %v527_v16   ;;  %s1564_s29 = smov 12 }
  0xaa   :  { %1326 = vrot.lane.b32.xlu2 %v1325_v12, %s3551_s18  ;;  %v3225_v23 = vld [vmem:[%s6152_s0 + $0x208] ss:$16 sm:%s1482_s22]   ;;  %1509 = vrot.lane.b32.xlu1 %v1508_v19, %s3552_s13  ;;  %v1480_v25 = vsel %vm10_vm1, %v3224_v21, %v1475_v22  ;;  %s1569_s22 = smov 48 }
  0xab   :  { %v3203_v26 = vld [vmem:[%s6152_s0 + $0x309] ss:$16 sm:%s1378_s17]   ;;  %3046 = vst.msk [vmem:[%s6153_s1 + $0x10] sm:$0xff] %vm551_vm6, %v641_v0   ;;  %v1485_v27 = vsel %vm14_vm2, %v3225_v23, %v1480_v25  ;;  %v618_v33 = vpop.permute.xlu1 %617   ;;  %s1813_s17 = smov 3 }
  0xac   :  { %v3204_v28 = vld [vmem:[%s6152_s0 + $0x309] ss:$16 sm:%s1381_s4]   ;;  %v3242_v32 = vld [vmem:[%s6152_s0 + $0x308] ss:$16 sm:%s1561_s11]   ;;  %s1546_s4 = smov 48  ;;  %s1551_s11 = smov 192 }
  0xad   :  { %v3205_v29 = vld [vmem:[%s6152_s0 + $0x309] ss:$16 sm:%s1386_s7]   ;;  %v1384_v30 = vsel %vm6_vm0, %v3204_v28, %v3203_v26  ;;  %v3243_v35 = vld [vmem:[%s6152_s0 + $0x308] ss:$16 sm:%s1564_s29]   ;;  %s1884_s29 = smov 12  ;;  %s1793_s7 = smov 12 }
  0xae   :  { %v3206_v31 = vld [vmem:[%s6152_s0 + $0x309] ss:$16 sm:%s1391_s10]   ;;  %1486 = vrot.lane.b32.xlu0 %v1485_v27, %s3552_s13  ;;  %v1389_v34 = vsel %vm10_vm1, %v3205_v29, %v1384_v30  ;;  %3041 = vst.msk [vmem:[%s6153_s1 + $0x28] sm:$0xff] %vm551_vm6, %v618_v33   ;;  %v1567_v37 = vsel %vm6_vm0, %v3243_v35, %v3242_v32  ;;  %s1688_s10 = smov 192 }
  0xaf   :  { %v1394_v36 = vsel %vm14_vm2, %v3206_v31, %v1389_v34  ;;  %v3244_v38 = vld [vmem:[%s6152_s0 + $0x308] ss:$16 sm:%s1569_s22]   ;;  %v595_v40 = vpop.permute.xlu0 %594   ;;  %s1455_s22 = smov 48  ;;  %v3258_v58 = vld [vmem:[%s6152_s0 + $0x7] ss:$16 sm:%s1633_s28]   ;;  %s1518_s28 = smov 12 }
  0xb0   :  { %v710_v24 = vpop.permute.xlu2 %709   ;;  %v3245_v39 = vld [vmem:[%s6152_s0 + $0x308] ss:$16 sm:%s1574_s25]   ;;  %v1572_v41 = vsel %vm10_vm1, %v3244_v38, %v1567_v37  ;;  %3036 = vst.msk [vmem:[%s6153_s1 + $0x8] sm:$0xff] %vm551_vm6, %v595_v40   ;;  %s1460_s25 = smov 192 }
  0xb1   :  { %v3237_v42 = vld [vmem:[%s6152_s0 + $0x108] ss:$16 sm:%s1538_s30]   ;;  %v1577_v43 = vsel %vm14_vm2, %v3245_v39, %v1572_v41  ;;  %s1630_s30 = smov 3  ;;  %3061 = vst.msk [vmem:[%s6153_s1 + $0x38] sm:$0xff] %vm551_vm6, %v710_v24  }
  0xb2   :  { %1395 = vrot.lane.b32.xlu2 %v1394_v36, %s3551_s18  ;;  %v3238_v44 = vld [vmem:[%s6152_s0 + $0x108] ss:$16 sm:%s1541_s3]   ;;  %1578 = vrot.lane.b32.xlu1 %v1577_v43, %s3552_s13  ;;  %s1584_s18 = smov 3  ;;  %s1770_s3 = smov 12 }
  0xb3   :  { %v3239_v45 = vld [vmem:[%s6152_s0 + $0x108] ss:$16 sm:%s1546_s4]   ;;  %v1544_v46 = vsel %vm6_vm0, %v3238_v44, %v3237_v42  ;;  %s1638_s4 = smov 48  ;;  %v3257_v57 = vld [vmem:[%s6152_s0 + $0x7] ss:$16 sm:%s1630_s30]   ;;  %v687_v59 = vpop.permute.xlu1 %686   ;;  %s1515_s30 = smov 3 }
  0xb4   :  { %v3240_v47 = vld [vmem:[%s6152_s0 + $0x108] ss:$16 sm:%s1551_s11]   ;;  %v1549_v50 = vsel %vm10_vm1, %v3239_v45, %v1544_v46  ;;  %s1643_s11 = smov 192  ;;  %v1636_v61 = vsel %vm6_vm0, %v3258_v58, %v3257_v57  ;;  %v3259_v62 = vld [vmem:[%s6152_s0 + $0x7] ss:$16 sm:%s1638_s4]   ;;  %s1655_s4 = smov 12 }
  0xb5   :  { %v3218_v48 = vld [vmem:[%s6152_s0 + $0x8] ss:$16 sm:%s1447_s14]   ;;  %v1554_v52 = vsel %vm14_vm2, %v3240_v47, %v1549_v50  ;;  %s1607_s14 = smov 3  ;;  %3056 = vst.msk [vmem:[%s6153_s1 + $0x18] sm:$0xff] %vm551_vm6, %v687_v59   ;;  %v1641_v63 = vsel %vm10_vm1, %v3259_v62, %v1636_v61 }
  0xb6   :  { %v3219_v51 = vld [vmem:[%s6152_s0 + $0x8] ss:$16 sm:%s1450_s27]   ;;  %s1610_s27 = smov 12  ;;  %1555 = vrot.lane.b32.xlu0 %v1554_v52, %s3552_s13 }
  0xb7   :  { %v1453_v53 = vsel %vm6_vm0, %v3219_v51, %v3218_v48  ;;  %v3220_v54 = vld [vmem:[%s6152_s0 + $0x8] ss:$16 sm:%s1455_s22]   ;;  %v3260_v0 = vld [vmem:[%s6152_s0 + $0x7] ss:$16 sm:%s1643_s11]   ;;  %v664_v2 = vpop.permute.xlu0 %663   ;;  %s1528_s11 = smov 192  ;;  %s1711_s22 = smov 192 }
  0xb8   :  { %v778_v49 = vpop.permute.xlu2 %777   ;;  %v3221_v55 = vld [vmem:[%s6152_s0 + $0x8] ss:$16 sm:%s1460_s25]   ;;  %v1458_v56 = vsel %vm10_vm1, %v3220_v54, %v1453_v53  ;;  %v1646_v3 = vsel %vm14_vm2, %v3260_v0, %v1641_v63  ;;  %3051 = vst.msk [vmem:[%s6153_s1 + $0x30] sm:$0xff] %vm551_vm6, %v664_v2   ;;  %s1981_s25 = smov 48 }
  0xb9   :  { %v1463_v60 = vsel %vm14_vm2, %v3221_v55, %v1458_v56  ;;  %v3252_v1 = vld [vmem:[%s6152_s0 + $0x388] ss:$16 sm:%s1607_s14]   ;;  %s1698_s14 = smov 3  ;;  %3075 = vst.msk [vmem:[%s6153_s1 + $0x8] sm:$0xff] %vm734_vm7, %v778_v49  }
  0xba   :  { %1464 = vrot.lane.b32.xlu2 %v1463_v60, %s3552_s13  ;;  %v3253_v4 = vld [vmem:[%s6152_s0 + $0x388] ss:$16 sm:%s1610_s27]   ;;  %s1701_s27 = smov 12  ;;  %1647 = vrot.lane.b32.xlu1 %v1646_v3, %s3553_s16 }
  0xbb   :  { %v1613_v5 = vsel %vm6_vm0, %v3253_v4, %v3252_v1  ;;  %v3254_v6 = vld [vmem:[%s6152_s0 + $0x388] ss:$16 sm:%s1615_s20]   ;;  %v3271_v17 = vld [vmem:[%s6152_s0 + $0x287] ss:$16 sm:%s1698_s14]   ;;  %v755_v21 = vpop.permute.xlu1 %754   ;;  %s1592_s20 = smov 48  ;;  %s1744_s14 = smov 3 }
  0xbc   :  { %v3255_v7 = vld [vmem:[%s6152_s0 + $0x388] ss:$16 sm:%s1620_s21]   ;;  %v1618_v8 = vsel %vm10_vm1, %v3254_v6, %v1613_v5  ;;  %v3272_v19 = vld [vmem:[%s6152_s0 + $0x287] ss:$16 sm:%s1701_s27]   ;;  %s1752_s21 = smov 48  ;;  %s1976_s27 = smov 12 }
  0xbd   :  { %v3232_v9 = vld [vmem:[%s6152_s0 + $0x288] ss:$16 sm:%s1515_s30]   ;;  %v1623_v12 = vsel %vm14_vm2, %v3255_v7, %v1618_v8  ;;  %v3273_v20 = vld [vmem:[%s6152_s0 + $0x287] ss:$16 sm:%s1706_s19]   ;;  %v1704_v22 = vsel %vm6_vm0, %v3272_v19, %v3271_v17  ;;  %s1587_s19 = smov 12  ;;  %s1790_s30 = smov 3 }
  0xbe   :  { %v3233_v10 = vld [vmem:[%s6152_s0 + $0x288] ss:$16 sm:%s1518_s28]   ;;  %s1675_s28 = smov 3  ;;  %1624 = vrot.lane.b32.xlu0 %v1623_v12, %s3552_s13  ;;  %3070 = vst.msk [vmem:[%s6153_s1 + $0x20] sm:$0xff] %vm734_vm7, %v755_v21   ;;  %v1709_v24 = vsel %vm10_vm1, %v3273_v20, %v1704_v22 }
  0xbf   :  { %v1521_v13 = vsel %vm6_vm0, %v3233_v10, %v3232_v9  ;;  %v3234_v14 = vld [vmem:[%s6152_s0 + $0x288] ss:$16 sm:%s1523_s8]   ;;  %v3274_v23 = vld [vmem:[%s6152_s0 + $0x287] ss:$16 sm:%s1711_s22]   ;;  %v733_v27 = vpop.permute.xlu0 %732   ;;  %s1953_s8 = smov 12  ;;  %s2118_s22 = smov 48 }
  0xc0   :  { %v847_v11 = vpop.permute.xlu2 %846   ;;  %v1526_v15 = vsel %vm10_vm1, %v3234_v14, %v1521_v13  ;;  %v3235_v16 = vld [vmem:[%s6152_s0 + $0x288] ss:$16 sm:%s1528_s11]   ;;  %v3266_v25 = vld [vmem:[%s6152_s0 + $0x87] ss:$16 sm:%s1675_s28]   ;;  %v1714_v28 = vsel %vm14_vm2, %v3274_v23, %v1709_v24  ;;  %s1950_s28 = smov 3  ;;  %s2136_s11 = smov 12 }
  0xc1   :  { %v1531_v18 = vsel %vm14_vm2, %v3235_v16, %v1526_v15  ;;  %v3267_v26 = vld [vmem:[%s6152_s0 + $0x87] ss:$16 sm:%s1678_s2]   ;;  %735 = vst.msk [vmem:[%s6153_s1] sm:$0xff] %vm734_vm7, %v733_v27   ;;  %s1767_s2 = smov 3 }
  0xc2   :  { %1532 = vrot.lane.b32.xlu2 %v1531_v18, %s3552_s13  ;;  %v1681_v29 = vsel %vm6_vm0, %v3267_v26, %v3266_v25  ;;  %v3268_v30 = vld [vmem:[%s6152_s0 + $0x87] ss:$16 sm:%s1683_s15]   ;;  %1715 = vrot.lane.b32.xlu1 %v1714_v28, %s3553_s16  ;;  %s1958_s15 = smov 48 }
  0xc3   :  { %v1686_v31 = vsel %vm10_vm1, %v3268_v30, %v1681_v29  ;;  %v3269_v32 = vld [vmem:[%s6152_s0 + $0x87] ss:$16 sm:%s1688_s10]   ;;  %v3247_v33 = vld [vmem:[%s6152_s0 + $0x188] ss:$16 sm:%s1584_s18]   ;;  %v824_v47 = vpop.permute.xlu1 %823   ;;  %s1665_s10 = smov 192  ;;  %s1940_s18 = smov 192 }
  0xc4   :  { %v3248_v34 = vld [vmem:[%s6152_s0 + $0x188] ss:$16 sm:%s1587_s19]   ;;  %v1691_v37 = vsel %vm14_vm2, %v3269_v32, %v1686_v31  ;;  %3090 = vst.msk [vmem:[%s6153_s1 + $0x30] sm:$0xff] %vm734_vm7, %v847_v11   ;;  %s1861_s19 = smov 12 }
  0xc5   :  { %v3249_v35 = vld [vmem:[%s6152_s0 + $0x188] ss:$16 sm:%s1592_s20]   ;;  %v1590_v38 = vsel %vm6_vm0, %v3248_v34, %v3247_v33  ;;  %v3286_v41 = vld [vmem:[%s6152_s0 + $0x187] ss:$16 sm:%s1767_s2]   ;;  %s1747_s20 = smov 12  ;;  %s1816_s2 = smov 12 }
  0xc6   :  { %v3250_v39 = vld [vmem:[%s6152_s0 + $0x188] ss:$16 sm:%s1597_s23]   ;;  %v1595_v40 = vsel %vm10_vm1, %v3249_v35, %v1590_v38  ;;  %v3287_v42 = vld [vmem:[%s6152_s0 + $0x187] ss:$16 sm:%s1770_s3]   ;;  %s1652_s3 = smov 3  ;;  %s2031_s23 = smov 192 }
  0xc7   :  { %v1600_v43 = vsel %vm14_vm2, %v3250_v39, %v1595_v40  ;;  %v1773_v44 = vsel %vm6_vm0, %v3287_v42, %v3286_v41  ;;  %v3288_v45 = vld [vmem:[%s6152_s0 + $0x187] ss:$16 sm:%s1775_s6]   ;;  %1692 = vrot.lane.b32.xlu0 %v1691_v37, %s3553_s16  ;;  %3085 = vst.msk [vmem:[%s6153_s1 + $0x10] sm:$0xff] %vm734_vm7, %v824_v47   ;;  %v801_v52 = vpop.permute.xlu0 %800   ;;  %s2049_s6 = smov 48 }
  0xc8   :  { %v916_v36 = vpop.permute.xlu2 %915   ;;  %v3289_v46 = vld [vmem:[%s6152_s0 + $0x187] ss:$16 sm:%s1780_s9]   ;;  %v1778_v48 = vsel %vm10_vm1, %v3288_v45, %v1773_v44  ;;  %s1660_s9 = smov 48  ;;  %3080 = vst.msk [vmem:[%s6153_s1 + $0x28] sm:$0xff] %vm734_vm7, %v801_v52  }
  0xc9   :  { %v3281_v49 = vld [vmem:[%s6152_s0 + $0x307] ss:$16 sm:%s1744_s14]   ;;  %v1783_v53 = vsel %vm14_vm2, %v3289_v46, %v1778_v48  ;;  %v3300_v1 = vld [vmem:[%s6152_s0 + $0x206] ss:$16 sm:%s1835_s5]   ;;  %s1721_s5 = smov 3  ;;  %s3556_s14 = smov 32  }
  0xca   :  { %v3282_v50 = vld [vmem:[%s6152_s0 + $0x307] ss:$16 sm:%s1747_s20]   ;;  %1601 = vrot.lane.b32.xlu2 %v1600_v43, %s3552_s13  ;;  %s1838_s20 = smov 12  ;;  %1784 = vrot.lane.b32.xlu1 %v1783_v53, %s3553_s16  ;;  %s1803_s13 = smov 192 }
  0xcb   :  { %v3283_v51 = vld [vmem:[%s6152_s0 + $0x307] ss:$16 sm:%s1752_s21]   ;;  %v1750_v54 = vsel %vm6_vm0, %v3282_v50, %v3281_v49  ;;  %s1843_s21 = smov 48  ;;  %918 = vst.msk [vmem:[%s6153_s1] sm:$0xff] %vm917_vm8, %v916_v36   ;;  %v893_v8 = vpop.permute.xlu1 %892  }
  0xcc   :  { %v3284_v55 = vld [vmem:[%s6152_s0 + $0x307] ss:$16 sm:%s1757_s24]   ;;  %v1755_v56 = vsel %vm10_vm1, %v3283_v51, %v1750_v54  ;;  %s1848_s24 = smov 192  ;;  %v3301_v2 = vld [vmem:[%s6152_s0 + $0x206] ss:$16 sm:%s1838_s20]   ;;  %s1724_s20 = smov 12 }
  0xcd   :  { %v3261_v57 = vld [vmem:[%s6152_s0 + $0x207] ss:$16 sm:%s1652_s3]   ;;  %v1760_v63 = vsel %vm14_vm2, %v3284_v55, %v1755_v56  ;;  %v3302_v3 = vld [vmem:[%s6152_s0 + $0x206] ss:$16 sm:%s1843_s21]   ;;  %v1841_v5 = vsel %vm6_vm0, %v3301_v2, %v3300_v1  ;;  %s1729_s21 = smov 48  ;;  %s1930_s3 = smov 12 }
  0xce   :  { %v3262_v58 = vld [vmem:[%s6152_s0 + $0x207] ss:$16 sm:%s1655_s4]   ;;  %v3303_v6 = vld [vmem:[%s6152_s0 + $0x206] ss:$16 sm:%s1848_s24]   ;;  %v1846_v9 = vsel %vm10_vm1, %v3302_v3, %v1841_v5  ;;  %s1734_s24 = smov 192  ;;  %s1907_s4 = smov 12 }
  0xcf   :  { %v1658_v59 = vsel %vm6_vm0, %v3262_v58, %v3261_v57  ;;  %v3263_v60 = vld [vmem:[%s6152_s0 + $0x207] ss:$16 sm:%s1660_s9]   ;;  %s1821_s9 = smov 48  ;;  %v3296_v7 = vld [vmem:[%s6152_s0 + $0x6] ss:$16 sm:%s1813_s17]   ;;  %v870_v14 = vpop.permute.xlu0 %869   ;;  %s1904_s17 = smov 3  ;;  %v1851_v15 = vsel %vm14_vm2, %v3303_v6, %v1846_v9 }
  0xd0   :  { %v3264_v61 = vld [vmem:[%s6152_s0 + $0x207] ss:$16 sm:%s1665_s10]   ;;  %v984_v62 = vpop.permute.xlu2 %983   ;;  %v1663_v0 = vsel %vm10_vm1, %v3263_v60, %v1658_v59  ;;  %s1826_s10 = smov 192  ;;  %1761 = vrot.lane.b32.xlu0 %v1760_v63, %s3553_s16  ;;  %3100 = vst.msk [vmem:[%s6153_s1 + $0x38] sm:$0xff] %vm734_vm7, %v893_v8  }
  0xd1   :  { %v1668_v4 = vsel %vm14_vm2, %v3264_v61, %v1663_v0  ;;  %v3297_v10 = vld [vmem:[%s6152_s0 + $0x6] ss:$16 sm:%s1816_s2]   ;;  %3095 = vst.msk [vmem:[%s6153_s1 + $0x18] sm:$0xff] %vm734_vm7, %v870_v14   ;;  %s2041_s2 = smov 3 }
  0xd2   :  { %v1819_v11 = vsel %vm6_vm0, %v3297_v10, %v3296_v7  ;;  %v3298_v12 = vld [vmem:[%s6152_s0 + $0x6] ss:$16 sm:%s1821_s9]   ;;  %1669 = vrot.lane.b32.xlu2 %v1668_v4, %s3553_s16  ;;  %s1912_s9 = smov 48  ;;  %1852 = vrot.lane.b32.xlu1 %v1851_v15, %s3554_s12 }
  0xd3   :  { %v3299_v13 = vld [vmem:[%s6152_s0 + $0x6] ss:$16 sm:%s1826_s10]   ;;  %v1824_v16 = vsel %vm10_vm1, %v3298_v12, %v1819_v11  ;;  %v3276_v17 = vld [vmem:[%s6152_s0 + $0x107] ss:$16 sm:%s1721_s5]   ;;  %s1917_s10 = smov 192  ;;  %s1881_s5 = smov 3  ;;  %v961_v34 = vpop.permute.xlu1 %960  }
  0xd4   :  { %v3277_v18 = vld [vmem:[%s6152_s0 + $0x107] ss:$16 sm:%s1724_s20]   ;;  %v3315_v22 = vld [vmem:[%s6152_s0 + $0x106] ss:$16 sm:%s1904_s17]   ;;  %v1829_v23 = vsel %vm14_vm2, %v3299_v13, %v1824_v16  ;;  %s1889_s20 = smov 48  ;;  %s1894_s17 = smov 192 }
  0xd5   :  { %v3278_v19 = vld [vmem:[%s6152_s0 + $0x107] ss:$16 sm:%s1729_s21]   ;;  %v1727_v20 = vsel %vm6_vm0, %v3277_v18, %v3276_v17  ;;  %v3316_v25 = vld [vmem:[%s6152_s0 + $0x106] ss:$16 sm:%s1907_s4]   ;;  %s2113_s21 = smov 12  ;;  %s2090_s4 = smov 12 }
  0xd6   :  { %v3279_v21 = vld [vmem:[%s6152_s0 + $0x107] ss:$16 sm:%s1734_s24]   ;;  %v1732_v24 = vsel %vm10_vm1, %v3278_v19, %v1727_v20  ;;  %3119 = vst.msk [vmem:[%s6153_s1 + $0x28] sm:$0xff] %vm917_vm8, %v984_v62   ;;  %v1910_v26 = vsel %vm6_vm0, %v3316_v25, %v3315_v22  ;;  %s1927_s24 = smov 3 }
  0xd7   :  { %v3317_v27 = vld [vmem:[%s6152_s0 + $0x106] ss:$16 sm:%s1912_s9]   ;;  %v1737_v30 = vsel %vm14_vm2, %v3279_v21, %v1732_v24  ;;  %3114 = vst.msk [vmem:[%s6153_s1 + $0x8] sm:$0xff] %vm917_vm8, %v961_v34   ;;  %v938_v38 = vpop.permute.xlu0 %937   ;;  %s2095_s9 = smov 48 }
  0xd8   :  { %v3318_v28 = vld [vmem:[%s6152_s0 + $0x106] ss:$16 sm:%s1917_s10]   ;;  %v1053_v29 = vpop.permute.xlu2 %1052   ;;  %v1915_v31 = vsel %vm10_vm1, %v3317_v27, %v1910_v26  ;;  %1830 = vrot.lane.b32.xlu0 %v1829_v23, %s3554_s12  ;;  %s1798_s10 = smov 48  ;;  %3109 = vst.msk [vmem:[%s6153_s1 + $0x20] sm:$0xff] %vm917_vm8, %v938_v38  }
  0xd9   :  { %v3310_v32 = vld [vmem:[%s6152_s0 + $0x286] ss:$16 sm:%s1881_s5]   ;;  %v3291_v39 = vld [vmem:[%s6152_s0 + $0x387] ss:$16 sm:%s1790_s30]   ;;  %v1920_v40 = vsel %vm14_vm2, %v3318_v28, %v1915_v31  ;;  %s1986_s30 = smov 192  ;;  %s2110_s5 = smov 3 }
  0xda   :  { %v3311_v33 = vld [vmem:[%s6152_s0 + $0x286] ss:$16 sm:%s1884_s29]   ;;  %s1973_s29 = smov 3  ;;  %1738 = vrot.lane.b32.xlu2 %v1737_v30, %s3553_s16  ;;  %1921 = vrot.lane.b32.xlu1 %v1920_v40, %s3554_s12 }
  0xdb   :  { %v1887_v35 = vsel %vm6_vm0, %v3311_v33, %v3310_v32  ;;  %v3312_v36 = vld [vmem:[%s6152_s0 + $0x286] ss:$16 sm:%s1889_s20]   ;;  %v3292_v42 = vld [vmem:[%s6152_s0 + $0x387] ss:$16 sm:%s1793_s7]   ;;  %v1030_v58 = vpop.permute.xlu1 %1029   ;;  %s2146_s7 = smov 192  ;;  %s2329_s20 = smov 192 }
  0xdc   :  { %v3313_v37 = vld [vmem:[%s6152_s0 + $0x286] ss:$16 sm:%s1894_s17]   ;;  %v1892_v41 = vsel %vm10_vm1, %v3312_v36, %v1887_v35  ;;  %v1796_v43 = vsel %vm6_vm0, %v3292_v42, %v3291_v39  ;;  %v3293_v44 = vld [vmem:[%s6152_s0 + $0x387] ss:$16 sm:%s1798_s10]   ;;  %s1963_s10 = smov 192  ;;  %s2365_s17 = smov 12 }
  0xdd   :  { %v3294_v45 = vld [vmem:[%s6152_s0 + $0x387] ss:$16 sm:%s1803_s13]   ;;  %v1801_v46 = vsel %vm10_vm1, %v3293_v44, %v1796_v43  ;;  %v3330_v47 = vld [vmem:[%s6152_s0 + $0x386] ss:$16 sm:%s1973_s29]   ;;  %v1897_v49 = vsel %vm14_vm2, %v3313_v37, %v1892_v41  ;;  %s2018_s29 = smov 3  ;;  %s1996_s13 = smov 3 }
  0xde   :  { %v3331_v48 = vld [vmem:[%s6152_s0 + $0x386] ss:$16 sm:%s1976_s27]   ;;  %3134 = vst.msk [vmem:[%s6153_s1 + $0x18] sm:$0xff] %vm917_vm8, %v1053_v29   ;;  %s1858_s27 = smov 3  ;;  %v1806_v54 = vsel %vm14_vm2, %v3294_v45, %v1801_v46 }
  0xdf   :  { %v1979_v50 = vsel %vm6_vm0, %v3331_v48, %v3330_v47  ;;  %v3332_v51 = vld [vmem:[%s6152_s0 + $0x386] ss:$16 sm:%s1981_s25]   ;;  %3129 = vst.msk [vmem:[%s6153_s1 + $0x30] sm:$0xff] %vm917_vm8, %v1030_v58   ;;  %v1007_v61 = vpop.permute.xlu0 %1006   ;;  %s2054_s25 = smov 192 }
  0xe0   :  { %v3333_v52 = vld [vmem:[%s6152_s0 + $0x386] ss:$16 sm:%s1986_s30]   ;;  %v1984_v55 = vsel %vm10_vm1, %v3332_v51, %v1979_v50  ;;  %1898 = vrot.lane.b32.xlu0 %v1897_v49, %s3554_s12  ;;  %3124 = vst.msk [vmem:[%s6153_s1 + $0x10] sm:$0xff] %vm917_vm8, %v1007_v61   ;;  %s2179_s30 = smov 3 }
  0xe1   :  { %v3325_v53 = vld [vmem:[%s6152_s0 + $0x186] ss:$16 sm:%s1950_s28]   ;;  %s1871_s28 = smov 192  ;;  %v1989_v0 = vsel %vm14_vm2, %v3333_v52, %v1984_v55  ;;  %v3344_v5 = vld [vmem:[%s6152_s0 + $0x85] ss:$16 sm:%s2041_s2]   ;;  %s2319_s2 = smov 12 }
  0xe2   :  { %v3326_v56 = vld [vmem:[%s6152_s0 + $0x186] ss:$16 sm:%s1953_s8]   ;;  %1807 = vrot.lane.b32.xlu2 %v1806_v54, %s3553_s16  ;;  %1990 = vrot.lane.b32.xlu1 %v1989_v0, %s3554_s12  ;;  %v1121_v18 = vpop.permute.xlu2 %1120   ;;  %s2123_s16 = smov 192  ;;  %s2009_s8 = smov 192 }
  0xe3   :  { %v3327_v57 = vld [vmem:[%s6152_s0 + $0x186] ss:$16 sm:%s1958_s15]   ;;  %v1956_v59 = vsel %vm6_vm0, %v3326_v56, %v3325_v53  ;;  %s2044_s15 = smov 12  ;;  %v3346_v8 = vld [vmem:[%s6152_s0 + $0x85] ss:$16 sm:%s2049_s6]   ;;  %v1099_v19 = vpop.permute.xlu1 %1098   ;;  %s1935_s6 = smov 48 }
  0xe4   :  { %v3328_v60 = vld [vmem:[%s6152_s0 + $0x186] ss:$16 sm:%s1963_s10]   ;;  %v1961_v1 = vsel %vm10_vm1, %v3327_v57, %v1956_v59  ;;  %v3345_v7 = vld [vmem:[%s6152_s0 + $0x85] ss:$16 sm:%s2044_s15]   ;;  %s3555_s10 = smov 40   ;;  %s2187_s15 = smov 48 }
  0xe5   :  { %v3305_v62 = vld [vmem:[%s6152_s0 + $0x86] ss:$16 sm:%s1858_s27]   ;;  %s2021_s27 = smov 12  ;;  %v1966_v9 = vsel %vm14_vm2, %v3328_v60, %v1961_v1  ;;  %v2047_v10 = vsel %vm6_vm0, %v3345_v7, %v3344_v5  ;;  %v3339_v11 = vld [vmem:[%s6152_s0 + $0x205] ss:$16 sm:%s2018_s29]   ;;  %s1999_s29 = smov 12 }
  0xe6   :  { %v3306_v63 = vld [vmem:[%s6152_s0 + $0x86] ss:$16 sm:%s1861_s19]   ;;  %v3340_v12 = vld [vmem:[%s6152_s0 + $0x205] ss:$16 sm:%s2021_s27]   ;;  %v2052_v14 = vsel %vm10_vm1, %v3346_v8, %v2047_v10  ;;  %s2004_s27 = smov 48  ;;  %s2237_s19 = smov 192 }
  0xe7   :  { %v1864_v2 = vsel %vm6_vm0, %v3306_v63, %v3305_v62  ;;  %v3307_v3 = vld [vmem:[%s6152_s0 + $0x86] ss:$16 sm:%s1866_s26]   ;;  %s2026_s26 = smov 48  ;;  %v3347_v15 = vld [vmem:[%s6152_s0 + $0x85] ss:$16 sm:%s2054_s25]   ;;  %v2024_v16 = vsel %vm6_vm0, %v3340_v12, %v3339_v11  ;;  %v1076_v22 = vpop.permute.xlu0 %1075   ;;  %s2100_s25 = smov 192 }
  0xe8   :  { %v3308_v4 = vld [vmem:[%s6152_s0 + $0x86] ss:$16 sm:%s1871_s28]   ;;  %v1869_v6 = vsel %vm10_vm1, %v3307_v3, %v1864_v2  ;;  %v3341_v17 = vld [vmem:[%s6152_s0 + $0x205] ss:$16 sm:%s2026_s26]   ;;  %v2057_v24 = vsel %vm14_vm2, %v3347_v15, %v2052_v14  ;;  %s2182_s28 = smov 12  ;;  %s2064_s26 = smov 3 }
  0xe9   :  { %v1874_v13 = vsel %vm14_vm2, %v3308_v4, %v1869_v6  ;;  %1967 = vrot.lane.b32.xlu0 %v1966_v9, %s3554_s12  ;;  %v3342_v20 = vld [vmem:[%s6152_s0 + $0x205] ss:$16 sm:%s2031_s23]   ;;  %3148 = vst.msk [vmem:[%s6153_s1 + $0x20] sm:$0xff] %vm1100_vm9, %v1121_v18   ;;  %v2029_v25 = vsel %vm10_vm1, %v3341_v17, %v2024_v16  ;;  %s2316_s23 = smov 3 }
  0xea   :  { %v3320_v21 = vld [vmem:[%s6152_s0 + $0x306] ss:$16 sm:%s1927_s24]   ;;  %1101 = vst.msk [vmem:[%s6153_s1] sm:$0xff] %vm1100_vm9, %v1099_v19   ;;  %1875 = vrot.lane.b32.xlu2 %v1874_v13, %s3554_s12  ;;  %v2034_v33 = vsel %vm14_vm2, %v3342_v20, %v2029_v25  ;;  %s2201_s24 = smov 3 }
  0xeb   :  { %v3321_v23 = vld [vmem:[%s6152_s0 + $0x306] ss:$16 sm:%s1930_s3]   ;;  %3139 = vst.msk [vmem:[%s6153_s1 + $0x38] sm:$0xff] %vm917_vm8, %v1076_v22   ;;  %s2087_s3 = smov 3  ;;  %2058 = vrot.lane.b32.xlu1 %v2057_v24, %s3555_s10  ;;  %v1167_v42 = vpop.permute.xlu1 %1166  }
  0xec   :  { %v1933_v26 = vsel %vm6_vm0, %v3321_v23, %v3320_v21  ;;  %v3322_v27 = vld [vmem:[%s6152_s0 + $0x306] ss:$16 sm:%s1935_s6]   ;;  %v3359_v29 = vld [vmem:[%s6152_s0 + $0x305] ss:$16 sm:%s2110_s5]   ;;  %s2209_s6 = smov 48  ;;  %s2570_s5 = smov 12 }
  0xed   :  { %v3323_v28 = vld [vmem:[%s6152_s0 + $0x306] ss:$16 sm:%s1940_s18]   ;;  %v1938_v30 = vsel %vm10_vm1, %v3322_v27, %v1933_v26  ;;  %v3360_v31 = vld [vmem:[%s6152_s0 + $0x305] ss:$16 sm:%s2113_s21]   ;;  %s2296_s18 = smov 12  ;;  %s2603_s21 = smov 192 }
  0xee   :  { %v3361_v32 = vld [vmem:[%s6152_s0 + $0x305] ss:$16 sm:%s2118_s22]   ;;  %v2116_v34 = vsel %vm6_vm0, %v3360_v31, %v3359_v29  ;;  %v1943_v37 = vsel %vm14_vm2, %v3323_v28, %v1938_v30  ;;  %3158 = vst.msk [vmem:[%s6153_s1 + $0x28] sm:$0xff] %vm1100_vm9, %v1167_v42   ;;  %s2278_s22 = smov 48 }
  0xef   :  { %v3354_v35 = vld [vmem:[%s6152_s0 + $0x105] ss:$16 sm:%s2087_s3]   ;;  %v2121_v38 = vsel %vm10_vm1, %v3361_v32, %v2116_v34  ;;  %v1144_v44 = vpop.permute.xlu0 %1143   ;;  %v3374_v51 = vld [vmem:[%s6152_s0 + $0x4] ss:$16 sm:%s2179_s30]   ;;  %s2204_s3 = smov 12  ;;  %s2479_s30 = smov 12 }
  0xf0   :  { %v3355_v36 = vld [vmem:[%s6152_s0 + $0x105] ss:$16 sm:%s2090_s4]   ;;  %3153 = vst.msk [vmem:[%s6153_s1 + $0x8] sm:$0xff] %vm1100_vm9, %v1144_v44   ;;  %s2397_s4 = smov 192 }
  0xf1   :  { %v3362_v39 = vld [vmem:[%s6152_s0 + $0x305] ss:$16 sm:%s2123_s16]   ;;  %v2093_v40 = vsel %vm6_vm0, %v3355_v36, %v3354_v35  ;;  %2035 = vrot.lane.b32.xlu0 %v2034_v33, %s3555_s10  ;;  %v1190_v53 = vpop.permute.xlu2 %1189   ;;  %s2324_s16 = smov 48 }
  0xf2   :  { %v3356_v41 = vld [vmem:[%s6152_s0 + $0x105] ss:$16 sm:%s2095_s9]   ;;  %1944 = vrot.lane.b32.xlu2 %v1943_v37, %s3554_s12  ;;  %v2126_v47 = vsel %vm14_vm2, %v3362_v39, %v2121_v38  ;;  %3163 = vst.msk [vmem:[%s6153_s1 + $0x10] sm:$0xff] %vm1100_vm9, %v1190_v53   ;;  %s2293_s9 = smov 3  ;;  %s2306_s12 = smov 192 }
  0xf3   :  { %v3335_v43 = vld [vmem:[%s6152_s0 + $0x5] ss:$16 sm:%s1996_s13]   ;;  %v2098_v48 = vsel %vm10_vm1, %v3356_v41, %v2093_v40  ;;  %s2156_s13 = smov 3  ;;  %v3375_v52 = vld [vmem:[%s6152_s0 + $0x4] ss:$16 sm:%s2182_s28]   ;;  %s2067_s28 = smov 12  ;;  %v1236_v2 = vpop.permute.xlu1 %1235  }
  0xf4   :  { %v3336_v45 = vld [vmem:[%s6152_s0 + $0x5] ss:$16 sm:%s1999_s29]   ;;  %s2192_s29 = smov 192  ;;  %v2185_v56 = vsel %vm6_vm0, %v3375_v52, %v3374_v51  ;;  %v3376_v57 = vld [vmem:[%s6152_s0 + $0x4] ss:$16 sm:%s2187_s15]   ;;  %s2072_s15 = smov 48 }
  0xf5   :  { %v3337_v46 = vld [vmem:[%s6152_s0 + $0x5] ss:$16 sm:%s2004_s27]   ;;  %v2002_v50 = vsel %vm6_vm0, %v3336_v45, %v3335_v43  ;;  %s2159_s27 = smov 12  ;;  %2127 = vrot.lane.b32.xlu1 %v2126_v47, %s3555_s10  ;;  %v2190_v63 = vsel %vm10_vm1, %v3376_v57, %v2185_v56  ;;  %3173 = vst.msk [vmem:[%s6153_s1 + $0x18] sm:$0xff] %vm1100_vm9, %v1236_v2  }
  0xf6   :  { %v3357_v49 = vld [vmem:[%s6152_s0 + $0x105] ss:$16 sm:%s2100_s25]   ;;  %v2007_v54 = vsel %vm10_vm1, %v3337_v46, %v2002_v50  ;;  %s2164_s25 = smov 48  ;;  %v3377_v60 = vld [vmem:[%s6152_s0 + $0x4] ss:$16 sm:%s2192_s29]   ;;  %s2077_s29 = smov 192 }
  0xf7   :  { %v3338_v55 = vld [vmem:[%s6152_s0 + $0x5] ss:$16 sm:%s2009_s8]   ;;  %v2103_v58 = vsel %vm14_vm2, %v3357_v49, %v2098_v48  ;;  %s2169_s8 = smov 192  ;;  %v1213_v6 = vpop.permute.xlu0 %1212   ;;  %v2195_v9 = vsel %vm14_vm2, %v3377_v60, %v2190_v63  ;;  %v3386_v28 = vld [vmem:[%s6152_s0 + $0x84] ss:$16 sm:%s2237_s19]   ;;  %s2387_s19 = smov 12 }
  0xf8   :  { %v3369_v59 = vld [vmem:[%s6152_s0 + $0x385] ss:$16 sm:%s2156_s13]   ;;  %v2012_v62 = vsel %vm14_vm2, %v3338_v55, %v2007_v54  ;;  %s2247_s13 = smov 3  ;;  %3168 = vst.msk [vmem:[%s6153_s1 + $0x30] sm:$0xff] %vm1100_vm9, %v1213_v6  }
  0xf9   :  { %v3370_v61 = vld [vmem:[%s6152_s0 + $0x385] ss:$16 sm:%s2159_s27]   ;;  %2104 = vrot.lane.b32.xlu0 %v2103_v58, %s3555_s10  ;;  %s2250_s27 = smov 12  ;;  %v1259_v14 = vpop.permute.xlu2 %1258  }
  0xfa   :  { %v2162_v0 = vsel %vm6_vm0, %v3370_v61, %v3369_v59  ;;  %v3371_v1 = vld [vmem:[%s6152_s0 + $0x385] ss:$16 sm:%s2164_s25]   ;;  %s2255_s25 = smov 48  ;;  %2013 = vrot.lane.b32.xlu2 %v2012_v62, %s3555_s10  ;;  %3178 = vst.msk [vmem:[%s6153_s1 + $0x38] sm:$0xff] %vm1100_vm9, %v1259_v14  }
  0xfb   :  { %v3349_v3 = vld [vmem:[%s6152_s0 + $0x285] ss:$16 sm:%s2064_s26]   ;;  %s2224_s26 = smov 3  ;;  %v2167_v10 = vsel %vm10_vm1, %v3371_v1, %v2162_v0  ;;  %v3388_v11 = vld [vmem:[%s6152_s0 + $0x284] ss:$16 sm:%s2247_s13]   ;;  %s2133_s13 = smov 3 }
  0xfc   :  { %v3350_v4 = vld [vmem:[%s6152_s0 + $0x285] ss:$16 sm:%s2067_s28]   ;;  %s2227_s28 = smov 12  ;;  %v3389_v13 = vld [vmem:[%s6152_s0 + $0x284] ss:$16 sm:%s2250_s27]   ;;  %s2214_s27 = smov 192 }
  0xfd   :  { %v3372_v5 = vld [vmem:[%s6152_s0 + $0x385] ss:$16 sm:%s2169_s8]   ;;  %v2070_v7 = vsel %vm6_vm0, %v3350_v4, %v3349_v3  ;;  %s2260_s8 = smov 192  ;;  %v2253_v16 = vsel %vm6_vm0, %v3389_v13, %v3388_v11  ;;  %v3390_v17 = vld [vmem:[%s6152_s0 + $0x284] ss:$16 sm:%s2255_s25]   ;;  %v1304_v34 = vpop.permute.xlu1 %1303   ;;  %s2453_s25 = smov 3 }
  0xfe   :  { %v3351_v8 = vld [vmem:[%s6152_s0 + $0x285] ss:$16 sm:%s2072_s15]   ;;  %s2232_s15 = smov 48  ;;  %v3383_v18 = vld [vmem:[%s6152_s0 + $0x84] ss:$16 sm:%s2224_s26]   ;;  %v2172_v19 = vsel %vm14_vm2, %v3372_v5, %v2167_v10  ;;  %s2141_s26 = smov 48  ;;  %v2258_v24 = vsel %vm10_vm1, %v3390_v17, %v2253_v16 }
  0xff   :  { %v3352_v12 = vld [vmem:[%s6152_s0 + $0x285] ss:$16 sm:%s2077_s29]   ;;  %v2075_v15 = vsel %vm10_vm1, %v3351_v8, %v2070_v7  ;;  %2196 = vrot.lane.b32.xlu1 %v2195_v9, %s3556_s14  ;;  %3187 = vst.msk [vmem:[%s6153_s1 + $0x20] sm:$0xff] %vm1283_vm10, %v1304_v34   ;;  %s2375_s29 = smov 192 }
 0x100   :  { %v3384_v20 = vld [vmem:[%s6152_s0 + $0x84] ss:$16 sm:%s2227_s28]   ;;  %v2080_v23 = vsel %vm14_vm2, %v3352_v12, %v2075_v15  ;;  %v3364_v26 = vld [vmem:[%s6152_s0 + $0x185] ss:$16 sm:%s2133_s13]   ;;  %s2502_s28 = smov 12  ;;  %s2407_s13 = smov 3 }
 0x101   :  { %v3391_v21 = vld [vmem:[%s6152_s0 + $0x284] ss:$16 sm:%s2260_s8]   ;;  %v2230_v25 = vsel %vm6_vm0, %v3384_v20, %v3383_v18  ;;  %v3365_v27 = vld [vmem:[%s6152_s0 + $0x185] ss:$16 sm:%s2136_s11]   ;;  %v1282_v38 = vpop.permute.xlu0 %1281   ;;  %s2433_s11 = smov 12  ;;  %s2535_s8 = smov 192 }
 0x102   :  { %v3385_v22 = vld [vmem:[%s6152_s0 + $0x84] ss:$16 sm:%s2232_s15]   ;;  %2173 = vrot.lane.b32.xlu0 %v2172_v19, %s3555_s10  ;;  %v2139_v29 = vsel %vm6_vm0, %v3365_v27, %v3364_v26  ;;  %2081 = vrot.lane.b32.xlu2 %v2080_v23, %s3555_s10  ;;  %v2263_v32 = vsel %vm14_vm2, %v3391_v21, %v2258_v24  ;;  %s2507_s15 = smov 48 }
 0x103   :  { %v3366_v30 = vld [vmem:[%s6152_s0 + $0x185] ss:$16 sm:%s2141_s26]   ;;  %v3403_v31 = vld [vmem:[%s6152_s0 + $0x184] ss:$16 sm:%s2316_s23]   ;;  %v2235_v33 = vsel %vm10_vm1, %v3385_v22, %v2230_v25  ;;  %s2301_s23 = smov 48  ;;  %s2392_s26 = smov 48 }
 0x104   :  { %v3404_v35 = vld [vmem:[%s6152_s0 + $0x184] ss:$16 sm:%s2319_s2]   ;;  %v3367_v36 = vld [vmem:[%s6152_s0 + $0x185] ss:$16 sm:%s2146_s7]   ;;  %v1327_v37 = vpop.permute.xlu2 %1326   ;;  %v2144_v39 = vsel %vm10_vm1, %v3366_v30, %v2139_v29  ;;  %v2240_v43 = vsel %vm14_vm2, %v3386_v28, %v2235_v33  ;;  %s2370_s7 = smov 48  ;;  %s2593_s2 = smov 12 }
 0x105   :  { %v2322_v40 = vsel %vm6_vm0, %v3404_v35, %v3403_v31  ;;  %v3405_v41 = vld [vmem:[%s6152_s0 + $0x184] ss:$16 sm:%s2324_s16]   ;;  %3192 = vst.msk [vmem:[%s6153_s1 + $0x8] sm:$0xff] %vm1283_vm10, %v1327_v37   ;;  %v2149_v46 = vsel %vm14_vm2, %v3367_v36, %v2144_v39  ;;  %s2270_s16 = smov 3 }
 0x106   :  { %v3398_v42 = vld [vmem:[%s6152_s0 + $0x304] ss:$16 sm:%s2293_s9]   ;;  %1284 = vst.msk [vmem:[%s6153_s1] sm:$0xff] %vm1283_vm10, %v1282_v38   ;;  %v2327_v47 = vsel %vm10_vm1, %v3405_v41, %v2322_v40  ;;  %s2273_s9 = smov 12 }
 0x107   :  { %2264 = vrot.lane.b32.xlu1 %v2263_v32, %s3556_s14  ;;  %v3399_v44 = vld [vmem:[%s6152_s0 + $0x304] ss:$16 sm:%s2296_s18]   ;;  %s2384_s18 = smov 3 }
 0x108   :  { %v3406_v45 = vld [vmem:[%s6152_s0 + $0x184] ss:$16 sm:%s2329_s20]   ;;  %v2299_v48 = vsel %vm6_vm0, %v3399_v44, %v3398_v42  ;;  %v3417_v57 = vld [vmem:[%s6152_s0 + $0x203] ss:$16 sm:%s2384_s18]   ;;  %s2438_s20 = smov 48  ;;  %s2525_s18 = smov 12 }
 0x109   :  { %v3400_v49 = vld [vmem:[%s6152_s0 + $0x304] ss:$16 sm:%s2301_s23]   ;;  %s2362_s23 = smov 3  ;;  %v2332_v55 = vsel %vm14_vm2, %v3406_v45, %v2327_v47  ;;  %v3418_v59 = vld [vmem:[%s6152_s0 + $0x203] ss:$16 sm:%s2387_s19]   ;;  %s2466_s19 = smov 192 }
 0x10a   :  { %v3378_v50 = vld [vmem:[%s6152_s0 + $0x204] ss:$16 sm:%s2201_s24]   ;;  %2241 = vrot.lane.b32.xlu0 %v2240_v43, %s3556_s14  ;;  %2150 = vrot.lane.b32.xlu2 %v2149_v46, %s3555_s10  ;;  %v2304_v56 = vsel %vm10_vm1, %v3400_v49, %v2299_v48  ;;  %v2390_v62 = vsel %vm6_vm0, %v3418_v59, %v3417_v57  ;;  %s2342_s10 = smov 12  ;;  %s3557_s24 = smov 24  }
 0x10b   :  { %v3379_v51 = vld [vmem:[%s6152_s0 + $0x204] ss:$16 sm:%s2204_s3]   ;;  %v3419_v63 = vld [vmem:[%s6152_s0 + $0x203] ss:$16 sm:%s2392_s26]   ;;  %s2443_s3 = smov 192  ;;  %s2415_s26 = smov 48 }
 0x10c   :  { %v3401_v52 = vld [vmem:[%s6152_s0 + $0x304] ss:$16 sm:%s2306_s12]   ;;  %v2207_v53 = vsel %vm6_vm0, %v3379_v51, %v3378_v50  ;;  %v1396_v60 = vpop.permute.xlu2 %1395   ;;  %v3413_v0 = vld [vmem:[%s6152_s0 + $0x3] ss:$16 sm:%s2362_s23]   ;;  %v1373_v5 = vpop.permute.xlu1 %1372   ;;  %v2395_v7 = vsel %vm10_vm1, %v3419_v63, %v2390_v62  ;;  %s2339_s23 = smov 3  ;;  %s2347_s12 = smov 48 }
 0x10d   :  { %v3380_v54 = vld [vmem:[%s6152_s0 + $0x204] ss:$16 sm:%s2209_s6]   ;;  %v2309_v1 = vsel %vm14_vm2, %v3401_v52, %v2304_v56  ;;  %3207 = vst.msk [vmem:[%s6153_s1 + $0x30] sm:$0xff] %vm1283_vm10, %v1396_v60   ;;  %s2461_s6 = smov 48 }
 0x10e   :  { %v3381_v58 = vld [vmem:[%s6152_s0 + $0x204] ss:$16 sm:%s2214_s27]   ;;  %v2212_v61 = vsel %vm10_vm1, %v3380_v54, %v2207_v53  ;;  %v3414_v2 = vld [vmem:[%s6152_s0 + $0x3] ss:$16 sm:%s2365_s17]   ;;  %s2456_s17 = smov 12  ;;  %s2888_s27 = smov 3 }
 0x10f   :  { %2333 = vrot.lane.b32.xlu1 %v2332_v55, %s3556_s14  ;;  %v3420_v3 = vld [vmem:[%s6152_s0 + $0x203] ss:$16 sm:%s2397_s4]   ;;  %v2217_v6 = vsel %vm14_vm2, %v3381_v58, %v2212_v61  ;;  %v2368_v8 = vsel %vm6_vm0, %v3414_v2, %v3413_v0  ;;  %3202 = vst.msk [vmem:[%s6153_s1 + $0x10] sm:$0xff] %vm1283_vm10, %v1373_v5   ;;  %s2283_s4 = smov 192 }
 0x110   :  { %v3415_v4 = vld [vmem:[%s6152_s0 + $0x3] ss:$16 sm:%s2370_s7]   ;;  %v3393_v9 = vld [vmem:[%s6152_s0 + $0x104] ss:$16 sm:%s2270_s16]   ;;  %s2430_s16 = smov 3  ;;  %v1350_v15 = vpop.permute.xlu0 %1349   ;;  %v2400_v16 = vsel %vm14_vm2, %v3420_v3, %v2395_v7  ;;  %s2580_s7 = smov 192 }
 0x111   :  { %v3394_v10 = vld [vmem:[%s6152_s0 + $0x104] ss:$16 sm:%s2273_s9]   ;;  %v3416_v11 = vld [vmem:[%s6152_s0 + $0x3] ss:$16 sm:%s2375_s29]   ;;  %v2373_v17 = vsel %vm10_vm1, %v3415_v4, %v2368_v8  ;;  %s2659_s9 = smov 3  ;;  %s2708_s29 = smov 12 }
 0x112   :  { %2310 = vrot.lane.b32.xlu0 %v2309_v1, %s3556_s14  ;;  %v2276_v12 = vsel %vm6_vm0, %v3394_v10, %v3393_v9  ;;  %v3395_v13 = vld [vmem:[%s6152_s0 + $0x104] ss:$16 sm:%s2278_s22]   ;;  %2218 = vrot.lane.b32.xlu2 %v2217_v6, %s3556_s14  ;;  %v2378_v25 = vsel %vm14_vm2, %v3416_v11, %v2373_v17  ;;  %s2575_s22 = smov 48 }
 0x113   :  { %v3432_v14 = vld [vmem:[%s6152_s0 + $0x103] ss:$16 sm:%s2453_s25]   ;;  %3197 = vst.msk [vmem:[%s6153_s1 + $0x28] sm:$0xff] %vm1283_vm10, %v1350_v15   ;;  %v2281_v21 = vsel %vm10_vm1, %v3395_v13, %v2276_v12  ;;  %s2713_s25 = smov 48 }
 0x114   :  { %v3433_v18 = vld [vmem:[%s6152_s0 + $0x103] ss:$16 sm:%s2456_s17]   ;;  %v3396_v19 = vld [vmem:[%s6152_s0 + $0x104] ss:$16 sm:%s2283_s4]   ;;  %v1465_v20 = vpop.permute.xlu2 %1464   ;;  %v1442_v29 = vpop.permute.xlu1 %1441   ;;  %s2476_s17 = smov 3  ;;  %s2868_s4 = smov 12 }
 0x115   :  { %v2459_v22 = vsel %vm6_vm0, %v3433_v18, %v3432_v14  ;;  %v3434_v23 = vld [vmem:[%s6152_s0 + $0x103] ss:$16 sm:%s2461_s6]   ;;  %1467 = vst.msk [vmem:[%s6153_s1] sm:$0xff] %vm1466_vm11, %v1465_v20   ;;  %s2522_s6 = smov 3  ;;  %v2286_v30 = vsel %vm14_vm2, %v3396_v19, %v2281_v21 }
 0x116   :  { %v3427_v24 = vld [vmem:[%s6152_s0 + $0x283] ss:$16 sm:%s2430_s16]   ;;  %v2464_v31 = vsel %vm10_vm1, %v3434_v23, %v2459_v22  ;;  %v3408_v33 = vld [vmem:[%s6152_s0 + $0x384] ss:$16 sm:%s2339_s23]   ;;  %s2530_s23 = smov 48  ;;  %s2484_s16 = smov 48 }
 0x117   :  { %2401 = vrot.lane.b32.xlu1 %v2400_v16, %s3557_s24  ;;  %v3428_v26 = vld [vmem:[%s6152_s0 + $0x283] ss:$16 sm:%s2433_s11]   ;;  %3217 = vst.msk [vmem:[%s6153_s1 + $0x38] sm:$0xff] %vm1283_vm10, %v1442_v29   ;;  %s2410_s11 = smov 12 }
 0x118   :  { %v3435_v27 = vld [vmem:[%s6152_s0 + $0x103] ss:$16 sm:%s2466_s19]   ;;  %v2436_v32 = vsel %vm6_vm0, %v3428_v26, %v3427_v24  ;;  %v3409_v34 = vld [vmem:[%s6152_s0 + $0x384] ss:$16 sm:%s2342_s10]   ;;  %s2499_s10 = smov 3  ;;  %v1419_v39 = vpop.permute.xlu0 %1418   ;;  %s2512_s19 = smov 192 }
 0x119   :  { %v3429_v28 = vld [vmem:[%s6152_s0 + $0x283] ss:$16 sm:%s2438_s20]   ;;  %s2352_s20 = smov 192  ;;  %v2345_v36 = vsel %vm6_vm0, %v3409_v34, %v3408_v33  ;;  %v3410_v37 = vld [vmem:[%s6152_s0 + $0x384] ss:$16 sm:%s2347_s12]   ;;  %v2469_v40 = vsel %vm14_vm2, %v3435_v27, %v2464_v31  ;;  %s2644_s12 = smov 48 }
 0x11a   :  { %2379 = vrot.lane.b32.xlu0 %v2378_v25, %s3557_s24  ;;  %v3430_v35 = vld [vmem:[%s6152_s0 + $0x283] ss:$16 sm:%s2443_s3]   ;;  %2287 = vrot.lane.b32.xlu2 %v2286_v30, %s3556_s14  ;;  %v2441_v41 = vsel %vm10_vm1, %v3429_v28, %v2436_v32  ;;  %v2350_v45 = vsel %vm10_vm1, %v3410_v37, %v2345_v36  ;;  %s2731_s3 = smov 12 }
 0x11b   :  { %v3447_v38 = vld [vmem:[%s6152_s0 + $0x383] ss:$16 sm:%s2522_s6]   ;;  %3212 = vst.msk [vmem:[%s6153_s1 + $0x18] sm:$0xff] %vm1283_vm10, %v1419_v39   ;;  %v2446_v49 = vsel %vm14_vm2, %v3430_v35, %v2441_v41  ;;  %s2781_s6 = smov 48 }
 0x11c   :  { %v3448_v42 = vld [vmem:[%s6152_s0 + $0x383] ss:$16 sm:%s2525_s18]   ;;  %v3411_v43 = vld [vmem:[%s6152_s0 + $0x384] ss:$16 sm:%s2352_s20]   ;;  %v1533_v44 = vpop.permute.xlu2 %1532   ;;  %v1510_v53 = vpop.permute.xlu1 %1509   ;;  %s3558_s18 = smov 16   ;;  %s2649_s20 = smov 192 }
 0x11d   :  { %v2528_v46 = vsel %vm6_vm0, %v3448_v42, %v3447_v38  ;;  %v3449_v47 = vld [vmem:[%s6152_s0 + $0x383] ss:$16 sm:%s2530_s23]   ;;  %3236 = vst.msk [vmem:[%s6153_s1 + $0x28] sm:$0xff] %vm1466_vm11, %v1533_v44   ;;  %s2590_s23 = smov 3  ;;  %v2355_v54 = vsel %vm14_vm2, %v3411_v43, %v2350_v45 }
 0x11e   :  { %v3442_v48 = vld [vmem:[%s6152_s0 + $0x183] ss:$16 sm:%s2499_s10]   ;;  %v2533_v55 = vsel %vm10_vm1, %v3449_v47, %v2528_v46  ;;  %3231 = vst.msk [vmem:[%s6153_s1 + $0x8] sm:$0xff] %vm1466_vm11, %v1510_v53   ;;  %s2667_s10 = smov 48 }
 0x11f   :  { %2470 = vrot.lane.b32.xlu1 %v2469_v40, %s3557_s24  ;;  %v3443_v50 = vld [vmem:[%s6152_s0 + $0x183] ss:$16 sm:%s2502_s28]   ;;  %s2616_s28 = smov 12 }
 0x120   :  { %v3450_v51 = vld [vmem:[%s6152_s0 + $0x383] ss:$16 sm:%s2535_s8]   ;;  %v2505_v56 = vsel %vm6_vm0, %v3443_v50, %v3442_v48  ;;  %v3461_v62 = vld [vmem:[%s6152_s0 + $0x82] ss:$16 sm:%s2590_s23]   ;;  %v1487_v63 = vpop.permute.xlu0 %1486   ;;  %s2553_s23 = smov 48  ;;  %s2718_s8 = smov 192 }
 0x121   :  { %v3444_v52 = vld [vmem:[%s6152_s0 + $0x183] ss:$16 sm:%s2507_s15]   ;;  %s2420_s15 = smov 192  ;;  %v2538_v0 = vsel %vm14_vm2, %v3450_v51, %v2533_v55  ;;  %v3462_v2 = vld [vmem:[%s6152_s0 + $0x82] ss:$16 sm:%s2593_s2]   ;;  %s2639_s2 = smov 12 }
 0x122   :  { %v3422_v57 = vld [vmem:[%s6152_s0 + $0x83] ss:$16 sm:%s2407_s13]   ;;  %2447 = vrot.lane.b32.xlu0 %v2446_v49, %s3557_s24  ;;  %s2598_s13 = smov 48  ;;  %2356 = vrot.lane.b32.xlu2 %v2355_v54, %s3556_s14  ;;  %v2510_v1 = vsel %vm10_vm1, %v3444_v52, %v2505_v56  ;;  %v2596_v6 = vsel %vm6_vm0, %v3462_v2, %v3461_v62  ;;  %s2548_s14 = smov 12 }
 0x123   :  { %v3423_v58 = vld [vmem:[%s6152_s0 + $0x83] ss:$16 sm:%s2410_s11]   ;;  %s2567_s11 = smov 3  ;;  %3226 = vst.msk [vmem:[%s6153_s1 + $0x20] sm:$0xff] %vm1466_vm11, %v1487_v63  }
 0x124   :  { %v3445_v59 = vld [vmem:[%s6152_s0 + $0x183] ss:$16 sm:%s2512_s19]   ;;  %v2413_v60 = vsel %vm6_vm0, %v3423_v58, %v3422_v57  ;;  %v1602_v4 = vpop.permute.xlu2 %1601   ;;  %v3463_v7 = vld [vmem:[%s6152_s0 + $0x82] ss:$16 sm:%s2598_s13]   ;;  %v1579_v13 = vpop.permute.xlu1 %1578   ;;  %s2796_s13 = smov 3  ;;  %s2845_s19 = smov 12 }
 0x125   :  { %v3424_v61 = vld [vmem:[%s6152_s0 + $0x83] ss:$16 sm:%s2415_s26]   ;;  %v3456_v8 = vld [vmem:[%s6152_s0 + $0x202] ss:$16 sm:%s2567_s11]   ;;  %v2515_v9 = vsel %vm14_vm2, %v3445_v59, %v2510_v1  ;;  %v2601_v15 = vsel %vm10_vm1, %v3463_v7, %v2596_v6  ;;  %s2545_s11 = smov 3  ;;  %s2878_s26 = smov 192 }
 0x126   :  { %v3425_v3 = vld [vmem:[%s6152_s0 + $0x83] ss:$16 sm:%s2420_s15]   ;;  %v2418_v5 = vsel %vm10_vm1, %v3424_v61, %v2413_v60  ;;  %3251 = vst.msk [vmem:[%s6153_s1 + $0x18] sm:$0xff] %vm1466_vm11, %v1602_v4   ;;  %s2672_s15 = smov 192 }
 0x127   :  { %2539 = vrot.lane.b32.xlu1 %v2538_v0, %s3557_s24  ;;  %v3457_v10 = vld [vmem:[%s6152_s0 + $0x202] ss:$16 sm:%s2570_s5]   ;;  %v2423_v14 = vsel %vm14_vm2, %v3425_v3, %v2418_v5  ;;  %s2662_s5 = smov 12  ;;  %3246 = vst.msk [vmem:[%s6153_s1 + $0x30] sm:$0xff] %vm1466_vm11, %v1579_v13  }
 0x128   :  { %v3464_v11 = vld [vmem:[%s6152_s0 + $0x82] ss:$16 sm:%s2603_s21]   ;;  %v2573_v16 = vsel %vm6_vm0, %v3457_v10, %v3456_v8  ;;  %v3437_v17 = vld [vmem:[%s6152_s0 + $0x303] ss:$16 sm:%s2476_s17]   ;;  %s2489_s21 = smov 192  ;;  %s2636_s17 = smov 3  ;;  %v1556_v23 = vpop.permute.xlu0 %1555  }
 0x129   :  { %v3458_v12 = vld [vmem:[%s6152_s0 + $0x202] ss:$16 sm:%s2575_s22]   ;;  %v3438_v18 = vld [vmem:[%s6152_s0 + $0x303] ss:$16 sm:%s2479_s30]   ;;  %v2606_v24 = vsel %vm14_vm2, %v3464_v11, %v2601_v15  ;;  %s2741_s22 = smov 192  ;;  %s2613_s30 = smov 3 }
 0x12a   :  { %2516 = vrot.lane.b32.xlu0 %v2515_v9, %s3557_s24  ;;  %v3459_v19 = vld [vmem:[%s6152_s0 + $0x202] ss:$16 sm:%s2580_s7]   ;;  %v2482_v20 = vsel %vm6_vm0, %v3438_v18, %v3437_v17  ;;  %2424 = vrot.lane.b32.xlu2 %v2423_v14, %s3557_s24  ;;  %v2578_v25 = vsel %vm10_vm1, %v3458_v12, %v2573_v16 }
 0x12b   :  { %v3439_v21 = vld [vmem:[%s6152_s0 + $0x303] ss:$16 sm:%s2484_s16]   ;;  %v3476_v22 = vld [vmem:[%s6152_s0 + $0x302] ss:$16 sm:%s2659_s9]   ;;  %v2583_v33 = vsel %vm14_vm2, %v3459_v19, %v2578_v25  ;;  %s2621_s9 = smov 48 }
 0x12c   :  { %v3477_v26 = vld [vmem:[%s6152_s0 + $0x302] ss:$16 sm:%s2662_s5]   ;;  %3241 = vst.msk [vmem:[%s6153_s1 + $0x10] sm:$0xff] %vm1466_vm11, %v1556_v23   ;;  %v1670_v28 = vpop.permute.xlu2 %1669   ;;  %v2487_v29 = vsel %vm10_vm1, %v3439_v21, %v2482_v20  ;;  %v1648_v37 = vpop.permute.xlu1 %1647   ;;  %s3559_s5 = smov 8  }
 0x12d   :  { %v3440_v27 = vld [vmem:[%s6152_s0 + $0x303] ss:$16 sm:%s2489_s21]   ;;  %v2665_v30 = vsel %vm6_vm0, %v3477_v26, %v3476_v22  ;;  %v3478_v31 = vld [vmem:[%s6152_s0 + $0x302] ss:$16 sm:%s2667_s10]   ;;  %s2728_s10 = smov 3  ;;  %s2786_s21 = smov 192 }
 0x12e   :  { %v3471_v32 = vld [vmem:[%s6152_s0 + $0x102] ss:$16 sm:%s2636_s17]   ;;  %3265 = vst.msk [vmem:[%s6153_s1 + $0x20] sm:$0xff] %vm1649_vm12, %v1670_v28   ;;  %v2492_v38 = vsel %vm14_vm2, %v3440_v27, %v2487_v29  ;;  %v2670_v39 = vsel %vm10_vm1, %v3478_v31, %v2665_v30  ;;  %s2804_s17 = smov 48 }
 0x12f   :  { %2607 = vrot.lane.b32.xlu1 %v2606_v24, %s3558_s18  ;;  %v3472_v34 = vld [vmem:[%s6152_s0 + $0x102] ss:$16 sm:%s2639_s2]   ;;  %1650 = vst.msk [vmem:[%s6153_s1] sm:$0xff] %vm1649_vm12, %v1648_v37   ;;  %s2750_s2 = smov 3 }
 0x130   :  { %v3479_v35 = vld [vmem:[%s6152_s0 + $0x302] ss:$16 sm:%s2672_s15]   ;;  %v2642_v40 = vsel %vm6_vm0, %v3472_v34, %v3471_v32  ;;  %v3491_v46 = vld [vmem:[%s6152_s0 + $0x1] ss:$16 sm:%s2728_s10]   ;;  %v1625_v47 = vpop.permute.xlu0 %1624   ;;  %s2690_s10 = smov 48 }
 0x131   :  { %v3473_v36 = vld [vmem:[%s6152_s0 + $0x102] ss:$16 sm:%s2644_s12]   ;;  %s2558_s12 = smov 192  ;;  %v2675_v48 = vsel %vm14_vm2, %v3479_v35, %v2670_v39  ;;  %v3492_v50 = vld [vmem:[%s6152_s0 + $0x1] ss:$16 sm:%s2731_s3]   ;;  %s2776_s3 = smov 12 }
 0x132   :  { %v3452_v41 = vld [vmem:[%s6152_s0 + $0x2] ss:$16 sm:%s2545_s11]   ;;  %2584 = vrot.lane.b32.xlu0 %v2583_v33, %s3558_s18  ;;  %s2736_s11 = smov 48  ;;  %2493 = vrot.lane.b32.xlu2 %v2492_v38, %s3557_s24  ;;  %v2647_v49 = vsel %vm10_vm1, %v3473_v36, %v2642_v40  ;;  %v2734_v54 = vsel %vm6_vm0, %v3492_v50, %v3491_v46  ;;  %s2685_s24 = smov 12 }
 0x133   :  { %v3453_v42 = vld [vmem:[%s6152_s0 + $0x2] ss:$16 sm:%s2548_s14]   ;;  %s2705_s14 = smov 3  ;;  %3256 = vst.msk [vmem:[%s6153_s1 + $0x38] sm:$0xff] %vm1466_vm11, %v1625_v47  }
 0x134   :  { %v3474_v43 = vld [vmem:[%s6152_s0 + $0x102] ss:$16 sm:%s2649_s20]   ;;  %v2551_v44 = vsel %vm6_vm0, %v3453_v42, %v3452_v41  ;;  %v1739_v52 = vpop.permute.xlu2 %1738   ;;  %v3493_v55 = vld [vmem:[%s6152_s0 + $0x1] ss:$16 sm:%s2736_s11]   ;;  %v1716_v61 = vpop.permute.xlu1 %1715   ;;  %s2855_s11 = smov 192 }
 0x135   :  { %v3454_v45 = vld [vmem:[%s6152_s0 + $0x2] ss:$16 sm:%s2553_s23]   ;;  %v2652_v57 = vsel %vm14_vm2, %v3474_v43, %v2647_v49  ;;  %3280 = vst.msk [vmem:[%s6153_s1 + $0x10] sm:$0xff] %vm1649_vm12, %v1739_v52   ;;  %v2739_v63 = vsel %vm10_vm1, %v3493_v55, %v2734_v54  ;;  %s2850_s23 = smov 48 }
 0x136   :  { %v3455_v51 = vld [vmem:[%s6152_s0 + $0x2] ss:$16 sm:%s2558_s12]   ;;  %v2556_v53 = vsel %vm10_vm1, %v3454_v45, %v2551_v44  ;;  %v3494_v59 = vld [vmem:[%s6152_s0 + $0x1] ss:$16 sm:%s2741_s22]   ;;  %s2626_s22 = smov 192  ;;  %s2809_s12 = smov 192 }
 0x137   :  { %v3486_v56 = vld [vmem:[%s6152_s0 + $0x382] ss:$16 sm:%s2705_s14]   ;;  %2676 = vrot.lane.b32.xlu1 %v2675_v48, %s3558_s18  ;;  %v2561_v62 = vsel %vm14_vm2, %v3455_v51, %v2556_v53  ;;  %3275 = vst.msk [vmem:[%s6153_s1 + $0x28] sm:$0xff] %vm1649_vm12, %v1716_v61   ;;  %v2744_v8 = vsel %vm14_vm2, %v3494_v59, %v2739_v63  ;;  %s2682_s14 = smov 3 }
 0x138   :  { %v3487_v58 = vld [vmem:[%s6152_s0 + $0x382] ss:$16 sm:%s2708_s29]   ;;  %s2799_s29 = smov 12  ;;  %v3505_v6 = vld [vmem:[%s6152_s0 + $0x281] ss:$16 sm:%s2796_s13]   ;;  %s2758_s13 = smov 48 }
 0x139   :  { %v3488_v60 = vld [vmem:[%s6152_s0 + $0x382] ss:$16 sm:%s2713_s25]   ;;  %v2711_v0 = vsel %vm6_vm0, %v3487_v58, %v3486_v56  ;;  %v1693_v7 = vpop.permute.xlu0 %1692   ;;  %v3506_v10 = vld [vmem:[%s6152_s0 + $0x281] ss:$16 sm:%s2799_s29]   ;;  %s2763_s25 = smov 192 }
 0x13a   :  { %v3466_v1 = vld [vmem:[%s6152_s0 + $0x282] ss:$16 sm:%s2613_s30]   ;;  %2653 = vrot.lane.b32.xlu0 %v2652_v57, %s3558_s18  ;;  %s2773_s30 = smov 3  ;;  %2562 = vrot.lane.b32.xlu2 %v2561_v62, %s3558_s18  ;;  %v2716_v9 = vsel %vm10_vm1, %v3488_v60, %v2711_v0  ;;  %v2802_v14 = vsel %vm6_vm0, %v3506_v10, %v3505_v6 }
 0x13b   :  { %v3467_v2 = vld [vmem:[%s6152_s0 + $0x282] ss:$16 sm:%s2616_s28]   ;;  %3270 = vst.msk [vmem:[%s6153_s1 + $0x8] sm:$0xff] %vm1649_vm12, %v1693_v7  }
 0x13c   :  { %v3489_v3 = vld [vmem:[%s6152_s0 + $0x382] ss:$16 sm:%s2718_s8]   ;;  %v2619_v4 = vsel %vm6_vm0, %v3467_v2, %v3466_v1  ;;  %v1808_v12 = vpop.permute.xlu2 %1807   ;;  %v3507_v15 = vld [vmem:[%s6152_s0 + $0x281] ss:$16 sm:%s2804_s17]   ;;  %s2865_s17 = smov 3  ;;  %v1785_v21 = vpop.permute.xlu1 %1784  }
 0x13d   :  { %v3468_v5 = vld [vmem:[%s6152_s0 + $0x282] ss:$16 sm:%s2621_s9]   ;;  %v3500_v16 = vld [vmem:[%s6152_s0 + $0x81] ss:$16 sm:%s2773_s30]   ;;  %v2721_v17 = vsel %vm14_vm2, %v3489_v3, %v2716_v9  ;;  %v2807_v23 = vsel %vm10_vm1, %v3507_v15, %v2802_v14  ;;  %s2822_s30 = smov 12 }
 0x13e   :  { %v3469_v11 = vld [vmem:[%s6152_s0 + $0x282] ss:$16 sm:%s2626_s22]   ;;  %v2624_v13 = vsel %vm10_vm1, %v3468_v5, %v2619_v4  ;;  %3295 = vst.msk [vmem:[%s6153_s1 + $0x38] sm:$0xff] %vm1649_vm12, %v1808_v12  }
 0x13f   :  { %2745 = vrot.lane.b32.xlu1 %v2744_v8, %s3559_s5  ;;  %v3501_v18 = vld [vmem:[%s6152_s0 + $0x81] ss:$16 sm:%s2776_s3]   ;;  %v2629_v22 = vsel %vm14_vm2, %v3469_v11, %v2624_v13  ;;  %3290 = vst.msk [vmem:[%s6153_s1 + $0x18] sm:$0xff] %vm1649_vm12, %v1785_v21   ;;  %s2753_s3 = smov 12 }
 0x140   :  { %v3508_v19 = vld [vmem:[%s6152_s0 + $0x281] ss:$16 sm:%s2809_s12]   ;;  %v2779_v24 = vsel %vm6_vm0, %v3501_v18, %v3500_v16  ;;  %v3481_v25 = vld [vmem:[%s6152_s0 + $0x182] ss:$16 sm:%s2682_s14]   ;;  %s2873_s14 = smov 48 }
 0x141   :  { %v3502_v20 = vld [vmem:[%s6152_s0 + $0x81] ss:$16 sm:%s2781_s6]   ;;  %v3482_v26 = vld [vmem:[%s6152_s0 + $0x182] ss:$16 sm:%s2685_s24]   ;;  %s2695_s6 = smov 192  ;;  %s2842_s24 = smov 3  ;;  %v2812_v32 = vsel %vm14_vm2, %v3508_v19, %v2807_v23 }
 0x142   :  { %2722 = vrot.lane.b32.xlu0 %v2721_v17, %s3558_s18  ;;  %v3503_v27 = vld [vmem:[%s6152_s0 + $0x81] ss:$16 sm:%s2786_s21]   ;;  %v2688_v28 = vsel %vm6_vm0, %v3482_v26, %v3481_v25  ;;  %v1762_v31 = vpop.permute.xlu0 %1761   ;;  %2630 = vrot.lane.b32.xlu2 %v2629_v22, %s3558_s18  ;;  %v2784_v33 = vsel %vm10_vm1, %v3502_v20, %v2779_v24 }
 0x143   :  { %v3483_v29 = vld [vmem:[%s6152_s0 + $0x182] ss:$16 sm:%s2690_s10]   ;;  %v3520_v30 = vld [vmem:[%s6152_s0 + $0x181] ss:$16 sm:%s2865_s17]   ;;  %v2789_v41 = vsel %vm14_vm2, %v3503_v27, %v2784_v33  ;;  %s2819_s17 = smov 3 }
 0x144   :  { %v3521_v34 = vld [vmem:[%s6152_s0 + $0x181] ss:$16 sm:%s2868_s4]   ;;  %3285 = vst.msk [vmem:[%s6153_s1 + $0x30] sm:$0xff] %vm1649_vm12, %v1762_v31   ;;  %v1876_v36 = vpop.permute.xlu2 %1875   ;;  %v2693_v37 = vsel %vm10_vm1, %v3483_v29, %v2688_v28  ;;  %v1853_v45 = vpop.permute.xlu1 %1852   ;;  %s2901_s4 = smov 192 }
 0x145   :  { %v3484_v35 = vld [vmem:[%s6152_s0 + $0x182] ss:$16 sm:%s2695_s6]   ;;  %v2871_v38 = vsel %vm6_vm0, %v3521_v34, %v3520_v30  ;;  %v3522_v39 = vld [vmem:[%s6152_s0 + $0x181] ss:$16 sm:%s2873_s14]   ;;  %s2827_s6 = smov 48  ;;  %s2832_s14 = smov 192 }
 0x146   :  { %v3515_v40 = vld [vmem:[%s6152_s0 + $0x301] ss:$16 sm:%s2842_s24]   ;;  %3309 = vst.msk [vmem:[%s6153_s1 + $0x8] sm:$0xff] %vm1832_vm13, %v1876_v36   ;;  %v2698_v46 = vsel %vm14_vm2, %v3484_v35, %v2693_v37  ;;  %v2876_v47 = vsel %vm10_vm1, %v3522_v39, %v2871_v38 }
 0x147   :  { %2813 = vrot.lane.b32.xlu1 %v2812_v32, %s3559_s5  ;;  %v3516_v42 = vld [vmem:[%s6152_s0 + $0x301] ss:$16 sm:%s2845_s19]   ;;  %3304 = vst.msk [vmem:[%s6153_s1 + $0x20] sm:$0xff] %vm1832_vm13, %v1853_v45   ;;  %s2891_s19 = smov 12 }
 0x148   :  { %v3523_v43 = vld [vmem:[%s6152_s0 + $0x181] ss:$16 sm:%s2878_s26]   ;;  %v2848_v48 = vsel %vm6_vm0, %v3516_v42, %v3515_v40 }
 0x149   :  { %v3517_v44 = vld [vmem:[%s6152_s0 + $0x301] ss:$16 sm:%s2850_s23]   ;;  %v2881_v54 = vsel %vm14_vm2, %v3523_v43, %v2876_v47 }
 0x14a   :  { %v3495_v49 = vld [vmem:[%s6152_s0 + $0x201] ss:$16 sm:%s2750_s2]   ;;  %2790 = vrot.lane.b32.xlu0 %v2789_v41, %s3559_s5  ;;  %v1831_v53 = vpop.permute.xlu0 %1830   ;;  %2699 = vrot.lane.b32.xlu2 %v2698_v46, %s3558_s18  ;;  %v2853_v55 = vsel %vm10_vm1, %v3517_v44, %v2848_v48 }
 0x14b   :  { %v3496_v50 = vld [vmem:[%s6152_s0 + $0x201] ss:$16 sm:%s2753_s3]   ;;  %1833 = vst.msk [vmem:[%s6153_s1] sm:$0xff] %vm1832_vm13, %v1831_v53  }
 0x14c   :  { %v2756_v51 = vsel %vm6_vm0, %v3496_v50, %v3495_v49  ;;  %v3497_v52 = vld [vmem:[%s6152_s0 + $0x201] ss:$16 sm:%s2758_s13]   ;;  %v1945_v57 = vpop.permute.xlu2 %1944   ;;  %v1922_v63 = vpop.permute.xlu1 %1921  }
 0x14d   :  { %v3518_v56 = vld [vmem:[%s6152_s0 + $0x301] ss:$16 sm:%s2855_s11]   ;;  %v2761_v58 = vsel %vm10_vm1, %v3497_v52, %v2756_v51  ;;  %3324 = vst.msk [vmem:[%s6153_s1 + $0x30] sm:$0xff] %vm1832_vm13, %v1945_v57  }
 0x14e   :  { %v3498_v59 = vld [vmem:[%s6152_s0 + $0x201] ss:$16 sm:%s2763_s25]   ;;  %v2858_v60 = vsel %vm14_vm2, %v3518_v56, %v2853_v55  ;;  %3319 = vst.msk [vmem:[%s6153_s1 + $0x10] sm:$0xff] %vm1832_vm13, %v1922_v63  }
 0x14f   :  { %2882 = vrot.lane.b32.xlu1 %v2881_v54, %s3559_s5  ;;  %v3510_v61 = vld [vmem:[%s6152_s0 + $0x101] ss:$16 sm:%s2819_s17]   ;;  %v2766_v0 = vsel %vm14_vm2, %v3498_v59, %v2761_v58  ;;  %s2896_s17 = smov 48 }
 0x150   :  { %v3511_v62 = vld [vmem:[%s6152_s0 + $0x101] ss:$16 sm:%s2822_s30]  }
 0x151   :  { %v2825_v1 = vsel %vm6_vm0, %v3511_v62, %v3510_v61  ;;  %v3512_v2 = vld [vmem:[%s6152_s0 + $0x101] ss:$16 sm:%s2827_s6]  }
 0x152   :  { %2859 = vrot.lane.b32.xlu0 %v2858_v60, %s3559_s5  ;;  %v1899_v3 = vpop.permute.xlu0 %1898   ;;  %2767 = vrot.lane.b32.xlu2 %v2766_v0, %s3559_s5  ;;  %v2830_v5 = vsel %vm10_vm1, %v3512_v2, %v2825_v1  ;;  %v3513_v6 = vld [vmem:[%s6152_s0 + $0x101] ss:$16 sm:%s2832_s14]  }
 0x153   :  { %3314 = vst.msk [vmem:[%s6153_s1 + $0x28] sm:$0xff] %vm1832_vm13, %v1899_v3   ;;  %v3525_v7 = vld [vmem:[%s6152_s0 + $0x381] ss:$16 sm:%s2888_s27]   ;;  %v2835_v10 = vsel %vm14_vm2, %v3513_v6, %v2830_v5 }
 0x154   :  { %v2014_v4 = vpop.permute.xlu2 %2013   ;;  %v3526_v8 = vld [vmem:[%s6152_s0 + $0x381] ss:$16 sm:%s2891_s19]   ;;  %v1991_v9 = vpop.permute.xlu1 %1990  }
 0x155   :  { %2016 = vst.msk [vmem:[%s6153_s1] sm:$0xff] %vm2015_vm14, %v2014_v4   ;;  %v2894_v11 = vsel %vm6_vm0, %v3526_v8, %v3525_v7  ;;  %v3527_v12 = vld [vmem:[%s6152_s0 + $0x381] ss:$16 sm:%s2896_s17]   ;;  %vm2381_vm0 = vcmask 261312  }
 0x156   :  { %3334 = vst.msk [vmem:[%s6153_s1 + $0x38] sm:$0xff] %vm1832_vm13, %v1991_v9   ;;  %v2899_v15 = vsel %vm10_vm1, %v3527_v12, %v2894_v11  ;;  %v3528_v16 = vld [vmem:[%s6152_s0 + $0x381] ss:$16 sm:%s2901_s4]   ;;  %vm2564_vm1 = vcmask 195712  }
 0x157   :  { %v2904_v18 = vsel %vm14_vm2, %v3528_v16, %v2899_v15  ;;  %vm2747_vm2 = vcmask 130112  }
 0x15a   :  { %2836 = vrot.lane.b32.xlu2 %v2835_v10, %s3559_s5 }
 0x15b   :  { %v1968_v13 = vpop.permute.xlu0 %1967  }
 0x15c   :  { %3329 = vst.msk [vmem:[%s6153_s1 + $0x18] sm:$0xff] %vm1832_vm13, %v1968_v13   ;;  %v2082_v14 = vpop.permute.xlu2 %2081  }
 0x15d   :  { %3353 = vst.msk [vmem:[%s6153_s1 + $0x28] sm:$0xff] %vm2015_vm14, %v2082_v14   ;;  %v2059_v17 = vpop.permute.xlu1 %2058  }
 0x15e   :  { %3348 = vst.msk [vmem:[%s6153_s1 + $0x8] sm:$0xff] %vm2015_vm14, %v2059_v17  }
 0x162   :  { %2905 = vrot.lane.b32.xlu2 %v2904_v18, %s3559_s5 }
 0x163   :  { %v2036_v19 = vpop.permute.xlu0 %2035  }
 0x164   :  { %3343 = vst.msk [vmem:[%s6153_s1 + $0x20] sm:$0xff] %vm2015_vm14, %v2036_v19   ;;  %v2151_v20 = vpop.permute.xlu2 %2150  }
 0x165   :  { %3368 = vst.msk [vmem:[%s6153_s1 + $0x18] sm:$0xff] %vm2015_vm14, %v2151_v20  }
 0x167   :  { %v2128_v21 = vpop.permute.xlu1 %2127  }
 0x168   :  { %3363 = vst.msk [vmem:[%s6153_s1 + $0x30] sm:$0xff] %vm2015_vm14, %v2128_v21  }
 0x16b   :  { %v2105_v22 = vpop.permute.xlu0 %2104  }
 0x16c   :  { %3358 = vst.msk [vmem:[%s6153_s1 + $0x10] sm:$0xff] %vm2015_vm14, %v2105_v22   ;;  %v2219_v23 = vpop.permute.xlu2 %2218  }
 0x16d   :  { %3382 = vst.msk [vmem:[%s6153_s1 + $0x20] sm:$0xff] %vm2198_vm15, %v2219_v23  }
 0x171   :  { %v2197_v24 = vpop.permute.xlu1 %2196  }
 0x172   :  { %2199 = vst.msk [vmem:[%s6153_s1] sm:$0xff] %vm2198_vm15, %v2197_v24  }
 0x174   :  { %v2174_v25 = vpop.permute.xlu0 %2173   ;;  %v2288_v26 = vpop.permute.xlu2 %2287  }
 0x175   :  { %3373 = vst.msk [vmem:[%s6153_s1 + $0x38] sm:$0xff] %vm2015_vm14, %v2174_v25  }
 0x176   :  { %3397 = vst.msk [vmem:[%s6153_s1 + $0x10] sm:$0xff] %vm2198_vm15, %v2288_v26  }
 0x179   :  { %v2265_v27 = vpop.permute.xlu1 %2264  }
 0x17a   :  { %3392 = vst.msk [vmem:[%s6153_s1 + $0x28] sm:$0xff] %vm2198_vm15, %v2265_v27  }
 0x17c   :  { %v2242_v28 = vpop.permute.xlu0 %2241   ;;  %v2357_v29 = vpop.permute.xlu2 %2356  }
 0x17d   :  { %3387 = vst.msk [vmem:[%s6153_s1 + $0x8] sm:$0xff] %vm2198_vm15, %v2242_v28  }
 0x17e   :  { %3412 = vst.msk [vmem:[%s6153_s1 + $0x38] sm:$0xff] %vm2198_vm15, %v2357_v29  }
 0x181   :  { %v2334_v30 = vpop.permute.xlu1 %2333  }
 0x182   :  { %3407 = vst.msk [vmem:[%s6153_s1 + $0x18] sm:$0xff] %vm2198_vm15, %v2334_v30  }
 0x184   :  { %v2311_v31 = vpop.permute.xlu0 %2310   ;;  %v2425_v32 = vpop.permute.xlu2 %2424  }
 0x185   :  { %3402 = vst.msk [vmem:[%s6153_s1 + $0x30] sm:$0xff] %vm2198_vm15, %v2311_v31  }
 0x186   :  { %3426 = vst.msk [vmem:[%s6153_s1 + $0x8] sm:$0xff] %vm2381_vm0, %v2425_v32  }
 0x189   :  { %v2402_v33 = vpop.permute.xlu1 %2401  }
 0x18a   :  { %3421 = vst.msk [vmem:[%s6153_s1 + $0x20] sm:$0xff] %vm2381_vm0, %v2402_v33  }
 0x18c   :  { %v2380_v34 = vpop.permute.xlu0 %2379   ;;  %v2494_v35 = vpop.permute.xlu2 %2493  }
 0x18d   :  { %2382 = vst.msk [vmem:[%s6153_s1] sm:$0xff] %vm2381_vm0, %v2380_v34  }
 0x18e   :  { %3441 = vst.msk [vmem:[%s6153_s1 + $0x30] sm:$0xff] %vm2381_vm0, %v2494_v35  }
 0x191   :  { %v2471_v36 = vpop.permute.xlu1 %2470  }
 0x192   :  { %3436 = vst.msk [vmem:[%s6153_s1 + $0x10] sm:$0xff] %vm2381_vm0, %v2471_v36  }
 0x194   :  { %v2448_v37 = vpop.permute.xlu0 %2447   ;;  %v2563_v38 = vpop.permute.xlu2 %2562  }
 0x195   :  { %3431 = vst.msk [vmem:[%s6153_s1 + $0x28] sm:$0xff] %vm2381_vm0, %v2448_v37  }
 0x196   :  { %2565 = vst.msk [vmem:[%s6153_s1] sm:$0xff] %vm2564_vm1, %v2563_v38  }
 0x199   :  { %v2540_v39 = vpop.permute.xlu1 %2539  }
 0x19a   :  { %3451 = vst.msk [vmem:[%s6153_s1 + $0x38] sm:$0xff] %vm2381_vm0, %v2540_v39  }
 0x19c   :  { %v2517_v40 = vpop.permute.xlu0 %2516   ;;  %v2631_v41 = vpop.permute.xlu2 %2630  }
 0x19d   :  { %3446 = vst.msk [vmem:[%s6153_s1 + $0x18] sm:$0xff] %vm2381_vm0, %v2517_v40  }
 0x19e   :  { %3470 = vst.msk [vmem:[%s6153_s1 + $0x28] sm:$0xff] %vm2564_vm1, %v2631_v41  }
 0x1a1   :  { %v2608_v42 = vpop.permute.xlu1 %2607  }
 0x1a2   :  { %3465 = vst.msk [vmem:[%s6153_s1 + $0x8] sm:$0xff] %vm2564_vm1, %v2608_v42  }
 0x1a4   :  { %v2585_v43 = vpop.permute.xlu0 %2584   ;;  %v2700_v44 = vpop.permute.xlu2 %2699  }
 0x1a5   :  { %3460 = vst.msk [vmem:[%s6153_s1 + $0x20] sm:$0xff] %vm2564_vm1, %v2585_v43  }
 0x1a6   :  { %3485 = vst.msk [vmem:[%s6153_s1 + $0x18] sm:$0xff] %vm2564_vm1, %v2700_v44  }
 0x1a9   :  { %v2677_v45 = vpop.permute.xlu1 %2676  }
 0x1aa   :  { %3480 = vst.msk [vmem:[%s6153_s1 + $0x30] sm:$0xff] %vm2564_vm1, %v2677_v45  }
 0x1ac   :  { %v2654_v46 = vpop.permute.xlu0 %2653   ;;  %v2768_v47 = vpop.permute.xlu2 %2767  }
 0x1ad   :  { %3475 = vst.msk [vmem:[%s6153_s1 + $0x10] sm:$0xff] %vm2564_vm1, %v2654_v46  }
 0x1ae   :  { %3499 = vst.msk [vmem:[%s6153_s1 + $0x20] sm:$0xff] %vm2747_vm2, %v2768_v47  }
 0x1b1   :  { %v2746_v48 = vpop.permute.xlu1 %2745  }
 0x1b2   :  { %2748 = vst.msk [vmem:[%s6153_s1] sm:$0xff] %vm2747_vm2, %v2746_v48  }
 0x1b4   :  { %v2723_v49 = vpop.permute.xlu0 %2722   ;;  %v2837_v50 = vpop.permute.xlu2 %2836  }
 0x1b5   :  { %3490 = vst.msk [vmem:[%s6153_s1 + $0x38] sm:$0xff] %vm2564_vm1, %v2723_v49  }
 0x1b6   :  { %3514 = vst.msk [vmem:[%s6153_s1 + $0x10] sm:$0xff] %vm2747_vm2, %v2837_v50  }
 0x1b9   :  { %v2814_v51 = vpop.permute.xlu1 %2813  }
 0x1ba   :  { %3509 = vst.msk [vmem:[%s6153_s1 + $0x28] sm:$0xff] %vm2747_vm2, %v2814_v51  }
 0x1bc   :  { %v2791_v52 = vpop.permute.xlu0 %2790   ;;  %v2906_v53 = vpop.permute.xlu2 %2905  }
 0x1bd   :  { %3504 = vst.msk [vmem:[%s6153_s1 + $0x8] sm:$0xff] %vm2747_vm2, %v2791_v52  }
 0x1be   :  { %3529 = vst.msk [vmem:[%s6153_s1 + $0x38] sm:$0xff] %vm2747_vm2, %v2906_v53  }
 0x1c1   :  { %v2883_v54 = vpop.permute.xlu1 %2882  }
 0x1c2   :  { %3524 = vst.msk [vmem:[%s6153_s1 + $0x18] sm:$0xff] %vm2747_vm2, %v2883_v54  }
 0x1c4   :  { %v2860_v55 = vpop.permute.xlu0 %2859  }
 0x1c5   :  { %3519 = vst.msk [vmem:[%s6153_s1 + $0x30] sm:$0xff] %vm2747_vm2, %v2860_v55  }

// kernel: tile.43
= control target key start
LH: loop header
LB: loop body
LE: loop exit
PB: predicated region body
PF: predicated region fallthrough
CT: control target
= control target key end

     0   :  { %s64_s0 = inlined_call_operand.vmem [shape: f32[4], index: 0, kind: input, shape index: {}]   ;;  %s65_s1 = inlined_call_operand.vmem [shape: f32[64,4], index: 1, kind: output, shape index: {}]  }
   0x1   :  { %v4_v0 = vld [vmem:[%s64_s0] ss:$0 sm:$0xff] }
   0x2   :  { %5 = vst [vmem:[%s65_s1] sm:$0xff] %v4_v0 }
   0x3   :  { %20 = vst [vmem:[%s65_s1 + $0x8] sm:$0xff] %v4_v0 }
   0x4   :  { %21 = vst [vmem:[%s65_s1 + $0x10] sm:$0xff] %v4_v0 }
   0x5   :  { %22 = vst [vmem:[%s65_s1 + $0x18] sm:$0xff] %v4_v0 }
   0x6   :  { %23 = vst [vmem:[%s65_s1 + $0x20] sm:$0xff] %v4_v0 }
   0x7   :  { %24 = vst [vmem:[%s65_s1 + $0x28] sm:$0xff] %v4_v0 }
   0x8   :  { %25 = vst [vmem:[%s65_s1 + $0x30] sm:$0xff] %v4_v0 }
   0x9   :  { %26 = vst [vmem:[%s65_s1 + $0x38] sm:$0xff] %v4_v0 }

// kernel: tile.44
= control target key start
LH: loop header
LB: loop body
LE: loop exit
PB: predicated region body
PF: predicated region fallthrough
CT: control target
= control target key end

     0   :  { %vm5_vm0 = vcmask 1041409   ;;  %s426_s14 = smov 124   ;;  %s427_s15 = smov 116   ;;  %vm7_vm1 = vcmask 31744   ;;  %vm17_vm2 = vcmask 1048544   ;;  %vm27_vm3 = vcmask 1015744   ;;  %s697_s0 = inlined_call_operand.vmem [shape: f32[64,4], index: 0, kind: input, shape index: {}]   ;;  %s698_s1 = inlined_call_operand.vmem [shape: f32[1,256], index: 1, kind: output, shape index: {}]  }
   0x1   :  { %v332_v0 = vld [vmem:[%s697_s0 + $0x1f] sm:$0x1]   ;;  %v336_v3 = vld [vmem:[%s697_s0 + $0x1d] sm:$0x1]   ;;  %v334_v6 = vld [vmem:[%s697_s0 + $0x1e] sm:$0x1]  }
   0x2   :  { %v333_v1 = vld [vmem:[%s697_s0 + $0x3e] sm:$0x2]   ;;  %v337_v4 = vld [vmem:[%s697_s0 + $0x3c] sm:$0x2]   ;;  %v335_v7 = vld [vmem:[%s697_s0 + $0x3d] sm:$0x2]  }
   0x3   :  { %v14_v2 = vsel %vm5_vm0, %v333_v1, %v332_v0  ;;  %v34_v5 = vsel %vm5_vm0, %v337_v4, %v336_v3  ;;  %v338_v8 = vld [vmem:[%s697_s0 + $0x1c] sm:$0x1]   ;;  %v24_v10 = vsel %vm5_vm0, %v335_v7, %v334_v6  ;;  %v340_v11 = vld [vmem:[%s697_s0 + $0x1b] sm:$0x1]   ;;  %s428_s28 = smov 108   ;;  %s429_s29 = smov 120  }
   0x4   :  { %15 = vrot.lane.b32.xlu0 %v14_v2, %s426_s14  ;;  %35 = vrot.lane.b32.xlu1 %v34_v5, %s427_s15  ;;  %v339_v9 = vld [vmem:[%s697_s0 + $0x3b] sm:$0x2]   ;;  %v341_v12 = vld [vmem:[%s697_s0 + $0x3a] sm:$0x2]   ;;  %s430_s30 = smov 112   ;;  %s431_s14 = smov 104  }
   0x5   :  { %v44_v13 = vsel %vm5_vm0, %v339_v9, %v338_v8  ;;  %v54_v14 = vsel %vm5_vm0, %v341_v12, %v340_v11  ;;  %v342_v15 = vld [vmem:[%s697_s0 + $0x1a] sm:$0x1]   ;;  %v344_v17 = vld [vmem:[%s697_s0 + $0x19] sm:$0x1]   ;;  %v346_v19 = vld [vmem:[%s697_s0 + $0x18] sm:$0x1]  }
   0x6   :  { %55 = vrot.lane.b32.xlu2 %v54_v14, %s428_s28  ;;  %v343_v16 = vld [vmem:[%s697_s0 + $0x39] sm:$0x2]   ;;  %v345_v18 = vld [vmem:[%s697_s0 + $0x38] sm:$0x2]   ;;  %v347_v20 = vld [vmem:[%s697_s0 + $0x37] sm:$0x2]  }
   0x7   :  { %v64_v21 = vsel %vm5_vm0, %v343_v16, %v342_v15  ;;  %v74_v22 = vsel %vm5_vm0, %v345_v18, %v344_v17  ;;  %v84_v23 = vsel %vm5_vm0, %v347_v20, %v346_v19  ;;  %s432_s15 = smov 100   ;;  %s433_s16 = smov 96   ;;  %v348_v24 = vld [vmem:[%s697_s0 + $0x17] sm:$0x1]   ;;  %v350_v26 = vld [vmem:[%s697_s0 + $0x16] sm:$0x1]  }
   0x8   :  { %v349_v25 = vld [vmem:[%s697_s0 + $0x36] sm:$0x2]   ;;  %v351_v27 = vld [vmem:[%s697_s0 + $0x35] sm:$0x2]   ;;  %v352_v28 = vld [vmem:[%s697_s0 + $0x15] sm:$0x1]  }
   0x9   :  { %v353_v29 = vld [vmem:[%s697_s0 + $0x34] sm:$0x2]   ;;  %v94_v30 = vsel %vm5_vm0, %v349_v25, %v348_v24  ;;  %v104_v31 = vsel %vm5_vm0, %v351_v27, %v350_v26  ;;  %s436_s2 = smov 84   ;;  %v354_v33 = vld [vmem:[%s697_s0 + $0x14] sm:$0x1]   ;;  %s439_s17 = smov 72  }
   0xa   :  { %v114_v32 = vsel %vm5_vm0, %v353_v29, %v352_v28  ;;  %v355_v34 = vld [vmem:[%s697_s0 + $0x33] sm:$0x2]   ;;  %v356_v35 = vld [vmem:[%s697_s0 + $0x13] sm:$0x1]   ;;  %v358_v37 = vld [vmem:[%s697_s0 + $0x12] sm:$0x1]  }
   0xb   :  { %v357_v36 = vld [vmem:[%s697_s0 + $0x32] sm:$0x2]   ;;  %v359_v38 = vld [vmem:[%s697_s0 + $0x31] sm:$0x2]   ;;  %v124_v39 = vsel %vm5_vm0, %v355_v34, %v354_v33  ;;  %v360_v42 = vld [vmem:[%s697_s0 + $0x11] sm:$0x1]  }
   0xc   :  { %25 = vrot.lane.b32.xlu0 %v24_v10, %s429_s29  ;;  %45 = vrot.lane.b32.xlu1 %v44_v13, %s430_s30  ;;  %s434_s29 = smov 92   ;;  %s435_s30 = smov 88   ;;  %v134_v40 = vsel %vm5_vm0, %v357_v36, %v356_v35  ;;  %v144_v41 = vsel %vm5_vm0, %v359_v38, %v358_v37  ;;  %v361_v43 = vld [vmem:[%s697_s0 + $0x30] sm:$0x2]   ;;  %v362_v44 = vld [vmem:[%s697_s0 + $0x10] sm:$0x1]  }
   0xd   :  { %v363_v45 = vld [vmem:[%s697_s0 + $0x2f] sm:$0x2]   ;;  %v364_v46 = vld [vmem:[%s697_s0 + $0xf] sm:$0x1]   ;;  %v154_v48 = vsel %vm5_vm0, %v361_v43, %v360_v42  ;;  %s442_s3 = smov 60   ;;  %s445_s18 = smov 48  }
   0xe   :  { %65 = vrot.lane.b32.xlu2 %v64_v21, %s431_s14  ;;  %v365_v47 = vld [vmem:[%s697_s0 + $0x2e] sm:$0x2]   ;;  %v164_v49 = vsel %vm5_vm0, %v363_v45, %v362_v44  ;;  %v366_v51 = vld [vmem:[%s697_s0 + $0xe] sm:$0x1]   ;;  %v368_v53 = vld [vmem:[%s697_s0 + $0xd] sm:$0x1]  }
   0xf   :  { %v174_v50 = vsel %vm5_vm0, %v365_v47, %v364_v46  ;;  %v367_v52 = vld [vmem:[%s697_s0 + $0x2d] sm:$0x2]   ;;  %v369_v54 = vld [vmem:[%s697_s0 + $0x2c] sm:$0x2]   ;;  %v370_v55 = vld [vmem:[%s697_s0 + $0xc] sm:$0x1]  }
  0x10   :  { %v371_v56 = vld [vmem:[%s697_s0 + $0x2b] sm:$0x2]   ;;  %v184_v57 = vsel %vm5_vm0, %v367_v52, %v366_v51  ;;  %v194_v58 = vsel %vm5_vm0, %v369_v54, %v368_v53  ;;  %v372_v60 = vld [vmem:[%s697_s0 + $0xb] sm:$0x1]   ;;  %v374_v62 = vld [vmem:[%s697_s0 + $0xa] sm:$0x1]  }
  0x11   :  { %v204_v59 = vsel %vm5_vm0, %v371_v56, %v370_v55  ;;  %v373_v61 = vld [vmem:[%s697_s0 + $0x2a] sm:$0x2]   ;;  %v375_v63 = vld [vmem:[%s697_s0 + $0x29] sm:$0x2]   ;;  %v376_v0 = vld [vmem:[%s697_s0 + $0x9] sm:$0x1]  }
  0x12   :  { %v377_v1 = vld [vmem:[%s697_s0 + $0x28] sm:$0x2]   ;;  %v214_v2 = vsel %vm5_vm0, %v373_v61, %v372_v60  ;;  %v224_v3 = vsel %vm5_vm0, %v375_v63, %v374_v62  ;;  %s448_s4 = smov 36   ;;  %v378_v5 = vld [vmem:[%s697_s0 + $0x8] sm:$0x1]   ;;  %s451_s19 = smov 24  }
  0x13   :  { %v234_v4 = vsel %vm5_vm0, %v377_v1, %v376_v0  ;;  %v379_v6 = vld [vmem:[%s697_s0 + $0x27] sm:$0x2]   ;;  %v380_v7 = vld [vmem:[%s697_s0 + $0x7] sm:$0x1]   ;;  %v382_v9 = vld [vmem:[%s697_s0 + $0x6] sm:$0x1]  }
  0x14   :  { %75 = vrot.lane.b32.xlu0 %v74_v22, %s432_s15  ;;  %85 = vrot.lane.b32.xlu1 %v84_v23, %s433_s16  ;;  %s437_s15 = smov 80   ;;  %s438_s16 = smov 76   ;;  %v381_v8 = vld [vmem:[%s697_s0 + $0x26] sm:$0x2]   ;;  %v383_v10 = vld [vmem:[%s697_s0 + $0x25] sm:$0x2]   ;;  %v244_v11 = vsel %vm5_vm0, %v379_v6, %v378_v5 }
  0x15   :  { %v254_v12 = vsel %vm5_vm0, %v381_v8, %v380_v7  ;;  %v264_v13 = vsel %vm5_vm0, %v383_v10, %v382_v9  ;;  %v384_v14 = vld [vmem:[%s697_s0 + $0x5] sm:$0x1]   ;;  %v386_v16 = vld [vmem:[%s697_s0 + $0x4] sm:$0x1]   ;;  %v388_v18 = vld [vmem:[%s697_s0 + $0x3] sm:$0x1]  }
  0x16   :  { %95 = vrot.lane.b32.xlu2 %v94_v30, %s434_s29  ;;  %v385_v15 = vld [vmem:[%s697_s0 + $0x24] sm:$0x2]   ;;  %v387_v17 = vld [vmem:[%s697_s0 + $0x23] sm:$0x2]   ;;  %v389_v19 = vld [vmem:[%s697_s0 + $0x22] sm:$0x2]  }
  0x17   :  { %v274_v20 = vsel %vm5_vm0, %v385_v15, %v384_v14  ;;  %v284_v21 = vsel %vm5_vm0, %v387_v17, %v386_v16  ;;  %v294_v22 = vsel %vm5_vm0, %v389_v19, %v388_v18  ;;  %s454_s5 = smov 12   ;;  %v390_v23 = vld [vmem:[%s697_s0 + $0x2] sm:$0x1]   ;;  %v392_v25 = vld [vmem:[%s697_s0 + $0x1] sm:$0x1]   ;;  %s455_s14 = smov 8  }
  0x18   :  { %v391_v24 = vld [vmem:[%s697_s0 + $0x21] sm:$0x2]   ;;  %v393_v26 = vld [vmem:[%s697_s0 + $0x20] sm:$0x2]   ;;  %v2_v29 = vld [vmem:[%s697_s0] sm:$0x1]  }
  0x19   :  { %v304_v27 = vsel %vm5_vm0, %v391_v24, %v390_v23  ;;  %v314_v28 = vsel %vm5_vm0, %v393_v26, %v392_v25  ;;  %v331_v30 = vld [vmem:[%s697_s0 + $0x1f] sm:$0x2]   ;;  %vm37_vm4 = vcmask 982944   ;;  %vm47_vm5 = vcmask 950144  }
  0x1a   :  { %vm57_vm6 = vcmask 917344   ;;  %vm67_vm7 = vcmask 884544   ;;  %vm77_vm8 = vcmask 851744   ;;  %vm87_vm9 = vcmask 818944  }
  0x1b   :  { %vm97_vm10 = vcmask 786144   ;;  %vm107_vm11 = vcmask 753344   ;;  %vm117_vm12 = vcmask 720544   ;;  %vm127_vm13 = vcmask 687744  }
  0x1c   :  { %105 = vrot.lane.b32.xlu0 %v104_v31, %s435_s30  ;;  %115 = vrot.lane.b32.xlu1 %v114_v32, %s436_s2  ;;  %s440_s30 = smov 68   ;;  %s441_s2 = smov 64   ;;  %v6_v31 = vsel %vm5_vm0, %v331_v30, %v2_v29  ;;  %vm137_vm14 = vcmask 654944   ;;  %vm147_vm15 = vcmask 622144   ;;  %vm157_vm0 = vcmask 589344  }
  0x1d   :  { %8 = vst.msk [vmem:[#allocation0] ss:$8 sm:$0x3] %vm7_vm1, %v6_v31   ;;  %vm167_vm1 = vcmask 556544  }
  0x1e   :  { %125 = vrot.lane.b32.xlu2 %v124_v39, %s437_s15  ;;  %s456_s15 = smov 4  }
  0x24   :  { %135 = vrot.lane.b32.xlu0 %v134_v40, %s438_s16  ;;  %145 = vrot.lane.b32.xlu1 %v144_v41, %s439_s17  ;;  %s443_s16 = smov 56   ;;  %s444_s17 = smov 52  }
  0x26   :  { %155 = vrot.lane.b32.xlu2 %v154_v48, %s440_s30 }
  0x2c   :  { %165 = vrot.lane.b32.xlu0 %v164_v49, %s441_s2  ;;  %175 = vrot.lane.b32.xlu1 %v174_v50, %s442_s3  ;;  %s446_s2 = smov 44   ;;  %s447_s3 = smov 40  }
  0x2e   :  { %185 = vrot.lane.b32.xlu2 %v184_v57, %s443_s16 }
  0x34   :  { %195 = vrot.lane.b32.xlu0 %v194_v58, %s444_s17  ;;  %205 = vrot.lane.b32.xlu1 %v204_v59, %s445_s18  ;;  %s449_s17 = smov 32   ;;  %s450_s18 = smov 28  }
  0x36   :  { %215 = vrot.lane.b32.xlu2 %v214_v2, %s446_s2 }
  0x3c   :  { %225 = vrot.lane.b32.xlu0 %v224_v3, %s447_s3  ;;  %235 = vrot.lane.b32.xlu1 %v234_v4, %s448_s4  ;;  %s452_s3 = smov 20   ;;  %s453_s4 = smov 16  }
  0x3e   :  { %245 = vrot.lane.b32.xlu2 %v244_v11, %s449_s17 }
  0x44   :  { %255 = vrot.lane.b32.xlu0 %v254_v12, %s450_s18  ;;  %265 = vrot.lane.b32.xlu1 %v264_v13, %s451_s19 }
  0x46   :  { %275 = vrot.lane.b32.xlu2 %v274_v20, %s452_s3 }
  0x4c   :  { %285 = vrot.lane.b32.xlu0 %v284_v21, %s453_s4  ;;  %295 = vrot.lane.b32.xlu1 %v294_v22, %s454_s5 }
  0x4e   :  { %305 = vrot.lane.b32.xlu2 %v304_v27, %s455_s14 }
  0x54   :  { %315 = vrot.lane.b32.xlu0 %v314_v28, %s456_s15 }
  0x60   :  { %v56_v32 = vpop.permute.xlu2 %55  }
  0x68   :  { %v66_v33 = vpop.permute.xlu2 %65  }
  0x70   :  { %v96_v34 = vpop.permute.xlu2 %95  }
  0x76   :  { %v16_v35 = vpop.permute.xlu0 %15   ;;  %v36_v36 = vpop.permute.xlu1 %35  }
  0x77   :  { %18 = vst.msk [vmem:[#allocation0] ss:$8 sm:$0x3] %vm17_vm2, %v16_v35   ;;  %vm177_vm2 = vcmask 523744  }
  0x78   :  { %v126_v37 = vpop.permute.xlu2 %125  }
  0x7e   :  { %v26_v38 = vpop.permute.xlu0 %25   ;;  %v46_v39 = vpop.permute.xlu1 %45  }
  0x7f   :  { %28 = vst.msk [vmem:[#allocation0] ss:$8 sm:$0x3] %vm27_vm3, %v26_v38   ;;  %vm187_vm3 = vcmask 490944  }
  0x80   :  { %38 = vst.msk [vmem:[#allocation0] ss:$8 sm:$0x3] %vm37_vm4, %v36_v36   ;;  %v156_v40 = vpop.permute.xlu2 %155   ;;  %vm197_vm4 = vcmask 458144  }
  0x81   :  { %48 = vst.msk [vmem:[#allocation0] ss:$8 sm:$0x3] %vm47_vm5, %v46_v39   ;;  %vm207_vm5 = vcmask 425344  }
  0x82   :  { %58 = vst.msk [vmem:[#allocation0] ss:$8 sm:$0x3] %vm57_vm6, %v56_v32   ;;  %vm217_vm6 = vcmask 392544  }
  0x83   :  { %68 = vst.msk [vmem:[#allocation0] ss:$8 sm:$0x3] %vm67_vm7, %v66_v33   ;;  %vm227_vm7 = vcmask 359744  }
  0x86   :  { %v76_v41 = vpop.permute.xlu0 %75   ;;  %v86_v42 = vpop.permute.xlu1 %85  }
  0x87   :  { %78 = vst.msk [vmem:[#allocation0] ss:$8 sm:$0x3] %vm77_vm8, %v76_v41   ;;  %vm237_vm8 = vcmask 326944  }
  0x88   :  { %88 = vst.msk [vmem:[#allocation0] ss:$8 sm:$0x3] %vm87_vm9, %v86_v42   ;;  %v186_v43 = vpop.permute.xlu2 %185   ;;  %vm247_vm9 = vcmask 294144  }
  0x89   :  { %98 = vst.msk [vmem:[#allocation0] ss:$8 sm:$0x3] %vm97_vm10, %v96_v34   ;;  %vm257_vm10 = vcmask 261344  }
  0x8e   :  { %v106_v44 = vpop.permute.xlu0 %105   ;;  %v116_v45 = vpop.permute.xlu1 %115  }
  0x8f   :  { %108 = vst.msk [vmem:[#allocation0] ss:$8 sm:$0x3] %vm107_vm11, %v106_v44   ;;  %vm267_vm11 = vcmask 228544  }
  0x90   :  { %118 = vst.msk [vmem:[#allocation0] ss:$8 sm:$0x3] %vm117_vm12, %v116_v45   ;;  %v216_v46 = vpop.permute.xlu2 %215   ;;  %vm277_vm12 = vcmask 195744  }
  0x91   :  { %128 = vst.msk [vmem:[#allocation0] ss:$8 sm:$0x3] %vm127_vm13, %v126_v37   ;;  %vm287_vm13 = vcmask 162944  }
  0x96   :  { %v136_v47 = vpop.permute.xlu0 %135   ;;  %v146_v48 = vpop.permute.xlu1 %145  }
  0x97   :  { %138 = vst.msk [vmem:[#allocation0] ss:$8 sm:$0x3] %vm137_vm14, %v136_v47   ;;  %vm297_vm14 = vcmask 130144  }
  0x98   :  { %148 = vst.msk [vmem:[#allocation0] ss:$8 sm:$0x3] %vm147_vm15, %v146_v48   ;;  %v246_v49 = vpop.permute.xlu2 %245   ;;  %vm307_vm15 = vcmask 97344  }
  0x99   :  { %158 = vst.msk [vmem:[#allocation0] ss:$8 sm:$0x3] %vm157_vm0, %v156_v40   ;;  %vm317_vm0 = vcmask 64544  }
  0x9e   :  { %v166_v50 = vpop.permute.xlu0 %165   ;;  %v176_v51 = vpop.permute.xlu1 %175  }
  0x9f   :  { %168 = vst.msk [vmem:[#allocation0] ss:$8 sm:$0x3] %vm167_vm1, %v166_v50  }
  0xa0   :  { %178 = vst.msk [vmem:[#allocation0] ss:$8 sm:$0x3] %vm177_vm2, %v176_v51   ;;  %v276_v52 = vpop.permute.xlu2 %275  }
  0xa1   :  { %188 = vst.msk [vmem:[#allocation0] ss:$8 sm:$0x3] %vm187_vm3, %v186_v43  }
  0xa6   :  { %v196_v53 = vpop.permute.xlu0 %195   ;;  %v206_v54 = vpop.permute.xlu1 %205  }
  0xa7   :  { %198 = vst.msk [vmem:[#allocation0] ss:$8 sm:$0x3] %vm197_vm4, %v196_v53  }
  0xa8   :  { %208 = vst.msk [vmem:[#allocation0] ss:$8 sm:$0x3] %vm207_vm5, %v206_v54   ;;  %v306_v55 = vpop.permute.xlu2 %305  }
  0xa9   :  { %218 = vst.msk [vmem:[#allocation0] ss:$8 sm:$0x3] %vm217_vm6, %v216_v46  }
  0xae   :  { %v226_v56 = vpop.permute.xlu0 %225   ;;  %v236_v57 = vpop.permute.xlu1 %235  }
  0xaf   :  { %228 = vst.msk [vmem:[#allocation0] ss:$8 sm:$0x3] %vm227_vm7, %v226_v56  }
  0xb0   :  { %238 = vst.msk [vmem:[#allocation0] ss:$8 sm:$0x3] %vm237_vm8, %v236_v57  }
  0xb1   :  { %248 = vst.msk [vmem:[#allocation0] ss:$8 sm:$0x3] %vm247_vm9, %v246_v49  }
  0xb6   :  { %v256_v58 = vpop.permute.xlu0 %255   ;;  %v266_v59 = vpop.permute.xlu1 %265  }
  0xb7   :  { %258 = vst.msk [vmem:[#allocation0] ss:$8 sm:$0x3] %vm257_vm10, %v256_v58  }
  0xb8   :  { %268 = vst.msk [vmem:[#allocation0] ss:$8 sm:$0x3] %vm267_vm11, %v266_v59  }
  0xb9   :  { %278 = vst.msk [vmem:[#allocation0] ss:$8 sm:$0x3] %vm277_vm12, %v276_v52  }
  0xbe   :  { %v286_v60 = vpop.permute.xlu0 %285   ;;  %v296_v61 = vpop.permute.xlu1 %295  }
  0xbf   :  { %288 = vst.msk [vmem:[#allocation0] ss:$8 sm:$0x3] %vm287_vm13, %v286_v60  }
  0xc0   :  { %298 = vst.msk [vmem:[#allocation0] ss:$8 sm:$0x3] %vm297_vm14, %v296_v61  }
  0xc1   :  { %308 = vst.msk [vmem:[#allocation0] ss:$8 sm:$0x3] %vm307_vm15, %v306_v55  }
  0xc6   :  { %v316_v62 = vpop.permute.xlu0 %315  }
  0xc7   :  { %318 = vst.msk [vmem:[#allocation0] ss:$8 sm:$0x3] %vm317_vm0, %v316_v62  }
  0xce   :  { %v321_v63 = vld [vmem:[#allocation0] sm:$0x1]  ;;  %v326_v0 = vld [vmem:[#allocation0 + $0x8] sm:$0x1] }
  0xcf   :  { %324 = vst [vmem:[%s698_s1] sm:$0x1] %v321_v63 }
  0xd0   :  { %394 = vst [vmem:[%s698_s1 + $0x1] sm:$0x1] %v326_v0 }

// kernel: tile.53
= control target key start
LH: loop header
LB: loop body
LE: loop exit
PB: predicated region body
PF: predicated region fallthrough
CT: control target
= control target key end

     0   :  { %s28_s0 = inlined_call_operand.vmem [shape: f32[4], index: 0, kind: input, shape index: {}]   ;;  %s29_s1 = inlined_call_operand.vmem [shape: f32[16,4], index: 1, kind: output, shape index: {}]  }
   0x1   :  { %v4_v0 = vld [vmem:[%s28_s0] ss:$0 sm:$0xff] }
   0x2   :  { %5 = vst [vmem:[%s29_s1] sm:$0xff] %v4_v0 }
   0x3   :  { %8 = vst [vmem:[%s29_s1 + $0x8] sm:$0xff] %v4_v0 }

// kernel: tile.54
= control target key start
LH: loop header
LB: loop body
LE: loop exit
PB: predicated region body
PF: predicated region fallthrough
CT: control target
= control target key end

     0   :  { %s131_s10 = smov 60   ;;  %s132_s11 = smov 52   ;;  %vm3_vm0 = vcmask 31744   ;;  %vm9_vm1 = vcmask 523744   ;;  %vm15_vm2 = vcmask 490944   ;;  %vm21_vm3 = vcmask 458144   ;;  %s207_s0 = inlined_call_operand.vmem [shape: f32[16,4], index: 0, kind: input, shape index: {}]   ;;  %s208_s1 = inlined_call_operand.vmem [shape: f32[1,64], index: 1, kind: output, shape index: {}]  }
   0x1   :  { %v101_v0 = vld [vmem:[%s207_s0 + $0xf] sm:$0x1]   ;;  %v103_v1 = vld [vmem:[%s207_s0 + $0xd] sm:$0x1]   ;;  %v105_v2 = vld [vmem:[%s207_s0 + $0xb] sm:$0x1]  }
   0x2   :  { %7 = vrot.lane.b32.xlu0 %v101_v0, %s131_s10  ;;  %19 = vrot.lane.b32.xlu1 %v103_v1, %s132_s11  ;;  %s133_s14 = smov 44   ;;  %v102_v3 = vld [vmem:[%s207_s0 + $0xe] sm:$0x1]   ;;  %v104_v4 = vld [vmem:[%s207_s0 + $0xc] sm:$0x1]   ;;  %s134_s19 = smov 56  }
   0x3   :  { %31 = vrot.lane.b32.xlu2 %v105_v2, %s133_s14  ;;  %s135_s20 = smov 48   ;;  %v106_v5 = vld [vmem:[%s207_s0 + $0xa] sm:$0x1]   ;;  %s136_s23 = smov 40   ;;  %v107_v6 = vld [vmem:[%s207_s0 + $0x9] sm:$0x1]  }
   0x4   :  { %v108_v7 = vld [vmem:[%s207_s0 + $0x8] sm:$0x1]   ;;  %s137_s28 = smov 36   ;;  %s138_s29 = smov 32   ;;  %v109_v8 = vld [vmem:[%s207_s0 + $0x7] sm:$0x1]  }
   0x5   :  { %s139_s3 = smov 28   ;;  %v110_v9 = vld [vmem:[%s207_s0 + $0x6] sm:$0x1]   ;;  %v111_v10 = vld [vmem:[%s207_s0 + $0x5] sm:$0x1]   ;;  %s140_s8 = smov 24  }
   0x6   :  { %s141_s9 = smov 20   ;;  %v112_v11 = vld [vmem:[%s207_s0 + $0x4] sm:$0x1]   ;;  %s142_s12 = smov 16   ;;  %v113_v12 = vld [vmem:[%s207_s0 + $0x3] sm:$0x1]  }
   0x7   :  { %v114_v13 = vld [vmem:[%s207_s0 + $0x2] sm:$0x1]   ;;  %s143_s17 = smov 12   ;;  %s144_s18 = smov 8   ;;  %v115_v14 = vld [vmem:[%s207_s0 + $0x1] sm:$0x1]  }
   0x8   :  { %s145_s21 = smov 4   ;;  %v2_v15 = vld [vmem:[%s207_s0] sm:$0x1]   ;;  %vm27_vm4 = vcmask 425344   ;;  %vm33_vm5 = vcmask 392544   ;;  %vm39_vm6 = vcmask 359744  }
   0x9   :  { %4 = vst.msk [vmem:[#allocation0] sm:$0x1] %vm3_vm0, %v2_v15   ;;  %vm45_vm7 = vcmask 326944   ;;  %vm51_vm8 = vcmask 294144   ;;  %vm57_vm9 = vcmask 261344   ;;  %vm63_vm10 = vcmask 228544  }
   0xa   :  { %13 = vrot.lane.b32.xlu0 %v102_v3, %s134_s19  ;;  %25 = vrot.lane.b32.xlu1 %v104_v4, %s135_s20  ;;  %vm69_vm11 = vcmask 195744   ;;  %vm75_vm12 = vcmask 162944   ;;  %vm81_vm13 = vcmask 130144   ;;  %vm87_vm14 = vcmask 97344  }
   0xb   :  { %37 = vrot.lane.b32.xlu2 %v106_v5, %s136_s23  ;;  %vm93_vm15 = vcmask 64544  }
  0x12   :  { %43 = vrot.lane.b32.xlu0 %v107_v6, %s137_s28  ;;  %49 = vrot.lane.b32.xlu1 %v108_v7, %s138_s29 }
  0x13   :  { %55 = vrot.lane.b32.xlu2 %v109_v8, %s139_s3 }
  0x1a   :  { %61 = vrot.lane.b32.xlu0 %v110_v9, %s140_s8  ;;  %67 = vrot.lane.b32.xlu1 %v111_v10, %s141_s9 }
  0x1b   :  { %73 = vrot.lane.b32.xlu2 %v112_v11, %s142_s12 }
  0x22   :  { %79 = vrot.lane.b32.xlu0 %v113_v12, %s143_s17  ;;  %85 = vrot.lane.b32.xlu1 %v114_v13, %s144_s18 }
  0x23   :  { %91 = vrot.lane.b32.xlu2 %v115_v14, %s145_s21 }
  0x5d   :  { %v32_v16 = vpop.permute.xlu2 %31  }
  0x65   :  { %v38_v17 = vpop.permute.xlu2 %37  }
  0x6d   :  { %v56_v18 = vpop.permute.xlu2 %55  }
  0x74   :  { %v8_v19 = vpop.permute.xlu0 %7   ;;  %v20_v20 = vpop.permute.xlu1 %19  }
  0x75   :  { %10 = vst.msk [vmem:[#allocation0] sm:$0x1] %vm9_vm1, %v8_v19   ;;  %v74_v21 = vpop.permute.xlu2 %73  }
  0x7c   :  { %v14_v22 = vpop.permute.xlu0 %13   ;;  %v26_v23 = vpop.permute.xlu1 %25  }
  0x7d   :  { %16 = vst.msk [vmem:[#allocation0] sm:$0x1] %vm15_vm2, %v14_v22   ;;  %v92_v24 = vpop.permute.xlu2 %91  }
  0x7e   :  { %22 = vst.msk [vmem:[#allocation0] sm:$0x1] %vm21_vm3, %v20_v20  }
  0x7f   :  { %28 = vst.msk [vmem:[#allocation0] sm:$0x1] %vm27_vm4, %v26_v23  }
  0x80   :  { %34 = vst.msk [vmem:[#allocation0] sm:$0x1] %vm33_vm5, %v32_v16  }
  0x81   :  { %40 = vst.msk [vmem:[#allocation0] sm:$0x1] %vm39_vm6, %v38_v17  }
  0x84   :  { %v44_v25 = vpop.permute.xlu0 %43   ;;  %v50_v26 = vpop.permute.xlu1 %49  }
  0x85   :  { %46 = vst.msk [vmem:[#allocation0] sm:$0x1] %vm45_vm7, %v44_v25  }
  0x86   :  { %52 = vst.msk [vmem:[#allocation0] sm:$0x1] %vm51_vm8, %v50_v26  }
  0x87   :  { %58 = vst.msk [vmem:[#allocation0] sm:$0x1] %vm57_vm9, %v56_v18  }
  0x8c   :  { %v62_v27 = vpop.permute.xlu0 %61   ;;  %v68_v28 = vpop.permute.xlu1 %67  }
  0x8d   :  { %64 = vst.msk [vmem:[#allocation0] sm:$0x1] %vm63_vm10, %v62_v27  }
  0x8e   :  { %70 = vst.msk [vmem:[#allocation0] sm:$0x1] %vm69_vm11, %v68_v28  }
  0x8f   :  { %76 = vst.msk [vmem:[#allocation0] sm:$0x1] %vm75_vm12, %v74_v21  }
  0x94   :  { %v80_v29 = vpop.permute.xlu0 %79   ;;  %v86_v30 = vpop.permute.xlu1 %85  }
  0x95   :  { %82 = vst.msk [vmem:[#allocation0] sm:$0x1] %vm81_vm13, %v80_v29  }
  0x96   :  { %88 = vst.msk [vmem:[#allocation0] sm:$0x1] %vm87_vm14, %v86_v30  }
  0x97   :  { %94 = vst.msk [vmem:[#allocation0] sm:$0x1] %vm93_vm15, %v92_v24  }
  0x9e   :  { %v97_v31 = vld [vmem:[#allocation0] sm:$0x1] }
  0x9f   :  { %100 = vst [vmem:[%s208_s1] sm:$0x1] %v97_v31 }

// kernel: tile.63
= control target key start
LH: loop header
LB: loop body
LE: loop exit
PB: predicated region body
PF: predicated region fallthrough
CT: control target
= control target key end

     0   :  { %s28_s0 = inlined_call_operand.vmem [shape: f32[8], index: 0, kind: input, shape index: {}]   ;;  %s29_s1 = inlined_call_operand.vmem [shape: f32[16,8], index: 1, kind: output, shape index: {}]  }
   0x1   :  { %v4_v0 = vld [vmem:[%s28_s0] ss:$0 sm:$0xff] }
   0x2   :  { %5 = vst [vmem:[%s29_s1] sm:$0xff] %v4_v0 }
   0x3   :  { %8 = vst [vmem:[%s29_s1 + $0x8] sm:$0xff] %v4_v0 }

// kernel: tile.64
= control target key start
LH: loop header
LB: loop body
LE: loop exit
PB: predicated region body
PF: predicated region fallthrough
CT: control target
= control target key end

     0   :  { %s131_s10 = smov 120   ;;  %s132_s11 = smov 104   ;;  %vm3_vm0 = vcmask 64512   ;;  %vm9_vm1 = vcmask 1048512   ;;  %vm15_vm2 = vcmask 982912   ;;  %vm21_vm3 = vcmask 917312   ;;  %s207_s0 = inlined_call_operand.vmem [shape: f32[16,8], index: 0, kind: input, shape index: {}]   ;;  %s208_s1 = inlined_call_operand.vmem [shape: f32[1,128], index: 1, kind: output, shape index: {}]  }
   0x1   :  { %v101_v0 = vld [vmem:[%s207_s0 + $0xf] sm:$0x1]   ;;  %v103_v1 = vld [vmem:[%s207_s0 + $0xd] sm:$0x1]   ;;  %v105_v2 = vld [vmem:[%s207_s0 + $0xb] sm:$0x1]  }
   0x2   :  { %7 = vrot.lane.b32.xlu0 %v101_v0, %s131_s10  ;;  %19 = vrot.lane.b32.xlu1 %v103_v1, %s132_s11  ;;  %s133_s14 = smov 88   ;;  %v102_v3 = vld [vmem:[%s207_s0 + $0xe] sm:$0x1]   ;;  %v104_v4 = vld [vmem:[%s207_s0 + $0xc] sm:$0x1]   ;;  %s134_s19 = smov 112  }
   0x3   :  { %31 = vrot.lane.b32.xlu2 %v105_v2, %s133_s14  ;;  %s135_s20 = smov 96   ;;  %v106_v5 = vld [vmem:[%s207_s0 + $0xa] sm:$0x1]   ;;  %s136_s23 = smov 80   ;;  %v107_v6 = vld [vmem:[%s207_s0 + $0x9] sm:$0x1]  }
   0x4   :  { %v108_v7 = vld [vmem:[%s207_s0 + $0x8] sm:$0x1]   ;;  %s137_s28 = smov 72   ;;  %s138_s29 = smov 64   ;;  %v109_v8 = vld [vmem:[%s207_s0 + $0x7] sm:$0x1]  }
   0x5   :  { %s139_s3 = smov 56   ;;  %v110_v9 = vld [vmem:[%s207_s0 + $0x6] sm:$0x1]   ;;  %v111_v10 = vld [vmem:[%s207_s0 + $0x5] sm:$0x1]   ;;  %s140_s8 = smov 48  }
   0x6   :  { %s141_s9 = smov 40   ;;  %v112_v11 = vld [vmem:[%s207_s0 + $0x4] sm:$0x1]   ;;  %s142_s12 = smov 32   ;;  %v113_v12 = vld [vmem:[%s207_s0 + $0x3] sm:$0x1]  }
   0x7   :  { %v114_v13 = vld [vmem:[%s207_s0 + $0x2] sm:$0x1]   ;;  %s143_s17 = smov 24   ;;  %s144_s18 = smov 16   ;;  %v115_v14 = vld [vmem:[%s207_s0 + $0x1] sm:$0x1]  }
   0x8   :  { %s145_s21 = smov 8   ;;  %v2_v15 = vld [vmem:[%s207_s0] sm:$0x1]   ;;  %vm27_vm4 = vcmask 851712   ;;  %vm33_vm5 = vcmask 786112   ;;  %vm39_vm6 = vcmask 720512  }
   0x9   :  { %4 = vst.msk [vmem:[#allocation0] sm:$0x1] %vm3_vm0, %v2_v15   ;;  %vm45_vm7 = vcmask 654912   ;;  %vm51_vm8 = vcmask 589312   ;;  %vm57_vm9 = vcmask 523712   ;;  %vm63_vm10 = vcmask 458112  }
   0xa   :  { %13 = vrot.lane.b32.xlu0 %v102_v3, %s134_s19  ;;  %25 = vrot.lane.b32.xlu1 %v104_v4, %s135_s20  ;;  %vm69_vm11 = vcmask 392512   ;;  %vm75_vm12 = vcmask 326912   ;;  %vm81_vm13 = vcmask 261312   ;;  %vm87_vm14 = vcmask 195712  }
   0xb   :  { %37 = vrot.lane.b32.xlu2 %v106_v5, %s136_s23  ;;  %vm93_vm15 = vcmask 130112  }
  0x12   :  { %43 = vrot.lane.b32.xlu0 %v107_v6, %s137_s28  ;;  %49 = vrot.lane.b32.xlu1 %v108_v7, %s138_s29 }
  0x13   :  { %55 = vrot.lane.b32.xlu2 %v109_v8, %s139_s3 }
  0x1a   :  { %61 = vrot.lane.b32.xlu0 %v110_v9, %s140_s8  ;;  %67 = vrot.lane.b32.xlu1 %v111_v10, %s141_s9 }
  0x1b   :  { %73 = vrot.lane.b32.xlu2 %v112_v11, %s142_s12 }
  0x22   :  { %79 = vrot.lane.b32.xlu0 %v113_v12, %s143_s17  ;;  %85 = vrot.lane.b32.xlu1 %v114_v13, %s144_s18 }
  0x23   :  { %91 = vrot.lane.b32.xlu2 %v115_v14, %s145_s21 }
  0x5d   :  { %v32_v16 = vpop.permute.xlu2 %31  }
  0x65   :  { %v38_v17 = vpop.permute.xlu2 %37  }
  0x6d   :  { %v56_v18 = vpop.permute.xlu2 %55  }
  0x74   :  { %v8_v19 = vpop.permute.xlu0 %7   ;;  %v20_v20 = vpop.permute.xlu1 %19  }
  0x75   :  { %10 = vst.msk [vmem:[#allocation0] sm:$0x1] %vm9_vm1, %v8_v19   ;;  %v74_v21 = vpop.permute.xlu2 %73  }
  0x7c   :  { %v14_v22 = vpop.permute.xlu0 %13   ;;  %v26_v23 = vpop.permute.xlu1 %25  }
  0x7d   :  { %16 = vst.msk [vmem:[#allocation0] sm:$0x1] %vm15_vm2, %v14_v22   ;;  %v92_v24 = vpop.permute.xlu2 %91  }
  0x7e   :  { %22 = vst.msk [vmem:[#allocation0] sm:$0x1] %vm21_vm3, %v20_v20  }
  0x7f   :  { %28 = vst.msk [vmem:[#allocation0] sm:$0x1] %vm27_vm4, %v26_v23  }
  0x80   :  { %34 = vst.msk [vmem:[#allocation0] sm:$0x1] %vm33_vm5, %v32_v16  }
  0x81   :  { %40 = vst.msk [vmem:[#allocation0] sm:$0x1] %vm39_vm6, %v38_v17  }
  0x84   :  { %v44_v25 = vpop.permute.xlu0 %43   ;;  %v50_v26 = vpop.permute.xlu1 %49  }
  0x85   :  { %46 = vst.msk [vmem:[#allocation0] sm:$0x1] %vm45_vm7, %v44_v25  }
  0x86   :  { %52 = vst.msk [vmem:[#allocation0] sm:$0x1] %vm51_vm8, %v50_v26  }
  0x87   :  { %58 = vst.msk [vmem:[#allocation0] sm:$0x1] %vm57_vm9, %v56_v18  }
  0x8c   :  { %v62_v27 = vpop.permute.xlu0 %61   ;;  %v68_v28 = vpop.permute.xlu1 %67  }
  0x8d   :  { %64 = vst.msk [vmem:[#allocation0] sm:$0x1] %vm63_vm10, %v62_v27  }
  0x8e   :  { %70 = vst.msk [vmem:[#allocation0] sm:$0x1] %vm69_vm11, %v68_v28  }
  0x8f   :  { %76 = vst.msk [vmem:[#allocation0] sm:$0x1] %vm75_vm12, %v74_v21  }
  0x94   :  { %v80_v29 = vpop.permute.xlu0 %79   ;;  %v86_v30 = vpop.permute.xlu1 %85  }
  0x95   :  { %82 = vst.msk [vmem:[#allocation0] sm:$0x1] %vm81_vm13, %v80_v29  }
  0x96   :  { %88 = vst.msk [vmem:[#allocation0] sm:$0x1] %vm87_vm14, %v86_v30  }
  0x97   :  { %94 = vst.msk [vmem:[#allocation0] sm:$0x1] %vm93_vm15, %v92_v24  }
  0x9e   :  { %v97_v31 = vld [vmem:[#allocation0] sm:$0x1] }
  0x9f   :  { %100 = vst [vmem:[%s208_s1] sm:$0x1] %v97_v31 }

// kernel: squeeze.20
= control target key start
LH: loop header
LB: loop body
LE: loop exit
PB: predicated region body
PF: predicated region fallthrough
CT: control target
= control target key end

     0   :  { %s130_s8 = smov 120   ;;  %s131_s9 = smov 88   ;;  %vm7_vm0 = vcmask 64512   ;;  %s221_s0 = inlined_call_operand.vmem [shape: f32[128], index: 0, kind: input, shape index: {}]   ;;  %s222_s1 = inlined_call_operand.vmem [shape: f32[16,8], index: 1, kind: output, shape index: {}]  }
   0x1   :  { %v4_v0 = vld [vmem:[%s221_s0] sm:$0x1]  ;;  %s129_s0 = smov 104   ;;  %s132_s10 = smov 96  }
   0x2   :  { %5 = vst [vmem:[#allocation0] sm:$0x1] %v4_v0  ;;  %s133_s11 = smov 112   ;;  %s134_s12 = smov 80  }
   0x3   :  { %s135_s13 = smov 64   ;;  %s136_s14 = smov 72  }
   0x4   :  { %s137_s15 = smov 56   ;;  %s138_s16 = smov 40  }
   0x5   :  { %s139_s17 = smov 48   ;;  %s140_s18 = smov 32  }
   0x6   :  { %s141_s19 = smov 16   ;;  %s142_s20 = smov 24  }
   0x7   :  { %s143_s21 = smov 8  }
   0x9   :  { %v21_v1 = vld [vmem:[#allocation0] sm:$0x1]  }
   0xa   :  { %v9_v2 = vld [vmem:[#allocation0] sm:$0x1]   ;;  %22 = vrot.lane.b32.xlu1 %v21_v1, %s129_s0 }
   0xb   :  { %10 = vrot.lane.b32.xlu0 %v9_v2, %s130_s8  ;;  %v33_v3 = vld [vmem:[#allocation0] sm:$0x1]  }
   0xc   :  { %34 = vrot.lane.b32.xlu2 %v33_v3, %s131_s9  ;;  %v27_v4 = vld [vmem:[#allocation0] sm:$0x1]  }
   0xd   :  { %v15_v5 = vld [vmem:[#allocation0] sm:$0x1]  }
   0xe   :  { %v39_v6 = vld [vmem:[#allocation0] sm:$0x1]  }
   0xf   :  { %v51_v7 = vld [vmem:[#allocation0] sm:$0x1]  }
  0x10   :  { %v45_v8 = vld [vmem:[#allocation0] sm:$0x1]  }
  0x11   :  { %v57_v9 = vld [vmem:[#allocation0] sm:$0x1]  }
  0x12   :  { %28 = vrot.lane.b32.xlu1 %v27_v4, %s132_s10  ;;  %v69_v10 = vld [vmem:[#allocation0] sm:$0x1]  }
  0x13   :  { %16 = vrot.lane.b32.xlu0 %v15_v5, %s133_s11  ;;  %v63_v11 = vld [vmem:[#allocation0] sm:$0x1]  }
  0x14   :  { %40 = vrot.lane.b32.xlu2 %v39_v6, %s134_s12  ;;  %v75_v12 = vld [vmem:[#allocation0] sm:$0x1]  }
  0x15   :  { %v87_v13 = vld [vmem:[#allocation0] sm:$0x1]  }
  0x16   :  { %v81_v14 = vld [vmem:[#allocation0] sm:$0x1]  }
  0x17   :  { %v93_v15 = vld [vmem:[#allocation0] sm:$0x1]  }
  0x18   :  { %v6_v21 = vld [vmem:[#allocation0] sm:$0x1]  }
  0x19   :  { %8 = vst.msk [vmem:[%s222_s1] sm:$0x1] %vm7_vm0, %v6_v21  }
  0x1a   :  { %52 = vrot.lane.b32.xlu1 %v51_v7, %s135_s13 }
  0x1b   :  { %46 = vrot.lane.b32.xlu0 %v45_v8, %s136_s14 }
  0x1c   :  { %58 = vrot.lane.b32.xlu2 %v57_v9, %s137_s15 }
  0x22   :  { %70 = vrot.lane.b32.xlu1 %v69_v10, %s138_s16 }
  0x23   :  { %64 = vrot.lane.b32.xlu0 %v63_v11, %s139_s17 }
  0x24   :  { %76 = vrot.lane.b32.xlu2 %v75_v12, %s140_s18 }
  0x2a   :  { %88 = vrot.lane.b32.xlu1 %v87_v13, %s141_s19 }
  0x2b   :  { %82 = vrot.lane.b32.xlu0 %v81_v14, %s142_s20 }
  0x2c   :  { %94 = vrot.lane.b32.xlu2 %v93_v15, %s143_s21 }
  0x66   :  { %v35_v16 = vpop.permute.xlu2 %34  }
  0x67   :  { %103 = vst.msk [vmem:[%s222_s1 + $0x5] sm:$0x1] %vm7_vm0, %v35_v16  }
  0x6e   :  { %v41_v17 = vpop.permute.xlu2 %40  }
  0x6f   :  { %104 = vst.msk [vmem:[%s222_s1 + $0x6] sm:$0x1] %vm7_vm0, %v41_v17  }
  0x76   :  { %v59_v18 = vpop.permute.xlu2 %58  }
  0x77   :  { %107 = vst.msk [vmem:[%s222_s1 + $0x9] sm:$0x1] %vm7_vm0, %v59_v18  }
  0x7c   :  { %v23_v19 = vpop.permute.xlu1 %22  }
  0x7d   :  { %v11_v20 = vpop.permute.xlu0 %10   ;;  %101 = vst.msk [vmem:[%s222_s1 + $0x3] sm:$0x1] %vm7_vm0, %v23_v19  }
  0x7e   :  { %99 = vst.msk [vmem:[%s222_s1 + $0x1] sm:$0x1] %vm7_vm0, %v11_v20   ;;  %v77_v22 = vpop.permute.xlu2 %76  }
  0x7f   :  { %110 = vst.msk [vmem:[%s222_s1 + $0xc] sm:$0x1] %vm7_vm0, %v77_v22  }
  0x84   :  { %v29_v23 = vpop.permute.xlu1 %28  }
  0x85   :  { %v17_v24 = vpop.permute.xlu0 %16   ;;  %102 = vst.msk [vmem:[%s222_s1 + $0x4] sm:$0x1] %vm7_vm0, %v29_v23  }
  0x86   :  { %100 = vst.msk [vmem:[%s222_s1 + $0x2] sm:$0x1] %vm7_vm0, %v17_v24   ;;  %v95_v25 = vpop.permute.xlu2 %94  }
  0x87   :  { %113 = vst.msk [vmem:[%s222_s1 + $0xf] sm:$0x1] %vm7_vm0, %v95_v25  }
  0x8c   :  { %v53_v26 = vpop.permute.xlu1 %52  }
  0x8d   :  { %v47_v27 = vpop.permute.xlu0 %46   ;;  %106 = vst.msk [vmem:[%s222_s1 + $0x8] sm:$0x1] %vm7_vm0, %v53_v26  }
  0x8e   :  { %105 = vst.msk [vmem:[%s222_s1 + $0x7] sm:$0x1] %vm7_vm0, %v47_v27  }
  0x94   :  { %v71_v28 = vpop.permute.xlu1 %70  }
  0x95   :  { %v65_v29 = vpop.permute.xlu0 %64   ;;  %109 = vst.msk [vmem:[%s222_s1 + $0xb] sm:$0x1] %vm7_vm0, %v71_v28  }
  0x96   :  { %108 = vst.msk [vmem:[%s222_s1 + $0xa] sm:$0x1] %vm7_vm0, %v65_v29  }
  0x9c   :  { %v89_v30 = vpop.permute.xlu1 %88  }
  0x9d   :  { %v83_v31 = vpop.permute.xlu0 %82   ;;  %112 = vst.msk [vmem:[%s222_s1 + $0xe] sm:$0x1] %vm7_vm0, %v89_v30  }
  0x9e   :  { %111 = vst.msk [vmem:[%s222_s1 + $0xd] sm:$0x1] %vm7_vm0, %v83_v31  }

// kernel: mul.57
= control target key start
LH: loop header
LB: loop body
LE: loop exit
PB: predicated region body
PF: predicated region fallthrough
CT: control target
= control target key end

     0   :  { %s1006_s0 = inlined_call_operand.vmem [shape: f32[16,8,16], index: 0, kind: input, shape index: {}]   ;;  %s1007_s1 = inlined_call_operand.vmem [shape: f32[16,8,16,4], index: 1, kind: output, shape index: {}]  }
   0x1   :  { %v493_v0 = vld [vmem:[%s1006_s0] sm:$0xff]  ;;  %v498_v1 = vld [vmem:[%s1006_s0 + $0x10] sm:$0xff]  ;;  %v745_v16 = vld [vmem:[%s1006_s0 + $0x8] sm:$0xff] }
   0x2   :  { %v503_v2 = vld [vmem:[%s1006_s0 + $0x20] sm:$0xff]  ;;  %5 = vst [vmem:[%s1007_s1] sm:$0xff] %v493_v0  ;;  %v326_v3 = vld [vmem:[%s1006_s0 + $0x30] sm:$0xff]  ;;  %v753_v17 = vld [vmem:[%s1006_s0 + $0x18] sm:$0xff] }
   0x3   :  { %323 = vst [vmem:[%s1007_s1 + $0x40] sm:$0xff] %v498_v1  ;;  %v328_v4 = vld [vmem:[%s1006_s0 + $0x40] sm:$0xff]  ;;  %v330_v5 = vld [vmem:[%s1006_s0 + $0x50] sm:$0xff]  ;;  %v761_v18 = vld [vmem:[%s1006_s0 + $0x28] sm:$0xff] }
   0x4   :  { %325 = vst [vmem:[%s1007_s1 + $0x80] sm:$0xff] %v503_v2  ;;  %v332_v6 = vld [vmem:[%s1006_s0 + $0x60] sm:$0xff]  ;;  %v334_v7 = vld [vmem:[%s1006_s0 + $0x70] sm:$0xff]  ;;  %v406_v19 = vld [vmem:[%s1006_s0 + $0x38] sm:$0xff] }
   0x5   :  { %327 = vst [vmem:[%s1007_s1 + $0xc0] sm:$0xff] %v326_v3  ;;  %v336_v8 = vld [vmem:[%s1006_s0 + $0x80] sm:$0xff]  ;;  %v338_v9 = vld [vmem:[%s1006_s0 + $0x90] sm:$0xff]  ;;  %v408_v20 = vld [vmem:[%s1006_s0 + $0x48] sm:$0xff] }
   0x6   :  { %329 = vst [vmem:[%s1007_s1 + $0x100] sm:$0xff] %v328_v4  ;;  %v340_v10 = vld [vmem:[%s1006_s0 + $0xa0] sm:$0xff]  ;;  %v342_v11 = vld [vmem:[%s1006_s0 + $0xb0] sm:$0xff]  ;;  %v410_v21 = vld [vmem:[%s1006_s0 + $0x58] sm:$0xff] }
   0x7   :  { %331 = vst [vmem:[%s1007_s1 + $0x140] sm:$0xff] %v330_v5  ;;  %v344_v12 = vld [vmem:[%s1006_s0 + $0xc0] sm:$0xff]  ;;  %v346_v13 = vld [vmem:[%s1006_s0 + $0xd0] sm:$0xff]  ;;  %v412_v22 = vld [vmem:[%s1006_s0 + $0x68] sm:$0xff] }
   0x8   :  { %333 = vst [vmem:[%s1007_s1 + $0x180] sm:$0xff] %v332_v6  ;;  %v348_v14 = vld [vmem:[%s1006_s0 + $0xe0] sm:$0xff]  ;;  %v350_v15 = vld [vmem:[%s1006_s0 + $0xf0] sm:$0xff]  ;;  %v414_v23 = vld [vmem:[%s1006_s0 + $0x78] sm:$0xff] }
   0x9   :  { %335 = vst [vmem:[%s1007_s1 + $0x1c0] sm:$0xff] %v334_v7  ;;  %v416_v24 = vld [vmem:[%s1006_s0 + $0x88] sm:$0xff]  ;;  %v418_v25 = vld [vmem:[%s1006_s0 + $0x98] sm:$0xff] }
   0xa   :  { %337 = vst [vmem:[%s1007_s1 + $0x200] sm:$0xff] %v336_v8  ;;  %v420_v26 = vld [vmem:[%s1006_s0 + $0xa8] sm:$0xff]  ;;  %v422_v27 = vld [vmem:[%s1006_s0 + $0xb8] sm:$0xff] }
   0xb   :  { %339 = vst [vmem:[%s1007_s1 + $0x240] sm:$0xff] %v338_v9  ;;  %v424_v28 = vld [vmem:[%s1006_s0 + $0xc8] sm:$0xff]  ;;  %v426_v29 = vld [vmem:[%s1006_s0 + $0xd8] sm:$0xff] }
   0xc   :  { %341 = vst [vmem:[%s1007_s1 + $0x280] sm:$0xff] %v340_v10  ;;  %v428_v30 = vld [vmem:[%s1006_s0 + $0xe8] sm:$0xff]  ;;  %v430_v31 = vld [vmem:[%s1006_s0 + $0xf8] sm:$0xff] }
   0xd   :  { %343 = vst [vmem:[%s1007_s1 + $0x2c0] sm:$0xff] %v342_v11 }
   0xe   :  { %345 = vst [vmem:[%s1007_s1 + $0x300] sm:$0xff] %v344_v12 }
   0xf   :  { %347 = vst [vmem:[%s1007_s1 + $0x340] sm:$0xff] %v346_v13 }
  0x10   :  { %349 = vst [vmem:[%s1007_s1 + $0x380] sm:$0xff] %v348_v14 }
  0x11   :  { %351 = vst [vmem:[%s1007_s1 + $0x3c0] sm:$0xff] %v350_v15 }
  0x12   :  { %352 = vst [vmem:[%s1007_s1 + $0x10] sm:$0xff] %v493_v0 }
  0x13   :  { %353 = vst [vmem:[%s1007_s1 + $0x50] sm:$0xff] %v498_v1 }
  0x14   :  { %354 = vst [vmem:[%s1007_s1 + $0x90] sm:$0xff] %v503_v2 }
  0x15   :  { %355 = vst [vmem:[%s1007_s1 + $0xd0] sm:$0xff] %v326_v3 }
  0x16   :  { %356 = vst [vmem:[%s1007_s1 + $0x110] sm:$0xff] %v328_v4 }
  0x17   :  { %357 = vst [vmem:[%s1007_s1 + $0x150] sm:$0xff] %v330_v5 }
  0x18   :  { %358 = vst [vmem:[%s1007_s1 + $0x190] sm:$0xff] %v332_v6 }
  0x19   :  { %359 = vst [vmem:[%s1007_s1 + $0x1d0] sm:$0xff] %v334_v7 }
  0x1a   :  { %360 = vst [vmem:[%s1007_s1 + $0x210] sm:$0xff] %v336_v8 }
  0x1b   :  { %361 = vst [vmem:[%s1007_s1 + $0x250] sm:$0xff] %v338_v9 }
  0x1c   :  { %362 = vst [vmem:[%s1007_s1 + $0x290] sm:$0xff] %v340_v10 }
  0x1d   :  { %363 = vst [vmem:[%s1007_s1 + $0x2d0] sm:$0xff] %v342_v11 }
  0x1e   :  { %364 = vst [vmem:[%s1007_s1 + $0x310] sm:$0xff] %v344_v12 }
  0x1f   :  { %365 = vst [vmem:[%s1007_s1 + $0x350] sm:$0xff] %v346_v13 }
  0x20   :  { %366 = vst [vmem:[%s1007_s1 + $0x390] sm:$0xff] %v348_v14 }
  0x21   :  { %367 = vst [vmem:[%s1007_s1 + $0x3d0] sm:$0xff] %v350_v15 }
  0x22   :  { %368 = vst [vmem:[%s1007_s1 + $0x20] sm:$0xff] %v493_v0 }
  0x23   :  { %369 = vst [vmem:[%s1007_s1 + $0x60] sm:$0xff] %v498_v1 }
  0x24   :  { %370 = vst [vmem:[%s1007_s1 + $0xa0] sm:$0xff] %v503_v2 }
  0x25   :  { %371 = vst [vmem:[%s1007_s1 + $0xe0] sm:$0xff] %v326_v3 }
  0x26   :  { %372 = vst [vmem:[%s1007_s1 + $0x120] sm:$0xff] %v328_v4 }
  0x27   :  { %373 = vst [vmem:[%s1007_s1 + $0x160] sm:$0xff] %v330_v5 }
  0x28   :  { %374 = vst [vmem:[%s1007_s1 + $0x1a0] sm:$0xff] %v332_v6 }
  0x29   :  { %375 = vst [vmem:[%s1007_s1 + $0x1e0] sm:$0xff] %v334_v7 }
  0x2a   :  { %376 = vst [vmem:[%s1007_s1 + $0x220] sm:$0xff] %v336_v8 }
  0x2b   :  { %377 = vst [vmem:[%s1007_s1 + $0x260] sm:$0xff] %v338_v9 }
  0x2c   :  { %378 = vst [vmem:[%s1007_s1 + $0x2a0] sm:$0xff] %v340_v10 }
  0x2d   :  { %379 = vst [vmem:[%s1007_s1 + $0x2e0] sm:$0xff] %v342_v11 }
  0x2e   :  { %380 = vst [vmem:[%s1007_s1 + $0x320] sm:$0xff] %v344_v12 }
  0x2f   :  { %381 = vst [vmem:[%s1007_s1 + $0x360] sm:$0xff] %v346_v13 }
  0x30   :  { %382 = vst [vmem:[%s1007_s1 + $0x3a0] sm:$0xff] %v348_v14 }
  0x31   :  { %383 = vst [vmem:[%s1007_s1 + $0x3e0] sm:$0xff] %v350_v15 }
  0x32   :  { %384 = vst [vmem:[%s1007_s1 + $0x30] sm:$0xff] %v493_v0 }
  0x33   :  { %385 = vst [vmem:[%s1007_s1 + $0x70] sm:$0xff] %v498_v1 }
  0x34   :  { %386 = vst [vmem:[%s1007_s1 + $0xb0] sm:$0xff] %v503_v2 }
  0x35   :  { %387 = vst [vmem:[%s1007_s1 + $0xf0] sm:$0xff] %v326_v3 }
  0x36   :  { %388 = vst [vmem:[%s1007_s1 + $0x130] sm:$0xff] %v328_v4 }
  0x37   :  { %389 = vst [vmem:[%s1007_s1 + $0x170] sm:$0xff] %v330_v5 }
  0x38   :  { %390 = vst [vmem:[%s1007_s1 + $0x1b0] sm:$0xff] %v332_v6 }
  0x39   :  { %391 = vst [vmem:[%s1007_s1 + $0x1f0] sm:$0xff] %v334_v7 }
  0x3a   :  { %392 = vst [vmem:[%s1007_s1 + $0x230] sm:$0xff] %v336_v8 }
  0x3b   :  { %393 = vst [vmem:[%s1007_s1 + $0x270] sm:$0xff] %v338_v9 }
  0x3c   :  { %394 = vst [vmem:[%s1007_s1 + $0x2b0] sm:$0xff] %v340_v10 }
  0x3d   :  { %395 = vst [vmem:[%s1007_s1 + $0x2f0] sm:$0xff] %v342_v11 }
  0x3e   :  { %396 = vst [vmem:[%s1007_s1 + $0x330] sm:$0xff] %v344_v12 }
  0x3f   :  { %397 = vst [vmem:[%s1007_s1 + $0x370] sm:$0xff] %v346_v13 }
  0x40   :  { %398 = vst [vmem:[%s1007_s1 + $0x3b0] sm:$0xff] %v348_v14 }
  0x41   :  { %399 = vst [vmem:[%s1007_s1 + $0x3f0] sm:$0xff] %v350_v15 }
  0x42   :  { %401 = vst [vmem:[%s1007_s1 + $0x8] sm:$0xff] %v745_v16 }
  0x43   :  { %403 = vst [vmem:[%s1007_s1 + $0x48] sm:$0xff] %v753_v17 }
  0x44   :  { %405 = vst [vmem:[%s1007_s1 + $0x88] sm:$0xff] %v761_v18 }
  0x45   :  { %407 = vst [vmem:[%s1007_s1 + $0xc8] sm:$0xff] %v406_v19 }
  0x46   :  { %409 = vst [vmem:[%s1007_s1 + $0x108] sm:$0xff] %v408_v20 }
  0x47   :  { %411 = vst [vmem:[%s1007_s1 + $0x148] sm:$0xff] %v410_v21 }
  0x48   :  { %413 = vst [vmem:[%s1007_s1 + $0x188] sm:$0xff] %v412_v22 }
  0x49   :  { %415 = vst [vmem:[%s1007_s1 + $0x1c8] sm:$0xff] %v414_v23 }
  0x4a   :  { %417 = vst [vmem:[%s1007_s1 + $0x208] sm:$0xff] %v416_v24 }
  0x4b   :  { %419 = vst [vmem:[%s1007_s1 + $0x248] sm:$0xff] %v418_v25 }
  0x4c   :  { %421 = vst [vmem:[%s1007_s1 + $0x288] sm:$0xff] %v420_v26 }
  0x4d   :  { %423 = vst [vmem:[%s1007_s1 + $0x2c8] sm:$0xff] %v422_v27 }
  0x4e   :  { %425 = vst [vmem:[%s1007_s1 + $0x308] sm:$0xff] %v424_v28 }
  0x4f   :  { %427 = vst [vmem:[%s1007_s1 + $0x348] sm:$0xff] %v426_v29 }
  0x50   :  { %429 = vst [vmem:[%s1007_s1 + $0x388] sm:$0xff] %v428_v30 }
  0x51   :  { %431 = vst [vmem:[%s1007_s1 + $0x3c8] sm:$0xff] %v430_v31 }
  0x52   :  { %432 = vst [vmem:[%s1007_s1 + $0x18] sm:$0xff] %v745_v16 }
  0x53   :  { %433 = vst [vmem:[%s1007_s1 + $0x58] sm:$0xff] %v753_v17 }
  0x54   :  { %434 = vst [vmem:[%s1007_s1 + $0x98] sm:$0xff] %v761_v18 }
  0x55   :  { %435 = vst [vmem:[%s1007_s1 + $0xd8] sm:$0xff] %v406_v19 }
  0x56   :  { %436 = vst [vmem:[%s1007_s1 + $0x118] sm:$0xff] %v408_v20 }
  0x57   :  { %437 = vst [vmem:[%s1007_s1 + $0x158] sm:$0xff] %v410_v21 }
  0x58   :  { %438 = vst [vmem:[%s1007_s1 + $0x198] sm:$0xff] %v412_v22 }
  0x59   :  { %439 = vst [vmem:[%s1007_s1 + $0x1d8] sm:$0xff] %v414_v23 }
  0x5a   :  { %440 = vst [vmem:[%s1007_s1 + $0x218] sm:$0xff] %v416_v24 }
  0x5b   :  { %441 = vst [vmem:[%s1007_s1 + $0x258] sm:$0xff] %v418_v25 }
  0x5c   :  { %442 = vst [vmem:[%s1007_s1 + $0x298] sm:$0xff] %v420_v26 }
  0x5d   :  { %443 = vst [vmem:[%s1007_s1 + $0x2d8] sm:$0xff] %v422_v27 }
  0x5e   :  { %444 = vst [vmem:[%s1007_s1 + $0x318] sm:$0xff] %v424_v28 }
  0x5f   :  { %445 = vst [vmem:[%s1007_s1 + $0x358] sm:$0xff] %v426_v29 }
  0x60   :  { %446 = vst [vmem:[%s1007_s1 + $0x398] sm:$0xff] %v428_v30 }
  0x61   :  { %447 = vst [vmem:[%s1007_s1 + $0x3d8] sm:$0xff] %v430_v31 }
  0x62   :  { %448 = vst [vmem:[%s1007_s1 + $0x28] sm:$0xff] %v745_v16 }
  0x63   :  { %449 = vst [vmem:[%s1007_s1 + $0x68] sm:$0xff] %v753_v17 }
  0x64   :  { %450 = vst [vmem:[%s1007_s1 + $0xa8] sm:$0xff] %v761_v18 }
  0x65   :  { %451 = vst [vmem:[%s1007_s1 + $0xe8] sm:$0xff] %v406_v19 }
  0x66   :  { %452 = vst [vmem:[%s1007_s1 + $0x128] sm:$0xff] %v408_v20 }
  0x67   :  { %453 = vst [vmem:[%s1007_s1 + $0x168] sm:$0xff] %v410_v21 }
  0x68   :  { %454 = vst [vmem:[%s1007_s1 + $0x1a8] sm:$0xff] %v412_v22 }
  0x69   :  { %455 = vst [vmem:[%s1007_s1 + $0x1e8] sm:$0xff] %v414_v23 }
  0x6a   :  { %456 = vst [vmem:[%s1007_s1 + $0x228] sm:$0xff] %v416_v24 }
  0x6b   :  { %457 = vst [vmem:[%s1007_s1 + $0x268] sm:$0xff] %v418_v25 }
  0x6c   :  { %458 = vst [vmem:[%s1007_s1 + $0x2a8] sm:$0xff] %v420_v26 }
  0x6d   :  { %459 = vst [vmem:[%s1007_s1 + $0x2e8] sm:$0xff] %v422_v27 }
  0x6e   :  { %460 = vst [vmem:[%s1007_s1 + $0x328] sm:$0xff] %v424_v28 }
  0x6f   :  { %461 = vst [vmem:[%s1007_s1 + $0x368] sm:$0xff] %v426_v29 }
  0x70   :  { %462 = vst [vmem:[%s1007_s1 + $0x3a8] sm:$0xff] %v428_v30 }
  0x71   :  { %463 = vst [vmem:[%s1007_s1 + $0x3e8] sm:$0xff] %v430_v31 }
  0x72   :  { %464 = vst [vmem:[%s1007_s1 + $0x38] sm:$0xff] %v745_v16 }
  0x73   :  { %465 = vst [vmem:[%s1007_s1 + $0x78] sm:$0xff] %v753_v17 }
  0x74   :  { %466 = vst [vmem:[%s1007_s1 + $0xb8] sm:$0xff] %v761_v18 }
  0x75   :  { %467 = vst [vmem:[%s1007_s1 + $0xf8] sm:$0xff] %v406_v19 }
  0x76   :  { %468 = vst [vmem:[%s1007_s1 + $0x138] sm:$0xff] %v408_v20 }
  0x77   :  { %469 = vst [vmem:[%s1007_s1 + $0x178] sm:$0xff] %v410_v21 }
  0x78   :  { %470 = vst [vmem:[%s1007_s1 + $0x1b8] sm:$0xff] %v412_v22 }
  0x79   :  { %471 = vst [vmem:[%s1007_s1 + $0x1f8] sm:$0xff] %v414_v23 }
  0x7a   :  { %472 = vst [vmem:[%s1007_s1 + $0x238] sm:$0xff] %v416_v24 }
  0x7b   :  { %473 = vst [vmem:[%s1007_s1 + $0x278] sm:$0xff] %v418_v25 }
  0x7c   :  { %474 = vst [vmem:[%s1007_s1 + $0x2b8] sm:$0xff] %v420_v26 }
  0x7d   :  { %475 = vst [vmem:[%s1007_s1 + $0x2f8] sm:$0xff] %v422_v27 }
  0x7e   :  { %476 = vst [vmem:[%s1007_s1 + $0x338] sm:$0xff] %v424_v28 }
  0x7f   :  { %477 = vst [vmem:[%s1007_s1 + $0x378] sm:$0xff] %v426_v29 }
  0x80   :  { %478 = vst [vmem:[%s1007_s1 + $0x3b8] sm:$0xff] %v428_v30 }
  0x81   :  { %479 = vst [vmem:[%s1007_s1 + $0x3f8] sm:$0xff] %v430_v31 }

// kernel: attention_block_forward.2
= control target key start
LH: loop header
LB: loop body
LE: loop exit
PB: predicated region body
PF: predicated region fallthrough
CT: control target
= control target key end

     0   :  { %s2033_s17 = smov 0   ;;  %s3621_s0 = inlined_call_operand.vmem [shape: f32[2,18,256], index: 0, kind: input, shape index: {}]   ;;  %s3622_s1 = inlined_call_operand.vmem [shape: f32[2,18,64], index: 1, kind: input, shape index: {}]   ;;  %s3623_s2 = inlined_call_operand.vmem [shape: f32[1,256], index: 2, kind: input, shape index: {}]   ;;  %s3624_s3 = inlined_call_operand.vmem [shape: f32[1,256], index: 3, kind: input, shape index: {}]   ;;  %s3625_s4 = inlined_call_operand.vmem [shape: f32[1,64], index: 4, kind: input, shape index: {}]   ;;  %s3626_s5 = inlined_call_operand.vmem [shape: f32[1,64], index: 5, kind: input, shape index: {}]   ;;  %s3627_s6 = inlined_call_operand.vmem [shape: f32[256,1536], index: 6, kind: input, shape index: {}]   ;;  %s3628_s7 = inlined_call_operand.vmem [shape: f32[64,384], index: 7, kind: input, shape index: {}]   ;;  %s3629_s8 = inlined_call_operand.vmem [shape: f32[1,128], index: 8, kind: input, shape index: {}]   ;;  %s3630_s9 = inlined_call_operand.vmem [shape: f32[1,128], index: 9, kind: input, shape index: {}]   ;;  %s3631_s10 = inlined_call_operand.vmem [shape: f32[2,16,128], index: 10, kind: output, shape index: {0}]   ;;  %s3632_s11 = inlined_call_operand.vmem [shape: f32[2,2,128], index: 11, kind: output, shape index: {1}]  }
   0x1 LB: > { %s1873_s18 = sadd.s32 4294967295, %s1971_s17   ;;  %p1877_p0 = scmp.ge.s32.totalorder %s1971_s17, 1  ;;  %s1971_s17 = sphi %s2033_s17, %s22_s17  }
   0x2   : > { %p350_p1 = scmp.lt.s32.totalorder %s1971_s17, 3 }
   0x4   : > { %p351_p2 = pnand %p1877_p0, %p350_p1 }
   0x5   : > { %p2163_p3 = scmp.lt.s32.totalorder (!%p351_p2), %s1873_s18, 1 }
   0x6   : > { %354 = sbr.rel (%p351_p2) target bundleno = 433 (0x1b1), region = 60 }
   0xb   : > { %v659_v0 = vld [vmem:[%s3627_s6 + $0x5a0] sm:$0xff]  ;;  %v660_v2 = vld [vmem:[%s3627_s6 + $0x5a8] sm:$0xff]  ;;  %s3635_s18 = smov (!%p2163_p3, %s1873_s18), 1  ;;  %vm1636_vm2 = vcmask 523264   ;;  %vm1491_vm3 = vcmask 1046528   ;;  %vm1540_vm4 = vcmask 1045504  }
   0xc   : > { %v851_v1 = vld [vmem:[%s3627_s6 + $0xba0] sm:$0xff]  ;;  %863 = vmatpush.msra.mxu0 %v659_v0  ;;  %v852_v3 = vld [vmem:[%s3627_s6 + $0xba8] sm:$0xff]  ;;  %913 = vmatpush.msra.mxu2 %v660_v2  ;;  %s1951_s30 = smul.u32 48, %s3635_s18  ;;  %v661_v0 = vld [vmem:[%s3627_s6 + $0x5b0] sm:$0xff]  ;;  %s1882_s15 = sshll.u32 %s3635_s18, 1 }
   0xd   : > { %888 = vmatpush.msra.mxu1 %v851_v1  ;;  %v647_v4 = vld [vmem:[%s3627_s6 + $0x540] sm:$0xff]  ;;  %938 = vmatpush.msra.mxu3 %v852_v3  ;;  %v648_v6 = vld [vmem:[%s3627_s6 + $0x548] sm:$0xff]  ;;  %v853_v1 = vld [vmem:[%s3627_s6 + $0xbb0] sm:$0xff]  ;;  %s1952_s24 = smul.u32 24, %s3635_s18  ;;  %s417_s12 = scalar_lea.vmem %s3632_s11, %s1882_s15 }
   0xe   : > { %v839_v5 = vld [vmem:[%s3627_s6 + $0xb40] sm:$0xff]  ;;  %v840_v7 = vld [vmem:[%s3627_s6 + $0xb48] sm:$0xff]  ;;  %864 = vmatpush.msra.mxu0 %v647_v4  ;;  %914 = vmatpush.msra.mxu2 %v648_v6  ;;  %s2252_s19 = scalar_lea.vmem %s3621_s0, %s1951_s30  ;;  %v662_v2 = vld [vmem:[%s3627_s6 + $0x5b8] sm:$0xff] }
   0xf   : > { %v635_v8 = vld [vmem:[%s3627_s6 + $0x4e0] sm:$0xff]  ;;  %889 = vmatpush.msra.mxu1 %v839_v5  ;;  %v636_v10 = vld [vmem:[%s3627_s6 + $0x4e8] sm:$0xff]  ;;  %939 = vmatpush.msra.mxu3 %v840_v7  ;;  %v854_v3 = vld [vmem:[%s3627_s6 + $0xbb8] sm:$0xff]  ;;  %s3458_s22 = scalar_lea.vmem %s3622_s1, %s1952_s24  ;;  %s1942_s24 = sshll.u32 %s3635_s18, 4 }
  0x10   : > { %v827_v9 = vld [vmem:[%s3627_s6 + $0xae0] sm:$0xff]  ;;  %v828_v11 = vld [vmem:[%s3627_s6 + $0xae8] sm:$0xff]  ;;  %865 = vmatpush.msra.mxu0 %v635_v8  ;;  %915 = vmatpush.msra.mxu2 %v636_v10  ;;  %v649_v4 = vld [vmem:[%s3627_s6 + $0x550] sm:$0xff]  ;;  %s413_s14 = scalar_lea.vmem %s3631_s10, %s1942_s24 }
  0x11   : > { %v623_v12 = vld [vmem:[%s3627_s6 + $0x480] sm:$0xff]  ;;  %890 = vmatpush.msra.mxu1 %v827_v9  ;;  %v624_v14 = vld [vmem:[%s3627_s6 + $0x488] sm:$0xff]  ;;  %940 = vmatpush.msra.mxu3 %v828_v11  ;;  %v841_v5 = vld [vmem:[%s3627_s6 + $0xb50] sm:$0xff] }
  0x12   : > { %v815_v13 = vld [vmem:[%s3627_s6 + $0xa80] sm:$0xff]  ;;  %v816_v15 = vld [vmem:[%s3627_s6 + $0xa88] sm:$0xff]  ;;  %866 = vmatpush.msra.mxu0 %v623_v12  ;;  %916 = vmatpush.msra.mxu2 %v624_v14  ;;  %v650_v12 = vld [vmem:[%s3627_s6 + $0x558] sm:$0xff] }
  0x13   : > { %v611_v16 = vld [vmem:[%s3627_s6 + $0x420] sm:$0xff]  ;;  %891 = vmatpush.msra.mxu1 %v815_v13  ;;  %v612_v18 = vld [vmem:[%s3627_s6 + $0x428] sm:$0xff]  ;;  %941 = vmatpush.msra.mxu3 %v816_v15  ;;  %v842_v13 = vld [vmem:[%s3627_s6 + $0xb58] sm:$0xff] }
  0x14   : > { %v803_v17 = vld [vmem:[%s3627_s6 + $0xa20] sm:$0xff]  ;;  %v804_v19 = vld [vmem:[%s3627_s6 + $0xa28] sm:$0xff]  ;;  %867 = vmatpush.msra.mxu0 %v611_v16  ;;  %917 = vmatpush.msra.mxu2 %v612_v18  ;;  %v637_v14 = vld [vmem:[%s3627_s6 + $0x4f0] sm:$0xff] }
  0x15   : > { %v599_v20 = vld [vmem:[%s3627_s6 + $0x3c0] sm:$0xff]  ;;  %892 = vmatpush.msra.mxu1 %v803_v17  ;;  %v600_v22 = vld [vmem:[%s3627_s6 + $0x3c8] sm:$0xff]  ;;  %942 = vmatpush.msra.mxu3 %v804_v19  ;;  %v829_v15 = vld [vmem:[%s3627_s6 + $0xaf0] sm:$0xff] }
  0x16   : > { %v791_v21 = vld [vmem:[%s3627_s6 + $0x9c0] sm:$0xff]  ;;  %v792_v23 = vld [vmem:[%s3627_s6 + $0x9c8] sm:$0xff]  ;;  %868 = vmatpush.msra.mxu0 %v599_v20  ;;  %918 = vmatpush.msra.mxu2 %v600_v22  ;;  %v638_v16 = vld [vmem:[%s3627_s6 + $0x4f8] sm:$0xff] }
  0x17   : > { %v587_v24 = vld [vmem:[%s3627_s6 + $0x360] sm:$0xff]  ;;  %893 = vmatpush.msra.mxu1 %v791_v21  ;;  %v588_v26 = vld [vmem:[%s3627_s6 + $0x368] sm:$0xff]  ;;  %943 = vmatpush.msra.mxu3 %v792_v23  ;;  %v830_v17 = vld [vmem:[%s3627_s6 + $0xaf8] sm:$0xff] }
  0x18   : > { %v779_v25 = vld [vmem:[%s3627_s6 + $0x960] sm:$0xff]  ;;  %v780_v27 = vld [vmem:[%s3627_s6 + $0x968] sm:$0xff]  ;;  %869 = vmatpush.msra.mxu0 %v587_v24  ;;  %919 = vmatpush.msra.mxu2 %v588_v26  ;;  %v625_v22 = vld [vmem:[%s3627_s6 + $0x490] sm:$0xff]  ;;  %v418_v24 = vlaneseq }
  0x19   : > { %v575_v28 = vld [vmem:[%s3627_s6 + $0x300] sm:$0xff]  ;;  %894 = vmatpush.msra.mxu1 %v779_v25  ;;  %v576_v30 = vld [vmem:[%s3627_s6 + $0x308] sm:$0xff]  ;;  %944 = vmatpush.msra.mxu3 %v780_v27  ;;  %v817_v23 = vld [vmem:[%s3627_s6 + $0xa90] sm:$0xff] }
  0x1a   : > { %v767_v29 = vld [vmem:[%s3627_s6 + $0x900] sm:$0xff]  ;;  %v768_v31 = vld [vmem:[%s3627_s6 + $0x908] sm:$0xff]  ;;  %870 = vmatpush.msra.mxu0 %v575_v28  ;;  %920 = vmatpush.msra.mxu2 %v576_v30  ;;  %v626_v25 = vld [vmem:[%s3627_s6 + $0x498] sm:$0xff] }
  0x1b   : > { %v563_v32 = vld [vmem:[%s3627_s6 + $0x2a0] sm:$0xff]  ;;  %895 = vmatpush.msra.mxu1 %v767_v29  ;;  %v564_v34 = vld [vmem:[%s3627_s6 + $0x2a8] sm:$0xff]  ;;  %945 = vmatpush.msra.mxu3 %v768_v31  ;;  %v818_v26 = vld [vmem:[%s3627_s6 + $0xa98] sm:$0xff] }
  0x1c   : > { %v755_v33 = vld [vmem:[%s3627_s6 + $0x8a0] sm:$0xff]  ;;  %v756_v35 = vld [vmem:[%s3627_s6 + $0x8a8] sm:$0xff]  ;;  %871 = vmatpush.msra.mxu0 %v563_v32  ;;  %921 = vmatpush.msra.mxu2 %v564_v34  ;;  %v613_v27 = vld [vmem:[%s3627_s6 + $0x430] sm:$0xff] }
  0x1d   : > { %v551_v36 = vld [vmem:[%s3627_s6 + $0x240] sm:$0xff]  ;;  %896 = vmatpush.msra.mxu1 %v755_v33  ;;  %v552_v38 = vld [vmem:[%s3627_s6 + $0x248] sm:$0xff]  ;;  %946 = vmatpush.msra.mxu3 %v756_v35  ;;  %v805_v28 = vld [vmem:[%s3627_s6 + $0xa30] sm:$0xff]  ;;  %v2337_v35 = vshrl.u32 %v418_v24, 7 }
  0x1e   : > { %v743_v37 = vld [vmem:[%s3627_s6 + $0x840] sm:$0xff]  ;;  %v744_v39 = vld [vmem:[%s3627_s6 + $0x848] sm:$0xff]  ;;  %872 = vmatpush.msra.mxu0 %v551_v36  ;;  %922 = vmatpush.msra.mxu2 %v552_v38  ;;  %v614_v29 = vld [vmem:[%s3627_s6 + $0x438] sm:$0xff] }
  0x1f   : > { %v539_v40 = vld [vmem:[%s3627_s6 + $0x1e0] sm:$0xff]  ;;  %897 = vmatpush.msra.mxu1 %v743_v37  ;;  %v540_v42 = vld [vmem:[%s3627_s6 + $0x1e8] sm:$0xff]  ;;  %947 = vmatpush.msra.mxu3 %v744_v39  ;;  %v806_v30 = vld [vmem:[%s3627_s6 + $0xa38] sm:$0xff]  ;;  %vm422_vm0 = vcmp.ge.s32.totalorder %v2337_v35, 1 }
  0x20   : > { %v731_v41 = vld [vmem:[%s3627_s6 + $0x7e0] sm:$0xff]  ;;  %v732_v43 = vld [vmem:[%s3627_s6 + $0x7e8] sm:$0xff]  ;;  %873 = vmatpush.msra.mxu0 %v539_v40  ;;  %923 = vmatpush.msra.mxu2 %v540_v42  ;;  %v601_v33 = vld [vmem:[%s3627_s6 + $0x3d0] sm:$0xff] }
  0x21   : > { %v527_v44 = vld [vmem:[%s3627_s6 + $0x180] sm:$0xff]  ;;  %898 = vmatpush.msra.mxu1 %v731_v41  ;;  %v528_v46 = vld [vmem:[%s3627_s6 + $0x188] sm:$0xff]  ;;  %948 = vmatpush.msra.mxu3 %v732_v43  ;;  %v793_v34 = vld [vmem:[%s3627_s6 + $0x9d0] sm:$0xff] }
  0x22   : > { %v719_v45 = vld [vmem:[%s3627_s6 + $0x780] sm:$0xff]  ;;  %v720_v47 = vld [vmem:[%s3627_s6 + $0x788] sm:$0xff]  ;;  %874 = vmatpush.msra.mxu0 %v527_v44  ;;  %924 = vmatpush.msra.mxu2 %v528_v46  ;;  %v602_v36 = vld [vmem:[%s3627_s6 + $0x3d8] sm:$0xff] }
  0x23   : > { %v515_v48 = vld [vmem:[%s3627_s6 + $0x120] sm:$0xff]  ;;  %899 = vmatpush.msra.mxu1 %v719_v45  ;;  %v516_v50 = vld [vmem:[%s3627_s6 + $0x128] sm:$0xff]  ;;  %949 = vmatpush.msra.mxu3 %v720_v47  ;;  %v794_v37 = vld [vmem:[%s3627_s6 + $0x9d8] sm:$0xff] }
  0x24   : > { %v707_v49 = vld [vmem:[%s3627_s6 + $0x720] sm:$0xff]  ;;  %v708_v51 = vld [vmem:[%s3627_s6 + $0x728] sm:$0xff]  ;;  %875 = vmatpush.msra.mxu0 %v515_v48  ;;  %925 = vmatpush.msra.mxu2 %v516_v50  ;;  %v589_v38 = vld [vmem:[%s3627_s6 + $0x370] sm:$0xff] }
  0x25   : > { %v503_v52 = vld [vmem:[%s3627_s6 + $0xc0] sm:$0xff]  ;;  %900 = vmatpush.msra.mxu1 %v707_v49  ;;  %v504_v54 = vld [vmem:[%s3627_s6 + $0xc8] sm:$0xff]  ;;  %950 = vmatpush.msra.mxu3 %v708_v51  ;;  %v781_v39 = vld [vmem:[%s3627_s6 + $0x970] sm:$0xff] }
  0x26   : > { %v695_v53 = vld [vmem:[%s3627_s6 + $0x6c0] sm:$0xff]  ;;  %v696_v55 = vld [vmem:[%s3627_s6 + $0x6c8] sm:$0xff]  ;;  %876 = vmatpush.msra.mxu0 %v503_v52  ;;  %926 = vmatpush.msra.mxu2 %v504_v54  ;;  %v433_v40 = vld [vmem:[%s2252_s19 + $0x10] sm:$0xff] }
  0x27   : > { %v491_v56 = vld [vmem:[%s3627_s6 + $0x60] sm:$0xff]  ;;  %901 = vmatpush.msra.mxu1 %v695_v53  ;;  %v492_v58 = vld [vmem:[%s3627_s6 + $0x68] sm:$0xff]  ;;  %951 = vmatpush.msra.mxu3 %v696_v55  ;;  %v434_v41 = vld [vmem:[%s2252_s19 + $0x18] sm:$0xff] }
  0x28   : > { %v683_v57 = vld [vmem:[%s3627_s6 + $0x660] sm:$0xff]  ;;  %v684_v59 = vld [vmem:[%s3627_s6 + $0x668] sm:$0xff]  ;;  %877 = vmatpush.msra.mxu0 %v491_v56  ;;  %927 = vmatpush.msra.mxu2 %v492_v58  ;;  %v590_v42 = vld [vmem:[%s3627_s6 + $0x378] sm:$0xff] }
  0x29   : > { %v479_v60 = vld [vmem:[%s3627_s6] sm:$0xff]  ;;  %902 = vmatpush.msra.mxu1 %v683_v57  ;;  %v480_v62 = vld [vmem:[%s3627_s6 + $0x8] sm:$0xff]  ;;  %952 = vmatpush.msra.mxu3 %v684_v59  ;;  %v782_v43 = vld [vmem:[%s3627_s6 + $0x978] sm:$0xff] }
  0x2a   : > { %v671_v61 = vld [vmem:[%s3627_s6 + $0x600] sm:$0xff]  ;;  %v672_v63 = vld [vmem:[%s3627_s6 + $0x608] sm:$0xff]  ;;  %878 = vmatpush.msra.mxu0 %v479_v60  ;;  %928 = vmatpush.msra.mxu2 %v480_v62  ;;  %v577_v48 = vld [vmem:[%s3627_s6 + $0x310] sm:$0xff] }
  0x2b   : > { %903 = vmatpush.msra.mxu1 %v671_v61  ;;  %v437_v6 = vld [vmem:[%s3623_s2] sm:$0x3]  ;;  %953 = vmatpush.msra.mxu3 %v672_v63  ;;  %v432_v10 = vld [vmem:[%s2252_s19 + $0x8] sm:$0xff]  ;;  %v769_v49 = vld [vmem:[%s3627_s6 + $0x910] sm:$0xff] }
  0x2c   : > { %v431_v7 = vld [vmem:[%s2252_s19] sm:$0xff]  ;;  %v2273_v8 = vperm.slane %v437_v6, 0  ;;  %v2279_v11 = vperm.slane %v437_v6, 1  ;;  %963 = vmatpush.msrb.mxu0 %v661_v0  ;;  %1013 = vmatpush.msrb.mxu2 %v662_v2  ;;  %v578_v50 = vld [vmem:[%s3627_s6 + $0x318] sm:$0xff]  ;;  %v565_v52 = vld [vmem:[%s3627_s6 + $0x2b0] sm:$0xff] }
  0x2d   : > { %v449_v9 = vld [vmem:[%s3624_s3] sm:$0x3]  ;;  %988 = vmatpush.msrb.mxu1 %v853_v1  ;;  %1038 = vmatpush.msrb.mxu3 %v854_v3  ;;  %v770_v51 = vld [vmem:[%s3627_s6 + $0x918] sm:$0xff]  ;;  %v757_v53 = vld [vmem:[%s3627_s6 + $0x8b0] sm:$0xff] }
  0x2e   : > { %964 = vmatpush.msrb.mxu0 %v649_v4  ;;  %v443_v18 = vmul.f32 %v2273_v8, %v431_v7  ;;  %v2300_v19 = vperm.slane %v449_v9, 0  ;;  %v444_v20 = vmul.f32 %v2279_v11, %v432_v10  ;;  %v2303_v21 = vperm.slane %v449_v9, 1  ;;  %1014 = vmatpush.msrb.mxu2 %v650_v12  ;;  %v566_v54 = vld [vmem:[%s3627_s6 + $0x2b8] sm:$0xff]  ;;  %v553_v58 = vld [vmem:[%s3627_s6 + $0x250] sm:$0xff]  ;;  %v435_v0 = vld [vmem:[%s2252_s19 + $0x20] sm:$0x3] }
  0x2f   : > { %989 = vmatpush.msrb.mxu1 %v841_v5  ;;  %1039 = vmatpush.msrb.mxu3 %v842_v13  ;;  %v445_v46 = vmul.f32 %v2273_v8, %v433_v40  ;;  %v446_v47 = vmul.f32 %v2279_v11, %v434_v41  ;;  %v758_v55 = vld [vmem:[%s3627_s6 + $0x8b8] sm:$0xff]  ;;  %v745_v59 = vld [vmem:[%s3627_s6 + $0x850] sm:$0xff]  ;;  %v436_v1 = vld [vmem:[%s2252_s19 + $0x28] sm:$0x3]  ;;  %v447_v9 = vmul.f32 %v2273_v8, %v435_v0 }
  0x30   : > { %965 = vmatpush.msrb.mxu0 %v637_v14  ;;  %1015 = vmatpush.msrb.mxu2 %v638_v16  ;;  %v455_v31 = vadd.f32 %v2300_v19, %v443_v18  ;;  %v456_v32 = vadd.f32 %v2303_v21, %v444_v20  ;;  %v554_v60 = vld [vmem:[%s3627_s6 + $0x258] sm:$0xff]  ;;  %v541_v62 = vld [vmem:[%s3627_s6 + $0x1f0] sm:$0xff]  ;;  %v448_v10 = vmul.f32 %v2279_v11, %v436_v1  ;;  %v652_v40 = vld [vmem:[%s3627_s6 + $0x568] sm:$0xff] }
  0x31   : > { %990 = vmatpush.msrb.mxu1 %v829_v15  ;;  %1040 = vmatpush.msrb.mxu3 %v830_v17  ;;  %v457_v56 = vadd.f32 %v2300_v19, %v445_v46  ;;  %v458_v57 = vadd.f32 %v2303_v21, %v446_v47  ;;  %v746_v61 = vld [vmem:[%s3627_s6 + $0x858] sm:$0xff]  ;;  %v733_v63 = vld [vmem:[%s3627_s6 + $0x7f0] sm:$0xff]  ;;  %v459_v16 = vadd.f32 %v2300_v19, %v447_v9  ;;  %v844_v41 = vld [vmem:[%s3627_s6 + $0xb68] sm:$0xff] }
  0x32   : > { %966 = vmatpush.msrb.mxu0 %v625_v22  ;;  %1016 = vmatpush.msrb.mxu2 %v626_v25  ;;  %v2359_v44 = vmax.f32 %v455_v31, 0.0  ;;  %v2361_v45 = vmax.f32 %v456_v32, 0.0  ;;  %v542_v2 = vld [vmem:[%s3627_s6 + $0x1f8] sm:$0xff]  ;;  %v529_v6 = vld [vmem:[%s3627_s6 + $0x190] sm:$0xff]  ;;  %v460_v17 = vadd.f32 %v2303_v21, %v448_v10  ;;  %v2473_v22 = vadd.s32 16, %v2337_v35  ;;  %v640_v46 = vld [vmem:[%s3627_s6 + $0x508] sm:$0xff] }
  0x33   : > { %991 = vmatpush.msrb.mxu1 %v817_v23  ;;  %1041 = vmatpush.msrb.mxu3 %v818_v26  ;;  %v734_v3 = vld [vmem:[%s3627_s6 + $0x7f8] sm:$0xff]  ;;  %v2430_v4 = vmax.f32 %v457_v56, 0.0  ;;  %v2432_v5 = vmax.f32 %v458_v57, 0.0  ;;  %v721_v7 = vld [vmem:[%s3627_s6 + $0x790] sm:$0xff]  ;;  %v832_v47 = vld [vmem:[%s3627_s6 + $0xb08] sm:$0xff] }
  0x34   : > { %967 = vmatpush.msrb.mxu0 %v613_v27  ;;  %1017 = vmatpush.msrb.mxu2 %v614_v29  ;;  %v530_v12 = vld [vmem:[%s3627_s6 + $0x198] sm:$0xff]  ;;  %v517_v8 = vld [vmem:[%s3627_s6 + $0x130] sm:$0xff]  ;;  %v2493_v27 = vmax.f32 %v459_v16, 0.0  ;;  %vm427_vm1 = vcmp.le.s32.totalorder %v2473_v22, 16  ;;  %v603_v56 = vld [vmem:[%s3627_s6 + $0x3e0] sm:$0xff] }
  0x35   : > { %992 = vmatpush.msrb.mxu1 %v805_v28  ;;  %1042 = vmatpush.msrb.mxu3 %v806_v30  ;;  %v722_v13 = vld [vmem:[%s3627_s6 + $0x798] sm:$0xff]  ;;  %v709_v11 = vld [vmem:[%s3627_s6 + $0x730] sm:$0xff]  ;;  %v2495_v28 = vmax.f32 %v460_v17, 0.0  ;;  %v795_v57 = vld [vmem:[%s3627_s6 + $0x9e0] sm:$0xff] }
  0x36   : > { %968 = vmatpush.msrb.mxu0 %v601_v33  ;;  %1018 = vmatpush.msrb.mxu2 %v602_v36  ;;  %v518_v14 = vld [vmem:[%s3627_s6 + $0x138] sm:$0xff]  ;;  %v505_v18 = vld [vmem:[%s3627_s6 + $0xd0] sm:$0xff]  ;;  %v663_v33 = vld [vmem:[%s3627_s6 + $0x5c0] sm:$0xff] }
  0x37   : > { %993 = vmatpush.msrb.mxu1 %v793_v34  ;;  %1043 = vmatpush.msrb.mxu3 %v794_v37  ;;  %v710_v15 = vld [vmem:[%s3627_s6 + $0x738] sm:$0xff]  ;;  %v697_v20 = vld [vmem:[%s3627_s6 + $0x6d0] sm:$0xff]  ;;  %v855_v34 = vld [vmem:[%s3627_s6 + $0xbc0] sm:$0xff] }
  0x38   : > { %969 = vmatpush.msrb.mxu0 %v589_v38  ;;  %1019 = vmatpush.msrb.mxu2 %v590_v42  ;;  %v506_v19 = vld [vmem:[%s3627_s6 + $0xd8] sm:$0xff]  ;;  %v493_v23 = vld [vmem:[%s3627_s6 + $0x70] sm:$0xff]  ;;  %v664_v36 = vld [vmem:[%s3627_s6 + $0x5c8] sm:$0xff] }
  0x39   : > { %994 = vmatpush.msrb.mxu1 %v781_v39  ;;  %1044 = vmatpush.msrb.mxu3 %v782_v43  ;;  %v698_v21 = vld [vmem:[%s3627_s6 + $0x6d8] sm:$0xff]  ;;  %v685_v24 = vld [vmem:[%s3627_s6 + $0x670] sm:$0xff]  ;;  %v856_v37 = vld [vmem:[%s3627_s6 + $0xbc8] sm:$0xff] }
  0x3a   : > { %1883 = vmatmul.msk.f32.vlgmr.msra.gmra.mxu0 %vm422_vm0, %v2359_v44  ;;  %1885 = vmatmul.msk.f32.vlgmr.msra.gmra.mxu1 %vm422_vm0, %v2361_v45  ;;  %v494_v25 = vld [vmem:[%s3627_s6 + $0x78] sm:$0xff]  ;;  %v481_v29 = vld [vmem:[%s3627_s6 + $0x10] sm:$0xff]  ;;  %v651_v38 = vld [vmem:[%s3627_s6 + $0x560] sm:$0xff] }
  0x3b   : > { %1887 = vmatmul.msk.f32.vlgmr.msra.gmra.mxu2 %vm422_vm0, %v2359_v44  ;;  %1889 = vmatmul.msk.f32.vlgmr.msra.gmra.mxu3 %vm422_vm0, %v2361_v45  ;;  %v686_v26 = vld [vmem:[%s3627_s6 + $0x678] sm:$0xff]  ;;  %v673_v30 = vld [vmem:[%s3627_s6 + $0x610] sm:$0xff]  ;;  %v843_v39 = vld [vmem:[%s3627_s6 + $0xb60] sm:$0xff] }
  0x3c   : > { %970 = vmatpush.msrb.mxu0 %v577_v48  ;;  %995 = vmatpush.msrb.mxu1 %v769_v49  ;;  %v482_v31 = vld [vmem:[%s3627_s6 + $0x18] sm:$0xff]  ;;  %v639_v42 = vld [vmem:[%s3627_s6 + $0x500] sm:$0xff]  ;;  %v568_v9 = vld [vmem:[%s3627_s6 + $0x2c8] sm:$0xff] }
  0x3d   : > { %1020 = vmatpush.msrb.mxu2 %v578_v50  ;;  %1045 = vmatpush.msrb.mxu3 %v770_v51  ;;  %v674_v32 = vld [vmem:[%s3627_s6 + $0x618] sm:$0xff]  ;;  %v831_v43 = vld [vmem:[%s3627_s6 + $0xb00] sm:$0xff]  ;;  %v628_v50 = vld [vmem:[%s3627_s6 + $0x4a8] sm:$0xff] }
  0x3e   : > { %971 = vmatpush.msrb.mxu0 %v565_v52  ;;  %996 = vmatpush.msrb.mxu1 %v757_v53  ;;  %v627_v48 = vld [vmem:[%s3627_s6 + $0x4a0] sm:$0xff]  ;;  %v820_v51 = vld [vmem:[%s3627_s6 + $0xaa8] sm:$0xff] }
  0x3f   : > { %1021 = vmatpush.msrb.mxu2 %v566_v54  ;;  %1046 = vmatpush.msrb.mxu3 %v758_v55  ;;  %v819_v49 = vld [vmem:[%s3627_s6 + $0xaa0] sm:$0xff]  ;;  %v616_v54 = vld [vmem:[%s3627_s6 + $0x448] sm:$0xff] }
  0x40   : > { %972 = vmatpush.msrb.mxu0 %v553_v58  ;;  %997 = vmatpush.msrb.mxu1 %v745_v59  ;;  %v615_v52 = vld [vmem:[%s3627_s6 + $0x440] sm:$0xff]  ;;  %v808_v55 = vld [vmem:[%s3627_s6 + $0xa48] sm:$0xff] }
  0x41   : > { %1022 = vmatpush.msrb.mxu2 %v554_v60  ;;  %1047 = vmatpush.msrb.mxu3 %v746_v61  ;;  %v807_v53 = vld [vmem:[%s3627_s6 + $0xa40] sm:$0xff]  ;;  %v604_v58 = vld [vmem:[%s3627_s6 + $0x3e8] sm:$0xff] }
  0x42   : > { %973 = vmatpush.msrb.mxu0 %v541_v62  ;;  %998 = vmatpush.msrb.mxu1 %v733_v63  ;;  %v796_v59 = vld [vmem:[%s3627_s6 + $0x9e8] sm:$0xff]  ;;  %v591_v60 = vld [vmem:[%s3627_s6 + $0x380] sm:$0xff] }
  0x43   : > { %1023 = vmatpush.msrb.mxu2 %v542_v2  ;;  %1048 = vmatpush.msrb.mxu3 %v734_v3  ;;  %v783_v61 = vld [vmem:[%s3627_s6 + $0x980] sm:$0xff]  ;;  %v592_v62 = vld [vmem:[%s3627_s6 + $0x388] sm:$0xff] }
  0x44   : > { %882 = vmatmul.f32.gmra.mxu0 %v2430_v4  ;;  %907 = vmatmul.f32.gmra.mxu1 %v2432_v5  ;;  %v784_v63 = vld [vmem:[%s3627_s6 + $0x988] sm:$0xff]  ;;  %v579_v0 = vld [vmem:[%s3627_s6 + $0x320] sm:$0xff] }
  0x45   : > { %932 = vmatmul.f32.gmra.mxu2 %v2430_v4  ;;  %957 = vmatmul.f32.gmra.mxu3 %v2432_v5  ;;  %v771_v1 = vld [vmem:[%s3627_s6 + $0x920] sm:$0xff]  ;;  %v580_v2 = vld [vmem:[%s3627_s6 + $0x328] sm:$0xff] }
  0x46   : > { %974 = vmatpush.msrb.mxu0 %v529_v6  ;;  %999 = vmatpush.msrb.mxu1 %v721_v7  ;;  %v772_v3 = vld [vmem:[%s3627_s6 + $0x928] sm:$0xff]  ;;  %v567_v6 = vld [vmem:[%s3627_s6 + $0x2c0] sm:$0xff] }
  0x47   : > { %1024 = vmatpush.msrb.mxu2 %v530_v12  ;;  %1049 = vmatpush.msrb.mxu3 %v722_v13  ;;  %v759_v7 = vld [vmem:[%s3627_s6 + $0x8c0] sm:$0xff]  ;;  %v760_v10 = vld [vmem:[%s3627_s6 + $0x8c8] sm:$0xff] }
  0x48   : > { %975 = vmatpush.msrb.mxu0 %v517_v8  ;;  %1000 = vmatpush.msrb.mxu1 %v709_v11  ;;  %v555_v12 = vld [vmem:[%s3627_s6 + $0x260] sm:$0xff]  ;;  %v556_v8 = vld [vmem:[%s3627_s6 + $0x268] sm:$0xff] }
  0x49   : > { %1025 = vmatpush.msrb.mxu2 %v518_v14  ;;  %1050 = vmatpush.msrb.mxu3 %v710_v15  ;;  %v747_v13 = vld [vmem:[%s3627_s6 + $0x860] sm:$0xff]  ;;  %v748_v11 = vld [vmem:[%s3627_s6 + $0x868] sm:$0xff] }
  0x4a   : > { %976 = vmatpush.msrb.mxu0 %v505_v18  ;;  %1001 = vmatpush.msrb.mxu1 %v697_v20  ;;  %v543_v14 = vld [vmem:[%s3627_s6 + $0x200] sm:$0xff]  ;;  %v544_v16 = vld [vmem:[%s3627_s6 + $0x208] sm:$0xff] }
  0x4b   : > { %1026 = vmatpush.msrb.mxu2 %v506_v19  ;;  %1051 = vmatpush.msrb.mxu3 %v698_v21  ;;  %v735_v15 = vld [vmem:[%s3627_s6 + $0x800] sm:$0xff]  ;;  %v736_v17 = vld [vmem:[%s3627_s6 + $0x808] sm:$0xff] }
  0x4c   : > { %977 = vmatpush.msrb.mxu0 %v493_v23  ;;  %1002 = vmatpush.msrb.mxu1 %v685_v24  ;;  %v531_v18 = vld [vmem:[%s3627_s6 + $0x1a0] sm:$0xff]  ;;  %v532_v19 = vld [vmem:[%s3627_s6 + $0x1a8] sm:$0xff] }
  0x4d   : > { %1027 = vmatpush.msrb.mxu2 %v494_v25  ;;  %1052 = vmatpush.msrb.mxu3 %v686_v26  ;;  %v723_v20 = vld [vmem:[%s3627_s6 + $0x7a0] sm:$0xff]  ;;  %v724_v21 = vld [vmem:[%s3627_s6 + $0x7a8] sm:$0xff] }
  0x4e   : > { %1884 = vmatmul.msk.f32.gmra.mxu0 %vm427_vm1, %v2493_v27  ;;  %1886 = vmatmul.msk.f32.gmra.mxu1 %vm427_vm1, %v2495_v28  ;;  %v519_v23 = vld [vmem:[%s3627_s6 + $0x140] sm:$0xff]  ;;  %v520_v25 = vld [vmem:[%s3627_s6 + $0x148] sm:$0xff] }
  0x4f   : > { %1888 = vmatmul.msk.f32.gmra.mxu2 %vm427_vm1, %v2493_v27  ;;  %1890 = vmatmul.msk.f32.gmra.mxu3 %vm427_vm1, %v2495_v28  ;;  %v711_v24 = vld [vmem:[%s3627_s6 + $0x740] sm:$0xff]  ;;  %v712_v26 = vld [vmem:[%s3627_s6 + $0x748] sm:$0xff] }
  0x50   : > { %978 = vmatpush.msrb.mxu0 %v481_v29  ;;  %1003 = vmatpush.msrb.mxu1 %v673_v30  ;;  %v507_v29 = vld [vmem:[%s3627_s6 + $0xe0] sm:$0xff] }
  0x51   : > { %1028 = vmatpush.msrb.mxu2 %v482_v31  ;;  %1053 = vmatpush.msrb.mxu3 %v674_v32  ;;  %v699_v30 = vld [vmem:[%s3627_s6 + $0x6e0] sm:$0xff]  ;;  %v508_v31 = vld [vmem:[%s3627_s6 + $0xe8] sm:$0xff] }
  0x52   : > { %1063 = vmatpush.msra.mxu0 %v663_v33  ;;  %1089 = vmatpush.msra.mxu1 %v855_v34  ;;  %v700_v32 = vld [vmem:[%s3627_s6 + $0x6e8] sm:$0xff]  ;;  %v495_v33 = vld [vmem:[%s3627_s6 + $0x80] sm:$0xff] }
  0x53   : > { %1115 = vmatpush.msra.mxu2 %v664_v36  ;;  %1141 = vmatpush.msra.mxu3 %v856_v37  ;;  %v687_v34 = vld [vmem:[%s3627_s6 + $0x680] sm:$0xff]  ;;  %v496_v36 = vld [vmem:[%s3627_s6 + $0x88] sm:$0xff] }
  0x54   : > { %1064 = vmatpush.msra.mxu0 %v651_v38  ;;  %1090 = vmatpush.msra.mxu1 %v843_v39  ;;  %v688_v37 = vld [vmem:[%s3627_s6 + $0x688] sm:$0xff]  ;;  %v483_v38 = vld [vmem:[%s3627_s6 + $0x20] sm:$0xff] }
  0x55   : > { %1116 = vmatpush.msra.mxu2 %v652_v40  ;;  %1142 = vmatpush.msra.mxu3 %v844_v41  ;;  %v675_v39 = vld [vmem:[%s3627_s6 + $0x620] sm:$0xff]  ;;  %v484_v40 = vld [vmem:[%s3627_s6 + $0x28] sm:$0xff] }
  0x56   : > { %1065 = vmatpush.msra.mxu0 %v639_v42  ;;  %1091 = vmatpush.msra.mxu1 %v831_v43  ;;  %v676_v41 = vld [vmem:[%s3627_s6 + $0x628] sm:$0xff]  ;;  %v665_v42 = vld [vmem:[%s3627_s6 + $0x5d0] sm:$0xff] }
  0x57   : > { %1117 = vmatpush.msra.mxu2 %v640_v46  ;;  %1143 = vmatpush.msra.mxu3 %v832_v47  ;;  %v857_v43 = vld [vmem:[%s3627_s6 + $0xbd0] sm:$0xff]  ;;  %v666_v46 = vld [vmem:[%s3627_s6 + $0x5d8] sm:$0xff] }
  0x58   : > { %1066 = vmatpush.msra.mxu0 %v627_v48  ;;  %1092 = vmatpush.msra.mxu1 %v819_v49  ;;  %v858_v47 = vld [vmem:[%s3627_s6 + $0xbd8] sm:$0xff]  ;;  %v653_v48 = vld [vmem:[%s3627_s6 + $0x570] sm:$0xff] }
  0x59   : > { %1118 = vmatpush.msra.mxu2 %v628_v50  ;;  %1144 = vmatpush.msra.mxu3 %v820_v51  ;;  %v845_v49 = vld [vmem:[%s3627_s6 + $0xb70] sm:$0xff]  ;;  %v654_v50 = vld [vmem:[%s3627_s6 + $0x578] sm:$0xff] }
  0x5a   : > { %1891 = vmatmul.msk.f32.vlgmr.msrb.gmra.mxu0 %vm422_vm0, %v2359_v44  ;;  %1893 = vmatmul.msk.f32.vlgmr.msrb.gmra.mxu1 %vm422_vm0, %v2361_v45  ;;  %v846_v51 = vld [vmem:[%s3627_s6 + $0xb78] sm:$0xff] }
  0x5b   : > { %1895 = vmatmul.msk.f32.vlgmr.msrb.gmra.mxu2 %vm422_vm0, %v2359_v44  ;;  %1897 = vmatmul.msk.f32.vlgmr.msrb.gmra.mxu3 %vm422_vm0, %v2361_v45 }
  0x5c   : > { %1067 = vmatpush.msra.mxu0 %v615_v52  ;;  %1093 = vmatpush.msra.mxu1 %v807_v53  ;;  %v641_v52 = vld [vmem:[%s3627_s6 + $0x510] sm:$0xff] }
  0x5d   : > { %1119 = vmatpush.msra.mxu2 %v616_v54  ;;  %1145 = vmatpush.msra.mxu3 %v808_v55  ;;  %v833_v53 = vld [vmem:[%s3627_s6 + $0xb10] sm:$0xff]  ;;  %v642_v54 = vld [vmem:[%s3627_s6 + $0x518] sm:$0xff] }
  0x5e   : > { %1068 = vmatpush.msra.mxu0 %v603_v56  ;;  %1094 = vmatpush.msra.mxu1 %v795_v57  ;;  %v834_v55 = vld [vmem:[%s3627_s6 + $0xb18] sm:$0xff]  ;;  %v629_v56 = vld [vmem:[%s3627_s6 + $0x4b0] sm:$0xff] }
  0x5f   : > { %1120 = vmatpush.msra.mxu2 %v604_v58  ;;  %1146 = vmatpush.msra.mxu3 %v796_v59  ;;  %v821_v57 = vld [vmem:[%s3627_s6 + $0xab0] sm:$0xff]  ;;  %v630_v58 = vld [vmem:[%s3627_s6 + $0x4b8] sm:$0xff] }
  0x60   : > { %1069 = vmatpush.msra.mxu0 %v591_v60  ;;  %1095 = vmatpush.msra.mxu1 %v783_v61  ;;  %v822_v59 = vld [vmem:[%s3627_s6 + $0xab8] sm:$0xff]  ;;  %v617_v60 = vld [vmem:[%s3627_s6 + $0x450] sm:$0xff] }
  0x61   : > { %1121 = vmatpush.msra.mxu2 %v592_v62  ;;  %1147 = vmatpush.msra.mxu3 %v784_v63  ;;  %v809_v61 = vld [vmem:[%s3627_s6 + $0xa50] sm:$0xff]  ;;  %v618_v62 = vld [vmem:[%s3627_s6 + $0x458] sm:$0xff] }
  0x62   : > { %1070 = vmatpush.msra.mxu0 %v579_v0  ;;  %1096 = vmatpush.msra.mxu1 %v771_v1  ;;  %v810_v63 = vld [vmem:[%s3627_s6 + $0xa58] sm:$0xff]  ;;  %v605_v0 = vld [vmem:[%s3627_s6 + $0x3f0] sm:$0xff] }
  0x63   : > { %1122 = vmatpush.msra.mxu2 %v580_v2  ;;  %1148 = vmatpush.msra.mxu3 %v772_v3  ;;  %v797_v1 = vld [vmem:[%s3627_s6 + $0x9f0] sm:$0xff]  ;;  %v606_v2 = vld [vmem:[%s3627_s6 + $0x3f8] sm:$0xff] }
  0x64   : > { %982 = vmatmul.f32.gmra.mxu0 %v2430_v4  ;;  %1007 = vmatmul.f32.gmra.mxu1 %v2432_v5  ;;  %v798_v3 = vld [vmem:[%s3627_s6 + $0x9f8] sm:$0xff] }
  0x65   : > { %1032 = vmatmul.f32.gmra.mxu2 %v2430_v4  ;;  %1057 = vmatmul.f32.gmra.mxu3 %v2432_v5 }
  0x66   : > { %1071 = vmatpush.msra.mxu0 %v567_v6  ;;  %1097 = vmatpush.msra.mxu1 %v759_v7  ;;  %v593_v6 = vld [vmem:[%s3627_s6 + $0x390] sm:$0xff] }
  0x67   : > { %1123 = vmatpush.msra.mxu2 %v568_v9  ;;  %1149 = vmatpush.msra.mxu3 %v760_v10  ;;  %v785_v7 = vld [vmem:[%s3627_s6 + $0x990] sm:$0xff]  ;;  %v594_v9 = vld [vmem:[%s3627_s6 + $0x398] sm:$0xff] }
  0x68   : > { %1072 = vmatpush.msra.mxu0 %v555_v12  ;;  %1098 = vmatpush.msra.mxu1 %v747_v13  ;;  %v786_v10 = vld [vmem:[%s3627_s6 + $0x998] sm:$0xff]  ;;  %v581_v12 = vld [vmem:[%s3627_s6 + $0x330] sm:$0xff] }
  0x69   : > { %1124 = vmatpush.msra.mxu2 %v556_v8  ;;  %1150 = vmatpush.msra.mxu3 %v748_v11  ;;  %v773_v13 = vld [vmem:[%s3627_s6 + $0x930] sm:$0xff]  ;;  %v582_v8 = vld [vmem:[%s3627_s6 + $0x338] sm:$0xff] }
  0x6a   : > { %1073 = vmatpush.msra.mxu0 %v543_v14  ;;  %1099 = vmatpush.msra.mxu1 %v735_v15  ;;  %v774_v11 = vld [vmem:[%s3627_s6 + $0x938] sm:$0xff]  ;;  %v569_v14 = vld [vmem:[%s3627_s6 + $0x2d0] sm:$0xff] }
  0x6b   : > { %1125 = vmatpush.msra.mxu2 %v544_v16  ;;  %1151 = vmatpush.msra.mxu3 %v736_v17  ;;  %v761_v15 = vld [vmem:[%s3627_s6 + $0x8d0] sm:$0xff]  ;;  %v570_v16 = vld [vmem:[%s3627_s6 + $0x2d8] sm:$0xff] }
  0x6c   : > { %1074 = vmatpush.msra.mxu0 %v531_v18  ;;  %1100 = vmatpush.msra.mxu1 %v723_v20  ;;  %v762_v17 = vld [vmem:[%s3627_s6 + $0x8d8] sm:$0xff]  ;;  %v557_v18 = vld [vmem:[%s3627_s6 + $0x270] sm:$0xff] }
  0x6d   : > { %1126 = vmatpush.msra.mxu2 %v532_v19  ;;  %1152 = vmatpush.msra.mxu3 %v724_v21  ;;  %v749_v20 = vld [vmem:[%s3627_s6 + $0x870] sm:$0xff]  ;;  %v558_v19 = vld [vmem:[%s3627_s6 + $0x278] sm:$0xff] }
  0x6e   : > { %1892 = vmatmul.msk.f32.gmra.mxu0 %vm427_vm1, %v2493_v27  ;;  %1894 = vmatmul.msk.f32.gmra.mxu1 %vm427_vm1, %v2495_v28  ;;  %v750_v21 = vld [vmem:[%s3627_s6 + $0x878] sm:$0xff] }
  0x6f   : > { %1896 = vmatmul.msk.f32.gmra.mxu2 %vm427_vm1, %v2493_v27  ;;  %1898 = vmatmul.msk.f32.gmra.mxu3 %vm427_vm1, %v2495_v28 }
  0x70   : > { %1075 = vmatpush.msra.mxu0 %v519_v23  ;;  %1101 = vmatpush.msra.mxu1 %v711_v24  ;;  %v545_v23 = vld [vmem:[%s3627_s6 + $0x210] sm:$0xff] }
  0x71   : > { %1127 = vmatpush.msra.mxu2 %v520_v25  ;;  %1153 = vmatpush.msra.mxu3 %v712_v26  ;;  %v737_v24 = vld [vmem:[%s3627_s6 + $0x810] sm:$0xff]  ;;  %v546_v25 = vld [vmem:[%s3627_s6 + $0x218] sm:$0xff] }
  0x72   : > { %1076 = vmatpush.msra.mxu0 %v507_v29  ;;  %1102 = vmatpush.msra.mxu1 %v699_v30  ;;  %v738_v26 = vld [vmem:[%s3627_s6 + $0x818] sm:$0xff]  ;;  %v533_v29 = vld [vmem:[%s3627_s6 + $0x1b0] sm:$0xff] }
  0x73   : > { %1128 = vmatpush.msra.mxu2 %v508_v31  ;;  %1154 = vmatpush.msra.mxu3 %v700_v32  ;;  %v725_v30 = vld [vmem:[%s3627_s6 + $0x7b0] sm:$0xff]  ;;  %v534_v31 = vld [vmem:[%s3627_s6 + $0x1b8] sm:$0xff] }
  0x74   : > { %1077 = vmatpush.msra.mxu0 %v495_v33  ;;  %1103 = vmatpush.msra.mxu1 %v687_v34  ;;  %v726_v32 = vld [vmem:[%s3627_s6 + $0x7b8] sm:$0xff]  ;;  %v521_v33 = vld [vmem:[%s3627_s6 + $0x150] sm:$0xff] }
  0x75   : > { %1129 = vmatpush.msra.mxu2 %v496_v36  ;;  %1155 = vmatpush.msra.mxu3 %v688_v37  ;;  %v713_v34 = vld [vmem:[%s3627_s6 + $0x750] sm:$0xff]  ;;  %v522_v36 = vld [vmem:[%s3627_s6 + $0x158] sm:$0xff] }
  0x76   : > { %1078 = vmatpush.msra.mxu0 %v483_v38  ;;  %1104 = vmatpush.msra.mxu1 %v675_v39  ;;  %v714_v37 = vld [vmem:[%s3627_s6 + $0x758] sm:$0xff]  ;;  %v509_v38 = vld [vmem:[%s3627_s6 + $0xf0] sm:$0xff] }
  0x77   : > { %1130 = vmatpush.msra.mxu2 %v484_v40  ;;  %1156 = vmatpush.msra.mxu3 %v676_v41  ;;  %v701_v39 = vld [vmem:[%s3627_s6 + $0x6f0] sm:$0xff]  ;;  %v510_v40 = vld [vmem:[%s3627_s6 + $0xf8] sm:$0xff] }
  0x78   : > { %1899 = vmatmul.msk.f32.vlgmr.msra.gmra.mxu0 %vm422_vm0, %v2359_v44  ;;  %1901 = vmatmul.msk.f32.vlgmr.msra.gmra.mxu1 %vm422_vm0, %v2361_v45  ;;  %v702_v41 = vld [vmem:[%s3627_s6 + $0x6f8] sm:$0xff] }
  0x79   : > { %1903 = vmatmul.msk.f32.vlgmr.msra.gmra.mxu2 %vm422_vm0, %v2359_v44  ;;  %1905 = vmatmul.msk.f32.vlgmr.msra.gmra.mxu3 %vm422_vm0, %v2361_v45 }
  0x7a   : > { %1167 = vmatpush.msrb.mxu0 %v665_v42  ;;  %1193 = vmatpush.msrb.mxu1 %v857_v43  ;;  %v497_v42 = vld [vmem:[%s3627_s6 + $0x90] sm:$0xff] }
  0x7b   : > { %1219 = vmatpush.msrb.mxu2 %v666_v46  ;;  %1245 = vmatpush.msrb.mxu3 %v858_v47  ;;  %v689_v43 = vld [vmem:[%s3627_s6 + $0x690] sm:$0xff]  ;;  %v498_v46 = vld [vmem:[%s3627_s6 + $0x98] sm:$0xff] }
  0x7c   : > { %1168 = vmatpush.msrb.mxu0 %v653_v48  ;;  %1194 = vmatpush.msrb.mxu1 %v845_v49  ;;  %v690_v47 = vld [vmem:[%s3627_s6 + $0x698] sm:$0xff]  ;;  %v485_v48 = vld [vmem:[%s3627_s6 + $0x30] sm:$0xff] }
  0x7d   : > { %1220 = vmatpush.msrb.mxu2 %v654_v50  ;;  %1246 = vmatpush.msrb.mxu3 %v846_v51  ;;  %v677_v49 = vld [vmem:[%s3627_s6 + $0x630] sm:$0xff]  ;;  %v486_v50 = vld [vmem:[%s3627_s6 + $0x38] sm:$0xff] }
  0x7e   : > { %1169 = vmatpush.msrb.mxu0 %v641_v52  ;;  %1195 = vmatpush.msrb.mxu1 %v833_v53  ;;  %v678_v51 = vld [vmem:[%s3627_s6 + $0x638] sm:$0xff]  ;;  %v667_v52 = vld [vmem:[%s3627_s6 + $0x5e0] sm:$0xff] }
  0x7f   : > { %1221 = vmatpush.msrb.mxu2 %v642_v54  ;;  %1247 = vmatpush.msrb.mxu3 %v834_v55  ;;  %v859_v53 = vld [vmem:[%s3627_s6 + $0xbe0] sm:$0xff]  ;;  %v668_v54 = vld [vmem:[%s3627_s6 + $0x5e8] sm:$0xff] }
  0x80   : > { %1170 = vmatpush.msrb.mxu0 %v629_v56  ;;  %1196 = vmatpush.msrb.mxu1 %v821_v57  ;;  %v860_v55 = vld [vmem:[%s3627_s6 + $0xbe8] sm:$0xff]  ;;  %v655_v56 = vld [vmem:[%s3627_s6 + $0x580] sm:$0xff] }
  0x81   : > { %1222 = vmatpush.msrb.mxu2 %v630_v58  ;;  %1248 = vmatpush.msrb.mxu3 %v822_v59  ;;  %v847_v57 = vld [vmem:[%s3627_s6 + $0xb80] sm:$0xff]  ;;  %v656_v58 = vld [vmem:[%s3627_s6 + $0x588] sm:$0xff] }
  0x82   : > { %1082 = vmatmul.f32.gmra.mxu0 %v2430_v4  ;;  %1108 = vmatmul.f32.gmra.mxu1 %v2432_v5  ;;  %v848_v59 = vld [vmem:[%s3627_s6 + $0xb88] sm:$0xff] }
  0x83   : > { %1134 = vmatmul.f32.gmra.mxu2 %v2430_v4  ;;  %1160 = vmatmul.f32.gmra.mxu3 %v2432_v5 }
  0x84   : > { %1171 = vmatpush.msrb.mxu0 %v617_v60  ;;  %1197 = vmatpush.msrb.mxu1 %v809_v61  ;;  %v643_v60 = vld [vmem:[%s3627_s6 + $0x520] sm:$0xff] }
  0x85   : > { %1223 = vmatpush.msrb.mxu2 %v618_v62  ;;  %1249 = vmatpush.msrb.mxu3 %v810_v63  ;;  %v835_v61 = vld [vmem:[%s3627_s6 + $0xb20] sm:$0xff]  ;;  %v644_v62 = vld [vmem:[%s3627_s6 + $0x528] sm:$0xff] }
  0x86   : > { %1172 = vmatpush.msrb.mxu0 %v605_v0  ;;  %1198 = vmatpush.msrb.mxu1 %v797_v1  ;;  %v836_v63 = vld [vmem:[%s3627_s6 + $0xb28] sm:$0xff]  ;;  %v631_v0 = vld [vmem:[%s3627_s6 + $0x4c0] sm:$0xff] }
  0x87   : > { %1224 = vmatpush.msrb.mxu2 %v606_v2  ;;  %1250 = vmatpush.msrb.mxu3 %v798_v3  ;;  %v823_v1 = vld [vmem:[%s3627_s6 + $0xac0] sm:$0xff]  ;;  %v632_v2 = vld [vmem:[%s3627_s6 + $0x4c8] sm:$0xff] }
  0x88   : > { %1173 = vmatpush.msrb.mxu0 %v593_v6  ;;  %1199 = vmatpush.msrb.mxu1 %v785_v7  ;;  %v824_v3 = vld [vmem:[%s3627_s6 + $0xac8] sm:$0xff]  ;;  %v619_v6 = vld [vmem:[%s3627_s6 + $0x460] sm:$0xff] }
  0x89   : > { %1225 = vmatpush.msrb.mxu2 %v594_v9  ;;  %1251 = vmatpush.msrb.mxu3 %v786_v10  ;;  %v811_v7 = vld [vmem:[%s3627_s6 + $0xa60] sm:$0xff]  ;;  %v620_v9 = vld [vmem:[%s3627_s6 + $0x468] sm:$0xff] }
  0x8a   : > { %1174 = vmatpush.msrb.mxu0 %v581_v12  ;;  %1200 = vmatpush.msrb.mxu1 %v773_v13  ;;  %v812_v10 = vld [vmem:[%s3627_s6 + $0xa68] sm:$0xff]  ;;  %v607_v12 = vld [vmem:[%s3627_s6 + $0x400] sm:$0xff] }
  0x8b   : > { %1226 = vmatpush.msrb.mxu2 %v582_v8  ;;  %1252 = vmatpush.msrb.mxu3 %v774_v11  ;;  %v799_v13 = vld [vmem:[%s3627_s6 + $0xa00] sm:$0xff]  ;;  %v608_v8 = vld [vmem:[%s3627_s6 + $0x408] sm:$0xff] }
  0x8c   : > { %1900 = vmatmul.msk.f32.gmra.mxu0 %vm427_vm1, %v2493_v27  ;;  %1902 = vmatmul.msk.f32.gmra.mxu1 %vm427_vm1, %v2495_v28  ;;  %v800_v11 = vld [vmem:[%s3627_s6 + $0xa08] sm:$0xff] }
  0x8d   : > { %1904 = vmatmul.msk.f32.gmra.mxu2 %vm427_vm1, %v2493_v27  ;;  %1906 = vmatmul.msk.f32.gmra.mxu3 %vm427_vm1, %v2495_v28 }
  0x8e   : > { %1175 = vmatpush.msrb.mxu0 %v569_v14  ;;  %1201 = vmatpush.msrb.mxu1 %v761_v15  ;;  %v595_v14 = vld [vmem:[%s3627_s6 + $0x3a0] sm:$0xff] }
  0x8f   : > { %1227 = vmatpush.msrb.mxu2 %v570_v16  ;;  %1253 = vmatpush.msrb.mxu3 %v762_v17  ;;  %v787_v15 = vld [vmem:[%s3627_s6 + $0x9a0] sm:$0xff]  ;;  %v596_v16 = vld [vmem:[%s3627_s6 + $0x3a8] sm:$0xff] }
  0x90   : > { %1176 = vmatpush.msrb.mxu0 %v557_v18  ;;  %1202 = vmatpush.msrb.mxu1 %v749_v20  ;;  %v788_v17 = vld [vmem:[%s3627_s6 + $0x9a8] sm:$0xff]  ;;  %v583_v18 = vld [vmem:[%s3627_s6 + $0x340] sm:$0xff] }
  0x91   : > { %1228 = vmatpush.msrb.mxu2 %v558_v19  ;;  %1254 = vmatpush.msrb.mxu3 %v750_v21  ;;  %v775_v20 = vld [vmem:[%s3627_s6 + $0x940] sm:$0xff]  ;;  %v584_v19 = vld [vmem:[%s3627_s6 + $0x348] sm:$0xff] }
  0x92   : > { %1177 = vmatpush.msrb.mxu0 %v545_v23  ;;  %1203 = vmatpush.msrb.mxu1 %v737_v24  ;;  %v776_v21 = vld [vmem:[%s3627_s6 + $0x948] sm:$0xff]  ;;  %v571_v23 = vld [vmem:[%s3627_s6 + $0x2e0] sm:$0xff] }
  0x93   : > { %1229 = vmatpush.msrb.mxu2 %v546_v25  ;;  %1255 = vmatpush.msrb.mxu3 %v738_v26  ;;  %v763_v24 = vld [vmem:[%s3627_s6 + $0x8e0] sm:$0xff]  ;;  %v572_v25 = vld [vmem:[%s3627_s6 + $0x2e8] sm:$0xff] }
  0x94   : > { %1178 = vmatpush.msrb.mxu0 %v533_v29  ;;  %1204 = vmatpush.msrb.mxu1 %v725_v30  ;;  %v764_v26 = vld [vmem:[%s3627_s6 + $0x8e8] sm:$0xff]  ;;  %v559_v29 = vld [vmem:[%s3627_s6 + $0x280] sm:$0xff] }
  0x95   : > { %1230 = vmatpush.msrb.mxu2 %v534_v31  ;;  %1256 = vmatpush.msrb.mxu3 %v726_v32  ;;  %v751_v30 = vld [vmem:[%s3627_s6 + $0x880] sm:$0xff]  ;;  %v560_v31 = vld [vmem:[%s3627_s6 + $0x288] sm:$0xff] }
  0x96   : > { %1179 = vmatpush.msrb.mxu0 %v521_v33  ;;  %1205 = vmatpush.msrb.mxu1 %v713_v34  ;;  %v752_v32 = vld [vmem:[%s3627_s6 + $0x888] sm:$0xff]  ;;  %v547_v33 = vld [vmem:[%s3627_s6 + $0x220] sm:$0xff] }
  0x97   : > { %1231 = vmatpush.msrb.mxu2 %v522_v36  ;;  %1257 = vmatpush.msrb.mxu3 %v714_v37  ;;  %v739_v34 = vld [vmem:[%s3627_s6 + $0x820] sm:$0xff]  ;;  %v548_v36 = vld [vmem:[%s3627_s6 + $0x228] sm:$0xff] }
  0x98   : > { %1180 = vmatpush.msrb.mxu0 %v509_v38  ;;  %1206 = vmatpush.msrb.mxu1 %v701_v39  ;;  %v740_v37 = vld [vmem:[%s3627_s6 + $0x828] sm:$0xff]  ;;  %v535_v38 = vld [vmem:[%s3627_s6 + $0x1c0] sm:$0xff] }
  0x99   : > { %1232 = vmatpush.msrb.mxu2 %v510_v40  ;;  %1258 = vmatpush.msrb.mxu3 %v702_v41  ;;  %v727_v39 = vld [vmem:[%s3627_s6 + $0x7c0] sm:$0xff] }
  0x9a   : > { %1181 = vmatpush.msrb.mxu0 %v497_v42  ;;  %1207 = vmatpush.msrb.mxu1 %v689_v43  ;;  %v536_v42 = vld [vmem:[%s3627_s6 + $0x1c8] sm:$0xff] }
  0x9b   : > { %1233 = vmatpush.msrb.mxu2 %v498_v46  ;;  %1259 = vmatpush.msrb.mxu3 %v690_v47  ;;  %v728_v43 = vld [vmem:[%s3627_s6 + $0x7c8] sm:$0xff]  ;;  %v523_v47 = vld [vmem:[%s3627_s6 + $0x160] sm:$0xff] }
  0x9c   : > { %1182 = vmatpush.msrb.mxu0 %v485_v48  ;;  %1208 = vmatpush.msrb.mxu1 %v677_v49  ;;  %v715_v48 = vld [vmem:[%s3627_s6 + $0x760] sm:$0xff]  ;;  %v524_v49 = vld [vmem:[%s3627_s6 + $0x168] sm:$0xff] }
  0x9d   : > { %1234 = vmatpush.msrb.mxu2 %v486_v50  ;;  %1260 = vmatpush.msrb.mxu3 %v678_v51  ;;  %v716_v50 = vld [vmem:[%s3627_s6 + $0x768] sm:$0xff]  ;;  %v511_v51 = vld [vmem:[%s3627_s6 + $0x100] sm:$0xff] }
  0x9e   : > { %1907 = vmatmul.msk.f32.vlgmr.msrb.gmra.mxu0 %vm422_vm0, %v2359_v44  ;;  %1909 = vmatmul.msk.f32.vlgmr.msrb.gmra.mxu1 %vm422_vm0, %v2361_v45 }
  0x9f   : > { %1911 = vmatmul.msk.f32.vlgmr.msrb.gmra.mxu2 %vm422_vm0, %v2359_v44  ;;  %1913 = vmatmul.msk.f32.vlgmr.msrb.gmra.mxu3 %vm422_vm0, %v2361_v45 }
  0xa0   : > { %1271 = vmatpush.msra.mxu0 %v667_v52  ;;  %1297 = vmatpush.msra.mxu1 %v859_v53  ;;  %v703_v52 = vld [vmem:[%s3627_s6 + $0x700] sm:$0xff]  ;;  %v512_v53 = vld [vmem:[%s3627_s6 + $0x108] sm:$0xff] }
  0xa1   : > { %1323 = vmatpush.msra.mxu2 %v668_v54  ;;  %1349 = vmatpush.msra.mxu3 %v860_v55  ;;  %v704_v54 = vld [vmem:[%s3627_s6 + $0x708] sm:$0xff]  ;;  %v499_v55 = vld [vmem:[%s3627_s6 + $0xa0] sm:$0xff] }
  0xa2   : > { %1272 = vmatpush.msra.mxu0 %v655_v56  ;;  %1298 = vmatpush.msra.mxu1 %v847_v57  ;;  %v691_v56 = vld [vmem:[%s3627_s6 + $0x6a0] sm:$0xff]  ;;  %v500_v57 = vld [vmem:[%s3627_s6 + $0xa8] sm:$0xff] }
  0xa3   : > { %1324 = vmatpush.msra.mxu2 %v656_v58  ;;  %1350 = vmatpush.msra.mxu3 %v848_v59  ;;  %v692_v58 = vld [vmem:[%s3627_s6 + $0x6a8] sm:$0xff]  ;;  %v487_v59 = vld [vmem:[%s3627_s6 + $0x40] sm:$0xff] }
  0xa4   : > { %1273 = vmatpush.msra.mxu0 %v643_v60  ;;  %1299 = vmatpush.msra.mxu1 %v835_v61  ;;  %v679_v60 = vld [vmem:[%s3627_s6 + $0x640] sm:$0xff] }
  0xa5   : > { %1325 = vmatpush.msra.mxu2 %v644_v62  ;;  %1351 = vmatpush.msra.mxu3 %v836_v63  ;;  %v488_v63 = vld [vmem:[%s3627_s6 + $0x48] sm:$0xff] }
  0xa6   : > { %1274 = vmatpush.msra.mxu0 %v631_v0  ;;  %1300 = vmatpush.msra.mxu1 %v823_v1  ;;  %v680_v0 = vld [vmem:[%s3627_s6 + $0x648] sm:$0xff] }
  0xa7   : > { %1326 = vmatpush.msra.mxu2 %v632_v2  ;;  %1352 = vmatpush.msra.mxu3 %v824_v3 }
  0xa8   : > { %1186 = vmatmul.f32.gmra.mxu0 %v2430_v4  ;;  %1212 = vmatmul.f32.gmra.mxu1 %v2432_v5 }
  0xa9   : > { %1238 = vmatmul.f32.gmra.mxu2 %v2430_v4  ;;  %1264 = vmatmul.f32.gmra.mxu3 %v2432_v5 }
  0xaa   : > { %1275 = vmatpush.msra.mxu0 %v619_v6  ;;  %1301 = vmatpush.msra.mxu1 %v811_v7  ;;  %v669_v7 = vld [vmem:[%s3627_s6 + $0x5f0] sm:$0xff] }
  0xab   : > { %1327 = vmatpush.msra.mxu2 %v620_v9  ;;  %1353 = vmatpush.msra.mxu3 %v812_v10  ;;  %v861_v9 = vld [vmem:[%s3627_s6 + $0xbf0] sm:$0xff]  ;;  %v670_v10 = vld [vmem:[%s3627_s6 + $0x5f8] sm:$0xff] }
  0xac   : > { %1276 = vmatpush.msra.mxu0 %v607_v12  ;;  %1302 = vmatpush.msra.mxu1 %v799_v13  ;;  %v862_v12 = vld [vmem:[%s3627_s6 + $0xbf8] sm:$0xff]  ;;  %v657_v13 = vld [vmem:[%s3627_s6 + $0x590] sm:$0xff] }
  0xad   : > { %1328 = vmatpush.msra.mxu2 %v608_v8  ;;  %1354 = vmatpush.msra.mxu3 %v800_v11  ;;  %v849_v8 = vld [vmem:[%s3627_s6 + $0xb90] sm:$0xff]  ;;  %v658_v11 = vld [vmem:[%s3627_s6 + $0x598] sm:$0xff] }
  0xae   : > { %1277 = vmatpush.msra.mxu0 %v595_v14  ;;  %1303 = vmatpush.msra.mxu1 %v787_v15  ;;  %v850_v14 = vld [vmem:[%s3627_s6 + $0xb98] sm:$0xff]  ;;  %v645_v15 = vld [vmem:[%s3627_s6 + $0x530] sm:$0xff] }
  0xaf   : > { %1329 = vmatpush.msra.mxu2 %v596_v16  ;;  %1355 = vmatpush.msra.mxu3 %v788_v17  ;;  %v837_v16 = vld [vmem:[%s3627_s6 + $0xb30] sm:$0xff]  ;;  %v646_v17 = vld [vmem:[%s3627_s6 + $0x538] sm:$0xff] }
  0xb0   : > { %1278 = vmatpush.msra.mxu0 %v583_v18  ;;  %1304 = vmatpush.msra.mxu1 %v775_v20  ;;  %v838_v18 = vld [vmem:[%s3627_s6 + $0xb38] sm:$0xff] }
  0xb1   : > { %1330 = vmatpush.msra.mxu2 %v584_v19  ;;  %1356 = vmatpush.msra.mxu3 %v776_v21  ;;  %v633_v21 = vld [vmem:[%s3627_s6 + $0x4d0] sm:$0xff] }
  0xb2   : > { %1908 = vmatmul.msk.f32.gmra.mxu0 %vm427_vm1, %v2493_v27  ;;  %1910 = vmatmul.msk.f32.gmra.mxu1 %vm427_vm1, %v2495_v28 }
  0xb3   : > { %1912 = vmatmul.msk.f32.gmra.mxu2 %vm427_vm1, %v2493_v27  ;;  %1914 = vmatmul.msk.f32.gmra.mxu3 %vm427_vm1, %v2495_v28 }
  0xb4   : > { %1279 = vmatpush.msra.mxu0 %v571_v23  ;;  %1305 = vmatpush.msra.mxu1 %v763_v24  ;;  %v825_v23 = vld [vmem:[%s3627_s6 + $0xad0] sm:$0xff] }
  0xb5   : > { %1331 = vmatpush.msra.mxu2 %v572_v25  ;;  %1357 = vmatpush.msra.mxu3 %v764_v26  ;;  %v634_v25 = vld [vmem:[%s3627_s6 + $0x4d8] sm:$0xff] }
  0xb6   : > { %1280 = vmatpush.msra.mxu0 %v559_v29  ;;  %1306 = vmatpush.msra.mxu1 %v751_v30  ;;  %v826_v26 = vld [vmem:[%s3627_s6 + $0xad8] sm:$0xff] }
  0xb7   : > { %1332 = vmatpush.msra.mxu2 %v560_v31  ;;  %1358 = vmatpush.msra.mxu3 %v752_v32  ;;  %v880_v40 = vpop.f32.mrf.mxu0  ;;  %v905_v41 = vpop.f32.mrf.mxu1  ;;  %v621_v31 = vld [vmem:[%s3627_s6 + $0x470] sm:$0xff] }
  0xb8   : > { %1281 = vmatpush.msra.mxu0 %v547_v33  ;;  %1307 = vmatpush.msra.mxu1 %v739_v34  ;;  %v3134_v46 = vadd.f32 %v905_v41, %v880_v40  ;;  %v813_v32 = vld [vmem:[%s3627_s6 + $0xa70] sm:$0xff]  ;;  %v622_v33 = vld [vmem:[%s3627_s6 + $0x478] sm:$0xff] }
  0xb9   : > { %1333 = vmatpush.msra.mxu2 %v548_v36  ;;  %1359 = vmatpush.msra.mxu3 %v740_v37  ;;  %v814_v34 = vld [vmem:[%s3627_s6 + $0xa78] sm:$0xff]  ;;  %v609_v36 = vld [vmem:[%s3627_s6 + $0x410] sm:$0xff] }
  0xba   : > { %1282 = vmatpush.msra.mxu0 %v535_v38  ;;  %1308 = vmatpush.msra.mxu1 %v727_v39  ;;  %v801_v37 = vld [vmem:[%s3627_s6 + $0xa10] sm:$0xff]  ;;  %v610_v38 = vld [vmem:[%s3627_s6 + $0x418] sm:$0xff] }
  0xbb   : > { %1334 = vmatpush.msra.mxu2 %v536_v42  ;;  %1360 = vmatpush.msra.mxu3 %v728_v43  ;;  %v802_v39 = vld [vmem:[%s3627_s6 + $0xa18] sm:$0xff]  ;;  %v597_v40 = vld [vmem:[%s3627_s6 + $0x3b0] sm:$0xff] }
  0xbc   : > { %1283 = vmatpush.msra.mxu0 %v523_v47  ;;  %1309 = vmatpush.msra.mxu1 %v715_v48  ;;  %v789_v41 = vld [vmem:[%s3627_s6 + $0x9b0] sm:$0xff]  ;;  %v598_v42 = vld [vmem:[%s3627_s6 + $0x3b8] sm:$0xff] }
  0xbd   : > { %1335 = vmatpush.msra.mxu2 %v524_v49  ;;  %1361 = vmatpush.msra.mxu3 %v716_v50  ;;  %v790_v43 = vld [vmem:[%s3627_s6 + $0x9b8] sm:$0xff]  ;;  %v585_v49 = vld [vmem:[%s3627_s6 + $0x350] sm:$0xff] }
  0xbe   : > { %1284 = vmatpush.msra.mxu0 %v511_v51  ;;  %1310 = vmatpush.msra.mxu1 %v703_v52  ;;  %v930_v61 = vpop.f32.mrf.mxu2  ;;  %v955_v62 = vpop.f32.mrf.mxu3  ;;  %v777_v50 = vld [vmem:[%s3627_s6 + $0x950] sm:$0xff]  ;;  %v586_v51 = vld [vmem:[%s3627_s6 + $0x358] sm:$0xff] }
  0xbf   : > { %1336 = vmatpush.msra.mxu2 %v512_v53  ;;  %1362 = vmatpush.msra.mxu3 %v704_v54  ;;  %v3184_v1 = vadd.f32 %v955_v62, %v930_v61  ;;  %v778_v52 = vld [vmem:[%s3627_s6 + $0x958] sm:$0xff]  ;;  %v573_v53 = vld [vmem:[%s3627_s6 + $0x2f0] sm:$0xff] }
  0xc0   : > { %1285 = vmatpush.msra.mxu0 %v499_v55  ;;  %1311 = vmatpush.msra.mxu1 %v691_v56  ;;  %v765_v54 = vld [vmem:[%s3627_s6 + $0x8f0] sm:$0xff]  ;;  %v562_v62 = vld [vmem:[%s3627_s6 + $0x298] sm:$0xff] }
  0xc1   : > { %1337 = vmatpush.msra.mxu2 %v500_v57  ;;  %1363 = vmatpush.msra.mxu3 %v692_v58  ;;  %v883_v2 = vpop.f32.mrf.mxu0  ;;  %v908_v3 = vpop.f32.mrf.mxu1  ;;  %v574_v57 = vld [vmem:[%s3627_s6 + $0x2f8] sm:$0xff]  ;;  %v753_v61 = vld [vmem:[%s3627_s6 + $0x890] sm:$0xff] }
  0xc2   : > { %1286 = vmatpush.msra.mxu0 %v487_v59  ;;  %1312 = vmatpush.msra.mxu1 %v679_v60  ;;  %v3186_v6 = vadd.f32 %v908_v3, %v883_v2  ;;  %v766_v58 = vld [vmem:[%s3627_s6 + $0x8f8] sm:$0xff]  ;;  %v561_v60 = vld [vmem:[%s3627_s6 + $0x290] sm:$0xff] }
  0xc3   : > { %1338 = vmatpush.msra.mxu2 %v488_v63  ;;  %1364 = vmatpush.msra.mxu3 %v680_v0  ;;  %v754_v63 = vld [vmem:[%s3627_s6 + $0x898] sm:$0xff]  ;;  %v549_v0 = vld [vmem:[%s3627_s6 + $0x230] sm:$0xff] }
  0xc4   : > { %1915 = vmatmul.msk.f32.vlgmr.msra.gmra.mxu0 %vm422_vm0, %v2359_v44  ;;  %1917 = vmatmul.msk.f32.vlgmr.msra.gmra.mxu1 %vm422_vm0, %v2361_v45  ;;  %v741_v2 = vld [vmem:[%s3627_s6 + $0x830] sm:$0xff]  ;;  %v550_v3 = vld [vmem:[%s3627_s6 + $0x238] sm:$0xff] }
  0xc5   : > { %1919 = vmatmul.msk.f32.vlgmr.msra.gmra.mxu2 %vm422_vm0, %v2359_v44  ;;  %1921 = vmatmul.msk.f32.vlgmr.msra.gmra.mxu3 %vm422_vm0, %v2361_v45 }
  0xc6   : > { %1375 = vmatpush.msrb.mxu0 %v669_v7  ;;  %1401 = vmatpush.msrb.mxu1 %v861_v9  ;;  %v742_v7 = vld [vmem:[%s3627_s6 + $0x838] sm:$0xff]  ;;  %v537_v9 = vld [vmem:[%s3627_s6 + $0x1d0] sm:$0xff] }
  0xc7   : > { %1427 = vmatpush.msrb.mxu2 %v670_v10  ;;  %1453 = vmatpush.msrb.mxu3 %v862_v12  ;;  %v729_v10 = vld [vmem:[%s3627_s6 + $0x7d0] sm:$0xff]  ;;  %v538_v12 = vld [vmem:[%s3627_s6 + $0x1d8] sm:$0xff] }
  0xc8   : > { %1376 = vmatpush.msrb.mxu0 %v657_v13  ;;  %1402 = vmatpush.msrb.mxu1 %v849_v8  ;;  %v933_v20 = vpop.f32.mrf.mxu2  ;;  %v958_v19 = vpop.f32.mrf.mxu3  ;;  %v730_v13 = vld [vmem:[%s3627_s6 + $0x7d8] sm:$0xff] }
  0xc9   : > { %1428 = vmatpush.msrb.mxu2 %v658_v11  ;;  %1454 = vmatpush.msrb.mxu3 %v850_v14  ;;  %v3242_v24 = vadd.f32 %v958_v19, %v933_v20  ;;  %v525_v14 = vld [vmem:[%s3627_s6 + $0x170] sm:$0xff] }
  0xca   : > { %1377 = vmatpush.msrb.mxu0 %v645_v15  ;;  %1403 = vmatpush.msrb.mxu1 %v837_v16  ;;  %v717_v15 = vld [vmem:[%s3627_s6 + $0x770] sm:$0xff] }
  0xcb   : > { %1429 = vmatpush.msrb.mxu2 %v646_v17  ;;  %1455 = vmatpush.msrb.mxu3 %v838_v18  ;;  %v886_v29 = vpop.f32.mrf.mxu0  ;;  %v911_v30 = vpop.f32.mrf.mxu1  ;;  %v526_v17 = vld [vmem:[%s3627_s6 + $0x178] sm:$0xff]  ;;  %v513_v20 = vld [vmem:[%s3627_s6 + $0x110] sm:$0xff] }
  0xcc   : > { %1378 = vmatpush.msrb.mxu0 %v633_v21  ;;  %1404 = vmatpush.msrb.mxu1 %v825_v23  ;;  %v718_v18 = vld [vmem:[%s3627_s6 + $0x778] sm:$0xff]  ;;  %v705_v19 = vld [vmem:[%s3627_s6 + $0x710] sm:$0xff] }
  0xcd   : > { %1430 = vmatpush.msrb.mxu2 %v634_v25  ;;  %1456 = vmatpush.msrb.mxu3 %v826_v26  ;;  %v514_v25 = vld [vmem:[%s3627_s6 + $0x118] sm:$0xff]  ;;  %v501_v30 = vld [vmem:[%s3627_s6 + $0xb0] sm:$0xff] }
  0xce   : > { %1290 = vmatmul.f32.gmra.mxu0 %v2430_v4  ;;  %1316 = vmatmul.f32.gmra.mxu1 %v2432_v5  ;;  %v706_v26 = vld [vmem:[%s3627_s6 + $0x718] sm:$0xff] }
  0xcf   : > { %1342 = vmatmul.f32.gmra.mxu2 %v2430_v4  ;;  %1368 = vmatmul.f32.gmra.mxu3 %v2432_v5 }
  0xd0   : > { %1379 = vmatpush.msrb.mxu0 %v621_v31  ;;  %1405 = vmatpush.msrb.mxu1 %v813_v32  ;;  %v693_v31 = vld [vmem:[%s3627_s6 + $0x6b0] sm:$0xff]  ;;  %v502_v32 = vld [vmem:[%s3627_s6 + $0xb8] sm:$0xff] }
  0xd1   : > { %1431 = vmatpush.msrb.mxu2 %v622_v33  ;;  %1457 = vmatpush.msrb.mxu3 %v814_v34  ;;  %v694_v33 = vld [vmem:[%s3627_s6 + $0x6b8] sm:$0xff]  ;;  %v489_v34 = vld [vmem:[%s3627_s6 + $0x50] sm:$0xff] }
  0xd2   : > { %1380 = vmatpush.msrb.mxu0 %v609_v36  ;;  %1406 = vmatpush.msrb.mxu1 %v801_v37  ;;  %v936_v47 = vpop.f32.mrf.mxu2  ;;  %v961_v48 = vpop.f32.mrf.mxu3  ;;  %v681_v36 = vld [vmem:[%s3627_s6 + $0x650] sm:$0xff]  ;;  %v490_v37 = vld [vmem:[%s3627_s6 + $0x58] sm:$0xff] }
  0xd3   : > { %1432 = vmatpush.msrb.mxu2 %v610_v38  ;;  %1458 = vmatpush.msrb.mxu3 %v802_v39  ;;  %v682_v38 = vld [vmem:[%s3627_s6 + $0x658] sm:$0xff]  ;;  %v1633_v47 = vld [vmem:[%s3628_s7 + $0xa8] sm:$0xff]  ;;  %v1632_v48 = vld [vmem:[%s3628_s7 + $0xa0] sm:$0xff] }
  0xd4   : > { %1381 = vmatpush.msrb.mxu0 %v597_v40  ;;  %1407 = vmatpush.msrb.mxu1 %v789_v41  ;;  %v1635_v41 = vld [vmem:[%s3628_s7 + $0xb8] sm:$0xff] }
  0xd5   : > { %1433 = vmatpush.msrb.mxu2 %v598_v42  ;;  %1459 = vmatpush.msrb.mxu3 %v790_v43  ;;  %v1634_v42 = vld [vmem:[%s3628_s7 + $0xb0] sm:$0xff] }
  0xd6   : > { %1382 = vmatpush.msrb.mxu0 %v585_v49  ;;  %1408 = vmatpush.msrb.mxu1 %v777_v50  ;;  %v1631_v49 = vld [vmem:[%s3628_s7 + $0x98] sm:$0xff] }
  0xd7   : > { %1434 = vmatpush.msrb.mxu2 %v586_v51  ;;  %1460 = vmatpush.msrb.mxu3 %v778_v52  ;;  %v980_v55 = vpop.f32.mrf.mxu0  ;;  %v1005_v56 = vpop.f32.mrf.mxu1  ;;  %v1628_v52 = vld [vmem:[%s3628_s7 + $0x80] sm:$0xff] }
  0xd8   : > { %1916 = vmatmul.msk.f32.gmra.mxu0 %vm427_vm1, %v2493_v27  ;;  %1918 = vmatmul.msk.f32.gmra.mxu1 %vm427_vm1, %v2495_v28  ;;  %v3320_v59 = vadd.f32 %v1005_v56, %v980_v55  ;;  %v1589_v55 = vld [vmem:[%s3458_s22] sm:$0xff]  ;;  %v1626_v56 = vld [vmem:[%s3628_s7 + $0x70] sm:$0xff] }
  0xd9   : > { %1920 = vmatmul.msk.f32.gmra.mxu2 %vm427_vm1, %v2493_v27  ;;  %1922 = vmatmul.msk.f32.gmra.mxu3 %vm427_vm1, %v2495_v28 }
  0xda   : > { %1383 = vmatpush.msrb.mxu0 %v573_v53  ;;  %1409 = vmatpush.msrb.mxu1 %v765_v54  ;;  %v1627_v53 = vld [vmem:[%s3628_s7 + $0x78] sm:$0xff]  ;;  %v3466_v54 = vld [vmem:[%s3625_s4] ss:$0 sm:$0xff] }
  0xdb   : > { %1435 = vmatpush.msrb.mxu2 %v574_v57  ;;  %1461 = vmatpush.msrb.mxu3 %v766_v58  ;;  %v1625_v57 = vld [vmem:[%s3628_s7 + $0x68] sm:$0xff]  ;;  %v1624_v58 = vld [vmem:[%s3628_s7 + $0x60] sm:$0xff] }
  0xdc   : > { %1384 = vmatpush.msrb.mxu0 %v561_v60  ;;  %1410 = vmatpush.msrb.mxu1 %v753_v61 }
  0xdd   : > { %1436 = vmatpush.msrb.mxu2 %v562_v62  ;;  %1462 = vmatpush.msrb.mxu3 %v754_v63  ;;  %v1623_v62 = vld [vmem:[%s3628_s7 + $0x58] sm:$0xff]  ;;  %v1622_v63 = vld [vmem:[%s3628_s7 + $0x50] sm:$0xff] }
  0xde   : > { %1385 = vmatpush.msrb.mxu0 %v549_v0  ;;  %1411 = vmatpush.msrb.mxu1 %v741_v2  ;;  %v1030_v8 = vpop.f32.mrf.mxu2  ;;  %v1055_v11 = vpop.f32.mrf.mxu3  ;;  %v1596_v0 = vmul.f32 %v3466_v54, %v1589_v55  ;;  %v1962_v2 = vld [vmem:[%s3626_s5] ss:$0 sm:$0xff] }
  0xdf   : > { %1437 = vmatpush.msrb.mxu2 %v550_v3  ;;  %1463 = vmatpush.msrb.mxu3 %v742_v7  ;;  %v3370_v16 = vadd.f32 %v1055_v11, %v1030_v8  ;;  %v1619_v3 = vld [vmem:[%s3628_s7 + $0x38] sm:$0xff]  ;;  %v1617_v11 = vld [vmem:[%s3628_s7 + $0x28] sm:$0xff] }
  0xe0   : > { %1386 = vmatpush.msrb.mxu0 %v537_v9  ;;  %1412 = vmatpush.msrb.mxu1 %v729_v10  ;;  %v1618_v10 = vld [vmem:[%s3628_s7 + $0x30] sm:$0xff]  ;;  %v1603_v8 = vadd.f32 %v1962_v2, %v1596_v0 }
  0xe1   : > { %1438 = vmatpush.msrb.mxu2 %v538_v12  ;;  %1464 = vmatpush.msrb.mxu3 %v730_v13  ;;  %v983_v21 = vpop.f32.mrf.mxu0  ;;  %v1008_v23 = vpop.f32.mrf.mxu1  ;;  %v1590_v13 = vld [vmem:[%s3458_s22 + $0x8] sm:$0xff] }
  0xe2   : > { %1387 = vmatpush.msrb.mxu0 %v525_v14  ;;  %1413 = vmatpush.msrb.mxu1 %v717_v15  ;;  %v3390_v29 = vadd.f32 %v1008_v23, %v983_v21  ;;  %v1616_v14 = vld [vmem:[%s3628_s7 + $0x20] sm:$0xff]  ;;  %v1597_v15 = vmul.f32 %v3466_v54, %v1590_v13  ;;  %v1591_v21 = vld [vmem:[%s3458_s22 + $0x10] sm:$0x3] }
  0xe3   : > { %1439 = vmatpush.msrb.mxu2 %v526_v17  ;;  %1465 = vmatpush.msrb.mxu3 %v718_v18  ;;  %v1615_v17 = vld [vmem:[%s3628_s7 + $0x18] sm:$0xff]  ;;  %v1614_v18 = vld [vmem:[%s3628_s7 + $0x10] sm:$0xff] }
  0xe4   : > { %1388 = vmatpush.msrb.mxu0 %v513_v20  ;;  %1414 = vmatpush.msrb.mxu1 %v705_v19  ;;  %v1613_v20 = vld [vmem:[%s3628_s7 + $0x8] sm:$0xff]  ;;  %v1606_v19 = vmax.f32 %v1603_v8, 0.0 }
  0xe5   : > { %1440 = vmatpush.msrb.mxu2 %v514_v25  ;;  %1466 = vmatpush.msrb.mxu3 %v706_v26 }
  0xe6   : > { %1389 = vmatpush.msrb.mxu0 %v501_v30  ;;  %1415 = vmatpush.msrb.mxu1 %v693_v31  ;;  %v1598_v30 = vmul.f32 %v3466_v54, %v1591_v21  ;;  %v1609_v31 = vsel %vm422_vm0, %v1606_v19, 0.0 }
  0xe7   : > { %1441 = vmatpush.msrb.mxu2 %v502_v32  ;;  %1467 = vmatpush.msrb.mxu3 %v694_v33 }
  0xe8   : > { %1390 = vmatpush.msrb.mxu0 %v489_v34  ;;  %1416 = vmatpush.msrb.mxu1 %v681_v36  ;;  %v1033_v39 = vpop.f32.mrf.mxu2  ;;  %v1058_v40 = vpop.f32.mrf.mxu3 }
  0xe9   : > { %1442 = vmatpush.msrb.mxu2 %v490_v37  ;;  %1468 = vmatpush.msrb.mxu3 %v682_v38  ;;  %v3422_v43 = vadd.f32 %v1058_v40, %v1033_v39  ;;  %v1605_v39 = vadd.f32 %v1962_v2, %v1598_v30 }
  0xea   : > { %1923 = vmatmul.msk.f32.vlgmr.msrb.gmra.mxu0 %vm422_vm0, %v2359_v44  ;;  %1925 = vmatmul.msk.f32.vlgmr.msrb.gmra.mxu1 %vm422_vm0, %v2361_v45 }
  0xeb   : > { %1927 = vmatmul.msk.f32.vlgmr.msrb.gmra.mxu2 %vm422_vm0, %v2359_v44  ;;  %1929 = vmatmul.msk.f32.vlgmr.msrb.gmra.mxu3 %vm422_vm0, %v2361_v45  ;;  %v986_v50 = vpop.f32.mrf.mxu0  ;;  %v1011_v51 = vpop.f32.mrf.mxu1  ;;  %v1630_v44 = vld [vmem:[%s3628_s7 + $0x90] sm:$0xff]  ;;  %v1629_v45 = vld [vmem:[%s3628_s7 + $0x88] sm:$0xff] }
  0xec   : > { %1705 = vmatpush.msra.mxu2 %v1635_v41  ;;  %1679 = vmatpush.msra.mxu1 %v1634_v42  ;;  %v1608_v41 = vmax.f32 %v1605_v39, 0.0 }
  0xed   : > { %1943 = vmatpush.msra.mxu3 %v1633_v47  ;;  %1654 = vmatpush.msra.mxu0 %v1633_v47 }
  0xee   : > { %1706 = vmatpush.msra.mxu2 %v1632_v48  ;;  %1680 = vmatpush.msra.mxu1 %v1631_v49 }
  0xef   : > { %1944 = vmatpush.msra.mxu3 %v1630_v44  ;;  %1655 = vmatpush.msra.mxu0 %v1630_v44 }
  0xf0   : > { %1707 = vmatpush.msra.mxu2 %v1629_v45  ;;  %1681 = vmatpush.msra.mxu1 %v1628_v52  ;;  %v1611_v45 = vsel %vm427_vm1, %v1608_v41, 0.0 }
  0xf1   : > { %1945 = vmatpush.msra.mxu3 %v1627_v53  ;;  %1656 = vmatpush.msra.mxu0 %v1627_v53 }
  0xf2   : > { %1394 = vmatmul.f32.gmra.mxu0 %v2430_v4  ;;  %1420 = vmatmul.f32.gmra.mxu1 %v2432_v5  ;;  %v1036_v60 = vpop.f32.mrf.mxu2  ;;  %v1061_v61 = vpop.f32.mrf.mxu3 }
  0xf3   : > { %1446 = vmatmul.f32.gmra.mxu2 %v2430_v4  ;;  %1472 = vmatmul.f32.gmra.mxu3 %v2432_v5  ;;  %v1621_v4 = vld [vmem:[%s3628_s7 + $0x48] sm:$0xff]  ;;  %v1620_v5 = vld [vmem:[%s3628_s7 + $0x40] sm:$0xff] }
  0xf4   : > { %1708 = vmatpush.msra.mxu2 %v1626_v56  ;;  %1682 = vmatpush.msra.mxu1 %v1625_v57 }
  0xf5   : > { %1657 = vmatpush.msra.mxu0 %v1624_v58  ;;  %1946 = vmatpush.msra.mxu3 %v1624_v58  ;;  %v1080_v7 = vpop.f32.mrf.mxu0  ;;  %v1106_v9 = vpop.f32.mrf.mxu1 }
  0xf6   : > { %1709 = vmatpush.msra.mxu2 %v1623_v62  ;;  %1683 = vmatpush.msra.mxu1 %v1622_v63  ;;  %v1107_v12 = vadd.f32 %v1106_v9, %v1080_v7 }
  0xf7   : > { %1658 = vmatpush.msra.mxu0 %v1621_v4  ;;  %1947 = vmatpush.msra.mxu3 %v1621_v4 }
  0xf8   : > { %1710 = vmatpush.msra.mxu2 %v1620_v5  ;;  %1684 = vmatpush.msra.mxu1 %v1619_v3  ;;  %v1492_v34 = vrot.slane %v1107_v12, 1 }
  0xf9   : > { %1659 = vmatpush.msra.mxu0 %v1618_v10  ;;  %1948 = vmatpush.msra.mxu3 %v1618_v10 }
  0xfa   : > { %1924 = vmatmul.msk.f32.gmra.mxu0 %vm427_vm1, %v2493_v27  ;;  %1926 = vmatmul.msk.f32.gmra.mxu1 %vm427_vm1, %v2495_v28 }
  0xfb   : > { %1928 = vmatmul.msk.f32.gmra.mxu2 %vm427_vm1, %v2493_v27  ;;  %1930 = vmatmul.msk.f32.gmra.mxu3 %vm427_vm1, %v2495_v28  ;;  %v1612_v27 = vld [vmem:[%s3628_s7] sm:$0xff]  ;;  %v1604_v28 = vadd.f32 %v1962_v2, %v1597_v15 }
  0xfc   : > { %1711 = vmatpush.msra.mxu2 %v1617_v11  ;;  %1685 = vmatpush.msra.mxu1 %v1616_v14  ;;  %v1132_v23 = vpop.f32.mrf.mxu2  ;;  %v1158_v25 = vpop.f32.mrf.mxu3 }
  0xfd   : > { %1660 = vmatpush.msra.mxu0 %v1615_v17  ;;  %1949 = vmatpush.msra.mxu3 %v1615_v17  ;;  %v1159_v26 = vadd.f32 %v1158_v25, %v1132_v23  ;;  %v1607_v37 = vmax.f32 %v1604_v28, 0.0 }
  0xfe   : > { %1712 = vmatpush.msra.mxu2 %v1614_v18  ;;  %1686 = vmatpush.msra.mxu1 %v1613_v20 }
  0xff   : > { %1661 = vmatpush.msra.mxu0 %v1612_v27  ;;  %1950 = vmatpush.msra.mxu3 %v1612_v27  ;;  %v1083_v32 = vpop.f32.mrf.mxu0  ;;  %v1109_v33 = vpop.f32.mrf.mxu1  ;;  %v1495_v48 = vrot.slane %v1159_v26, 1 }
 0x100   : > { %v1110_v36 = vadd.f32 %v1109_v33, %v1083_v32 }
 0x102   : > { %1934 = vmatmul.msk.f32.vlgmr.msra.gmra.mxu1 %vm1636_vm2, %v1609_v31  ;;  %1931 = vmatmul.msk.f32.vlgmr.msra.gmra.mxu0 %vm1636_vm2, %v1609_v31  ;;  %v1493_v38 = vrot.slane %v1110_v36, 1 }
 0x103   : > { %1937 = vmatmul.msk.f32.vlgmr.msra.gmra.mxu2 %vm1636_vm2, %v1609_v31  ;;  %1932 = vmatmul.msk.f32.vlgmr.msra.gmra.mxu3 %vm1636_vm2, %v1607_v37 }
 0x104   : > { %v1494_v35 = vsel %vm1491_vm3, %v1492_v34, %v1493_v38 }
 0x105   : > { %v3546_v40 = vadd.f32 %v1494_v35, %v3134_v46 }
 0x106   : > { %v1135_v42 = vpop.f32.mrf.mxu2  ;;  %v1161_v47 = vpop.f32.mrf.mxu3 }
 0x107   : > { %v1162_v49 = vadd.f32 %v1161_v47, %v1135_v42 }
 0x109   : > { %v1496_v50 = vrot.slane %v1162_v49, 1  ;;  %v1086_v51 = vpop.f32.mrf.mxu0  ;;  %v1112_v44 = vpop.f32.mrf.mxu1 }
 0x10a   : > { %1935 = vmatmul.msk.f32.gmra.mxu1 %vm1636_vm2, %v1607_v37  ;;  %v1113_v52 = vadd.f32 %v1112_v44, %v1086_v51 }
 0x10b   : > { %1938 = vmatmul.msk.f32.gmra.mxu2 %vm1636_vm2, %v1607_v37  ;;  %v1497_v53 = vsel %vm1491_vm3, %v1495_v48, %v1496_v50  ;;  %1933 = vmatmul.msk.f32.gmra.mxu3 %vm1636_vm2, %v1611_v45 }
 0x10c   : > { %v3555_v46 = vadd.f32 %v1497_v53, %v3184_v1  ;;  %v1504_v54 = vrot.slane %v1113_v52, 1 }
 0x10e   : > { %v1505_v55 = vsel %vm1491_vm3, %v1493_v38, %v1504_v54 }
 0x10f   : > { %v3559_v56 = vadd.f32 %v1505_v55, %v3186_v6 }
 0x110   : > { %v1138_v57 = vpop.f32.mrf.mxu2  ;;  %v1164_v58 = vpop.f32.mrf.mxu3 }
 0x111   : > { %v1165_v22 = vadd.f32 %v1164_v58, %v1138_v57 }
 0x112   : > { %1936 = vmatmul.msk.f32.gmra.mxu1 %vm1636_vm2, %v1611_v45 }
 0x113   : > { %1939 = vmatmul.msk.f32.gmra.mxu2 %vm1636_vm2, %v1611_v45  ;;  %v1506_v60 = vrot.slane %v1165_v22, 1 }
 0x115   : > { %v1507_v61 = vsel %vm1491_vm3, %v1496_v50, %v1506_v60 }
 0x116   : > { %v1525_v62 = vadd.f32 %v1507_v61, %v3242_v24 }
 0x11b   : > { %v1184_v1 = vpop.f32.mrf.mxu0  ;;  %v1210_v63 = vpop.f32.mrf.mxu1 }
 0x11c   : > { %v1211_v0 = vadd.f32 %v1210_v63, %v1184_v1 }
 0x11e   : > { %v1498_v7 = vrot.slane %v1211_v0, 1 }
 0x122   : > { %v1236_v2 = vpop.f32.mrf.mxu2  ;;  %v1262_v4 = vpop.f32.mrf.mxu3 }
 0x123   : > { %v1263_v5 = vadd.f32 %v1262_v4, %v1236_v2 }
 0x125   : > { %v1187_v6 = vpop.f32.mrf.mxu0  ;;  %v1213_v3 = vpop.f32.mrf.mxu1  ;;  %v1501_v14 = vrot.slane %v1263_v5, 1 }
 0x126   : > { %v1214_v9 = vadd.f32 %v1213_v3, %v1187_v6 }
 0x128   : > { %v1499_v10 = vrot.slane %v1214_v9, 1 }
 0x12a   : > { %v1500_v12 = vsel %vm1491_vm3, %v1498_v7, %v1499_v10 }
 0x12b   : > { %v3567_v13 = vadd.f32 %v1500_v12, %v3320_v59 }
 0x12c   : > { %v1239_v8 = vpop.f32.mrf.mxu2  ;;  %v1265_v11 = vpop.f32.mrf.mxu3 }
 0x12d   : > { %v3569_v24 = vadd.f32 %v1265_v11, %v1239_v8 }
 0x12f   : > { %v1502_v15 = vrot.slane %v3569_v24, 1  ;;  %v1190_v17 = vpop.f32.mrf.mxu0  ;;  %v1216_v18 = vpop.f32.mrf.mxu1 }
 0x130   : > { %v1217_v20 = vadd.f32 %v1216_v18, %v1190_v17 }
 0x131   : > { %v1503_v19 = vsel %vm1491_vm3, %v1501_v14, %v1502_v15 }
 0x132   : > { %v3576_v21 = vadd.f32 %v1503_v19, %v3370_v16  ;;  %v1508_v27 = vrot.slane %v1217_v20, 1 }
 0x134   : > { %v1509_v59 = vsel %vm1491_vm3, %v1499_v10, %v1508_v27 }
 0x135   : > { %v3580_v23 = vadd.f32 %v1509_v59, %v3390_v29 }
 0x136   : > { %v1242_v25 = vpop.f32.mrf.mxu2  ;;  %v1268_v28 = vpop.f32.mrf.mxu3 }
 0x137   : > { %v1269_v11 = vadd.f32 %v1268_v28, %v1242_v25 }
 0x139   : > { %v1510_v59 = vrot.slane %v1269_v11, 1 }
 0x13b   : > { %v1511_v28 = vsel %vm1491_vm3, %v1502_v15, %v1510_v59 }
 0x141   : > { %v1288_v26 = vpop.f32.mrf.mxu0  ;;  %v1314_v30 = vpop.f32.mrf.mxu1 }
 0x142   : > { %v1315_v36 = vadd.f32 %v1314_v30, %v1288_v26 }
 0x144   : > { %v1541_v39 = vrot.slane %v1315_v36, 2 }
 0x148   : > { %v1340_v31 = vpop.f32.mrf.mxu2  ;;  %v1366_v32 = vpop.f32.mrf.mxu3 }
 0x149   : > { %v1367_v38 = vadd.f32 %v1366_v32, %v1340_v31 }
 0x14b   : > { %v1291_v33 = vpop.f32.mrf.mxu0  ;;  %v1317_v34 = vpop.f32.mrf.mxu1  ;;  %v1544_v42 = vrot.slane %v1367_v38, 2 }
 0x14c   : > { %v1318_v37 = vadd.f32 %v1317_v34, %v1291_v33 }
 0x14e   : > { %v1542_v16 = vrot.slane %v1318_v37, 2 }
 0x150   : > { %v1543_v29 = vsel %vm1540_vm4, %v1541_v39, %v1542_v16 }
 0x151   : > { %v1569_v45 = vadd.f32 %v1543_v29, %v3546_v40 }
 0x152   : > { %v1343_v35 = vpop.f32.mrf.mxu2  ;;  %v1369_v41 = vpop.f32.mrf.mxu3 }
 0x153   : > { %v1370_v47 = vadd.f32 %v1369_v41, %v1343_v35  ;;  %v1527_v35 = vadd.f32 %v1511_v28, %v3422_v43  ;;  %v1963_v43 = vld [vmem:[%s3629_s8] ss:$0 sm:$0xff] }
 0x155   : > { %v1545_v48 = vrot.slane %v1370_v47, 2  ;;  %v1294_v49 = vpop.f32.mrf.mxu0  ;;  %v1320_v50 = vpop.f32.mrf.mxu1 }
 0x156   : > { %v1321_v44 = vadd.f32 %v1320_v50, %v1294_v49 }
 0x157   : > { %v1546_v51 = vsel %vm1540_vm4, %v1544_v42, %v1545_v48 }
 0x158   : > { %v1570_v52 = vadd.f32 %v1546_v51, %v3555_v46  ;;  %v1553_v54 = vrot.slane %v1321_v44, 2 }
 0x15a   : > { %v1577_v53 = vmax.f32 %v1569_v45, %v1570_v52  ;;  %v1554_v22 = vsel %vm1540_vm4, %v1542_v16, %v1553_v54 }
 0x15b   : > { %v1573_v1 = vadd.f32 %v1554_v22, %v3559_v56 }
 0x15c   : > { %v1346_v55 = vpop.f32.mrf.mxu2  ;;  %v1372_v57 = vpop.f32.mrf.mxu3 }
 0x15d   : > { %v1373_v58 = vadd.f32 %v1372_v57, %v1346_v55 }
 0x15f   : > { %v1555_v60 = vrot.slane %v1373_v58, 2 }
 0x161   : > { %v1556_v61 = vsel %vm1540_vm4, %v1545_v48, %v1555_v60  ;;  %v1964_v60 = vld [vmem:[%s3630_s9] ss:$0 sm:$0xff] }
 0x162   : > { %v1574_v63 = vadd.f32 %v1556_v61, %v1525_v62 }
 0x164   : > { %v1578_v0 = vmax.f32 %v1573_v1, %v1574_v63 }
 0x167   : > { %v1392_v2 = vpop.f32.mrf.mxu0  ;;  %v1418_v4 = vpop.f32.mrf.mxu1 }
 0x168   : > { %v1419_v7 = vadd.f32 %v1418_v4, %v1392_v2 }
 0x16a   : > { %v1547_v14 = vrot.slane %v1419_v7, 2 }
 0x16e   : > { %v1444_v5 = vpop.f32.mrf.mxu2  ;;  %v1470_v40 = vpop.f32.mrf.mxu3 }
 0x16f   : > { %v1395_v6 = vpop.f32.mrf.mxu0  ;;  %v1421_v46 = vpop.f32.mrf.mxu1  ;;  %v1471_v9 = vadd.f32 %v1470_v40, %v1444_v5 }
 0x170   : > { %v1422_v3 = vadd.f32 %v1421_v46, %v1395_v6 }
 0x171   : > { %v1550_v56 = vrot.slane %v1471_v9, 2 }
 0x172   : > { %v1548_v10 = vrot.slane %v1422_v3, 2 }
 0x174   : > { %v1549_v62 = vsel %vm1540_vm4, %v1547_v14, %v1548_v10 }
 0x175   : > { %v1571_v30 = vadd.f32 %v1549_v62, %v3567_v13 }
 0x176   : > { %v1447_v12 = vpop.f32.mrf.mxu2  ;;  %v1473_v8 = vpop.f32.mrf.mxu3 }
 0x177   : > { %v1474_v17 = vadd.f32 %v1473_v8, %v1447_v12  ;;  %v1398_v18 = vpop.f32.mrf.mxu0  ;;  %v1424_v20 = vpop.f32.mrf.mxu1 }
 0x178   : > { %v1425_v27 = vadd.f32 %v1424_v20, %v1398_v18 }
 0x179   : > { %v1551_v19 = vrot.slane %v1474_v17, 2 }
 0x17a   : > { %v1557_v32 = vrot.slane %v1425_v27, 2 }
 0x17b   : > { %v1552_v26 = vsel %vm1540_vm4, %v1550_v56, %v1551_v19 }
 0x17c   : > { %v1572_v31 = vadd.f32 %v1552_v26, %v3576_v21  ;;  %v1558_v39 = vsel %vm1540_vm4, %v1548_v10, %v1557_v32 }
 0x17d   : > { %v1575_v21 = vadd.f32 %v1558_v39, %v3580_v23 }
 0x17e   : > { %v1579_v33 = vmax.f32 %v1571_v30, %v1572_v31  ;;  %v1450_v34 = vpop.f32.mrf.mxu2  ;;  %v1476_v25 = vpop.f32.mrf.mxu3 }
 0x17f   : > { %v1477_v36 = vadd.f32 %v1476_v25, %v1450_v34  ;;  %v1688_v37 = vpop.f32.mrf.mxu1  ;;  %v1663_v50 = vpop.f32.mrf.mxu0 }
 0x180   : > { %v1581_v38 = vmax.f32 %v1577_v53, %v1579_v33  ;;  %v1726_v49 = vrot.slane %v1688_v37, 1 }
 0x181   : > { %v1559_v16 = vrot.slane %v1477_v36, 2 }
 0x182   : > { %v1587_v58 = vadd.f32 %v1963_v43, %v1581_v38 }
 0x183   : > { %v1560_v13 = vsel %vm1540_vm4, %v1551_v19, %v1559_v16 }
 0x184   : > { %v1576_v41 = vadd.f32 %v1560_v13, %v1527_v35 }
 0x186   : > { %v1580_v42 = vmax.f32 %v1575_v21, %v1576_v41  ;;  %v1714_v47 = vpop.f32.mrf.mxu2  ;;  %v1666_v29 = vpop.f32.mrf.mxu3 }
 0x187   : > { %v1691_v24 = vpop.f32.mrf.mxu1  ;;  %v1738_v52 = vrot.slane %v1714_v47, 2 }
 0x188   : > { %v1582_v48 = vmax.f32 %v1578_v0, %v1580_v42  ;;  %v1727_v15 = vrot.slane %v1691_v24, 1 }
 0x18a   : > { %v1728_v51 = vsel %vm1491_vm3, %v1726_v49, %v1727_v15  ;;  %v1588_v40 = vadd.f32 %v1963_v43, %v1582_v48 }
 0x18b   : > { %v1733_v54 = vadd.f32 %v1728_v51, %v1663_v50 }
 0x18e   : > { %v1717_v44 = vpop.f32.mrf.mxu2  ;;  %v1669_v45 = vpop.f32.mrf.mxu3 }
 0x18f   : > { %v1739_v23 = vrot.slane %v1717_v44, 2  ;;  %v1694_v53 = vpop.f32.mrf.mxu1 }
 0x190   : > { %v1729_v57 = vrot.slane %v1694_v53, 1 }
 0x191   : > { %v1740_v55 = vsel %vm1540_vm4, %v1738_v52, %v1739_v23 }
 0x192   : > { %v1745_v22 = vadd.f32 %v1740_v55, %v1733_v54  ;;  %v1730_v1 = vsel %vm1491_vm3, %v1727_v15, %v1729_v57 }
 0x193   : > { %v1734_v4 = vadd.f32 %v1730_v1, %v1666_v29 }
 0x194   : > { %v1747_v61 = vadd.f32 %v1745_v22, %v1587_v58 }
 0x196   : > { %v1753_v63 = vadd.f32 %v1964_v60, %v1747_v61  ;;  %v1720_v0 = vpop.f32.mrf.mxu2 }
 0x197   : > { %v1741_v2 = vrot.slane %v1720_v0, 2 }
 0x198   : > { %1755 = vst [vmem:[%s413_s14] sm:$0xff] %v1753_v63  ;;  %v1765_v7 = vmul.f32 %v1753_v63, %v1753_v63 }
 0x199   : > { %v1742_v5 = vsel %vm1540_vm4, %v1739_v23, %v1741_v2 }
 0x19a   : > { %v1746_v6 = vadd.f32 %v1742_v5, %v1734_v4 }
 0x19c   : > { %v1748_v46 = vadd.f32 %v1746_v6, %v1588_v40 }
 0x19e   : > { %v1754_v3 = vadd.f32 %v1964_v60, %v1748_v46 }
 0x1a0   : > { %1756 = vst [vmem:[%s413_s14 + $0x8] sm:$0xff] %v1754_v3  ;;  %v1757_v9 = vadd.f32 %v1754_v3, %v1753_v63  ;;  %v1766_v10 = vmul.f32 %v1754_v3, %v1754_v3 }
 0x1a2   : > { %v1758_v12 = vrot.slane %v1757_v9, 4  ;;  %v1767_v8 = vadd.f32 %v1766_v10, %v1765_v7 }
 0x1a4   : > { %v1759_v11 = vadd.f32 %v1758_v12, %v1757_v9  ;;  %v1768_v14 = vrot.slane %v1767_v8, 4 }
 0x1a6   : > { %v1760_v17 = vrot.slane %v1759_v11, 2  ;;  %v1769_v18 = vadd.f32 %v1768_v14, %v1767_v8 }
 0x1a8   : > { %v1761_v20 = vadd.f32 %v1760_v17, %v1759_v11  ;;  %v1770_v56 = vrot.slane %v1769_v18, 2 }
 0x1aa   : > { %v1762_v62 = vrot.slane %v1761_v20, 1  ;;  %v1771_v19 = vadd.f32 %v1770_v56, %v1769_v18 }
 0x1ac   : > { %v1763_v27 = vadd.f32 %v1762_v62, %v1761_v20  ;;  %v1772_v59 = vrot.slane %v1771_v19, 1 }
 0x1ae   : > { %1764 = vst [vmem:[%s417_s12] sm:$0x1] %v1763_v27  ;;  %v1773_v26 = vadd.f32 %v1772_v59, %v1771_v19 }
 0x1b0   : > { %1774 = vst [vmem:[%s417_s12 + $0x1] sm:$0x1] %v1773_v26 }
 0x1b1 PF: > { %s22_s17 = sadd.s32 1, %s1971_s17  }
 0x1b2   : > { %p19_p4 = scmp.ge.s32.totalorder %s22_s17, 4  }
 0x1b4   :  { %21 = sbr.rel (!%p19_p4) target bundleno = 1 (0x1), region = 105 }

// kernel: attention_block_forward.3
= control target key start
LH: loop header
LB: loop body
LE: loop exit
PB: predicated region body
PF: predicated region fallthrough
CT: control target
= control target key end

     0   :  { %s491_s21 = smov 0   ;;  %s573_s0 = inlined_call_operand.vmem [shape: f32[2,16,128], index: 0, kind: input, shape index: {}]   ;;  %s574_s1 = inlined_call_operand.vmem [shape: f32[2,16,64], index: 1, kind: input, shape index: {}]   ;;  %s575_s2 = inlined_call_operand.vmem [shape: f32[1,128], index: 2, kind: input, shape index: {}]   ;;  %s576_s3 = inlined_call_operand.vmem [shape: f32[1,128], index: 3, kind: input, shape index: {}]   ;;  %s577_s4 = inlined_call_operand.vmem [shape: f32[128,64], index: 4, kind: input, shape index: {}]   ;;  %s578_s5 = inlined_call_operand.vmem [shape: f32[1,64], index: 5, kind: input, shape index: {}]   ;;  %s579_s6 = inlined_call_operand.vmem [shape: f32[2,16,64], index: 6, kind: output, shape index: {}]  }
   0x1 LB: > { %s405_s22 = sadd.s32 4294967295, %s454_s21   ;;  %p409_p0 = scmp.ge.s32.totalorder %s454_s21, 1  ;;  %s454_s21 = sphi %s491_s21, %s16_s21  }
   0x2   : > { %p222_p1 = scmp.lt.s32.totalorder %s454_s21, 3 }
   0x4   : > { %p223_p2 = pnand %p409_p0, %p222_p1 }
   0x5   : > { %p257_p3 = scmp.lt.s32.totalorder (!%p223_p2), %s405_s22, 1 }
   0x6   : > { %226 = sbr.rel (%p223_p2) target bundleno = 175 (0xaf), region = 44 }
   0xb   : > { %v303_v0 = vld [vmem:[%s577_s4 + $0x78] sm:$0xff]  ;;  %v302_v1 = vld [vmem:[%s577_s4 + $0x70] sm:$0xff]  ;;  %v301_v2 = vld [vmem:[%s577_s4 + $0x68] sm:$0xff]  ;;  %s581_s22 = smov (!%p257_p3, %s405_s22), 1  ;;  %vm335_vm0 = vcmask 523264  }
   0xc   : > { %308 = vmatpush.msra.mxu0 %v303_v0  ;;  %421 = vmatpush.msra.mxu1 %v303_v0  ;;  %v300_v3 = vld [vmem:[%s577_s4 + $0x60] sm:$0xff]  ;;  %v299_v4 = vld [vmem:[%s577_s4 + $0x58] sm:$0xff]  ;;  %v298_v5 = vld [vmem:[%s577_s4 + $0x50] sm:$0xff]  ;;  %s520_s13 = sshll.u32 %s581_s22, 4 }
   0xd   : > { %v297_v6 = vld [vmem:[%s577_s4 + $0x48] sm:$0xff]  ;;  %v296_v7 = vld [vmem:[%s577_s4 + $0x40] sm:$0xff]  ;;  %v295_v8 = vld [vmem:[%s577_s4 + $0x38] sm:$0xff]  ;;  %s261_s20 = scalar_lea.vmem %s573_s0, %s520_s13  ;;  %s266_s19 = scalar_lea.vmem %s574_s1, %s520_s13 }
   0xe   : > { %309 = vmatpush.msra.mxu0 %v302_v1  ;;  %422 = vmatpush.msra.mxu1 %v302_v1  ;;  %v294_v9 = vld [vmem:[%s577_s4 + $0x30] sm:$0xff]  ;;  %v445_v10 = vld [vmem:[%s575_s2] ss:$0 sm:$0xff]  ;;  %v273_v12 = vld [vmem:[%s261_s20 + $0x8] sm:$0xff]  ;;  %s271_s25 = scalar_lea.vmem %s579_s6, %s520_s13 }
   0xf   : > { %v272_v11 = vld [vmem:[%s261_s20] sm:$0xff]  ;;  %v293_v13 = vld [vmem:[%s577_s4 + $0x28] sm:$0xff]  ;;  %v279_v17 = vmul.f32 %v445_v10, %v273_v12  ;;  %v291_v18 = vld [vmem:[%s577_s4 + $0x18] sm:$0xff] }
  0x10   : > { %310 = vmatpush.msra.mxu0 %v301_v2  ;;  %423 = vmatpush.msra.mxu1 %v301_v2  ;;  %v292_v14 = vld [vmem:[%s577_s4 + $0x20] sm:$0xff]  ;;  %v278_v15 = vmul.f32 %v445_v10, %v272_v11  ;;  %v290_v19 = vld [vmem:[%s577_s4 + $0x10] sm:$0xff]  ;;  %v289_v22 = vld [vmem:[%s577_s4 + $0x8] sm:$0xff] }
  0x11   : > { %v446_v16 = vld [vmem:[%s576_s3] ss:$0 sm:$0xff]  ;;  %v332_v30 = vld [vmem:[%s266_s19 + $0x8] sm:$0xff] }
  0x12   : > { %311 = vmatpush.msra.mxu0 %v300_v3  ;;  %424 = vmatpush.msra.mxu1 %v300_v3  ;;  %v284_v20 = vadd.f32 %v446_v16, %v278_v15  ;;  %v285_v21 = vadd.f32 %v446_v16, %v279_v17  ;;  %v288_v23 = vld [vmem:[%s577_s4] sm:$0xff] }
  0x13   : > { %v447_v26 = vld [vmem:[%s578_s5] ss:$0 sm:$0xff] }
  0x14   : > { %312 = vmatpush.msra.mxu0 %v299_v4  ;;  %425 = vmatpush.msra.mxu1 %v299_v4  ;;  %v286_v24 = vmax.f32 %v284_v20, 0.0  ;;  %v287_v25 = vmax.f32 %v285_v21, 0.0  ;;  %v331_v28 = vld [vmem:[%s266_s19] sm:$0xff] }
  0x16   : > { %313 = vmatpush.msra.mxu0 %v298_v5  ;;  %426 = vmatpush.msra.mxu1 %v298_v5 }
  0x18   : > { %314 = vmatpush.msra.mxu0 %v297_v6  ;;  %427 = vmatpush.msra.mxu1 %v297_v6 }
  0x1a   : > { %315 = vmatpush.msra.mxu0 %v296_v7  ;;  %428 = vmatpush.msra.mxu1 %v296_v7 }
  0x1c   : > { %316 = vmatpush.msra.mxu0 %v295_v8  ;;  %429 = vmatpush.msra.mxu1 %v295_v8 }
  0x1e   : > { %317 = vmatpush.msra.mxu0 %v294_v9  ;;  %430 = vmatpush.msra.mxu1 %v294_v9 }
  0x20   : > { %318 = vmatpush.msra.mxu0 %v293_v13  ;;  %431 = vmatpush.msra.mxu1 %v293_v13 }
  0x22   : > { %319 = vmatpush.msra.mxu0 %v292_v14  ;;  %432 = vmatpush.msra.mxu1 %v292_v14 }
  0x24   : > { %320 = vmatpush.msra.mxu0 %v291_v18  ;;  %433 = vmatpush.msra.mxu1 %v291_v18 }
  0x26   : > { %321 = vmatpush.msra.mxu0 %v290_v19  ;;  %434 = vmatpush.msra.mxu1 %v290_v19 }
  0x28   : > { %322 = vmatpush.msra.mxu0 %v289_v22  ;;  %435 = vmatpush.msra.mxu1 %v289_v22 }
  0x2a   : > { %323 = vmatpush.msra.mxu0 %v288_v23  ;;  %436 = vmatpush.msra.mxu1 %v288_v23 }
  0x2b   : > { %324 = vmatmul.f32.vlgmr.msra.gmra.mxu0 %v286_v24  ;;  %327 = vmatmul.f32.vlgmr.msra.gmra.mxu1 %v287_v25 }
  0xa8   : > { %v325_v27 = vpop.f32.mrf.mxu0  ;;  %v328_v29 = vpop.f32.mrf.mxu1 }
  0xa9   : > { %v326_v31 = vadd.f32 %v447_v26, %v325_v27  ;;  %v329_v32 = vadd.f32 %v447_v26, %v328_v29 }
  0xab   : > { %v333_v33 = vmul.f32 %v331_v28, %v326_v31  ;;  %v334_v34 = vmul.f32 %v332_v30, %v329_v32 }
  0xad   : > { %336 = vst.msk [vmem:[%s271_s25] sm:$0xff] %vm335_vm0, %v333_v33 }
  0xae   : > { %337 = vst.msk [vmem:[%s271_s25 + $0x8] sm:$0xff] %vm335_vm0, %v334_v34 }
  0xaf PF: > { %s16_s21 = sadd.s32 1, %s454_s21  }
  0xb0   : > { %p13_p4 = scmp.ge.s32.totalorder %s16_s21, 4  }
  0xb2   :  { %15 = sbr.rel (!%p13_p4) target bundleno = 1 (0x1), region = 77 }

</bundles_post_ra>
